<compile_context>
chip_gen: v7x
topology: tpu7x:2x2x1
jax: 0.10.0
libtpu: 0.0.40
codegen_flags: <defaults>
</compile_context>

<pallas_src>
import functools

import jax
import jax.numpy as jnp
from jax.experimental import pallas as pl
from jax.experimental.pallas import tpu as pltpu

_LANE = 128
_VMEM_LIMIT = 48 * 1024 * 1024  # leaves headroom on v7x's 64 MiB VMEM


def _round_up(x, m):
    return ((x + m - 1) // m) * m


def _pick_tile(dim, candidates):
    for c in candidates:
        if dim % c == 0:
            return c
    return dim


# ----------------------------------------------------------------------------
# Tiled GEMM kernel: (tm, tk) x (tk, tn) with f32 accumulation and a fused
# bias (+ optional tanh) epilogue on the last K step.
# ----------------------------------------------------------------------------
def _gemm_kernel(lhs_ref, rhs_ref, bias_ref, o_ref, acc_ref, *, activation):
    k = pl.program_id(2)

    @pl.when(k == 0)
    def _init():
        acc_ref[...] = jnp.zeros_like(acc_ref)

    acc_ref[...] += jnp.dot(lhs_ref[...], rhs_ref[...],
                            preferred_element_type=jnp.float32)

    @pl.when(k == pl.num_programs(2) - 1)
    def _finalize():
        y = acc_ref[...] + bias_ref[...]
        if activation == "tanh":
            y = jnp.tanh(y)
        o_ref[...] = y.astype(o_ref.dtype)


def gemm_bias_act(lhs, rhs, bias, activation=None):
    """(M, K) x (Kp, Cp) + (1, Cp) -> (M, Cp) in f32.

    rhs / bias are pre-padded (Kp, Cp are multiples of 128).  lhs is zero-padded
    here to (Mp, Kp) and cast to bf16 for the MXU.
    """
    M, K = lhs.shape
    Kp, Cp = rhs.shape
    assert Kp >= K and Kp % _LANE == 0 and Cp % _LANE == 0

    Mp = _round_up(M, 16)
    tm = _pick_tile(Mp, (512, 256, 128, 64, 32, 16))
    tk = _pick_tile(Kp, (512, 256, 128))
    tn = _pick_tile(Cp, (256, 128))  # 256 maps one full MXU pass on v6e/v7x

    lhs = lhs.astype(jnp.bfloat16)
    if Mp != M or Kp != K:
        lhs = jnp.pad(lhs, ((0, Mp - M), (0, Kp - K)))

    grid = (Mp // tm, Cp // tn, Kp // tk)
    cost = pl.CostEstimate(
        flops=2 * Mp * Kp * Cp,
        transcendentals=Mp * Cp if activation == "tanh" else 0,
        bytes_accessed=Mp * Kp * 2 + Kp * Cp * 2 + Mp * Cp * 4)

    out = pl.pallas_call(
        functools.partial(_gemm_kernel, activation=activation),
        out_shape=jax.ShapeDtypeStruct((Mp, Cp), jnp.float32),
        grid_spec=pltpu.PrefetchScalarGridSpec(
            num_scalar_prefetch=0,
            grid=grid,
            in_specs=[
                pl.BlockSpec((tm, tk), lambda i, j, k: (i, k)),
                pl.BlockSpec((tk, tn), lambda i, j, k: (k, j)),
                pl.BlockSpec((1, tn), lambda i, j, k: (0, j)),
            ],
            out_specs=pl.BlockSpec((tm, tn), lambda i, j, k: (i, j)),
            scratch_shapes=[pltpu.VMEM((tm, tn), jnp.float32)],
        ),
        compiler_params=pltpu.CompilerParams(
            dimension_semantics=("parallel", "parallel", "arbitrary"),
            vmem_limit_bytes=_VMEM_LIMIT),
        cost_estimate=cost,
    )(lhs, rhs, bias)
    return out[:M]


# ----------------------------------------------------------------------------
# InstanceNorm2d(affine=False) on an (N, H*W, C) view, channels on the lane
# axis.  ReLU or the residual add are fused into the same kernel.
# ----------------------------------------------------------------------------
def _in_kernel(y_ref, o_ref, *, relu, eps):
    y = y_ref[0].astype(jnp.float32)                      # (HW, tc)
    mean = jnp.mean(y, axis=0, keepdims=True)
    var = jnp.mean(jnp.square(y - mean), axis=0, keepdims=True)  # biased (PyTorch IN)
    out = (y - mean) * jax.lax.rsqrt(var + eps)
    if relu:
        out = jnp.maximum(out, 0.0)
    o_ref[0] = out.astype(o_ref.dtype)


def _in_res_kernel(y_ref, res_ref, o_ref, *, eps):
    y = y_ref[0].astype(jnp.float32)
    mean = jnp.mean(y, axis=0, keepdims=True)
    var = jnp.mean(jnp.square(y - mean), axis=0, keepdims=True)
    out = (y - mean) * jax.lax.rsqrt(var + eps) + res_ref[0].astype(jnp.float32)
    o_ref[0] = out.astype(o_ref.dtype)


def instance_norm_nhwc(y, residual=None, relu=False, eps=1e-5,
                       out_dtype=jnp.bfloat16):
    """y: (N, H, W, C) f32 conv output.  Returns bf16 NHWC activation."""
    N, H, W, C = y.shape
    HW = H * W
    # TODO(synk): for very large H*W, tile the spatial axis with a two-pass
    # (stats accumulate / normalize) grid instead of one full-spatial block.
    tc = _pick_tile(C, (256, 128))
    spec = pl.BlockSpec((1, HW, tc), lambda n, c: (n, 0, c))
    y2 = y.reshape(N, HW, C)

    if residual is None:
        kernel = functools.partial(_in_kernel, relu=relu, eps=eps)
        args, in_specs = (y2,), [spec]
    else:
        kernel = functools.partial(_in_res_kernel, eps=eps)
        args, in_specs = (y2, residual.reshape(N, HW, C)), [spec, spec]

    out = pl.pallas_call(
        kernel,
        out_shape=jax.ShapeDtypeStruct((N, HW, C), out_dtype),
        grid_spec=pltpu.PrefetchScalarGridSpec(
            num_scalar_prefetch=0,
            grid=(N, C // tc),
            in_specs=in_specs,
            out_specs=spec,
        ),
        compiler_params=pltpu.CompilerParams(
            dimension_semantics=("parallel", "parallel"),
            vmem_limit_bytes=_VMEM_LIMIT),
    )(*args)
    return out.reshape(N, H, W, C)


# ----------------------------------------------------------------------------
# Conv2d as NHWC im2col + tiled GEMM.
# ----------------------------------------------------------------------------
def conv_nhwc(x, w_mat, bias, kh, kw, stride, pad, activation=None):
    """x: (N, H, W, Cin) NHWC (Cin possibly zero-padded).
    w_mat: (Kp, Coutp) bf16 with K ordered tap-major / channel-minor (matches
    the patch construction below);  bias: (1, Coutp) f32."""
    N, H, W, Cin = x.shape
    pt, pb, pleft, pright = pad
    xp = jnp.pad(x, ((0, 0), (pt, pb), (pleft, pright), (0, 0))).astype(jnp.bfloat16)
    Hp, Wp = H + pt + pb, W + pleft + pright
    Ho = (Hp - kh) // stride + 1
    Wo = (Wp - kw) // stride + 1
    # TODO(synk): fold the tap loop into the GEMM's K reduction with manual DMA
    # from the padded NHWC tensor instead of materializing the kh*kw-amplified
    # im2col patch matrix in HBM.
    taps = []
    for i in range(kh):
        for j in range(kw):
            taps.append(xp[:, i:i + stride * Ho:stride, j:j + stride * Wo:stride, :])
    patches = jnp.concatenate(taps, axis=-1).reshape(N * Ho * Wo, kh * kw * Cin)
    y = gemm_bias_act(patches, w_mat, bias, activation=activation)
    return y.reshape(N, Ho, Wo, w_mat.shape[1])


# ----------------------------------------------------------------------------
# ConvTranspose2d(k=3, s=2, p=1, output_padding=1) via sub-pixel decomposition:
# 4 stride-1 convs (1x1, 1x2, 2x1, 2x2) interleaved into the 2x-upsampled grid.
# ----------------------------------------------------------------------------
_PHASE_META = (((1, 1), (0, 0, 0, 0)),   # (even row, even col)
               ((1, 2), (0, 0, 0, 1)),   # (even row, odd col)
               ((2, 1), (0, 1, 0, 0)),   # (odd row, even col)
               ((2, 2), (0, 1, 0, 1)))   # (odd row, odd col)


def upsample_conv_transpose(x, phase_params):
    outs = []
    for (w_mat, bias), ((kh, kw), pad) in zip(phase_params, _PHASE_META):
        outs.append(conv_nhwc(x, w_mat, bias, kh, kw, 1, pad))
    y = jnp.stack(outs, axis=3)                           # (N, H, W, 4, Cp)
    N, H, W, _, Cp = y.shape
    y = y.reshape(N, H, W, 2, 2, Cp)
    y = jnp.transpose(y, (0, 1, 3, 2, 4, 5))
    return y.reshape(N, 2 * H, 2 * W, Cp)


# ----------------------------------------------------------------------------
# One-time parameter preprocessing (weight re-layout, channel padding, bf16).
# ----------------------------------------------------------------------------
def _prep_conv(w, b, c_in_act):
    """Torch conv weight (C_out, C_in, kh, kw) -> ((Kp, Coutp) bf16, (1, Coutp) f32)."""
    C_out, C_in, kh, kw = w.shape
    Coutp = _round_up(C_out, _LANE)
    K = kh * kw * c_in_act
    Kp = _round_up(K, _LANE)
    wt = jnp.transpose(w, (2, 3, 1, 0))                               # (kh, kw, Cin, Cout)
    wt = jnp.pad(wt, ((0, 0), (0, 0), (0, c_in_act - C_in), (0, Coutp - C_out)))
    w_mat = jnp.pad(wt.reshape(K, Coutp), ((0, Kp - K), (0, 0))).astype(jnp.bfloat16)
    bias = jnp.pad(b, (0, Coutp - C_out)).astype(jnp.float32).reshape(1, Coutp)
    return w_mat, bias


def _prep_convT(w, b, c_in_act):
    """Torch ConvTranspose weight (C_in, C_out, 3, 3) -> 4 sub-pixel conv GEMMs."""
    wc = jnp.transpose(w, (1, 0, 2, 3))                   # (C_out, C_in, 3, 3)
    w_ee = wc[:, :, 1:2, 1:2]
    w_eo = jnp.stack([wc[:, :, 1, 2], wc[:, :, 1, 0]], axis=-1)[:, :, None, :]
    w_oe = jnp.stack([wc[:, :, 2, 1], wc[:, :, 0, 1]], axis=-1)[:, :, :, None]
    w_oo = jnp.stack([jnp.stack([wc[:, :, 2, 2], wc[:, :, 2, 0]], axis=-1),
                      jnp.stack([wc[:, :, 0, 2], wc[:, :, 0, 0]], axis=-1)], axis=-2)
    return tuple(_prep_conv(wp, b, c_in_act) for wp in (w_ee, w_eo, w_oe, w_oo))


def prepare_params(raw, in_channels):
    p = {"c1": _prep_conv(*raw["c1"], in_channels),
         "c2": _prep_conv(*raw["c2"], 128),
         "c3": _prep_conv(*raw["c3"], 128)}
    for r in range(9):
        w1, b1, w2, b2 = raw[f"res{r}"]
        p[f"res{r}"] = _prep_conv(w1, b1, 256) + _prep_conv(w2, b2, 256)
    p["t1"] = _prep_convT(*raw["t1"], 256)
    p["t2"] = _prep_convT(*raw["t2"], 128)
    p["c4"] = _prep_conv(*raw["c4"], 128)
    return p


# ----------------------------------------------------------------------------
# Deterministic synthetic parameters (shapes match Generator.__init__).
# ----------------------------------------------------------------------------
def _conv_param(key, c_out, c_in, k):
    k1, k2 = jax.random.split(key)
    w = jax.random.normal(k1, (c_out, c_in, k, k), jnp.float32) / jnp.sqrt(c_in * k * k)
    b = 0.01 * jax.random.normal(k2, (c_out,), jnp.float32)
    return w, b


def _convT_param(key, c_in, c_out, k):
    k1, k2 = jax.random.split(key)
    w = jax.random.normal(k1, (c_in, c_out, k, k), jnp.float32) / jnp.sqrt(c_in * k * k)
    b = 0.01 * jax.random.normal(k2, (c_out,), jnp.float32)
    return w, b


def init_generator_params(key, in_channels, out_channels):
    keys = jax.random.split(key, 24)
    raw = {"c1": _conv_param(keys[0], 64, in_channels, 7),
           "c2": _conv_param(keys[1], 128, 64, 3),
           "c3": _conv_param(keys[2], 256, 128, 3)}
    for r in range(9):
        raw[f"res{r}"] = (_conv_param(keys[3 + 2 * r], 256, 256, 3)
                          + _conv_param(keys[4 + 2 * r], 256, 256, 3))
    raw["t1"] = _convT_param(keys[21], 256, 128, 3)
    raw["t2"] = _convT_param(keys[22], 128, 64, 3)
    raw["c4"] = _conv_param(keys[23], out_channels, 64, 7)
    return raw


# ----------------------------------------------------------------------------
# Generator forward pass (matches the PyTorch nn.Sequential).
# ----------------------------------------------------------------------------
def generator_forward(params, x_nchw, *, out_channels):
    x = jnp.transpose(x_nchw, (0, 2, 3, 1))               # NHWC once at entry

    w, b = params["c1"]
    x = instance_norm_nhwc(conv_nhwc(x, w, b, 7, 7, 1, (3, 3, 3, 3)), relu=True)
    w, b = params["c2"]
    x = instance_norm_nhwc(conv_nhwc(x, w, b, 3, 3, 2, (1, 1, 1, 1)), relu=True)
    w, b = params["c3"]
    x = instance_norm_nhwc(conv_nhwc(x, w, b, 3, 3, 2, (1, 1, 1, 1)), relu=True)

    for r in range(9):                                    # 9 x ResidualBlock(256)
        w1, b1, w2, b2 = params[f"res{r}"]
        h = instance_norm_nhwc(conv_nhwc(x, w1, b1, 3, 3, 1, (1, 1, 1, 1)), relu=True)
        x = instance_norm_nhwc(conv_nhwc(h, w2, b2, 3, 3, 1, (1, 1, 1, 1)), residual=x)

    x = instance_norm_nhwc(upsample_conv_transpose(x, params["t1"]), relu=True)
    x = instance_norm_nhwc(upsample_conv_transpose(x, params["t2"]), relu=True)

    w, b = params["c4"]
    y = conv_nhwc(x, w, b, 7, 7, 1, (3, 3, 3, 3), activation="tanh")  # fused tanh
    return jnp.transpose(y[..., :out_channels], (0, 3, 1, 2))         # back to NCHW


if __name__ == "__main__":
    key = jax.random.PRNGKey(0)
    k_params, k_x = jax.random.split(key)

    in_channels, out_channels = 3, 3
    N, H, W = 2, 16, 16

    raw = init_generator_params(k_params, in_channels, out_channels)
    params = prepare_params(raw, in_channels)              # hoisted weight re-layout
    x = jax.random.normal(k_x, (N, in_channels, H, W), jnp.float32)

    fwd = jax.jit(functools.partial(generator_forward, out_channels=out_channels))
    y = jax.block_until_ready(fwd(params, x))

    assert y.shape == (N, out_channels, H, W), y.shape
    assert bool(jnp.all(jnp.isfinite(y)))
    assert bool(jnp.all(jnp.abs(y) <= 1.0))                # tanh range
    print("KERNEL_OK")
</pallas_src>

<mosaic_0001>
module attributes {stable_mosaic.version = 11 : i64} {
  func.func @_gemm_kernel(%arg0: i32, %arg1: i32, %arg2: i32, %arg3: memref<512x256xbf16, #tpu.memory_space<vmem>>, %arg4: memref<256x128xbf16, #tpu.memory_space<vmem>>, %arg5: memref<1x128xf32, #tpu.memory_space<vmem>>, %arg6: memref<512x128xf32, #tpu.memory_space<vmem>>, %arg7: memref<512x128xf32, #tpu.memory_space<vmem>>) attributes {dimension_semantics = [#tpu.dimension_semantics<parallel>, #tpu.dimension_semantics<parallel>, #tpu.dimension_semantics<arbitrary>], iteration_bounds = array<i64: 1, 1, 1>, scalar_prefetch = 0 : i64, scratch_operands = 1 : i64, tpu.core_type = #tpu.core_type<tc>, window_params = [{transform_indices = @transform_0, window_bounds = array<i64: 512, 256>}, {transform_indices = @transform_1, window_bounds = array<i64: 256, 128>}, {transform_indices = @transform_2, window_bounds = array<i64: 1, 128>}, {transform_indices = @transform_3, window_bounds = array<i64: 512, 128>}]} {
    %c0_i32 = arith.constant 0 : i32
    %0 = arith.cmpi eq, %arg2, %c0_i32 : i32
    %1 = arith.extui %0 : i1 to i32
    %c0_i32_0 = arith.constant 0 : i32
    %2 = arith.cmpi ne, %1, %c0_i32_0 : i32
    scf.if %2 {
      %cst_10 = arith.constant 0.000000e+00 : f32
      %12 = vector.broadcast %cst_10 : f32 to vector<512x128xf32>
      %c0_11 = arith.constant 0 : index
      %c0_12 = arith.constant 0 : index
      %13 = vector.load %arg7[%c0_11, %c0_12] : memref<512x128xf32, #tpu.memory_space<vmem>>, vector<512x128xf32>
      tpu.vector_store %arg7[%c0_11, %c0_12], %12 {strides = array<i32>} : memref<512x128xf32, #tpu.memory_space<vmem>>, vector<512x128xf32>,
    } else {
    }
    %c0 = arith.constant 0 : index
    %c0_1 = arith.constant 0 : index
    %3 = vector.load %arg7[%c0, %c0_1] : memref<512x128xf32, #tpu.memory_space<vmem>>, vector<512x128xf32>
    %c0_2 = arith.constant 0 : index
    %c0_3 = arith.constant 0 : index
    %4 = vector.load %arg3[%c0_2, %c0_3] : memref<512x256xbf16, #tpu.memory_space<vmem>>, vector<512x256xbf16>
    %c0_4 = arith.constant 0 : index
    %c0_5 = arith.constant 0 : index
    %5 = vector.load %arg4[%c0_4, %c0_5] : memref<256x128xbf16, #tpu.memory_space<vmem>>, vector<256x128xbf16>
    %cst = arith.constant dense<0.000000e+00> : vector<512x128xf32>
    %6 = tpu.matmul %4, %5, %cst {dimension_numbers = #tpu.dot_dimension_numbers<[1], [0], [0], [1], [0, 0, 1, 1], [], []>} : vector<512x256xbf16>, vector<256x128xbf16>, vector<512x128xf32> -> vector<512x128xf32>
    %7 = arith.addf %3, %6 : vector<512x128xf32>
    %c0_6 = arith.constant 0 : index
    %c0_7 = arith.constant 0 : index
    %8 = vector.load %arg7[%c0_6, %c0_7] : memref<512x128xf32, #tpu.memory_space<vmem>>, vector<512x128xf32>
    tpu.vector_store %arg7[%c0_6, %c0_7], %7 {strides = array<i32>} : memref<512x128xf32, #tpu.memory_space<vmem>>, vector<512x128xf32>,
    %c0_i32_8 = arith.constant 0 : i32
    %9 = arith.cmpi eq, %arg2, %c0_i32_8 : i32
    %10 = arith.extui %9 : i1 to i32
    %c0_i32_9 = arith.constant 0 : i32
    %11 = arith.cmpi ne, %10, %c0_i32_9 : i32
    scf.if %11 {
      %c0_10 = arith.constant 0 : index
      %c0_11 = arith.constant 0 : index
      %12 = vector.load %arg7[%c0_10, %c0_11] : memref<512x128xf32, #tpu.memory_space<vmem>>, vector<512x128xf32>
      %c0_12 = arith.constant 0 : index
      %c0_13 = arith.constant 0 : index
      %13 = vector.load %arg5[%c0_12, %c0_13] : memref<1x128xf32, #tpu.memory_space<vmem>>, vector<1x128xf32>
      %14 = vector.broadcast %13 : vector<1x128xf32> to vector<512x128xf32>
      %15 = arith.addf %12, %14 : vector<512x128xf32>
      %c0_14 = arith.constant 0 : index
      %c0_15 = arith.constant 0 : index
      %16 = vector.load %arg6[%c0_14, %c0_15] : memref<512x128xf32, #tpu.memory_space<vmem>>, vector<512x128xf32>
      tpu.vector_store %arg6[%c0_14, %c0_15], %15 {strides = array<i32>} : memref<512x128xf32, #tpu.memory_space<vmem>>, vector<512x128xf32>,
    } else {
    }
    return
  }
  func.func @transform_0(%arg0: i32, %arg1: i32, %arg2: i32) -> (i32, i32) {
    %c0_i32 = arith.constant 0 : i32
    return %arg0, %arg2 : i32, i32
  }
  func.func @transform_1(%arg0: i32, %arg1: i32, %arg2: i32) -> (i32, i32) {
    %c0_i32 = arith.constant 0 : i32
    return %arg2, %arg1 : i32, i32
  }
  func.func @transform_2(%arg0: i32, %arg1: i32, %arg2: i32) -> (i32, i32) {
    %c0_i32 = arith.constant 0 : i32
    %c0_i32_0 = arith.constant 0 : i32
    return %c0_i32, %arg1 : i32, i32
  }
  func.func @transform_3(%arg0: i32, %arg1: i32, %arg2: i32) -> (i32, i32) {
    %c0_i32 = arith.constant 0 : i32
    return %arg0, %arg1 : i32, i32
  }
}

module attributes {stable_mosaic.version = 11 : i64} {
  func.func @_in_kernel(%arg0: i32, %arg1: i32, %arg2: memref<1x256x128xf32, #tpu.memory_space<vmem>>, %arg3: memref<1x256x128xbf16, #tpu.memory_space<vmem>>) attributes {dimension_semantics = [#tpu.dimension_semantics<parallel>, #tpu.dimension_semantics<parallel>], iteration_bounds = array<i64: 2, 1>, scalar_prefetch = 0 : i64, scratch_operands = 0 : i64, tpu.core_type = #tpu.core_type<tc>, window_params = [{transform_indices = @transform_0, window_bounds = array<i64: 1, 256, 128>}, {transform_indices = @transform_1, window_bounds = array<i64: 1, 256, 128>}]} {
    %c0 = arith.constant 0 : index
    %c0_0 = arith.constant 0 : index
    %c0_1 = arith.constant 0 : index
    %0 = vector.load %arg2[%c0, %c0_0, %c0_1] : memref<1x256x128xf32, #tpu.memory_space<vmem>>, vector<1x256x128xf32>
    %1 = vector.shape_cast %0 : vector<1x256x128xf32> to vector<256x128xf32>
    %cst = arith.constant dense<0.000000e+00> : vector<128xf32>
    %2 = vector.multi_reduction <add>, %1, %cst [0] : vector<256x128xf32> to vector<128xf32>
    %3 = vector.shape_cast %2 : vector<128xf32> to vector<1x128xf32>
    %cst_2 = arith.constant 2.560000e+02 : f32
    %4 = vector.broadcast %cst_2 : f32 to vector<1x128xf32>
    %5 = arith.divf %3, %4 : vector<1x128xf32>
    %6 = vector.broadcast %5 : vector<1x128xf32> to vector<256x128xf32>
    %7 = arith.subf %1, %6 : vector<256x128xf32>
    %8 = arith.mulf %7, %7 : vector<256x128xf32>
    %cst_3 = arith.constant dense<0.000000e+00> : vector<128xf32>
    %9 = vector.multi_reduction <add>, %8, %cst_3 [0] : vector<256x128xf32> to vector<128xf32>
    %10 = vector.shape_cast %9 : vector<128xf32> to vector<1x128xf32>
    %cst_4 = arith.constant 2.560000e+02 : f32
    %11 = vector.broadcast %cst_4 : f32 to vector<1x128xf32>
    %12 = arith.divf %10, %11 : vector<1x128xf32>
    %13 = vector.broadcast %5 : vector<1x128xf32> to vector<256x128xf32>
    %14 = arith.subf %1, %13 : vector<256x128xf32>
    %cst_5 = arith.constant 9.99999974E-6 : f32
    %15 = vector.broadcast %cst_5 : f32 to vector<1x128xf32>
    %16 = arith.addf %12, %15 : vector<1x128xf32>
    %17 = math.rsqrt %16 : vector<1x128xf32>
    %18 = vector.broadcast %17 : vector<1x128xf32> to vector<256x128xf32>
    %19 = arith.mulf %14, %18 : vector<256x128xf32>
    %cst_6 = arith.constant 0.000000e+00 : f32
    %20 = vector.broadcast %cst_6 : f32 to vector<256x128xf32>
    %21 = arith.maximumf %19, %20 : vector<256x128xf32>
    %22 = arith.truncf %21 : vector<256x128xf32> to vector<256x128xbf16>
    %c0_7 = arith.constant 0 : index
    %c0_8 = arith.constant 0 : index
    %c0_9 = arith.constant 0 : index
    %23 = vector.load %arg3[%c0_7, %c0_8, %c0_9] : memref<1x256x128xbf16, #tpu.memory_space<vmem>>, vector<1x256x128xbf16>
    %24 = vector.shape_cast %23 : vector<1x256x128xbf16> to vector<256x128xbf16>
    %25 = vector.shape_cast %22 : vector<256x128xbf16> to vector<1x256x128xbf16>
    tpu.vector_store %arg3[%c0_7, %c0_8, %c0_9], %25 {strides = array<i32>} : memref<1x256x128xbf16, #tpu.memory_space<vmem>>, vector<1x256x128xbf16>,
    return
  }
  func.func @transform_0(%arg0: i32, %arg1: i32) -> (i32, i32, i32) {
    %c0_i32 = arith.constant 0 : i32
    %c0_i32_0 = arith.constant 0 : i32
    return %arg0, %c0_i32, %arg1 : i32, i32, i32
  }
  func.func @transform_1(%arg0: i32, %arg1: i32) -> (i32, i32, i32) {
    %c0_i32 = arith.constant 0 : i32
    %c0_i32_0 = arith.constant 0 : i32
    return %arg0, %c0_i32, %arg1 : i32, i32, i32
  }
}

module attributes {stable_mosaic.version = 11 : i64} {
  func.func @_gemm_kernel(%arg0: i32, %arg1: i32, %arg2: i32, %arg3: memref<128x128xbf16, #tpu.memory_space<vmem>>, %arg4: memref<128x128xbf16, #tpu.memory_space<vmem>>, %arg5: memref<1x128xf32, #tpu.memory_space<vmem>>, %arg6: memref<128x128xf32, #tpu.memory_space<vmem>>, %arg7: memref<128x128xf32, #tpu.memory_space<vmem>>) attributes {dimension_semantics = [#tpu.dimension_semantics<parallel>, #tpu.dimension_semantics<parallel>, #tpu.dimension_semantics<arbitrary>], iteration_bounds = array<i64: 1, 1, 9>, scalar_prefetch = 0 : i64, scratch_operands = 1 : i64, tpu.core_type = #tpu.core_type<tc>, window_params = [{transform_indices = @transform_0, window_bounds = array<i64: 128, 128>}, {transform_indices = @transform_1, window_bounds = array<i64: 128, 128>}, {transform_indices = @transform_2, window_bounds = array<i64: 1, 128>}, {transform_indices = @transform_3, window_bounds = array<i64: 128, 128>}]} {
    %c0_i32 = arith.constant 0 : i32
    %0 = arith.cmpi eq, %arg2, %c0_i32 : i32
    %1 = arith.extui %0 : i1 to i32
    %c0_i32_0 = arith.constant 0 : i32
    %2 = arith.cmpi ne, %1, %c0_i32_0 : i32
    scf.if %2 {
      %cst_9 = arith.constant 0.000000e+00 : f32
      %12 = vector.broadcast %cst_9 : f32 to vector<128x128xf32>
      %c0_10 = arith.constant 0 : index
      %c0_11 = arith.constant 0 : index
      %13 = vector.load %arg7[%c0_10, %c0_11] : memref<128x128xf32, #tpu.memory_space<vmem>>, vector<128x128xf32>
      tpu.vector_store %arg7[%c0_10, %c0_11], %12 {strides = array<i32>} : memref<128x128xf32, #tpu.memory_space<vmem>>, vector<128x128xf32>,
    } else {
    }
    %c0 = arith.constant 0 : index
    %c0_1 = arith.constant 0 : index
    %3 = vector.load %arg7[%c0, %c0_1] : memref<128x128xf32, #tpu.memory_space<vmem>>, vector<128x128xf32>
    %c0_2 = arith.constant 0 : index
    %c0_3 = arith.constant 0 : index
    %4 = vector.load %arg3[%c0_2, %c0_3] : memref<128x128xbf16, #tpu.memory_space<vmem>>, vector<128x128xbf16>
    %c0_4 = arith.constant 0 : index
    %c0_5 = arith.constant 0 : index
    %5 = vector.load %arg4[%c0_4, %c0_5] : memref<128x128xbf16, #tpu.memory_space<vmem>>, vector<128x128xbf16>
    %cst = arith.constant dense<0.000000e+00> : vector<128x128xf32>
    %6 = tpu.matmul %4, %5, %cst {dimension_numbers = #tpu.dot_dimension_numbers<[1], [0], [0], [1], [0, 0, 1, 1], [], []>} : vector<128x128xbf16>, vector<128x128xbf16>, vector<128x128xf32> -> vector<128x128xf32>
    %7 = arith.addf %3, %6 : vector<128x128xf32>
    %c0_6 = arith.constant 0 : index
    %c0_7 = arith.constant 0 : index
    %8 = vector.load %arg7[%c0_6, %c0_7] : memref<128x128xf32, #tpu.memory_space<vmem>>, vector<128x128xf32>
    tpu.vector_store %arg7[%c0_6, %c0_7], %7 {strides = array<i32>} : memref<128x128xf32, #tpu.memory_space<vmem>>, vector<128x128xf32>,
    %c8_i32 = arith.constant 8 : i32
    %9 = arith.cmpi eq, %arg2, %c8_i32 : i32
    %10 = arith.extui %9 : i1 to i32
    %c0_i32_8 = arith.constant 0 : i32
    %11 = arith.cmpi ne, %10, %c0_i32_8 : i32
    scf.if %11 {
      %c0_9 = arith.constant 0 : index
      %c0_10 = arith.constant 0 : index
      %12 = vector.load %arg7[%c0_9, %c0_10] : memref<128x128xf32, #tpu.memory_space<vmem>>, vector<128x128xf32>
      %c0_11 = arith.constant 0 : index
      %c0_12 = arith.constant 0 : index
      %13 = vector.load %arg5[%c0_11, %c0_12] : memref<1x128xf32, #tpu.memory_space<vmem>>, vector<1x128xf32>
      %14 = vector.broadcast %13 : vector<1x128xf32> to vector<128x128xf32>
      %15 = arith.addf %12, %14 : vector<128x128xf32>
      %c0_13 = arith.constant 0 : index
      %c0_14 = arith.constant 0 : index
      %16 = vector.load %arg6[%c0_13, %c0_14] : memref<128x128xf32, #tpu.memory_space<vmem>>, vector<128x128xf32>
      tpu.vector_store %arg6[%c0_13, %c0_14], %15 {strides = array<i32>} : memref<128x128xf32, #tpu.memory_space<vmem>>, vector<128x128xf32>,
    } else {
    }
    return
  }
  func.func @transform_0(%arg0: i32, %arg1: i32, %arg2: i32) -> (i32, i32) {
    %c0_i32 = arith.constant 0 : i32
    return %arg0, %arg2 : i32, i32
  }
  func.func @transform_1(%arg0: i32, %arg1: i32, %arg2: i32) -> (i32, i32) {
    %c0_i32 = arith.constant 0 : i32
    return %arg2, %arg1 : i32, i32
  }
  func.func @transform_2(%arg0: i32, %arg1: i32, %arg2: i32) -> (i32, i32) {
    %c0_i32 = arith.constant 0 : i32
    %c0_i32_0 = arith.constant 0 : i32
    return %c0_i32, %arg1 : i32, i32
  }
  func.func @transform_3(%arg0: i32, %arg1: i32, %arg2: i32) -> (i32, i32) {
    %c0_i32 = arith.constant 0 : i32
    return %arg0, %arg1 : i32, i32
  }
}

module attributes {stable_mosaic.version = 11 : i64} {
  func.func @_in_kernel(%arg0: i32, %arg1: i32, %arg2: memref<1x64x128xf32, #tpu.memory_space<vmem>>, %arg3: memref<1x64x128xbf16, #tpu.memory_space<vmem>>) attributes {dimension_semantics = [#tpu.dimension_semantics<parallel>, #tpu.dimension_semantics<parallel>], iteration_bounds = array<i64: 2, 1>, scalar_prefetch = 0 : i64, scratch_operands = 0 : i64, tpu.core_type = #tpu.core_type<tc>, window_params = [{transform_indices = @transform_0, window_bounds = array<i64: 1, 64, 128>}, {transform_indices = @transform_1, window_bounds = array<i64: 1, 64, 128>}]} {
    %c0 = arith.constant 0 : index
    %c0_0 = arith.constant 0 : index
    %c0_1 = arith.constant 0 : index
    %0 = vector.load %arg2[%c0, %c0_0, %c0_1] : memref<1x64x128xf32, #tpu.memory_space<vmem>>, vector<1x64x128xf32>
    %1 = vector.shape_cast %0 : vector<1x64x128xf32> to vector<64x128xf32>
    %cst = arith.constant dense<0.000000e+00> : vector<128xf32>
    %2 = vector.multi_reduction <add>, %1, %cst [0] : vector<64x128xf32> to vector<128xf32>
    %3 = vector.shape_cast %2 : vector<128xf32> to vector<1x128xf32>
    %cst_2 = arith.constant 6.400000e+01 : f32
    %4 = vector.broadcast %cst_2 : f32 to vector<1x128xf32>
    %5 = arith.divf %3, %4 : vector<1x128xf32>
    %6 = vector.broadcast %5 : vector<1x128xf32> to vector<64x128xf32>
    %7 = arith.subf %1, %6 : vector<64x128xf32>
    %8 = arith.mulf %7, %7 : vector<64x128xf32>
    %cst_3 = arith.constant dense<0.000000e+00> : vector<128xf32>
    %9 = vector.multi_reduction <add>, %8, %cst_3 [0] : vector<64x128xf32> to vector<128xf32>
    %10 = vector.shape_cast %9 : vector<128xf32> to vector<1x128xf32>
    %cst_4 = arith.constant 6.400000e+01 : f32
    %11 = vector.broadcast %cst_4 : f32 to vector<1x128xf32>
    %12 = arith.divf %10, %11 : vector<1x128xf32>
    %13 = vector.broadcast %5 : vector<1x128xf32> to vector<64x128xf32>
    %14 = arith.subf %1, %13 : vector<64x128xf32>
    %cst_5 = arith.constant 9.99999974E-6 : f32
    %15 = vector.broadcast %cst_5 : f32 to vector<1x128xf32>
    %16 = arith.addf %12, %15 : vector<1x128xf32>
    %17 = math.rsqrt %16 : vector<1x128xf32>
    %18 = vector.broadcast %17 : vector<1x128xf32> to vector<64x128xf32>
    %19 = arith.mulf %14, %18 : vector<64x128xf32>
    %cst_6 = arith.constant 0.000000e+00 : f32
    %20 = vector.broadcast %cst_6 : f32 to vector<64x128xf32>
    %21 = arith.maximumf %19, %20 : vector<64x128xf32>
    %22 = arith.truncf %21 : vector<64x128xf32> to vector<64x128xbf16>
    %c0_7 = arith.constant 0 : index
    %c0_8 = arith.constant 0 : index
    %c0_9 = arith.constant 0 : index
    %23 = vector.load %arg3[%c0_7, %c0_8, %c0_9] : memref<1x64x128xbf16, #tpu.memory_space<vmem>>, vector<1x64x128xbf16>
    %24 = vector.shape_cast %23 : vector<1x64x128xbf16> to vector<64x128xbf16>
    %25 = vector.shape_cast %22 : vector<64x128xbf16> to vector<1x64x128xbf16>
    tpu.vector_store %arg3[%c0_7, %c0_8, %c0_9], %25 {strides = array<i32>} : memref<1x64x128xbf16, #tpu.memory_space<vmem>>, vector<1x64x128xbf16>,
    return
  }
  func.func @transform_0(%arg0: i32, %arg1: i32) -> (i32, i32, i32) {
    %c0_i32 = arith.constant 0 : i32
    %c0_i32_0 = arith.constant 0 : i32
    return %arg0, %c0_i32, %arg1 : i32, i32, i32
  }
  func.func @transform_1(%arg0: i32, %arg1: i32) -> (i32, i32, i32) {
    %c0_i32 = arith.constant 0 : i32
    %c0_i32_0 = arith.constant 0 : i32
    return %arg0, %c0_i32, %arg1 : i32, i32, i32
  }
}

module attributes {stable_mosaic.version = 11 : i64} {
  func.func @_gemm_kernel(%arg0: i32, %arg1: i32, %arg2: i32, %arg3: memref<32x128xbf16, #tpu.memory_space<vmem>>, %arg4: memref<128x256xbf16, #tpu.memory_space<vmem>>, %arg5: memref<1x256xf32, #tpu.memory_space<vmem>>, %arg6: memref<32x256xf32, #tpu.memory_space<vmem>>, %arg7: memref<32x256xf32, #tpu.memory_space<vmem>>) attributes {dimension_semantics = [#tpu.dimension_semantics<parallel>, #tpu.dimension_semantics<parallel>, #tpu.dimension_semantics<arbitrary>], iteration_bounds = array<i64: 1, 1, 9>, scalar_prefetch = 0 : i64, scratch_operands = 1 : i64, tpu.core_type = #tpu.core_type<tc>, window_params = [{transform_indices = @transform_0, window_bounds = array<i64: 32, 128>}, {transform_indices = @transform_1, window_bounds = array<i64: 128, 256>}, {transform_indices = @transform_2, window_bounds = array<i64: 1, 256>}, {transform_indices = @transform_3, window_bounds = array<i64: 32, 256>}]} {
    %c0_i32 = arith.constant 0 : i32
    %0 = arith.cmpi eq, %arg2, %c0_i32 : i32
    %1 = arith.extui %0 : i1 to i32
    %c0_i32_0 = arith.constant 0 : i32
    %2 = arith.cmpi ne, %1, %c0_i32_0 : i32
    scf.if %2 {
      %cst_9 = arith.constant 0.000000e+00 : f32
      %12 = vector.broadcast %cst_9 : f32 to vector<32x256xf32>
      %c0_10 = arith.constant 0 : index
      %c0_11 = arith.constant 0 : index
      %13 = vector.load %arg7[%c0_10, %c0_11] : memref<32x256xf32, #tpu.memory_space<vmem>>, vector<32x256xf32>
      tpu.vector_store %arg7[%c0_10, %c0_11], %12 {strides = array<i32>} : memref<32x256xf32, #tpu.memory_space<vmem>>, vector<32x256xf32>,
    } else {
    }
    %c0 = arith.constant 0 : index
    %c0_1 = arith.constant 0 : index
    %3 = vector.load %arg7[%c0, %c0_1] : memref<32x256xf32, #tpu.memory_space<vmem>>, vector<32x256xf32>
    %c0_2 = arith.constant 0 : index
    %c0_3 = arith.constant 0 : index
    %4 = vector.load %arg3[%c0_2, %c0_3] : memref<32x128xbf16, #tpu.memory_space<vmem>>, vector<32x128xbf16>
    %c0_4 = arith.constant 0 : index
    %c0_5 = arith.constant 0 : index
    %5 = vector.load %arg4[%c0_4, %c0_5] : memref<128x256xbf16, #tpu.memory_space<vmem>>, vector<128x256xbf16>
    %cst = arith.constant dense<0.000000e+00> : vector<32x256xf32>
    %6 = tpu.matmul %4, %5, %cst {dimension_numbers = #tpu.dot_dimension_numbers<[1], [0], [0], [1], [0, 0, 1, 1], [], []>} : vector<32x128xbf16>, vector<128x256xbf16>, vector<32x256xf32> -> vector<32x256xf32>
    %7 = arith.addf %3, %6 : vector<32x256xf32>
    %c0_6 = arith.constant 0 : index
    %c0_7 = arith.constant 0 : index
    %8 = vector.load %arg7[%c0_6, %c0_7] : memref<32x256xf32, #tpu.memory_space<vmem>>, vector<32x256xf32>
    tpu.vector_store %arg7[%c0_6, %c0_7], %7 {strides = array<i32>} : memref<32x256xf32, #tpu.memory_space<vmem>>, vector<32x256xf32>,
    %c8_i32 = arith.constant 8 : i32
    %9 = arith.cmpi eq, %arg2, %c8_i32 : i32
    %10 = arith.extui %9 : i1 to i32
    %c0_i32_8 = arith.constant 0 : i32
    %11 = arith.cmpi ne, %10, %c0_i32_8 : i32
    scf.if %11 {
      %c0_9 = arith.constant 0 : index
      %c0_10 = arith.constant 0 : index
      %12 = vector.load %arg7[%c0_9, %c0_10] : memref<32x256xf32, #tpu.memory_space<vmem>>, vector<32x256xf32>
      %c0_11 = arith.constant 0 : index
      %c0_12 = arith.constant 0 : index
      %13 = vector.load %arg5[%c0_11, %c0_12] : memref<1x256xf32, #tpu.memory_space<vmem>>, vector<1x256xf32>
      %14 = vector.broadcast %13 : vector<1x256xf32> to vector<32x256xf32>
      %15 = arith.addf %12, %14 : vector<32x256xf32>
      %c0_13 = arith.constant 0 : index
      %c0_14 = arith.constant 0 : index
      %16 = vector.load %arg6[%c0_13, %c0_14] : memref<32x256xf32, #tpu.memory_space<vmem>>, vector<32x256xf32>
      tpu.vector_store %arg6[%c0_13, %c0_14], %15 {strides = array<i32>} : memref<32x256xf32, #tpu.memory_space<vmem>>, vector<32x256xf32>,
    } else {
    }
    return
  }
  func.func @transform_0(%arg0: i32, %arg1: i32, %arg2: i32) -> (i32, i32) {
    %c0_i32 = arith.constant 0 : i32
    return %arg0, %arg2 : i32, i32
  }
  func.func @transform_1(%arg0: i32, %arg1: i32, %arg2: i32) -> (i32, i32) {
    %c0_i32 = arith.constant 0 : i32
    return %arg2, %arg1 : i32, i32
  }
  func.func @transform_2(%arg0: i32, %arg1: i32, %arg2: i32) -> (i32, i32) {
    %c0_i32 = arith.constant 0 : i32
    %c0_i32_0 = arith.constant 0 : i32
    return %c0_i32, %arg1 : i32, i32
  }
  func.func @transform_3(%arg0: i32, %arg1: i32, %arg2: i32) -> (i32, i32) {
    %c0_i32 = arith.constant 0 : i32
    return %arg0, %arg1 : i32, i32
  }
}

module attributes {stable_mosaic.version = 11 : i64} {
  func.func @_in_kernel(%arg0: i32, %arg1: i32, %arg2: memref<1x16x256xf32, #tpu.memory_space<vmem>>, %arg3: memref<1x16x256xbf16, #tpu.memory_space<vmem>>) attributes {dimension_semantics = [#tpu.dimension_semantics<parallel>, #tpu.dimension_semantics<parallel>], iteration_bounds = array<i64: 2, 1>, scalar_prefetch = 0 : i64, scratch_operands = 0 : i64, tpu.core_type = #tpu.core_type<tc>, window_params = [{transform_indices = @transform_0, window_bounds = array<i64: 1, 16, 256>}, {transform_indices = @transform_1, window_bounds = array<i64: 1, 16, 256>}]} {
    %c0 = arith.constant 0 : index
    %c0_0 = arith.constant 0 : index
    %c0_1 = arith.constant 0 : index
    %0 = vector.load %arg2[%c0, %c0_0, %c0_1] : memref<1x16x256xf32, #tpu.memory_space<vmem>>, vector<1x16x256xf32>
    %1 = vector.shape_cast %0 : vector<1x16x256xf32> to vector<16x256xf32>
    %cst = arith.constant dense<0.000000e+00> : vector<256xf32>
    %2 = vector.multi_reduction <add>, %1, %cst [0] : vector<16x256xf32> to vector<256xf32>
    %3 = vector.shape_cast %2 : vector<256xf32> to vector<1x256xf32>
    %cst_2 = arith.constant 1.600000e+01 : f32
    %4 = vector.broadcast %cst_2 : f32 to vector<1x256xf32>
    %5 = arith.divf %3, %4 : vector<1x256xf32>
    %6 = vector.broadcast %5 : vector<1x256xf32> to vector<16x256xf32>
    %7 = arith.subf %1, %6 : vector<16x256xf32>
    %8 = arith.mulf %7, %7 : vector<16x256xf32>
    %cst_3 = arith.constant dense<0.000000e+00> : vector<256xf32>
    %9 = vector.multi_reduction <add>, %8, %cst_3 [0] : vector<16x256xf32> to vector<256xf32>
    %10 = vector.shape_cast %9 : vector<256xf32> to vector<1x256xf32>
    %cst_4 = arith.constant 1.600000e+01 : f32
    %11 = vector.broadcast %cst_4 : f32 to vector<1x256xf32>
    %12 = arith.divf %10, %11 : vector<1x256xf32>
    %13 = vector.broadcast %5 : vector<1x256xf32> to vector<16x256xf32>
    %14 = arith.subf %1, %13 : vector<16x256xf32>
    %cst_5 = arith.constant 9.99999974E-6 : f32
    %15 = vector.broadcast %cst_5 : f32 to vector<1x256xf32>
    %16 = arith.addf %12, %15 : vector<1x256xf32>
    %17 = math.rsqrt %16 : vector<1x256xf32>
    %18 = vector.broadcast %17 : vector<1x256xf32> to vector<16x256xf32>
    %19 = arith.mulf %14, %18 : vector<16x256xf32>
    %cst_6 = arith.constant 0.000000e+00 : f32
    %20 = vector.broadcast %cst_6 : f32 to vector<16x256xf32>
    %21 = arith.maximumf %19, %20 : vector<16x256xf32>
    %22 = arith.truncf %21 : vector<16x256xf32> to vector<16x256xbf16>
    %c0_7 = arith.constant 0 : index
    %c0_8 = arith.constant 0 : index
    %c0_9 = arith.constant 0 : index
    %23 = vector.load %arg3[%c0_7, %c0_8, %c0_9] : memref<1x16x256xbf16, #tpu.memory_space<vmem>>, vector<1x16x256xbf16>
    %24 = vector.shape_cast %23 : vector<1x16x256xbf16> to vector<16x256xbf16>
    %25 = vector.shape_cast %22 : vector<16x256xbf16> to vector<1x16x256xbf16>
    tpu.vector_store %arg3[%c0_7, %c0_8, %c0_9], %25 {strides = array<i32>} : memref<1x16x256xbf16, #tpu.memory_space<vmem>>, vector<1x16x256xbf16>,
    return
  }
  func.func @transform_0(%arg0: i32, %arg1: i32) -> (i32, i32, i32) {
    %c0_i32 = arith.constant 0 : i32
    %c0_i32_0 = arith.constant 0 : i32
    return %arg0, %c0_i32, %arg1 : i32, i32, i32
  }
  func.func @transform_1(%arg0: i32, %arg1: i32) -> (i32, i32, i32) {
    %c0_i32 = arith.constant 0 : i32
    %c0_i32_0 = arith.constant 0 : i32
    return %arg0, %c0_i32, %arg1 : i32, i32, i32
  }
}

module attributes {stable_mosaic.version = 11 : i64} {
  func.func @_gemm_kernel(%arg0: i32, %arg1: i32, %arg2: i32, %arg3: memref<32x256xbf16, #tpu.memory_space<vmem>>, %arg4: memref<256x256xbf16, #tpu.memory_space<vmem>>, %arg5: memref<1x256xf32, #tpu.memory_space<vmem>>, %arg6: memref<32x256xf32, #tpu.memory_space<vmem>>, %arg7: memref<32x256xf32, #tpu.memory_space<vmem>>) attributes {dimension_semantics = [#tpu.dimension_semantics<parallel>, #tpu.dimension_semantics<parallel>, #tpu.dimension_semantics<arbitrary>], iteration_bounds = array<i64: 1, 1, 9>, scalar_prefetch = 0 : i64, scratch_operands = 1 : i64, tpu.core_type = #tpu.core_type<tc>, window_params = [{transform_indices = @transform_0, window_bounds = array<i64: 32, 256>}, {transform_indices = @transform_1, window_bounds = array<i64: 256, 256>}, {transform_indices = @transform_2, window_bounds = array<i64: 1, 256>}, {transform_indices = @transform_3, window_bounds = array<i64: 32, 256>}]} {
    %c0_i32 = arith.constant 0 : i32
    %0 = arith.cmpi eq, %arg2, %c0_i32 : i32
    %1 = arith.extui %0 : i1 to i32
    %c0_i32_0 = arith.constant 0 : i32
    %2 = arith.cmpi ne, %1, %c0_i32_0 : i32
    scf.if %2 {
      %cst_9 = arith.constant 0.000000e+00 : f32
      %12 = vector.broadcast %cst_9 : f32 to vector<32x256xf32>
      %c0_10 = arith.constant 0 : index
      %c0_11 = arith.constant 0 : index
      %13 = vector.load %arg7[%c0_10, %c0_11] : memref<32x256xf32, #tpu.memory_space<vmem>>, vector<32x256xf32>
      tpu.vector_store %arg7[%c0_10, %c0_11], %12 {strides = array<i32>} : memref<32x256xf32, #tpu.memory_space<vmem>>, vector<32x256xf32>,
    } else {
    }
    %c0 = arith.constant 0 : index
    %c0_1 = arith.constant 0 : index
    %3 = vector.load %arg7[%c0, %c0_1] : memref<32x256xf32, #tpu.memory_space<vmem>>, vector<32x256xf32>
    %c0_2 = arith.constant 0 : index
    %c0_3 = arith.constant 0 : index
    %4 = vector.load %arg3[%c0_2, %c0_3] : memref<32x256xbf16, #tpu.memory_space<vmem>>, vector<32x256xbf16>
    %c0_4 = arith.constant 0 : index
    %c0_5 = arith.constant 0 : index
    %5 = vector.load %arg4[%c0_4, %c0_5] : memref<256x256xbf16, #tpu.memory_space<vmem>>, vector<256x256xbf16>
    %cst = arith.constant dense<0.000000e+00> : vector<32x256xf32>
    %6 = tpu.matmul %4, %5, %cst {dimension_numbers = #tpu.dot_dimension_numbers<[1], [0], [0], [1], [0, 0, 1, 1], [], []>} : vector<32x256xbf16>, vector<256x256xbf16>, vector<32x256xf32> -> vector<32x256xf32>
    %7 = arith.addf %3, %6 : vector<32x256xf32>
    %c0_6 = arith.constant 0 : index
    %c0_7 = arith.constant 0 : index
    %8 = vector.load %arg7[%c0_6, %c0_7] : memref<32x256xf32, #tpu.memory_space<vmem>>, vector<32x256xf32>
    tpu.vector_store %arg7[%c0_6, %c0_7], %7 {strides = array<i32>} : memref<32x256xf32, #tpu.memory_space<vmem>>, vector<32x256xf32>,
    %c8_i32 = arith.constant 8 : i32
    %9 = arith.cmpi eq, %arg2, %c8_i32 : i32
    %10 = arith.extui %9 : i1 to i32
    %c0_i32_8 = arith.constant 0 : i32
    %11 = arith.cmpi ne, %10, %c0_i32_8 : i32
    scf.if %11 {
      %c0_9 = arith.constant 0 : index
      %c0_10 = arith.constant 0 : index
      %12 = vector.load %arg7[%c0_9, %c0_10] : memref<32x256xf32, #tpu.memory_space<vmem>>, vector<32x256xf32>
      %c0_11 = arith.constant 0 : index
      %c0_12 = arith.constant 0 : index
      %13 = vector.load %arg5[%c0_11, %c0_12] : memref<1x256xf32, #tpu.memory_space<vmem>>, vector<1x256xf32>
      %14 = vector.broadcast %13 : vector<1x256xf32> to vector<32x256xf32>
      %15 = arith.addf %12, %14 : vector<32x256xf32>
      %c0_13 = arith.constant 0 : index
      %c0_14 = arith.constant 0 : index
      %16 = vector.load %arg6[%c0_13, %c0_14] : memref<32x256xf32, #tpu.memory_space<vmem>>, vector<32x256xf32>
      tpu.vector_store %arg6[%c0_13, %c0_14], %15 {strides = array<i32>} : memref<32x256xf32, #tpu.memory_space<vmem>>, vector<32x256xf32>,
    } else {
    }
    return
  }
  func.func @transform_0(%arg0: i32, %arg1: i32, %arg2: i32) -> (i32, i32) {
    %c0_i32 = arith.constant 0 : i32
    return %arg0, %arg2 : i32, i32
  }
  func.func @transform_1(%arg0: i32, %arg1: i32, %arg2: i32) -> (i32, i32) {
    %c0_i32 = arith.constant 0 : i32
    return %arg2, %arg1 : i32, i32
  }
  func.func @transform_2(%arg0: i32, %arg1: i32, %arg2: i32) -> (i32, i32) {
    %c0_i32 = arith.constant 0 : i32
    %c0_i32_0 = arith.constant 0 : i32
    return %c0_i32, %arg1 : i32, i32
  }
  func.func @transform_3(%arg0: i32, %arg1: i32, %arg2: i32) -> (i32, i32) {
    %c0_i32 = arith.constant 0 : i32
    return %arg0, %arg1 : i32, i32
  }
}

module attributes {stable_mosaic.version = 11 : i64} {
  func.func @_in_res_kernel(%arg0: i32, %arg1: i32, %arg2: memref<1x16x256xf32, #tpu.memory_space<vmem>>, %arg3: memref<1x16x256xbf16, #tpu.memory_space<vmem>>, %arg4: memref<1x16x256xbf16, #tpu.memory_space<vmem>>) attributes {dimension_semantics = [#tpu.dimension_semantics<parallel>, #tpu.dimension_semantics<parallel>], iteration_bounds = array<i64: 2, 1>, scalar_prefetch = 0 : i64, scratch_operands = 0 : i64, tpu.core_type = #tpu.core_type<tc>, window_params = [{transform_indices = @transform_0, window_bounds = array<i64: 1, 16, 256>}, {transform_indices = @transform_1, window_bounds = array<i64: 1, 16, 256>}, {transform_indices = @transform_2, window_bounds = array<i64: 1, 16, 256>}]} {
    %c0 = arith.constant 0 : index
    %c0_0 = arith.constant 0 : index
    %c0_1 = arith.constant 0 : index
    %0 = vector.load %arg2[%c0, %c0_0, %c0_1] : memref<1x16x256xf32, #tpu.memory_space<vmem>>, vector<1x16x256xf32>
    %1 = vector.shape_cast %0 : vector<1x16x256xf32> to vector<16x256xf32>
    %cst = arith.constant dense<0.000000e+00> : vector<256xf32>
    %2 = vector.multi_reduction <add>, %1, %cst [0] : vector<16x256xf32> to vector<256xf32>
    %3 = vector.shape_cast %2 : vector<256xf32> to vector<1x256xf32>
    %cst_2 = arith.constant 1.600000e+01 : f32
    %4 = vector.broadcast %cst_2 : f32 to vector<1x256xf32>
    %5 = arith.divf %3, %4 : vector<1x256xf32>
    %6 = vector.broadcast %5 : vector<1x256xf32> to vector<16x256xf32>
    %7 = arith.subf %1, %6 : vector<16x256xf32>
    %8 = arith.mulf %7, %7 : vector<16x256xf32>
    %cst_3 = arith.constant dense<0.000000e+00> : vector<256xf32>
    %9 = vector.multi_reduction <add>, %8, %cst_3 [0] : vector<16x256xf32> to vector<256xf32>
    %10 = vector.shape_cast %9 : vector<256xf32> to vector<1x256xf32>
    %cst_4 = arith.constant 1.600000e+01 : f32
    %11 = vector.broadcast %cst_4 : f32 to vector<1x256xf32>
    %12 = arith.divf %10, %11 : vector<1x256xf32>
    %13 = vector.broadcast %5 : vector<1x256xf32> to vector<16x256xf32>
    %14 = arith.subf %1, %13 : vector<16x256xf32>
    %cst_5 = arith.constant 9.99999974E-6 : f32
    %15 = vector.broadcast %cst_5 : f32 to vector<1x256xf32>
    %16 = arith.addf %12, %15 : vector<1x256xf32>
    %17 = math.rsqrt %16 : vector<1x256xf32>
    %18 = vector.broadcast %17 : vector<1x256xf32> to vector<16x256xf32>
    %19 = arith.mulf %14, %18 : vector<16x256xf32>
    %c0_6 = arith.constant 0 : index
    %c0_7 = arith.constant 0 : index
    %c0_8 = arith.constant 0 : index
    %20 = vector.load %arg3[%c0_6, %c0_7, %c0_8] : memref<1x16x256xbf16, #tpu.memory_space<vmem>>, vector<1x16x256xbf16>
    %21 = vector.shape_cast %20 : vector<1x16x256xbf16> to vector<16x256xbf16>
    %22 = arith.extf %21 : vector<16x256xbf16> to vector<16x256xf32>
    %23 = arith.addf %19, %22 : vector<16x256xf32>
    %24 = arith.truncf %23 : vector<16x256xf32> to vector<16x256xbf16>
    %c0_9 = arith.constant 0 : index
    %c0_10 = arith.constant 0 : index
    %c0_11 = arith.constant 0 : index
    %25 = vector.load %arg4[%c0_9, %c0_10, %c0_11] : memref<1x16x256xbf16, #tpu.memory_space<vmem>>, vector<1x16x256xbf16>
    %26 = vector.shape_cast %25 : vector<1x16x256xbf16> to vector<16x256xbf16>
    %27 = vector.shape_cast %24 : vector<16x256xbf16> to vector<1x16x256xbf16>
    tpu.vector_store %arg4[%c0_9, %c0_10, %c0_11], %27 {strides = array<i32>} : memref<1x16x256xbf16, #tpu.memory_space<vmem>>, vector<1x16x256xbf16>,
    return
  }
  func.func @transform_0(%arg0: i32, %arg1: i32) -> (i32, i32, i32) {
    %c0_i32 = arith.constant 0 : i32
    %c0_i32_0 = arith.constant 0 : i32
    return %arg0, %c0_i32, %arg1 : i32, i32, i32
  }
  func.func @transform_1(%arg0: i32, %arg1: i32) -> (i32, i32, i32) {
    %c0_i32 = arith.constant 0 : i32
    %c0_i32_0 = arith.constant 0 : i32
    return %arg0, %c0_i32, %arg1 : i32, i32, i32
  }
  func.func @transform_2(%arg0: i32, %arg1: i32) -> (i32, i32, i32) {
    %c0_i32 = arith.constant 0 : i32
    %c0_i32_0 = arith.constant 0 : i32
    return %arg0, %c0_i32, %arg1 : i32, i32, i32
  }
}

module attributes {stable_mosaic.version = 11 : i64} {
  func.func @_gemm_kernel(%arg0: i32, %arg1: i32, %arg2: i32, %arg3: memref<32x512xbf16, #tpu.memory_space<vmem>>, %arg4: memref<512x128xbf16, #tpu.memory_space<vmem>>, %arg5: memref<1x128xf32, #tpu.memory_space<vmem>>, %arg6: memref<32x128xf32, #tpu.memory_space<vmem>>, %arg7: memref<32x128xf32, #tpu.memory_space<vmem>>) attributes {dimension_semantics = [#tpu.dimension_semantics<parallel>, #tpu.dimension_semantics<parallel>, #tpu.dimension_semantics<arbitrary>], iteration_bounds = array<i64: 1, 1, 1>, scalar_prefetch = 0 : i64, scratch_operands = 1 : i64, tpu.core_type = #tpu.core_type<tc>, window_params = [{transform_indices = @transform_0, window_bounds = array<i64: 32, 512>}, {transform_indices = @transform_1, window_bounds = array<i64: 512, 128>}, {transform_indices = @transform_2, window_bounds = array<i64: 1, 128>}, {transform_indices = @transform_3, window_bounds = array<i64: 32, 128>}]} {
    %c0_i32 = arith.constant 0 : i32
    %0 = arith.cmpi eq, %arg2, %c0_i32 : i32
    %1 = arith.extui %0 : i1 to i32
    %c0_i32_0 = arith.constant 0 : i32
    %2 = arith.cmpi ne, %1, %c0_i32_0 : i32
    scf.if %2 {
      %cst_10 = arith.constant 0.000000e+00 : f32
      %12 = vector.broadcast %cst_10 : f32 to vector<32x128xf32>
      %c0_11 = arith.constant 0 : index
      %c0_12 = arith.constant 0 : index
      %13 = vector.load %arg7[%c0_11, %c0_12] : memref<32x128xf32, #tpu.memory_space<vmem>>, vector<32x128xf32>
      tpu.vector_store %arg7[%c0_11, %c0_12], %12 {strides = array<i32>} : memref<32x128xf32, #tpu.memory_space<vmem>>, vector<32x128xf32>,
    } else {
    }
    %c0 = arith.constant 0 : index
    %c0_1 = arith.constant 0 : index
    %3 = vector.load %arg7[%c0, %c0_1] : memref<32x128xf32, #tpu.memory_space<vmem>>, vector<32x128xf32>
    %c0_2 = arith.constant 0 : index
    %c0_3 = arith.constant 0 : index
    %4 = vector.load %arg3[%c0_2, %c0_3] : memref<32x512xbf16, #tpu.memory_space<vmem>>, vector<32x512xbf16>
    %c0_4 = arith.constant 0 : index
    %c0_5 = arith.constant 0 : index
    %5 = vector.load %arg4[%c0_4, %c0_5] : memref<512x128xbf16, #tpu.memory_space<vmem>>, vector<512x128xbf16>
    %cst = arith.constant dense<0.000000e+00> : vector<32x128xf32>
    %6 = tpu.matmul %4, %5, %cst {dimension_numbers = #tpu.dot_dimension_numbers<[1], [0], [0], [1], [0, 0, 1, 1], [], []>} : vector<32x512xbf16>, vector<512x128xbf16>, vector<32x128xf32> -> vector<32x128xf32>
    %7 = arith.addf %3, %6 : vector<32x128xf32>
    %c0_6 = arith.constant 0 : index
    %c0_7 = arith.constant 0 : index
    %8 = vector.load %arg7[%c0_6, %c0_7] : memref<32x128xf32, #tpu.memory_space<vmem>>, vector<32x128xf32>
    tpu.vector_store %arg7[%c0_6, %c0_7], %7 {strides = array<i32>} : memref<32x128xf32, #tpu.memory_space<vmem>>, vector<32x128xf32>,
    %c0_i32_8 = arith.constant 0 : i32
    %9 = arith.cmpi eq, %arg2, %c0_i32_8 : i32
    %10 = arith.extui %9 : i1 to i32
    %c0_i32_9 = arith.constant 0 : i32
    %11 = arith.cmpi ne, %10, %c0_i32_9 : i32
    scf.if %11 {
      %c0_10 = arith.constant 0 : index
      %c0_11 = arith.constant 0 : index
      %12 = vector.load %arg7[%c0_10, %c0_11] : memref<32x128xf32, #tpu.memory_space<vmem>>, vector<32x128xf32>
      %c0_12 = arith.constant 0 : index
      %c0_13 = arith.constant 0 : index
      %13 = vector.load %arg5[%c0_12, %c0_13] : memref<1x128xf32, #tpu.memory_space<vmem>>, vector<1x128xf32>
      %14 = vector.broadcast %13 : vector<1x128xf32> to vector<32x128xf32>
      %15 = arith.addf %12, %14 : vector<32x128xf32>
      %c0_14 = arith.constant 0 : index
      %c0_15 = arith.constant 0 : index
      %16 = vector.load %arg6[%c0_14, %c0_15] : memref<32x128xf32, #tpu.memory_space<vmem>>, vector<32x128xf32>
      tpu.vector_store %arg6[%c0_14, %c0_15], %15 {strides = array<i32>} : memref<32x128xf32, #tpu.memory_space<vmem>>, vector<32x128xf32>,
    } else {
    }
    return
  }
  func.func @transform_0(%arg0: i32, %arg1: i32, %arg2: i32) -> (i32, i32) {
    %c0_i32 = arith.constant 0 : i32
    return %arg0, %arg2 : i32, i32
  }
  func.func @transform_1(%arg0: i32, %arg1: i32, %arg2: i32) -> (i32, i32) {
    %c0_i32 = arith.constant 0 : i32
    return %arg2, %arg1 : i32, i32
  }
  func.func @transform_2(%arg0: i32, %arg1: i32, %arg2: i32) -> (i32, i32) {
    %c0_i32 = arith.constant 0 : i32
    %c0_i32_0 = arith.constant 0 : i32
    return %c0_i32, %arg1 : i32, i32
  }
  func.func @transform_3(%arg0: i32, %arg1: i32, %arg2: i32) -> (i32, i32) {
    %c0_i32 = arith.constant 0 : i32
    return %arg0, %arg1 : i32, i32
  }
}

module attributes {stable_mosaic.version = 11 : i64} {
  func.func @_gemm_kernel(%arg0: i32, %arg1: i32, %arg2: i32, %arg3: memref<32x512xbf16, #tpu.memory_space<vmem>>, %arg4: memref<512x128xbf16, #tpu.memory_space<vmem>>, %arg5: memref<1x128xf32, #tpu.memory_space<vmem>>, %arg6: memref<32x128xf32, #tpu.memory_space<vmem>>, %arg7: memref<32x128xf32, #tpu.memory_space<vmem>>) attributes {dimension_semantics = [#tpu.dimension_semantics<parallel>, #tpu.dimension_semantics<parallel>, #tpu.dimension_semantics<arbitrary>], iteration_bounds = array<i64: 1, 1, 2>, scalar_prefetch = 0 : i64, scratch_operands = 1 : i64, tpu.core_type = #tpu.core_type<tc>, window_params = [{transform_indices = @transform_0, window_bounds = array<i64: 32, 512>}, {transform_indices = @transform_1, window_bounds = array<i64: 512, 128>}, {transform_indices = @transform_2, window_bounds = array<i64: 1, 128>}, {transform_indices = @transform_3, window_bounds = array<i64: 32, 128>}]} {
    %c0_i32 = arith.constant 0 : i32
    %0 = arith.cmpi eq, %arg2, %c0_i32 : i32
    %1 = arith.extui %0 : i1 to i32
    %c0_i32_0 = arith.constant 0 : i32
    %2 = arith.cmpi ne, %1, %c0_i32_0 : i32
    scf.if %2 {
      %cst_9 = arith.constant 0.000000e+00 : f32
      %12 = vector.broadcast %cst_9 : f32 to vector<32x128xf32>
      %c0_10 = arith.constant 0 : index
      %c0_11 = arith.constant 0 : index
      %13 = vector.load %arg7[%c0_10, %c0_11] : memref<32x128xf32, #tpu.memory_space<vmem>>, vector<32x128xf32>
      tpu.vector_store %arg7[%c0_10, %c0_11], %12 {strides = array<i32>} : memref<32x128xf32, #tpu.memory_space<vmem>>, vector<32x128xf32>,
    } else {
    }
    %c0 = arith.constant 0 : index
    %c0_1 = arith.constant 0 : index
    %3 = vector.load %arg7[%c0, %c0_1] : memref<32x128xf32, #tpu.memory_space<vmem>>, vector<32x128xf32>
    %c0_2 = arith.constant 0 : index
    %c0_3 = arith.constant 0 : index
    %4 = vector.load %arg3[%c0_2, %c0_3] : memref<32x512xbf16, #tpu.memory_space<vmem>>, vector<32x512xbf16>
    %c0_4 = arith.constant 0 : index
    %c0_5 = arith.constant 0 : index
    %5 = vector.load %arg4[%c0_4, %c0_5] : memref<512x128xbf16, #tpu.memory_space<vmem>>, vector<512x128xbf16>
    %cst = arith.constant dense<0.000000e+00> : vector<32x128xf32>
    %6 = tpu.matmul %4, %5, %cst {dimension_numbers = #tpu.dot_dimension_numbers<[1], [0], [0], [1], [0, 0, 1, 1], [], []>} : vector<32x512xbf16>, vector<512x128xbf16>, vector<32x128xf32> -> vector<32x128xf32>
    %7 = arith.addf %3, %6 : vector<32x128xf32>
    %c0_6 = arith.constant 0 : index
    %c0_7 = arith.constant 0 : index
    %8 = vector.load %arg7[%c0_6, %c0_7] : memref<32x128xf32, #tpu.memory_space<vmem>>, vector<32x128xf32>
    tpu.vector_store %arg7[%c0_6, %c0_7], %7 {strides = array<i32>} : memref<32x128xf32, #tpu.memory_space<vmem>>, vector<32x128xf32>,
    %c1_i32 = arith.constant 1 : i32
    %9 = arith.cmpi eq, %arg2, %c1_i32 : i32
    %10 = arith.extui %9 : i1 to i32
    %c0_i32_8 = arith.constant 0 : i32
    %11 = arith.cmpi ne, %10, %c0_i32_8 : i32
    scf.if %11 {
      %c0_9 = arith.constant 0 : index
      %c0_10 = arith.constant 0 : index
      %12 = vector.load %arg7[%c0_9, %c0_10] : memref<32x128xf32, #tpu.memory_space<vmem>>, vector<32x128xf32>
      %c0_11 = arith.constant 0 : index
      %c0_12 = arith.constant 0 : index
      %13 = vector.load %arg5[%c0_11, %c0_12] : memref<1x128xf32, #tpu.memory_space<vmem>>, vector<1x128xf32>
      %14 = vector.broadcast %13 : vector<1x128xf32> to vector<32x128xf32>
      %15 = arith.addf %12, %14 : vector<32x128xf32>
      %c0_13 = arith.constant 0 : index
      %c0_14 = arith.constant 0 : index
      %16 = vector.load %arg6[%c0_13, %c0_14] : memref<32x128xf32, #tpu.memory_space<vmem>>, vector<32x128xf32>
      tpu.vector_store %arg6[%c0_13, %c0_14], %15 {strides = array<i32>} : memref<32x128xf32, #tpu.memory_space<vmem>>, vector<32x128xf32>,
    } else {
    }
    return
  }
  func.func @transform_0(%arg0: i32, %arg1: i32, %arg2: i32) -> (i32, i32) {
    %c0_i32 = arith.constant 0 : i32
    return %arg0, %arg2 : i32, i32
  }
  func.func @transform_1(%arg0: i32, %arg1: i32, %arg2: i32) -> (i32, i32) {
    %c0_i32 = arith.constant 0 : i32
    return %arg2, %arg1 : i32, i32
  }
  func.func @transform_2(%arg0: i32, %arg1: i32, %arg2: i32) -> (i32, i32) {
    %c0_i32 = arith.constant 0 : i32
    %c0_i32_0 = arith.constant 0 : i32
    return %c0_i32, %arg1 : i32, i32
  }
  func.func @transform_3(%arg0: i32, %arg1: i32, %arg2: i32) -> (i32, i32) {
    %c0_i32 = arith.constant 0 : i32
    return %arg0, %arg1 : i32, i32
  }
}

module attributes {stable_mosaic.version = 11 : i64} {
  func.func @_gemm_kernel(%arg0: i32, %arg1: i32, %arg2: i32, %arg3: memref<32x256xbf16, #tpu.memory_space<vmem>>, %arg4: memref<256x128xbf16, #tpu.memory_space<vmem>>, %arg5: memref<1x128xf32, #tpu.memory_space<vmem>>, %arg6: memref<32x128xf32, #tpu.memory_space<vmem>>, %arg7: memref<32x128xf32, #tpu.memory_space<vmem>>) attributes {dimension_semantics = [#tpu.dimension_semantics<parallel>, #tpu.dimension_semantics<parallel>, #tpu.dimension_semantics<arbitrary>], iteration_bounds = array<i64: 1, 1, 1>, scalar_prefetch = 0 : i64, scratch_operands = 1 : i64, tpu.core_type = #tpu.core_type<tc>, window_params = [{transform_indices = @transform_0, window_bounds = array<i64: 32, 256>}, {transform_indices = @transform_1, window_bounds = array<i64: 256, 128>}, {transform_indices = @transform_2, window_bounds = array<i64: 1, 128>}, {transform_indices = @transform_3, window_bounds = array<i64: 32, 128>}]} {
    %c0_i32 = arith.constant 0 : i32
    %0 = arith.cmpi eq, %arg2, %c0_i32 : i32
    %1 = arith.extui %0 : i1 to i32
    %c0_i32_0 = arith.constant 0 : i32
    %2 = arith.cmpi ne, %1, %c0_i32_0 : i32
    scf.if %2 {
      %cst_10 = arith.constant 0.000000e+00 : f32
      %12 = vector.broadcast %cst_10 : f32 to vector<32x128xf32>
      %c0_11 = arith.constant 0 : index
      %c0_12 = arith.constant 0 : index
      %13 = vector.load %arg7[%c0_11, %c0_12] : memref<32x128xf32, #tpu.memory_space<vmem>>, vector<32x128xf32>
      tpu.vector_store %arg7[%c0_11, %c0_12], %12 {strides = array<i32>} : memref<32x128xf32, #tpu.memory_space<vmem>>, vector<32x128xf32>,
    } else {
    }
    %c0 = arith.constant 0 : index
    %c0_1 = arith.constant 0 : index
    %3 = vector.load %arg7[%c0, %c0_1] : memref<32x128xf32, #tpu.memory_space<vmem>>, vector<32x128xf32>
    %c0_2 = arith.constant 0 : index
    %c0_3 = arith.constant 0 : index
    %4 = vector.load %arg3[%c0_2, %c0_3] : memref<32x256xbf16, #tpu.memory_space<vmem>>, vector<32x256xbf16>
    %c0_4 = arith.constant 0 : index
    %c0_5 = arith.constant 0 : index
    %5 = vector.load %arg4[%c0_4, %c0_5] : memref<256x128xbf16, #tpu.memory_space<vmem>>, vector<256x128xbf16>
    %cst = arith.constant dense<0.000000e+00> : vector<32x128xf32>
    %6 = tpu.matmul %4, %5, %cst {dimension_numbers = #tpu.dot_dimension_numbers<[1], [0], [0], [1], [0, 0, 1, 1], [], []>} : vector<32x256xbf16>, vector<256x128xbf16>, vector<32x128xf32> -> vector<32x128xf32>
    %7 = arith.addf %3, %6 : vector<32x128xf32>
    %c0_6 = arith.constant 0 : index
    %c0_7 = arith.constant 0 : index
    %8 = vector.load %arg7[%c0_6, %c0_7] : memref<32x128xf32, #tpu.memory_space<vmem>>, vector<32x128xf32>
    tpu.vector_store %arg7[%c0_6, %c0_7], %7 {strides = array<i32>} : memref<32x128xf32, #tpu.memory_space<vmem>>, vector<32x128xf32>,
    %c0_i32_8 = arith.constant 0 : i32
    %9 = arith.cmpi eq, %arg2, %c0_i32_8 : i32
    %10 = arith.extui %9 : i1 to i32
    %c0_i32_9 = arith.constant 0 : i32
    %11 = arith.cmpi ne, %10, %c0_i32_9 : i32
    scf.if %11 {
      %c0_10 = arith.constant 0 : index
      %c0_11 = arith.constant 0 : index
      %12 = vector.load %arg7[%c0_10, %c0_11] : memref<32x128xf32, #tpu.memory_space<vmem>>, vector<32x128xf32>
      %c0_12 = arith.constant 0 : index
      %c0_13 = arith.constant 0 : index
      %13 = vector.load %arg5[%c0_12, %c0_13] : memref<1x128xf32, #tpu.memory_space<vmem>>, vector<1x128xf32>
      %14 = vector.broadcast %13 : vector<1x128xf32> to vector<32x128xf32>
      %15 = arith.addf %12, %14 : vector<32x128xf32>
      %c0_14 = arith.constant 0 : index
      %c0_15 = arith.constant 0 : index
      %16 = vector.load %arg6[%c0_14, %c0_15] : memref<32x128xf32, #tpu.memory_space<vmem>>, vector<32x128xf32>
      tpu.vector_store %arg6[%c0_14, %c0_15], %15 {strides = array<i32>} : memref<32x128xf32, #tpu.memory_space<vmem>>, vector<32x128xf32>,
    } else {
    }
    return
  }
  func.func @transform_0(%arg0: i32, %arg1: i32, %arg2: i32) -> (i32, i32) {
    %c0_i32 = arith.constant 0 : i32
    return %arg0, %arg2 : i32, i32
  }
  func.func @transform_1(%arg0: i32, %arg1: i32, %arg2: i32) -> (i32, i32) {
    %c0_i32 = arith.constant 0 : i32
    return %arg2, %arg1 : i32, i32
  }
  func.func @transform_2(%arg0: i32, %arg1: i32, %arg2: i32) -> (i32, i32) {
    %c0_i32 = arith.constant 0 : i32
    %c0_i32_0 = arith.constant 0 : i32
    return %c0_i32, %arg1 : i32, i32
  }
  func.func @transform_3(%arg0: i32, %arg1: i32, %arg2: i32) -> (i32, i32) {
    %c0_i32 = arith.constant 0 : i32
    return %arg0, %arg1 : i32, i32
  }
}

module attributes {stable_mosaic.version = 11 : i64} {
  func.func @_gemm_kernel(%arg0: i32, %arg1: i32, %arg2: i32, %arg3: memref<128x128xbf16, #tpu.memory_space<vmem>>, %arg4: memref<128x128xbf16, #tpu.memory_space<vmem>>, %arg5: memref<1x128xf32, #tpu.memory_space<vmem>>, %arg6: memref<128x128xf32, #tpu.memory_space<vmem>>, %arg7: memref<128x128xf32, #tpu.memory_space<vmem>>) attributes {dimension_semantics = [#tpu.dimension_semantics<parallel>, #tpu.dimension_semantics<parallel>, #tpu.dimension_semantics<arbitrary>], iteration_bounds = array<i64: 1, 1, 1>, scalar_prefetch = 0 : i64, scratch_operands = 1 : i64, tpu.core_type = #tpu.core_type<tc>, window_params = [{transform_indices = @transform_0, window_bounds = array<i64: 128, 128>}, {transform_indices = @transform_1, window_bounds = array<i64: 128, 128>}, {transform_indices = @transform_2, window_bounds = array<i64: 1, 128>}, {transform_indices = @transform_3, window_bounds = array<i64: 128, 128>}]} {
    %c0_i32 = arith.constant 0 : i32
    %0 = arith.cmpi eq, %arg2, %c0_i32 : i32
    %1 = arith.extui %0 : i1 to i32
    %c0_i32_0 = arith.constant 0 : i32
    %2 = arith.cmpi ne, %1, %c0_i32_0 : i32
    scf.if %2 {
      %cst_10 = arith.constant 0.000000e+00 : f32
      %12 = vector.broadcast %cst_10 : f32 to vector<128x128xf32>
      %c0_11 = arith.constant 0 : index
      %c0_12 = arith.constant 0 : index
      %13 = vector.load %arg7[%c0_11, %c0_12] : memref<128x128xf32, #tpu.memory_space<vmem>>, vector<128x128xf32>
      tpu.vector_store %arg7[%c0_11, %c0_12], %12 {strides = array<i32>} : memref<128x128xf32, #tpu.memory_space<vmem>>, vector<128x128xf32>,
    } else {
    }
    %c0 = arith.constant 0 : index
    %c0_1 = arith.constant 0 : index
    %3 = vector.load %arg7[%c0, %c0_1] : memref<128x128xf32, #tpu.memory_space<vmem>>, vector<128x128xf32>
    %c0_2 = arith.constant 0 : index
    %c0_3 = arith.constant 0 : index
    %4 = vector.load %arg3[%c0_2, %c0_3] : memref<128x128xbf16, #tpu.memory_space<vmem>>, vector<128x128xbf16>
    %c0_4 = arith.constant 0 : index
    %c0_5 = arith.constant 0 : index
    %5 = vector.load %arg4[%c0_4, %c0_5] : memref<128x128xbf16, #tpu.memory_space<vmem>>, vector<128x128xbf16>
    %cst = arith.constant dense<0.000000e+00> : vector<128x128xf32>
    %6 = tpu.matmul %4, %5, %cst {dimension_numbers = #tpu.dot_dimension_numbers<[1], [0], [0], [1], [0, 0, 1, 1], [], []>} : vector<128x128xbf16>, vector<128x128xbf16>, vector<128x128xf32> -> vector<128x128xf32>
    %7 = arith.addf %3, %6 : vector<128x128xf32>
    %c0_6 = arith.constant 0 : index
    %c0_7 = arith.constant 0 : index
    %8 = vector.load %arg7[%c0_6, %c0_7] : memref<128x128xf32, #tpu.memory_space<vmem>>, vector<128x128xf32>
    tpu.vector_store %arg7[%c0_6, %c0_7], %7 {strides = array<i32>} : memref<128x128xf32, #tpu.memory_space<vmem>>, vector<128x128xf32>,
    %c0_i32_8 = arith.constant 0 : i32
    %9 = arith.cmpi eq, %arg2, %c0_i32_8 : i32
    %10 = arith.extui %9 : i1 to i32
    %c0_i32_9 = arith.constant 0 : i32
    %11 = arith.cmpi ne, %10, %c0_i32_9 : i32
    scf.if %11 {
      %c0_10 = arith.constant 0 : index
      %c0_11 = arith.constant 0 : index
      %12 = vector.load %arg7[%c0_10, %c0_11] : memref<128x128xf32, #tpu.memory_space<vmem>>, vector<128x128xf32>
      %c0_12 = arith.constant 0 : index
      %c0_13 = arith.constant 0 : index
      %13 = vector.load %arg5[%c0_12, %c0_13] : memref<1x128xf32, #tpu.memory_space<vmem>>, vector<1x128xf32>
      %14 = vector.broadcast %13 : vector<1x128xf32> to vector<128x128xf32>
      %15 = arith.addf %12, %14 : vector<128x128xf32>
      %c0_14 = arith.constant 0 : index
      %c0_15 = arith.constant 0 : index
      %16 = vector.load %arg6[%c0_14, %c0_15] : memref<128x128xf32, #tpu.memory_space<vmem>>, vector<128x128xf32>
      tpu.vector_store %arg6[%c0_14, %c0_15], %15 {strides = array<i32>} : memref<128x128xf32, #tpu.memory_space<vmem>>, vector<128x128xf32>,
    } else {
    }
    return
  }
  func.func @transform_0(%arg0: i32, %arg1: i32, %arg2: i32) -> (i32, i32) {
    %c0_i32 = arith.constant 0 : i32
    return %arg0, %arg2 : i32, i32
  }
  func.func @transform_1(%arg0: i32, %arg1: i32, %arg2: i32) -> (i32, i32) {
    %c0_i32 = arith.constant 0 : i32
    return %arg2, %arg1 : i32, i32
  }
  func.func @transform_2(%arg0: i32, %arg1: i32, %arg2: i32) -> (i32, i32) {
    %c0_i32 = arith.constant 0 : i32
    %c0_i32_0 = arith.constant 0 : i32
    return %c0_i32, %arg1 : i32, i32
  }
  func.func @transform_3(%arg0: i32, %arg1: i32, %arg2: i32) -> (i32, i32) {
    %c0_i32 = arith.constant 0 : i32
    return %arg0, %arg1 : i32, i32
  }
}

module attributes {stable_mosaic.version = 11 : i64} {
  func.func @_gemm_kernel(%arg0: i32, %arg1: i32, %arg2: i32, %arg3: memref<128x512xbf16, #tpu.memory_space<vmem>>, %arg4: memref<512x128xbf16, #tpu.memory_space<vmem>>, %arg5: memref<1x128xf32, #tpu.memory_space<vmem>>, %arg6: memref<128x128xf32, #tpu.memory_space<vmem>>, %arg7: memref<128x128xf32, #tpu.memory_space<vmem>>) attributes {dimension_semantics = [#tpu.dimension_semantics<parallel>, #tpu.dimension_semantics<parallel>, #tpu.dimension_semantics<arbitrary>], iteration_bounds = array<i64: 1, 1, 1>, scalar_prefetch = 0 : i64, scratch_operands = 1 : i64, tpu.core_type = #tpu.core_type<tc>, window_params = [{transform_indices = @transform_0, window_bounds = array<i64: 128, 512>}, {transform_indices = @transform_1, window_bounds = array<i64: 512, 128>}, {transform_indices = @transform_2, window_bounds = array<i64: 1, 128>}, {transform_indices = @transform_3, window_bounds = array<i64: 128, 128>}]} {
    %c0_i32 = arith.constant 0 : i32
    %0 = arith.cmpi eq, %arg2, %c0_i32 : i32
    %1 = arith.extui %0 : i1 to i32
    %c0_i32_0 = arith.constant 0 : i32
    %2 = arith.cmpi ne, %1, %c0_i32_0 : i32
    scf.if %2 {
      %cst_10 = arith.constant 0.000000e+00 : f32
      %12 = vector.broadcast %cst_10 : f32 to vector<128x128xf32>
      %c0_11 = arith.constant 0 : index
      %c0_12 = arith.constant 0 : index
      %13 = vector.load %arg7[%c0_11, %c0_12] : memref<128x128xf32, #tpu.memory_space<vmem>>, vector<128x128xf32>
      tpu.vector_store %arg7[%c0_11, %c0_12], %12 {strides = array<i32>} : memref<128x128xf32, #tpu.memory_space<vmem>>, vector<128x128xf32>,
    } else {
    }
    %c0 = arith.constant 0 : index
    %c0_1 = arith.constant 0 : index
    %3 = vector.load %arg7[%c0, %c0_1] : memref<128x128xf32, #tpu.memory_space<vmem>>, vector<128x128xf32>
    %c0_2 = arith.constant 0 : index
    %c0_3 = arith.constant 0 : index
    %4 = vector.load %arg3[%c0_2, %c0_3] : memref<128x512xbf16, #tpu.memory_space<vmem>>, vector<128x512xbf16>
    %c0_4 = arith.constant 0 : index
    %c0_5 = arith.constant 0 : index
    %5 = vector.load %arg4[%c0_4, %c0_5] : memref<512x128xbf16, #tpu.memory_space<vmem>>, vector<512x128xbf16>
    %cst = arith.constant dense<0.000000e+00> : vector<128x128xf32>
    %6 = tpu.matmul %4, %5, %cst {dimension_numbers = #tpu.dot_dimension_numbers<[1], [0], [0], [1], [0, 0, 1, 1], [], []>} : vector<128x512xbf16>, vector<512x128xbf16>, vector<128x128xf32> -> vector<128x128xf32>
    %7 = arith.addf %3, %6 : vector<128x128xf32>
    %c0_6 = arith.constant 0 : index
    %c0_7 = arith.constant 0 : index
    %8 = vector.load %arg7[%c0_6, %c0_7] : memref<128x128xf32, #tpu.memory_space<vmem>>, vector<128x128xf32>
    tpu.vector_store %arg7[%c0_6, %c0_7], %7 {strides = array<i32>} : memref<128x128xf32, #tpu.memory_space<vmem>>, vector<128x128xf32>,
    %c0_i32_8 = arith.constant 0 : i32
    %9 = arith.cmpi eq, %arg2, %c0_i32_8 : i32
    %10 = arith.extui %9 : i1 to i32
    %c0_i32_9 = arith.constant 0 : i32
    %11 = arith.cmpi ne, %10, %c0_i32_9 : i32
    scf.if %11 {
      %c0_10 = arith.constant 0 : index
      %c0_11 = arith.constant 0 : index
      %12 = vector.load %arg7[%c0_10, %c0_11] : memref<128x128xf32, #tpu.memory_space<vmem>>, vector<128x128xf32>
      %c0_12 = arith.constant 0 : index
      %c0_13 = arith.constant 0 : index
      %13 = vector.load %arg5[%c0_12, %c0_13] : memref<1x128xf32, #tpu.memory_space<vmem>>, vector<1x128xf32>
      %14 = vector.broadcast %13 : vector<1x128xf32> to vector<128x128xf32>
      %15 = arith.addf %12, %14 : vector<128x128xf32>
      %c0_14 = arith.constant 0 : index
      %c0_15 = arith.constant 0 : index
      %16 = vector.load %arg6[%c0_14, %c0_15] : memref<128x128xf32, #tpu.memory_space<vmem>>, vector<128x128xf32>
      tpu.vector_store %arg6[%c0_14, %c0_15], %15 {strides = array<i32>} : memref<128x128xf32, #tpu.memory_space<vmem>>, vector<128x128xf32>,
    } else {
    }
    return
  }
  func.func @transform_0(%arg0: i32, %arg1: i32, %arg2: i32) -> (i32, i32) {
    %c0_i32 = arith.constant 0 : i32
    return %arg0, %arg2 : i32, i32
  }
  func.func @transform_1(%arg0: i32, %arg1: i32, %arg2: i32) -> (i32, i32) {
    %c0_i32 = arith.constant 0 : i32
    return %arg2, %arg1 : i32, i32
  }
  func.func @transform_2(%arg0: i32, %arg1: i32, %arg2: i32) -> (i32, i32) {
    %c0_i32 = arith.constant 0 : i32
    %c0_i32_0 = arith.constant 0 : i32
    return %c0_i32, %arg1 : i32, i32
  }
  func.func @transform_3(%arg0: i32, %arg1: i32, %arg2: i32) -> (i32, i32) {
    %c0_i32 = arith.constant 0 : i32
    return %arg0, %arg1 : i32, i32
  }
}

module attributes {stable_mosaic.version = 11 : i64} {
  func.func @_gemm_kernel(%arg0: i32, %arg1: i32, %arg2: i32, %arg3: memref<128x256xbf16, #tpu.memory_space<vmem>>, %arg4: memref<256x128xbf16, #tpu.memory_space<vmem>>, %arg5: memref<1x128xf32, #tpu.memory_space<vmem>>, %arg6: memref<128x128xf32, #tpu.memory_space<vmem>>, %arg7: memref<128x128xf32, #tpu.memory_space<vmem>>) attributes {dimension_semantics = [#tpu.dimension_semantics<parallel>, #tpu.dimension_semantics<parallel>, #tpu.dimension_semantics<arbitrary>], iteration_bounds = array<i64: 1, 1, 1>, scalar_prefetch = 0 : i64, scratch_operands = 1 : i64, tpu.core_type = #tpu.core_type<tc>, window_params = [{transform_indices = @transform_0, window_bounds = array<i64: 128, 256>}, {transform_indices = @transform_1, window_bounds = array<i64: 256, 128>}, {transform_indices = @transform_2, window_bounds = array<i64: 1, 128>}, {transform_indices = @transform_3, window_bounds = array<i64: 128, 128>}]} {
    %c0_i32 = arith.constant 0 : i32
    %0 = arith.cmpi eq, %arg2, %c0_i32 : i32
    %1 = arith.extui %0 : i1 to i32
    %c0_i32_0 = arith.constant 0 : i32
    %2 = arith.cmpi ne, %1, %c0_i32_0 : i32
    scf.if %2 {
      %cst_10 = arith.constant 0.000000e+00 : f32
      %12 = vector.broadcast %cst_10 : f32 to vector<128x128xf32>
      %c0_11 = arith.constant 0 : index
      %c0_12 = arith.constant 0 : index
      %13 = vector.load %arg7[%c0_11, %c0_12] : memref<128x128xf32, #tpu.memory_space<vmem>>, vector<128x128xf32>
      tpu.vector_store %arg7[%c0_11, %c0_12], %12 {strides = array<i32>} : memref<128x128xf32, #tpu.memory_space<vmem>>, vector<128x128xf32>,
    } else {
    }
    %c0 = arith.constant 0 : index
    %c0_1 = arith.constant 0 : index
    %3 = vector.load %arg7[%c0, %c0_1] : memref<128x128xf32, #tpu.memory_space<vmem>>, vector<128x128xf32>
    %c0_2 = arith.constant 0 : index
    %c0_3 = arith.constant 0 : index
    %4 = vector.load %arg3[%c0_2, %c0_3] : memref<128x256xbf16, #tpu.memory_space<vmem>>, vector<128x256xbf16>
    %c0_4 = arith.constant 0 : index
    %c0_5 = arith.constant 0 : index
    %5 = vector.load %arg4[%c0_4, %c0_5] : memref<256x128xbf16, #tpu.memory_space<vmem>>, vector<256x128xbf16>
    %cst = arith.constant dense<0.000000e+00> : vector<128x128xf32>
    %6 = tpu.matmul %4, %5, %cst {dimension_numbers = #tpu.dot_dimension_numbers<[1], [0], [0], [1], [0, 0, 1, 1], [], []>} : vector<128x256xbf16>, vector<256x128xbf16>, vector<128x128xf32> -> vector<128x128xf32>
    %7 = arith.addf %3, %6 : vector<128x128xf32>
    %c0_6 = arith.constant 0 : index
    %c0_7 = arith.constant 0 : index
    %8 = vector.load %arg7[%c0_6, %c0_7] : memref<128x128xf32, #tpu.memory_space<vmem>>, vector<128x128xf32>
    tpu.vector_store %arg7[%c0_6, %c0_7], %7 {strides = array<i32>} : memref<128x128xf32, #tpu.memory_space<vmem>>, vector<128x128xf32>,
    %c0_i32_8 = arith.constant 0 : i32
    %9 = arith.cmpi eq, %arg2, %c0_i32_8 : i32
    %10 = arith.extui %9 : i1 to i32
    %c0_i32_9 = arith.constant 0 : i32
    %11 = arith.cmpi ne, %10, %c0_i32_9 : i32
    scf.if %11 {
      %c0_10 = arith.constant 0 : index
      %c0_11 = arith.constant 0 : index
      %12 = vector.load %arg7[%c0_10, %c0_11] : memref<128x128xf32, #tpu.memory_space<vmem>>, vector<128x128xf32>
      %c0_12 = arith.constant 0 : index
      %c0_13 = arith.constant 0 : index
      %13 = vector.load %arg5[%c0_12, %c0_13] : memref<1x128xf32, #tpu.memory_space<vmem>>, vector<1x128xf32>
      %14 = vector.broadcast %13 : vector<1x128xf32> to vector<128x128xf32>
      %15 = arith.addf %12, %14 : vector<128x128xf32>
      %c0_14 = arith.constant 0 : index
      %c0_15 = arith.constant 0 : index
      %16 = vector.load %arg6[%c0_14, %c0_15] : memref<128x128xf32, #tpu.memory_space<vmem>>, vector<128x128xf32>
      tpu.vector_store %arg6[%c0_14, %c0_15], %15 {strides = array<i32>} : memref<128x128xf32, #tpu.memory_space<vmem>>, vector<128x128xf32>,
    } else {
    }
    return
  }
  func.func @transform_0(%arg0: i32, %arg1: i32, %arg2: i32) -> (i32, i32) {
    %c0_i32 = arith.constant 0 : i32
    return %arg0, %arg2 : i32, i32
  }
  func.func @transform_1(%arg0: i32, %arg1: i32, %arg2: i32) -> (i32, i32) {
    %c0_i32 = arith.constant 0 : i32
    return %arg2, %arg1 : i32, i32
  }
  func.func @transform_2(%arg0: i32, %arg1: i32, %arg2: i32) -> (i32, i32) {
    %c0_i32 = arith.constant 0 : i32
    %c0_i32_0 = arith.constant 0 : i32
    return %c0_i32, %arg1 : i32, i32
  }
  func.func @transform_3(%arg0: i32, %arg1: i32, %arg2: i32) -> (i32, i32) {
    %c0_i32 = arith.constant 0 : i32
    return %arg0, %arg1 : i32, i32
  }
}

module attributes {stable_mosaic.version = 11 : i64} {
  func.func @_gemm_kernel(%arg0: i32, %arg1: i32, %arg2: i32, %arg3: memref<512x128xbf16, #tpu.memory_space<vmem>>, %arg4: memref<128x128xbf16, #tpu.memory_space<vmem>>, %arg5: memref<1x128xf32, #tpu.memory_space<vmem>>, %arg6: memref<512x128xf32, #tpu.memory_space<vmem>>, %arg7: memref<512x128xf32, #tpu.memory_space<vmem>>) attributes {dimension_semantics = [#tpu.dimension_semantics<parallel>, #tpu.dimension_semantics<parallel>, #tpu.dimension_semantics<arbitrary>], iteration_bounds = array<i64: 1, 1, 49>, scalar_prefetch = 0 : i64, scratch_operands = 1 : i64, tpu.core_type = #tpu.core_type<tc>, window_params = [{transform_indices = @transform_0, window_bounds = array<i64: 512, 128>}, {transform_indices = @transform_1, window_bounds = array<i64: 128, 128>}, {transform_indices = @transform_2, window_bounds = array<i64: 1, 128>}, {transform_indices = @transform_3, window_bounds = array<i64: 512, 128>}]} {
    %c0_i32 = arith.constant 0 : i32
    %0 = arith.cmpi eq, %arg2, %c0_i32 : i32
    %1 = arith.extui %0 : i1 to i32
    %c0_i32_0 = arith.constant 0 : i32
    %2 = arith.cmpi ne, %1, %c0_i32_0 : i32
    scf.if %2 {
      %cst_9 = arith.constant 0.000000e+00 : f32
      %12 = vector.broadcast %cst_9 : f32 to vector<512x128xf32>
      %c0_10 = arith.constant 0 : index
      %c0_11 = arith.constant 0 : index
      %13 = vector.load %arg7[%c0_10, %c0_11] : memref<512x128xf32, #tpu.memory_space<vmem>>, vector<512x128xf32>
      tpu.vector_store %arg7[%c0_10, %c0_11], %12 {strides = array<i32>} : memref<512x128xf32, #tpu.memory_space<vmem>>, vector<512x128xf32>,
    } else {
    }
    %c0 = arith.constant 0 : index
    %c0_1 = arith.constant 0 : index
    %3 = vector.load %arg7[%c0, %c0_1] : memref<512x128xf32, #tpu.memory_space<vmem>>, vector<512x128xf32>
    %c0_2 = arith.constant 0 : index
    %c0_3 = arith.constant 0 : index
    %4 = vector.load %arg3[%c0_2, %c0_3] : memref<512x128xbf16, #tpu.memory_space<vmem>>, vector<512x128xbf16>
    %c0_4 = arith.constant 0 : index
    %c0_5 = arith.constant 0 : index
    %5 = vector.load %arg4[%c0_4, %c0_5] : memref<128x128xbf16, #tpu.memory_space<vmem>>, vector<128x128xbf16>
    %cst = arith.constant dense<0.000000e+00> : vector<512x128xf32>
    %6 = tpu.matmul %4, %5, %cst {dimension_numbers = #tpu.dot_dimension_numbers<[1], [0], [0], [1], [0, 0, 1, 1], [], []>} : vector<512x128xbf16>, vector<128x128xbf16>, vector<512x128xf32> -> vector<512x128xf32>
    %7 = arith.addf %3, %6 : vector<512x128xf32>
    %c0_6 = arith.constant 0 : index
    %c0_7 = arith.constant 0 : index
    %8 = vector.load %arg7[%c0_6, %c0_7] : memref<512x128xf32, #tpu.memory_space<vmem>>, vector<512x128xf32>
    tpu.vector_store %arg7[%c0_6, %c0_7], %7 {strides = array<i32>} : memref<512x128xf32, #tpu.memory_space<vmem>>, vector<512x128xf32>,
    %c48_i32 = arith.constant 48 : i32
    %9 = arith.cmpi eq, %arg2, %c48_i32 : i32
    %10 = arith.extui %9 : i1 to i32
    %c0_i32_8 = arith.constant 0 : i32
    %11 = arith.cmpi ne, %10, %c0_i32_8 : i32
    scf.if %11 {
      %c0_9 = arith.constant 0 : index
      %c0_10 = arith.constant 0 : index
      %12 = vector.load %arg7[%c0_9, %c0_10] : memref<512x128xf32, #tpu.memory_space<vmem>>, vector<512x128xf32>
      %c0_11 = arith.constant 0 : index
      %c0_12 = arith.constant 0 : index
      %13 = vector.load %arg5[%c0_11, %c0_12] : memref<1x128xf32, #tpu.memory_space<vmem>>, vector<1x128xf32>
      %14 = vector.broadcast %13 : vector<1x128xf32> to vector<512x128xf32>
      %15 = arith.addf %12, %14 : vector<512x128xf32>
      %16 = math.tanh %15 : vector<512x128xf32>
      %c0_13 = arith.constant 0 : index
      %c0_14 = arith.constant 0 : index
      %17 = vector.load %arg6[%c0_13, %c0_14] : memref<512x128xf32, #tpu.memory_space<vmem>>, vector<512x128xf32>
      tpu.vector_store %arg6[%c0_13, %c0_14], %16 {strides = array<i32>} : memref<512x128xf32, #tpu.memory_space<vmem>>, vector<512x128xf32>,
    } else {
    }
    return
  }
  func.func @transform_0(%arg0: i32, %arg1: i32, %arg2: i32) -> (i32, i32) {
    %c0_i32 = arith.constant 0 : i32
    return %arg0, %arg2 : i32, i32
  }
  func.func @transform_1(%arg0: i32, %arg1: i32, %arg2: i32) -> (i32, i32) {
    %c0_i32 = arith.constant 0 : i32
    return %arg2, %arg1 : i32, i32
  }
  func.func @transform_2(%arg0: i32, %arg1: i32, %arg2: i32) -> (i32, i32) {
    %c0_i32 = arith.constant 0 : i32
    %c0_i32_0 = arith.constant 0 : i32
    return %c0_i32, %arg1 : i32, i32
  }
  func.func @transform_3(%arg0: i32, %arg1: i32, %arg2: i32) -> (i32, i32) {
    %c0_i32 = arith.constant 0 : i32
    return %arg0, %arg1 : i32, i32
  }
}

</mosaic_0001>

<bundles_post_ra>
// kernel: generator_forward.54
= control target key start
LH: loop header
LB: loop body
LE: loop exit
PB: predicated region body
PF: predicated region fallthrough
CT: control target
= control target key end

     0   :  { %s862_s6 = smov 0   ;;  %s864_s7 = smov 0   ;;  %s1307_s0 = inlined_call_operand.vmem [shape: f32[2,256,128], index: 0, kind: input, shape index: {}]   ;;  %s1308_s1 = inlined_call_operand.vmem [shape: bf16[2,256,128], index: 1, kind: output, shape index: {}]  }
   0x1   :  { %s866_s8 = smov 0  }
   0x2 LB: > { %s23_s9 = sadd.s32 1, %s846_s7  ;;  %p634_p0 = scmp.ge.s32.totalorder %s850_s8, 1  ;;  %s850_s8 = sphi %s866_s8, %s11_s8   ;;  %s846_s7 = sphi %s864_s7, %s1310_s7   ;;  %s842_s6 = sphi %s862_s6, %s1309_s6  }
   0x3   : > { %p25_p1 = scmp.ge.s32.totalorder %s23_s9, 2  ;;  %p106_p2 = scmp.lt.s32.totalorder %s850_s8, 3 }
   0x5   : > { %s1312_s9 = smov (%p25_p1, %s23_s9), 0  ;;  %p107_p3 = pnand %p634_p0, %p106_p2 }
   0x6   : > { %p132_p4 = scmp.lt.s32.totalorder (!%p107_p3), %s842_s6, 1 }
   0x7   : > { %110 = sbr.rel (%p107_p3) target bundleno = 211 (0xd3), region = 24 }
   0xe   : > { %s1314_s6 = smov (!%p132_p4, %s842_s6), 1 }
   0xf   : > { %s673_s10 = sshll.u32 %s1314_s6, 8  ;;  %s674_s14 = sshll.u32 %s1314_s6, 7 }
  0x10   : > { %s886_s13 = scalar_lea.vmem %s1307_s0, %s673_s10  ;;  %s1232_s17 = scalar_lea.vmem %s1308_s1, %s674_s14 }
  0x11   : > { %v889_v0 = vld [vmem:[%s886_s13] sm:$0xff]  ;;  %v892_v1 = vld [vmem:[%s886_s13 + $0x8] sm:$0xff]  ;;  %v895_v2 = vld [vmem:[%s886_s13 + $0x10] sm:$0xff] }
  0x12   : > { %v180_v3 = vadd.f32 %v892_v1, %v889_v0  ;;  %v900_v4 = vld [vmem:[%s886_s13 + $0x18] sm:$0xff]  ;;  %v904_v6 = vld [vmem:[%s886_s13 + $0x20] sm:$0xff]  ;;  %v908_v8 = vld [vmem:[%s886_s13 + $0x28] sm:$0xff] }
  0x13   : > { %v912_v10 = vld [vmem:[%s886_s13 + $0x30] sm:$0xff]  ;;  %v916_v12 = vld [vmem:[%s886_s13 + $0x38] sm:$0xff]  ;;  %v920_v14 = vld [vmem:[%s886_s13 + $0x40] sm:$0xff] }
  0x14   : > { %v181_v5 = vadd.f32 %v180_v3, %v895_v2  ;;  %v924_v16 = vld [vmem:[%s886_s13 + $0x48] sm:$0xff]  ;;  %v928_v18 = vld [vmem:[%s886_s13 + $0x50] sm:$0xff]  ;;  %v932_v20 = vld [vmem:[%s886_s13 + $0x58] sm:$0xff] }
  0x15   : > { %v936_v22 = vld [vmem:[%s886_s13 + $0x60] sm:$0xff]  ;;  %v940_v24 = vld [vmem:[%s886_s13 + $0x68] sm:$0xff]  ;;  %v944_v26 = vld [vmem:[%s886_s13 + $0x70] sm:$0xff] }
  0x16   : > { %v182_v7 = vadd.f32 %v181_v5, %v900_v4  ;;  %v948_v28 = vld [vmem:[%s886_s13 + $0x78] sm:$0xff]  ;;  %v952_v30 = vld [vmem:[%s886_s13 + $0x80] sm:$0xff]  ;;  %v956_v32 = vld [vmem:[%s886_s13 + $0x88] sm:$0xff] }
  0x17   : > { %v960_v34 = vld [vmem:[%s886_s13 + $0x90] sm:$0xff]  ;;  %v964_v36 = vld [vmem:[%s886_s13 + $0x98] sm:$0xff]  ;;  %v968_v38 = vld [vmem:[%s886_s13 + $0xa0] sm:$0xff] }
  0x18   : > { %v183_v9 = vadd.f32 %v182_v7, %v904_v6  ;;  %v972_v40 = vld [vmem:[%s886_s13 + $0xa8] sm:$0xff]  ;;  %v976_v42 = vld [vmem:[%s886_s13 + $0xb0] sm:$0xff]  ;;  %v980_v44 = vld [vmem:[%s886_s13 + $0xb8] sm:$0xff] }
  0x19   : > { %v984_v46 = vld [vmem:[%s886_s13 + $0xc0] sm:$0xff]  ;;  %v988_v48 = vld [vmem:[%s886_s13 + $0xc8] sm:$0xff]  ;;  %v992_v50 = vld [vmem:[%s886_s13 + $0xd0] sm:$0xff] }
  0x1a   : > { %v184_v11 = vadd.f32 %v183_v9, %v908_v8  ;;  %v996_v52 = vld [vmem:[%s886_s13 + $0xd8] sm:$0xff]  ;;  %v1000_v54 = vld [vmem:[%s886_s13 + $0xe0] sm:$0xff]  ;;  %v1004_v56 = vld [vmem:[%s886_s13 + $0xe8] sm:$0xff] }
  0x1b   : > { %v1008_v58 = vld [vmem:[%s886_s13 + $0xf0] sm:$0xff]  ;;  %v1012_v60 = vld [vmem:[%s886_s13 + $0xf8] sm:$0xff] }
  0x1c   : > { %v185_v13 = vadd.f32 %v184_v11, %v912_v10 }
  0x1e   : > { %v186_v15 = vadd.f32 %v185_v13, %v916_v12 }
  0x20   : > { %v187_v17 = vadd.f32 %v186_v15, %v920_v14 }
  0x22   : > { %v188_v19 = vadd.f32 %v187_v17, %v924_v16 }
  0x24   : > { %v189_v21 = vadd.f32 %v188_v19, %v928_v18 }
  0x26   : > { %v190_v23 = vadd.f32 %v189_v21, %v932_v20 }
  0x28   : > { %v191_v25 = vadd.f32 %v190_v23, %v936_v22 }
  0x2a   : > { %v192_v27 = vadd.f32 %v191_v25, %v940_v24 }
  0x2c   : > { %v193_v29 = vadd.f32 %v192_v27, %v944_v26 }
  0x2e   : > { %v194_v31 = vadd.f32 %v193_v29, %v948_v28 }
  0x30   : > { %v195_v33 = vadd.f32 %v194_v31, %v952_v30 }
  0x32   : > { %v196_v35 = vadd.f32 %v195_v33, %v956_v32 }
  0x34   : > { %v197_v37 = vadd.f32 %v196_v35, %v960_v34 }
  0x36   : > { %v198_v39 = vadd.f32 %v197_v37, %v964_v36 }
  0x38   : > { %v199_v41 = vadd.f32 %v198_v39, %v968_v38 }
  0x3a   : > { %v200_v43 = vadd.f32 %v199_v41, %v972_v40 }
  0x3c   : > { %v201_v45 = vadd.f32 %v200_v43, %v976_v42 }
  0x3e   : > { %v202_v47 = vadd.f32 %v201_v45, %v980_v44 }
  0x40   : > { %v203_v49 = vadd.f32 %v202_v47, %v984_v46 }
  0x42   : > { %v204_v51 = vadd.f32 %v203_v49, %v988_v48 }
  0x44   : > { %v205_v53 = vadd.f32 %v204_v51, %v992_v50 }
  0x46   : > { %v206_v55 = vadd.f32 %v205_v53, %v996_v52 }
  0x48   : > { %v207_v57 = vadd.f32 %v206_v55, %v1000_v54 }
  0x4a   : > { %v208_v59 = vadd.f32 %v207_v57, %v1004_v56 }
  0x4c   : > { %v209_v61 = vadd.f32 %v208_v59, %v1008_v58 }
  0x4e   : > { %v210_v62 = vadd.f32 %v209_v61, %v1012_v60 }
  0x50   : > { %v211_v63 = vrot.slane %v210_v62, 4 }
  0x52   : > { %v212_v3 = vadd.f32 %v211_v63, %v210_v62 }
  0x54   : > { %v213_v5 = vrot.slane %v212_v3, 2 }
  0x56   : > { %v214_v7 = vadd.f32 %v213_v5, %v212_v3 }
  0x58   : > { %v215_v9 = vrot.slane %v214_v7, 1 }
  0x5a   : > { %v216_v11 = vadd.f32 %v215_v9, %v214_v7 }
  0x5c   : > { %v1016_v13 = vmul.f32 0.00390625, %v216_v11 }
  0x5e   : > { %v1020_v15 = vsub.f32 %v889_v0, %v1016_v13  ;;  %v1024_v17 = vsub.f32 %v892_v1, %v1016_v13  ;;  %v1028_v19 = vsub.f32 %v895_v2, %v1016_v13  ;;  %v1032_v21 = vsub.f32 %v900_v4, %v1016_v13 }
  0x5f   : > { %v1040_v0 = vsub.f32 %v904_v6, %v1016_v13  ;;  %v1046_v2 = vsub.f32 %v908_v8, %v1016_v13  ;;  %v1052_v29 = vsub.f32 %v912_v10, %v1016_v13  ;;  %v1058_v33 = vsub.f32 %v916_v12, %v1016_v13 }
  0x60   : > { %v251_v23 = vmul.f32 %v1020_v15, %v1020_v15  ;;  %v252_v25 = vmul.f32 %v1024_v17, %v1024_v17  ;;  %v253_v1 = vmul.f32 %v1028_v19, %v1028_v19  ;;  %v254_v4 = vmul.f32 %v1032_v21, %v1032_v21 }
  0x61   : > { %v255_v31 = vmul.f32 %v1040_v0, %v1040_v0  ;;  %v256_v8 = vmul.f32 %v1046_v2, %v1046_v2  ;;  %v1064_v37 = vsub.f32 %v920_v14, %v1016_v13  ;;  %v257_v10 = vmul.f32 %v1052_v29, %v1052_v29 }
  0x62   : > { %v283_v27 = vadd.f32 %v252_v25, %v251_v23  ;;  %v1070_v41 = vsub.f32 %v924_v16, %v1016_v13  ;;  %v258_v12 = vmul.f32 %v1058_v33, %v1058_v33  ;;  %v1076_v45 = vsub.f32 %v928_v18, %v1016_v13 }
  0x63   : > { %v259_v14 = vmul.f32 %v1064_v37, %v1064_v37  ;;  %v1082_v49 = vsub.f32 %v932_v20, %v1016_v13  ;;  %v1088_v53 = vsub.f32 %v936_v22, %v1016_v13  ;;  %v1094_v57 = vsub.f32 %v940_v24, %v1016_v13 }
  0x64   : > { %v284_v6 = vadd.f32 %v283_v27, %v253_v1  ;;  %v260_v16 = vmul.f32 %v1070_v41, %v1070_v41  ;;  %v261_v18 = vmul.f32 %v1076_v45, %v1076_v45  ;;  %v1100_v61 = vsub.f32 %v944_v26, %v1016_v13 }
  0x65   : > { %v262_v20 = vmul.f32 %v1082_v49, %v1082_v49  ;;  %v263_v22 = vmul.f32 %v1088_v53, %v1088_v53  ;;  %v1106_v63 = vsub.f32 %v948_v28, %v1016_v13  ;;  %v264_v24 = vmul.f32 %v1094_v57, %v1094_v57 }
  0x66   : > { %v285_v35 = vadd.f32 %v284_v6, %v254_v4  ;;  %v1112_v5 = vsub.f32 %v952_v30, %v1016_v13  ;;  %v265_v26 = vmul.f32 %v1100_v61, %v1100_v61  ;;  %v1118_v9 = vsub.f32 %v956_v32, %v1016_v13 }
  0x67   : > { %v266_v28 = vmul.f32 %v1106_v63, %v1106_v63  ;;  %v1124_v23 = vsub.f32 %v960_v34, %v1016_v13  ;;  %v1130_v1 = vsub.f32 %v964_v36, %v1016_v13  ;;  %v1136_v27 = vsub.f32 %v968_v38, %v1016_v13 }
  0x68   : > { %v286_v39 = vadd.f32 %v285_v35, %v255_v31  ;;  %v267_v30 = vmul.f32 %v1112_v5, %v1112_v5  ;;  %v268_v32 = vmul.f32 %v1118_v9, %v1118_v9  ;;  %v1142_v6 = vsub.f32 %v972_v40, %v1016_v13 }
  0x69   : > { %v269_v34 = vmul.f32 %v1124_v23, %v1124_v23  ;;  %v270_v36 = vmul.f32 %v1130_v1, %v1130_v1  ;;  %v1148_v35 = vsub.f32 %v976_v42, %v1016_v13  ;;  %v271_v38 = vmul.f32 %v1136_v27, %v1136_v27 }
  0x6a   : > { %v287_v43 = vadd.f32 %v286_v39, %v256_v8  ;;  %v1154_v39 = vsub.f32 %v980_v44, %v1016_v13  ;;  %v272_v40 = vmul.f32 %v1142_v6, %v1142_v6 }
  0x6b   : > { %v273_v42 = vmul.f32 %v1148_v35, %v1148_v35 }
  0x6c   : > { %v288_v47 = vadd.f32 %v287_v43, %v257_v10  ;;  %v1160_v43 = vsub.f32 %v984_v46, %v1016_v13  ;;  %v274_v44 = vmul.f32 %v1154_v39, %v1154_v39 }
  0x6e   : > { %v289_v51 = vadd.f32 %v288_v47, %v258_v12  ;;  %v1166_v47 = vsub.f32 %v988_v48, %v1016_v13  ;;  %v275_v46 = vmul.f32 %v1160_v43, %v1160_v43 }
  0x70   : > { %v290_v55 = vadd.f32 %v289_v51, %v259_v14  ;;  %v1172_v51 = vsub.f32 %v992_v50, %v1016_v13  ;;  %v276_v48 = vmul.f32 %v1166_v47, %v1166_v47 }
  0x72   : > { %v291_v59 = vadd.f32 %v290_v55, %v260_v16  ;;  %v1178_v55 = vsub.f32 %v996_v52, %v1016_v13  ;;  %v277_v50 = vmul.f32 %v1172_v51, %v1172_v51 }
  0x74   : > { %v292_v62 = vadd.f32 %v291_v59, %v261_v18  ;;  %v1184_v59 = vsub.f32 %v1000_v54, %v1016_v13  ;;  %v278_v52 = vmul.f32 %v1178_v55, %v1178_v55 }
  0x76   : > { %v293_v3 = vadd.f32 %v292_v62, %v262_v20  ;;  %v1190_v62 = vsub.f32 %v1004_v56, %v1016_v13  ;;  %v279_v54 = vmul.f32 %v1184_v59, %v1184_v59 }
  0x78   : > { %v294_v7 = vadd.f32 %v293_v3, %v263_v22  ;;  %v1196_v3 = vsub.f32 %v1008_v58, %v1016_v13  ;;  %v280_v56 = vmul.f32 %v1190_v62, %v1190_v62 }
  0x7a   : > { %v295_v11 = vadd.f32 %v294_v7, %v264_v24  ;;  %v1202_v7 = vsub.f32 %v1012_v60, %v1016_v13 }
  0x7c   : > { %v296_v25 = vadd.f32 %v295_v11, %v265_v26  ;;  %v281_v11 = vmul.f32 %v1196_v3, %v1196_v3  ;;  %v282_v58 = vmul.f32 %v1202_v7, %v1202_v7 }
  0x7e   : > { %v297_v4 = vadd.f32 %v296_v25, %v266_v28 }
  0x80   : > { %v298_v31 = vadd.f32 %v297_v4, %v267_v30 }
  0x82   : > { %v299_v8 = vadd.f32 %v298_v31, %v268_v32 }
  0x84   : > { %v300_v10 = vadd.f32 %v299_v8, %v269_v34 }
  0x86   : > { %v301_v12 = vadd.f32 %v300_v10, %v270_v36 }
  0x88   : > { %v302_v14 = vadd.f32 %v301_v12, %v271_v38 }
  0x8a   : > { %v303_v16 = vadd.f32 %v302_v14, %v272_v40 }
  0x8c   : > { %v304_v18 = vadd.f32 %v303_v16, %v273_v42 }
  0x8e   : > { %v305_v20 = vadd.f32 %v304_v18, %v274_v44 }
  0x90   : > { %v306_v22 = vadd.f32 %v305_v20, %v275_v46 }
  0x92   : > { %v307_v24 = vadd.f32 %v306_v22, %v276_v48 }
  0x94   : > { %v308_v26 = vadd.f32 %v307_v24, %v277_v50 }
  0x96   : > { %v309_v28 = vadd.f32 %v308_v26, %v278_v52 }
  0x98   : > { %v310_v30 = vadd.f32 %v309_v28, %v279_v54 }
  0x9a   : > { %v311_v25 = vadd.f32 %v310_v30, %v280_v56 }
  0x9c   : > { %v312_v32 = vadd.f32 %v311_v25, %v281_v11 }
  0x9e   : > { %v313_v4 = vadd.f32 %v312_v32, %v282_v58 }
  0xa0   : > { %v314_v34 = vrot.slane %v313_v4, 4 }
  0xa2   : > { %v315_v31 = vadd.f32 %v314_v34, %v313_v4 }
  0xa4   : > { %v316_v36 = vrot.slane %v315_v31, 2 }
  0xa6   : > { %v317_v60 = vadd.f32 %v316_v36, %v315_v31 }
  0xa8   : > { %v318_v13 = vrot.slane %v317_v60, 1 }
  0xaa   : > { %v319_v8 = vadd.f32 %v318_v13, %v317_v60 }
  0xac   : > { %v320_v38 = vmul.f32 0.00390625, %v319_v8 }
  0xae   : > { %v321_v10 = vadd.f32 1e-05, %v320_v38 }
  0xb0   : > { %826 = vrsqrt.f32 %v321_v10 }
  0xba   : > { %v1210_v40 = vpop.eup %826 }
  0xbb   : > { %v323_v12 = vmul.f32 %v1210_v40, %v1020_v15  ;;  %v324_v42 = vmul.f32 %v1210_v40, %v1024_v17  ;;  %v325_v14 = vmul.f32 %v1210_v40, %v1028_v19  ;;  %v326_v44 = vmul.f32 %v1210_v40, %v1032_v21 }
  0xbc   : > { %v327_v16 = vmul.f32 %v1210_v40, %v1040_v0  ;;  %v328_v46 = vmul.f32 %v1210_v40, %v1046_v2  ;;  %v329_v18 = vmul.f32 %v1210_v40, %v1052_v29  ;;  %v330_v15 = vmul.f32 %v1210_v40, %v1058_v33 }
  0xbd   : > { %v355_v48 = vmax.f32 %v323_v12, 0.0  ;;  %v356_v17 = vmax.f32 %v324_v42, 0.0  ;;  %v357_v20 = vmax.f32 %v325_v14, 0.0  ;;  %v358_v50 = vmax.f32 %v326_v44, 0.0 }
  0xbe   : > { %v359_v19 = vmax.f32 %v327_v16, 0.0  ;;  %v360_v21 = vmax.f32 %v328_v46, 0.0  ;;  %v361_v0 = vmax.f32 %v329_v18, 0.0  ;;  %v362_v2 = vmax.f32 %v330_v15, 0.0 }
  0xbf   : > { %v710_v29 = vpack.c.bf16 %v356_v17, %v355_v48  ;;  %v715_v22 = vpack.c.bf16 %v358_v50, %v357_v20  ;;  %v331_v33 = vmul.f32 %v1210_v40, %v1064_v37  ;;  %v332_v52 = vmul.f32 %v1210_v40, %v1070_v41 }
  0xc0   : > { %v720_v24 = vpack.c.bf16 %v360_v21, %v359_v19  ;;  %v725_v54 = vpack.c.bf16 %v362_v2, %v361_v0  ;;  %v333_v26 = vmul.f32 %v1210_v40, %v1076_v45  ;;  %v334_v56 = vmul.f32 %v1210_v40, %v1082_v49 }
  0xc1   : > { %711 = vst [vmem:[%s1232_s17] sm:$0xff] %v710_v29   ;;  %787 = vst [vmem:[%s1232_s17 + $0x8] sm:$0xff] %v715_v22   ;;  %v363_v28 = vmax.f32 %v331_v33, 0.0  ;;  %v364_v11 = vmax.f32 %v332_v52, 0.0  ;;  %v335_v30 = vmul.f32 %v1210_v40, %v1088_v53  ;;  %v336_v37 = vmul.f32 %v1210_v40, %v1094_v57 }
  0xc2   : > { %788 = vst [vmem:[%s1232_s17 + $0x10] sm:$0xff] %v720_v24   ;;  %789 = vst [vmem:[%s1232_s17 + $0x18] sm:$0xff] %v725_v54   ;;  %v365_v41 = vmax.f32 %v333_v26, 0.0  ;;  %v366_v58 = vmax.f32 %v334_v56, 0.0  ;;  %v337_v45 = vmul.f32 %v1210_v40, %v1100_v61  ;;  %v338_v49 = vmul.f32 %v1210_v40, %v1106_v63 }
  0xc3   : > { %v730_v25 = vpack.c.bf16 %v364_v11, %v363_v28  ;;  %v367_v32 = vmax.f32 %v335_v30, 0.0  ;;  %v368_v4 = vmax.f32 %v336_v37, 0.0  ;;  %v339_v53 = vmul.f32 %v1210_v40, %v1112_v5 }
  0xc4   : > { %v735_v34 = vpack.c.bf16 %v366_v58, %v365_v41  ;;  %v369_v57 = vmax.f32 %v337_v45, 0.0  ;;  %v370_v31 = vmax.f32 %v338_v49, 0.0  ;;  %v340_v36 = vmul.f32 %v1210_v40, %v1118_v9 }
  0xc5   : > { %790 = vst [vmem:[%s1232_s17 + $0x20] sm:$0xff] %v730_v25   ;;  %v740_v60 = vpack.c.bf16 %v368_v4, %v367_v32  ;;  %v371_v61 = vmax.f32 %v339_v53, 0.0  ;;  %v341_v63 = vmul.f32 %v1210_v40, %v1124_v23  ;;  %v342_v13 = vmul.f32 %v1210_v40, %v1130_v1 }
  0xc6   : > { %791 = vst [vmem:[%s1232_s17 + $0x28] sm:$0xff] %v735_v34   ;;  %v745_v8 = vpack.c.bf16 %v370_v31, %v369_v57  ;;  %v372_v38 = vmax.f32 %v340_v36, 0.0  ;;  %v343_v5 = vmul.f32 %v1210_v40, %v1136_v27  ;;  %v344_v9 = vmul.f32 %v1210_v40, %v1142_v6 }
  0xc7   : > { %792 = vst [vmem:[%s1232_s17 + $0x30] sm:$0xff] %v740_v60   ;;  %v373_v10 = vmax.f32 %v341_v63, 0.0  ;;  %v374_v12 = vmax.f32 %v342_v13, 0.0  ;;  %v345_v42 = vmul.f32 %v1210_v40, %v1148_v35  ;;  %v346_v23 = vmul.f32 %v1210_v40, %v1154_v39 }
  0xc8   : > { %793 = vst [vmem:[%s1232_s17 + $0x38] sm:$0xff] %v745_v8   ;;  %v750_v1 = vpack.c.bf16 %v372_v38, %v371_v61  ;;  %v375_v14 = vmax.f32 %v343_v5, 0.0  ;;  %v376_v44 = vmax.f32 %v344_v9, 0.0  ;;  %v347_v27 = vmul.f32 %v1210_v40, %v1160_v43 }
  0xc9   : > { %v755_v16 = vpack.c.bf16 %v374_v12, %v373_v10  ;;  %v377_v6 = vmax.f32 %v345_v42, 0.0  ;;  %v378_v46 = vmax.f32 %v346_v23, 0.0  ;;  %v348_v18 = vmul.f32 %v1210_v40, %v1166_v47 }
  0xca   : > { %794 = vst [vmem:[%s1232_s17 + $0x40] sm:$0xff] %v750_v1   ;;  %v760_v35 = vpack.c.bf16 %v376_v44, %v375_v14  ;;  %v379_v15 = vmax.f32 %v347_v27, 0.0  ;;  %v349_v39 = vmul.f32 %v1210_v40, %v1172_v51  ;;  %v350_v48 = vmul.f32 %v1210_v40, %v1178_v55 }
  0xcb   : > { %795 = vst [vmem:[%s1232_s17 + $0x48] sm:$0xff] %v755_v16   ;;  %v765_v17 = vpack.c.bf16 %v378_v46, %v377_v6  ;;  %v380_v43 = vmax.f32 %v348_v18, 0.0  ;;  %v351_v20 = vmul.f32 %v1210_v40, %v1184_v59  ;;  %v352_v47 = vmul.f32 %v1210_v40, %v1190_v62 }
  0xcc   : > { %796 = vst [vmem:[%s1232_s17 + $0x50] sm:$0xff] %v760_v35   ;;  %v381_v50 = vmax.f32 %v349_v39, 0.0  ;;  %v382_v19 = vmax.f32 %v350_v48, 0.0  ;;  %v353_v51 = vmul.f32 %v1210_v40, %v1196_v3  ;;  %v354_v55 = vmul.f32 %v1210_v40, %v1202_v7 }
  0xcd   : > { %797 = vst [vmem:[%s1232_s17 + $0x58] sm:$0xff] %v765_v17   ;;  %v770_v21 = vpack.c.bf16 %v380_v43, %v379_v15  ;;  %v383_v0 = vmax.f32 %v351_v20, 0.0  ;;  %v384_v2 = vmax.f32 %v352_v47, 0.0 }
  0xce   : > { %v775_v59 = vpack.c.bf16 %v382_v19, %v381_v50  ;;  %v385_v29 = vmax.f32 %v353_v51, 0.0  ;;  %v386_v22 = vmax.f32 %v354_v55, 0.0 }
  0xcf   : > { %798 = vst [vmem:[%s1232_s17 + $0x60] sm:$0xff] %v770_v21   ;;  %v780_v62 = vpack.c.bf16 %v384_v2, %v383_v0 }
  0xd0   : > { %799 = vst [vmem:[%s1232_s17 + $0x68] sm:$0xff] %v775_v59   ;;  %v785_v33 = vpack.c.bf16 %v386_v22, %v385_v29 }
  0xd1   : > { %800 = vst [vmem:[%s1232_s17 + $0x70] sm:$0xff] %v780_v62  }
  0xd2   : > { %801 = vst [vmem:[%s1232_s17 + $0x78] sm:$0xff] %v785_v33  }
  0xd3 PF: > { %s11_s8 = sadd.s32 1, %s850_s8   ;;  %s1309_s6 = smov %s846_s7 }
  0xd4   : > { %p8_p5 = scmp.ge.s32.totalorder %s11_s8, 4   ;;  %s1310_s7 = smov %s1312_s9 }
  0xd6   :  { %10 = sbr.rel (!%p8_p5) target bundleno = 2 (0x2), region = 54 }

// kernel: generator_forward.53
= control target key start
LH: loop header
LB: loop body
LE: loop exit
PB: predicated region body
PF: predicated region fallthrough
CT: control target
= control target key end

     0   :  { %v1508_v0 = vmov 0   ;;  %s2062_s1 = inlined_call_operand.vmem [shape: bf16[256,128], index: 1, kind: input, shape index: {}]   ;;  %s2063_s0 = inlined_call_operand.vmem [shape: bf16[512,256], index: 0, kind: input, shape index: {}]   ;;  %s2064_s2 = inlined_call_operand.vmem [shape: f32[1,128], index: 2, kind: input, shape index: {}]   ;;  %s2065_s3 = inlined_call_operand.vmem [shape: f32[512,128], index: 3, kind: output, shape index: {}]  }
   0x1   :  { %659 = vmatprep.subr.bf16.mxu0 %v1508_v0  ;;  %1363 = vmatprep.subr.bf16.mxu1 %v1508_v0  ;;  %v1396_v1 = vld [vmem:[%s2062_s1] sm:$0xff]   ;;  %v1397_v2 = vld [vmem:[%s2062_s1 + $0x8] sm:$0xff]   ;;  %v1398_v3 = vld [vmem:[%s2062_s1 + $0x10] sm:$0xff]  }
   0x2   :  { %660 = vmatpush1.bf16.msra.mxu0 %v1396_v1  ;;  %1379 = vmatpush1.bf16.msra.mxu1 %v1396_v1  ;;  %v1399_v4 = vld [vmem:[%s2062_s1 + $0x18] sm:$0xff]   ;;  %v1400_v5 = vld [vmem:[%s2062_s1 + $0x20] sm:$0xff]   ;;  %v1401_v7 = vld [vmem:[%s2062_s1 + $0x28] sm:$0xff]  }
   0x3   :  { %661 = vmatprep.subr.bf16.mxu0 %v1508_v0  ;;  %1364 = vmatprep.subr.bf16.mxu1 %v1508_v0  ;;  %v1414_v6 = vld [vmem:[%s2063_s0 + $0x4] ss:$8 sps:$4 sm:$0xff]   ;;  %v1402_v9 = vld [vmem:[%s2062_s1 + $0x30] sm:$0xff]   ;;  %v1403_v10 = vld [vmem:[%s2062_s1 + $0x38] sm:$0xff]  }
   0x4   :  { %v1417_v8 = vld [vmem:[%s2063_s0 + $0x104] ss:$8 sps:$4 sm:$0xff]   ;;  %691 = vmatprep.mubr.bf16.mxu0 %v1414_v6  ;;  %v1406_v13 = vld [vmem:[%s2062_s1 + $0x50] sm:$0xff]   ;;  %v1407_v14 = vld [vmem:[%s2062_s1 + $0x58] sm:$0xff]  }
   0x5   :  { %819 = vmatprep.mubr.bf16.mxu1 %v1417_v8  ;;  %v1404_v11 = vld [vmem:[%s2062_s1 + $0x40] sm:$0xff]   ;;  %v1405_v12 = vld [vmem:[%s2062_s1 + $0x48] sm:$0xff]   ;;  %v1410_v17 = vld [vmem:[%s2062_s1 + $0x70] sm:$0xff]  }
   0x6   :  { %662 = vmatpush1.bf16.msra.mxu0 %v1397_v2  ;;  %1380 = vmatpush1.bf16.msra.mxu1 %v1397_v2  ;;  %v1408_v15 = vld [vmem:[%s2062_s1 + $0x60] sm:$0xff]   ;;  %v1409_v16 = vld [vmem:[%s2062_s1 + $0x68] sm:$0xff]   ;;  %v1411_v18 = vld [vmem:[%s2062_s1 + $0x78] sm:$0xff]  }
   0x7   :  { %663 = vmatprep.subr.bf16.mxu0 %v1508_v0  ;;  %1365 = vmatprep.subr.bf16.mxu1 %v1508_v0  ;;  %v1412_v19 = vld [vmem:[%s2063_s0] ss:$8 sps:$4 sm:$0xff]   ;;  %v1418_v21 = vld [vmem:[%s2063_s0 + $0x14] ss:$8 sps:$4 sm:$0xff]   ;;  %v1422_v23 = vld [vmem:[%s2063_s0 + $0x10] ss:$8 sps:$4 sm:$0xff]  }
   0x8   :  { %v1415_v20 = vld [vmem:[%s2063_s0 + $0x100] ss:$8 sps:$4 sm:$0xff]   ;;  %v1420_v22 = vld [vmem:[%s2063_s0 + $0x114] ss:$8 sps:$4 sm:$0xff]   ;;  %v1423_v24 = vld [vmem:[%s2063_s0 + $0x110] ss:$8 sps:$4 sm:$0xff]  }
   0x9   :  { %v1424_v25 = vld [vmem:[%s2063_s0 + $0x24] ss:$8 sps:$4 sm:$0xff]   ;;  %v1428_v27 = vld [vmem:[%s2063_s0 + $0x20] ss:$8 sps:$4 sm:$0xff]   ;;  %v1430_v29 = vld [vmem:[%s2063_s0 + $0x34] ss:$8 sps:$4 sm:$0xff]  }
   0xa   :  { %664 = vmatpush1.bf16.msra.mxu0 %v1398_v3  ;;  %1381 = vmatpush1.bf16.msra.mxu1 %v1398_v3  ;;  %v1426_v26 = vld [vmem:[%s2063_s0 + $0x124] ss:$8 sps:$4 sm:$0xff]   ;;  %v1429_v28 = vld [vmem:[%s2063_s0 + $0x120] ss:$8 sps:$4 sm:$0xff]   ;;  %v1432_v30 = vld [vmem:[%s2063_s0 + $0x134] ss:$8 sps:$4 sm:$0xff]  }
   0xb   :  { %665 = vmatprep.subr.bf16.mxu0 %v1508_v0  ;;  %1366 = vmatprep.subr.bf16.mxu1 %v1508_v0  ;;  %v1434_v31 = vld [vmem:[%s2063_s0 + $0x30] ss:$8 sps:$4 sm:$0xff]   ;;  %v1436_v33 = vld [vmem:[%s2063_s0 + $0x44] ss:$8 sps:$4 sm:$0xff]   ;;  %v1440_v35 = vld [vmem:[%s2063_s0 + $0x40] ss:$8 sps:$4 sm:$0xff]  }
   0xc   :  { %v1435_v32 = vld [vmem:[%s2063_s0 + $0x130] ss:$8 sps:$4 sm:$0xff]   ;;  %v1438_v34 = vld [vmem:[%s2063_s0 + $0x144] ss:$8 sps:$4 sm:$0xff]   ;;  %v1441_v36 = vld [vmem:[%s2063_s0 + $0x140] ss:$8 sps:$4 sm:$0xff]  }
   0xd   :  { %v1442_v37 = vld [vmem:[%s2063_s0 + $0x54] ss:$8 sps:$4 sm:$0xff]   ;;  %v1446_v39 = vld [vmem:[%s2063_s0 + $0x50] ss:$8 sps:$4 sm:$0xff]   ;;  %v1448_v41 = vld [vmem:[%s2063_s0 + $0x64] ss:$8 sps:$4 sm:$0xff]  }
   0xe   :  { %666 = vmatpush1.bf16.msra.mxu0 %v1399_v4  ;;  %1382 = vmatpush1.bf16.msra.mxu1 %v1399_v4  ;;  %v1444_v38 = vld [vmem:[%s2063_s0 + $0x154] ss:$8 sps:$4 sm:$0xff]   ;;  %v1447_v40 = vld [vmem:[%s2063_s0 + $0x150] ss:$8 sps:$4 sm:$0xff]   ;;  %v1450_v42 = vld [vmem:[%s2063_s0 + $0x164] ss:$8 sps:$4 sm:$0xff]  }
   0xf   :  { %667 = vmatprep.subr.bf16.mxu0 %v1508_v0  ;;  %1367 = vmatprep.subr.bf16.mxu1 %v1508_v0  ;;  %v1452_v43 = vld [vmem:[%s2063_s0 + $0x60] ss:$8 sps:$4 sm:$0xff]   ;;  %v1454_v45 = vld [vmem:[%s2063_s0 + $0x74] ss:$8 sps:$4 sm:$0xff]   ;;  %v1458_v47 = vld [vmem:[%s2063_s0 + $0x70] ss:$8 sps:$4 sm:$0xff]  }
  0x10   :  { %v1453_v44 = vld [vmem:[%s2063_s0 + $0x160] ss:$8 sps:$4 sm:$0xff]   ;;  %v1456_v46 = vld [vmem:[%s2063_s0 + $0x174] ss:$8 sps:$4 sm:$0xff]   ;;  %v1459_v48 = vld [vmem:[%s2063_s0 + $0x170] ss:$8 sps:$4 sm:$0xff]  }
  0x11   :  { %v1460_v49 = vld [vmem:[%s2063_s0 + $0x84] ss:$8 sps:$4 sm:$0xff]   ;;  %v1464_v51 = vld [vmem:[%s2063_s0 + $0x80] ss:$8 sps:$4 sm:$0xff]   ;;  %v1466_v53 = vld [vmem:[%s2063_s0 + $0x94] ss:$8 sps:$4 sm:$0xff]  }
  0x12   :  { %668 = vmatpush1.bf16.msra.mxu0 %v1400_v5  ;;  %1383 = vmatpush1.bf16.msra.mxu1 %v1400_v5  ;;  %v1462_v50 = vld [vmem:[%s2063_s0 + $0x184] ss:$8 sps:$4 sm:$0xff]   ;;  %v1465_v52 = vld [vmem:[%s2063_s0 + $0x180] ss:$8 sps:$4 sm:$0xff]   ;;  %v1468_v54 = vld [vmem:[%s2063_s0 + $0x194] ss:$8 sps:$4 sm:$0xff]  }
  0x13   :  { %669 = vmatprep.subr.bf16.mxu0 %v1508_v0  ;;  %1368 = vmatprep.subr.bf16.mxu1 %v1508_v0  ;;  %v1470_v55 = vld [vmem:[%s2063_s0 + $0x90] ss:$8 sps:$4 sm:$0xff]   ;;  %v1472_v57 = vld [vmem:[%s2063_s0 + $0xa4] ss:$8 sps:$4 sm:$0xff]   ;;  %v1476_v59 = vld [vmem:[%s2063_s0 + $0xa0] ss:$8 sps:$4 sm:$0xff]  }
  0x14   :  { %v1471_v56 = vld [vmem:[%s2063_s0 + $0x190] ss:$8 sps:$4 sm:$0xff]   ;;  %v1474_v58 = vld [vmem:[%s2063_s0 + $0x1a4] ss:$8 sps:$4 sm:$0xff]   ;;  %v1477_v60 = vld [vmem:[%s2063_s0 + $0x1a0] ss:$8 sps:$4 sm:$0xff]  }
  0x15   :  { %v1478_v61 = vld [vmem:[%s2063_s0 + $0xb4] ss:$8 sps:$4 sm:$0xff]   ;;  %v1482_v63 = vld [vmem:[%s2063_s0 + $0xb0] ss:$8 sps:$4 sm:$0xff]   ;;  %v1484_v1 = vld [vmem:[%s2063_s0 + $0xc4] ss:$8 sps:$4 sm:$0xff]  }
  0x16   :  { %670 = vmatpush1.bf16.msra.mxu0 %v1401_v7  ;;  %1384 = vmatpush1.bf16.msra.mxu1 %v1401_v7  ;;  %v1480_v62 = vld [vmem:[%s2063_s0 + $0x1b4] ss:$8 sps:$4 sm:$0xff]   ;;  %v1486_v2 = vld [vmem:[%s2063_s0 + $0x1c4] ss:$8 sps:$4 sm:$0xff]   ;;  %v1488_v3 = vld [vmem:[%s2063_s0 + $0xc0] ss:$8 sps:$4 sm:$0xff]  }
  0x17   :  { %671 = vmatprep.subr.bf16.mxu0 %v1508_v0  ;;  %1369 = vmatprep.subr.bf16.mxu1 %v1508_v0  ;;  %v1489_v4 = vld [vmem:[%s2063_s0 + $0x1c0] ss:$8 sps:$4 sm:$0xff]   ;;  %v1490_v5 = vld [vmem:[%s2063_s0 + $0xd4] ss:$8 sps:$4 sm:$0xff]   ;;  %v1494_v7 = vld [vmem:[%s2063_s0 + $0xd0] ss:$8 sps:$4 sm:$0xff]  }
  0x18   :  { %v1492_v6 = vld [vmem:[%s2063_s0 + $0x1d4] ss:$8 sps:$4 sm:$0xff]   ;;  %v1495_v8 = vld [vmem:[%s2063_s0 + $0x1d0] ss:$8 sps:$4 sm:$0xff]  }
  0x1a   :  { %672 = vmatpush1.bf16.msra.mxu0 %v1402_v9  ;;  %1385 = vmatpush1.bf16.msra.mxu1 %v1402_v9  ;;  %v1496_v9 = vld [vmem:[%s2063_s0 + $0xe4] ss:$8 sps:$4 sm:$0xff]  }
  0x1b   :  { %673 = vmatprep.subr.bf16.mxu0 %v1508_v0  ;;  %1370 = vmatprep.subr.bf16.mxu1 %v1508_v0 }
  0x1e   :  { %674 = vmatpush1.bf16.msra.mxu0 %v1403_v10  ;;  %1386 = vmatpush1.bf16.msra.mxu1 %v1403_v10  ;;  %v1498_v10 = vld [vmem:[%s2063_s0 + $0x1e4] ss:$8 sps:$4 sm:$0xff]  }
  0x1f   :  { %675 = vmatprep.subr.bf16.mxu0 %v1508_v0  ;;  %1371 = vmatprep.subr.bf16.mxu1 %v1508_v0 }
  0x22   :  { %676 = vmatpush1.bf16.msra.mxu0 %v1404_v11  ;;  %1387 = vmatpush1.bf16.msra.mxu1 %v1404_v11  ;;  %v1500_v11 = vld [vmem:[%s2063_s0 + $0xe0] ss:$8 sps:$4 sm:$0xff]  }
  0x23   :  { %677 = vmatprep.subr.bf16.mxu0 %v1508_v0  ;;  %1372 = vmatprep.subr.bf16.mxu1 %v1508_v0 }
  0x26   :  { %678 = vmatpush1.bf16.msra.mxu0 %v1405_v12  ;;  %1388 = vmatpush1.bf16.msra.mxu1 %v1405_v12  ;;  %v1501_v12 = vld [vmem:[%s2063_s0 + $0x1e0] ss:$8 sps:$4 sm:$0xff]  }
  0x27   :  { %679 = vmatprep.subr.bf16.mxu0 %v1508_v0  ;;  %1373 = vmatprep.subr.bf16.mxu1 %v1508_v0 }
  0x2a   :  { %680 = vmatpush1.bf16.msra.mxu0 %v1406_v13  ;;  %1389 = vmatpush1.bf16.msra.mxu1 %v1406_v13  ;;  %v1502_v13 = vld [vmem:[%s2063_s0 + $0xf4] ss:$8 sps:$4 sm:$0xff]  }
  0x2b   :  { %681 = vmatprep.subr.bf16.mxu0 %v1508_v0  ;;  %1374 = vmatprep.subr.bf16.mxu1 %v1508_v0 }
  0x2e   :  { %682 = vmatpush1.bf16.msra.mxu0 %v1407_v14  ;;  %1390 = vmatpush1.bf16.msra.mxu1 %v1407_v14  ;;  %v1504_v14 = vld [vmem:[%s2063_s0 + $0x1f4] ss:$8 sps:$4 sm:$0xff]  }
  0x2f   :  { %683 = vmatprep.subr.bf16.mxu0 %v1508_v0  ;;  %1375 = vmatprep.subr.bf16.mxu1 %v1508_v0 }
  0x32   :  { %684 = vmatpush1.bf16.msra.mxu0 %v1408_v15  ;;  %1391 = vmatpush1.bf16.msra.mxu1 %v1408_v15  ;;  %v1506_v15 = vld [vmem:[%s2063_s0 + $0xf0] ss:$8 sps:$4 sm:$0xff]  }
  0x33   :  { %685 = vmatprep.subr.bf16.mxu0 %v1508_v0  ;;  %1376 = vmatprep.subr.bf16.mxu1 %v1508_v0 }
  0x36   :  { %686 = vmatpush1.bf16.msra.mxu0 %v1409_v16  ;;  %1392 = vmatpush1.bf16.msra.mxu1 %v1409_v16  ;;  %v1507_v16 = vld [vmem:[%s2063_s0 + $0x1f0] ss:$8 sps:$4 sm:$0xff]  }
  0x37   :  { %687 = vmatprep.subr.bf16.mxu0 %v1508_v0  ;;  %1377 = vmatprep.subr.bf16.mxu1 %v1508_v0 }
  0x3a   :  { %688 = vmatpush1.bf16.msra.mxu0 %v1410_v17  ;;  %1393 = vmatpush1.bf16.msra.mxu1 %v1410_v17  ;;  %v1804_v17 = vld [vmem:[%s2064_s2] ss:$0 sm:$0xff] }
  0x3b   :  { %689 = vmatprep.subr.bf16.mxu0 %v1508_v0  ;;  %1378 = vmatprep.subr.bf16.mxu1 %v1508_v0  ;;  %v1483_v0 = vld [vmem:[%s2063_s0 + $0x1b0] ss:$8 sps:$4 sm:$0xff]  }
  0x3e   :  { %690 = vmatpush1.bf16.msra.mxu0 %v1411_v18  ;;  %1394 = vmatpush1.bf16.msra.mxu1 %v1411_v18 }
  0x41   :  { %692 = vmatmul.mubr.bf16.vlgmr.msra.gmra.mrb[0].mxu0 %v1412_v19  ;;  %820 = vmatmul.mubr.bf16.vlgmr.msra.gmra.mrb[0].mxu1 %v1415_v20 }
  0x42   :  { %699 = vmatprep.mubr.bf16.mxu0 %v1418_v21  ;;  %827 = vmatprep.mubr.bf16.mxu1 %v1420_v22 }
  0x49   :  { %700 = vmatmul.mubr.bf16.gmra.mrb[4].mxu0 %v1422_v23  ;;  %828 = vmatmul.mubr.bf16.gmra.mrb[4].mxu1 %v1423_v24 }
  0x4a   :  { %707 = vmatprep.mubr.bf16.mxu0 %v1424_v25  ;;  %835 = vmatprep.mubr.bf16.mxu1 %v1426_v26 }
  0x51   :  { %708 = vmatmul.mubr.bf16.gmra.mrb[8].mxu0 %v1428_v27  ;;  %836 = vmatmul.mubr.bf16.gmra.mrb[8].mxu1 %v1429_v28 }
  0x52   :  { %715 = vmatprep.mubr.bf16.mxu0 %v1430_v29  ;;  %843 = vmatprep.mubr.bf16.mxu1 %v1432_v30 }
  0x59   :  { %716 = vmatmul.mubr.bf16.gmra.mrb[12].mxu0 %v1434_v31  ;;  %844 = vmatmul.mubr.bf16.gmra.mrb[12].mxu1 %v1435_v32 }
  0x5a   :  { %723 = vmatprep.mubr.bf16.mxu0 %v1436_v33  ;;  %851 = vmatprep.mubr.bf16.mxu1 %v1438_v34 }
  0x61   :  { %724 = vmatmul.mubr.bf16.gmra.mrb[16].mxu0 %v1440_v35  ;;  %852 = vmatmul.mubr.bf16.gmra.mrb[16].mxu1 %v1441_v36 }
  0x62   :  { %731 = vmatprep.mubr.bf16.mxu0 %v1442_v37  ;;  %859 = vmatprep.mubr.bf16.mxu1 %v1444_v38 }
  0x69   :  { %732 = vmatmul.mubr.bf16.gmra.mrb[20].mxu0 %v1446_v39  ;;  %860 = vmatmul.mubr.bf16.gmra.mrb[20].mxu1 %v1447_v40 }
  0x6a   :  { %739 = vmatprep.mubr.bf16.mxu0 %v1448_v41  ;;  %867 = vmatprep.mubr.bf16.mxu1 %v1450_v42 }
  0x71   :  { %740 = vmatmul.mubr.bf16.gmra.mrb[24].mxu0 %v1452_v43  ;;  %868 = vmatmul.mubr.bf16.gmra.mrb[24].mxu1 %v1453_v44 }
  0x72   :  { %747 = vmatprep.mubr.bf16.mxu0 %v1454_v45  ;;  %875 = vmatprep.mubr.bf16.mxu1 %v1456_v46 }
  0x79   :  { %748 = vmatmul.mubr.bf16.gmra.mrb[28].mxu0 %v1458_v47  ;;  %876 = vmatmul.mubr.bf16.gmra.mrb[28].mxu1 %v1459_v48 }
  0x7a   :  { %755 = vmatprep.mubr.bf16.mxu0 %v1460_v49  ;;  %883 = vmatprep.mubr.bf16.mxu1 %v1462_v50 }
  0x81   :  { %756 = vmatmul.mubr.bf16.gmra.mrb[32].mxu0 %v1464_v51  ;;  %884 = vmatmul.mubr.bf16.gmra.mrb[32].mxu1 %v1465_v52 }
  0x82   :  { %763 = vmatprep.mubr.bf16.mxu0 %v1466_v53  ;;  %891 = vmatprep.mubr.bf16.mxu1 %v1468_v54 }
  0x89   :  { %764 = vmatmul.mubr.bf16.gmra.mrb[36].mxu0 %v1470_v55  ;;  %892 = vmatmul.mubr.bf16.gmra.mrb[36].mxu1 %v1471_v56 }
  0x8a   :  { %771 = vmatprep.mubr.bf16.mxu0 %v1472_v57  ;;  %899 = vmatprep.mubr.bf16.mxu1 %v1474_v58 }
  0x91   :  { %772 = vmatmul.mubr.bf16.gmra.mrb[40].mxu0 %v1476_v59  ;;  %900 = vmatmul.mubr.bf16.gmra.mrb[40].mxu1 %v1477_v60 }
  0x92   :  { %779 = vmatprep.mubr.bf16.mxu0 %v1478_v61  ;;  %907 = vmatprep.mubr.bf16.mxu1 %v1480_v62 }
  0x99   :  { %780 = vmatmul.mubr.bf16.gmra.mrb[44].mxu0 %v1482_v63  ;;  %908 = vmatmul.mubr.bf16.gmra.mrb[44].mxu1 %v1483_v0 }
  0x9a   :  { %787 = vmatprep.mubr.bf16.mxu0 %v1484_v1  ;;  %915 = vmatprep.mubr.bf16.mxu1 %v1486_v2 }
  0xa1   :  { %788 = vmatmul.mubr.bf16.gmra.mrb[48].mxu0 %v1488_v3  ;;  %916 = vmatmul.mubr.bf16.gmra.mrb[48].mxu1 %v1489_v4 }
  0xa2   :  { %795 = vmatprep.mubr.bf16.mxu0 %v1490_v5  ;;  %923 = vmatprep.mubr.bf16.mxu1 %v1492_v6 }
  0xa9   :  { %796 = vmatmul.mubr.bf16.gmra.mrb[52].mxu0 %v1494_v7  ;;  %924 = vmatmul.mubr.bf16.gmra.mrb[52].mxu1 %v1495_v8 }
  0xaa   :  { %803 = vmatprep.mubr.bf16.mxu0 %v1496_v9  ;;  %931 = vmatprep.mubr.bf16.mxu1 %v1498_v10 }
  0xb1   :  { %804 = vmatmul.mubr.bf16.gmra.mrb[56].mxu0 %v1500_v11  ;;  %932 = vmatmul.mubr.bf16.gmra.mrb[56].mxu1 %v1501_v12 }
  0xb2   :  { %811 = vmatprep.mubr.bf16.mxu0 %v1502_v13  ;;  %939 = vmatprep.mubr.bf16.mxu1 %v1504_v14 }
  0xb9   :  { %812 = vmatmul.mubr.bf16.gmra.mrb[60].mxu0 %v1506_v15  ;;  %940 = vmatmul.mubr.bf16.gmra.mrb[60].mxu1 %v1507_v16 }
 0x114   :  { %v693_v18 = vpop.f32.mrb[0].mxu0  ;;  %v821_v19 = vpop.f32.mrb[0].mxu1 }
 0x115   :  { %v1150_v20 = vadd.f32 %v1804_v17, %v693_v18  ;;  %v1182_v21 = vadd.f32 %v1804_v17, %v821_v19  ;;  %v695_v22 = vpop.f32.mrb[1].mxu0  ;;  %v823_v23 = vpop.f32.mrb[1].mxu1 }
 0x116   :  { %v696_v24 = vpop.f32.mrb[2].mxu0  ;;  %v824_v25 = vpop.f32.mrb[2].mxu1 }
 0x117   :  { %1214 = vst [vmem:[%s2065_s3] sm:$0xff] %v1150_v20  ;;  %1246 = vst [vmem:[%s2065_s3 + $0x100] sm:$0xff] %v1182_v21  ;;  %v1151_v26 = vadd.f32 %v1804_v17, %v696_v24  ;;  %v1183_v27 = vadd.f32 %v1804_v17, %v824_v25  ;;  %v698_v28 = vpop.f32.mrb[3].mxu0  ;;  %v826_v29 = vpop.f32.mrb[3].mxu1 }
 0x119   :  { %1215 = vst [vmem:[%s2065_s3 + $0x8] sm:$0xff] %v1151_v26  ;;  %1247 = vst [vmem:[%s2065_s3 + $0x108] sm:$0xff] %v1183_v27 }
 0x11c   :  { %v701_v30 = vpop.f32.mrb[4].mxu0  ;;  %v829_v31 = vpop.f32.mrb[4].mxu1 }
 0x11d   :  { %v1152_v32 = vadd.f32 %v1804_v17, %v701_v30  ;;  %v1184_v33 = vadd.f32 %v1804_v17, %v829_v31  ;;  %v703_v34 = vpop.f32.mrb[5].mxu0  ;;  %v831_v35 = vpop.f32.mrb[5].mxu1 }
 0x11e   :  { %v704_v36 = vpop.f32.mrb[6].mxu0  ;;  %v832_v37 = vpop.f32.mrb[6].mxu1 }
 0x11f   :  { %1216 = vst [vmem:[%s2065_s3 + $0x10] sm:$0xff] %v1152_v32  ;;  %1248 = vst [vmem:[%s2065_s3 + $0x110] sm:$0xff] %v1184_v33  ;;  %v1153_v38 = vadd.f32 %v1804_v17, %v704_v36  ;;  %v1185_v39 = vadd.f32 %v1804_v17, %v832_v37  ;;  %v706_v40 = vpop.f32.mrb[7].mxu0  ;;  %v834_v41 = vpop.f32.mrb[7].mxu1 }
 0x121   :  { %1217 = vst [vmem:[%s2065_s3 + $0x18] sm:$0xff] %v1153_v38  ;;  %1249 = vst [vmem:[%s2065_s3 + $0x118] sm:$0xff] %v1185_v39 }
 0x124   :  { %v709_v42 = vpop.f32.mrb[8].mxu0  ;;  %v837_v43 = vpop.f32.mrb[8].mxu1 }
 0x125   :  { %v1154_v44 = vadd.f32 %v1804_v17, %v709_v42  ;;  %v1186_v45 = vadd.f32 %v1804_v17, %v837_v43  ;;  %v711_v46 = vpop.f32.mrb[9].mxu0  ;;  %v839_v47 = vpop.f32.mrb[9].mxu1 }
 0x126   :  { %v712_v48 = vpop.f32.mrb[10].mxu0  ;;  %v840_v49 = vpop.f32.mrb[10].mxu1 }
 0x127   :  { %1218 = vst [vmem:[%s2065_s3 + $0x20] sm:$0xff] %v1154_v44  ;;  %1250 = vst [vmem:[%s2065_s3 + $0x120] sm:$0xff] %v1186_v45  ;;  %v1155_v50 = vadd.f32 %v1804_v17, %v712_v48  ;;  %v1187_v51 = vadd.f32 %v1804_v17, %v840_v49  ;;  %v714_v52 = vpop.f32.mrb[11].mxu0  ;;  %v842_v53 = vpop.f32.mrb[11].mxu1 }
 0x129   :  { %1219 = vst [vmem:[%s2065_s3 + $0x28] sm:$0xff] %v1155_v50  ;;  %1251 = vst [vmem:[%s2065_s3 + $0x128] sm:$0xff] %v1187_v51 }
 0x12c   :  { %v717_v54 = vpop.f32.mrb[12].mxu0  ;;  %v845_v55 = vpop.f32.mrb[12].mxu1 }
 0x12d   :  { %v1156_v56 = vadd.f32 %v1804_v17, %v717_v54  ;;  %v1188_v57 = vadd.f32 %v1804_v17, %v845_v55  ;;  %v719_v58 = vpop.f32.mrb[13].mxu0  ;;  %v847_v59 = vpop.f32.mrb[13].mxu1 }
 0x12e   :  { %v720_v60 = vpop.f32.mrb[14].mxu0  ;;  %v848_v61 = vpop.f32.mrb[14].mxu1 }
 0x12f   :  { %1220 = vst [vmem:[%s2065_s3 + $0x30] sm:$0xff] %v1156_v56  ;;  %1252 = vst [vmem:[%s2065_s3 + $0x130] sm:$0xff] %v1188_v57  ;;  %v1157_v62 = vadd.f32 %v1804_v17, %v720_v60  ;;  %v1189_v63 = vadd.f32 %v1804_v17, %v848_v61  ;;  %v722_v0 = vpop.f32.mrb[15].mxu0  ;;  %v850_v1 = vpop.f32.mrb[15].mxu1 }
 0x131   :  { %1221 = vst [vmem:[%s2065_s3 + $0x38] sm:$0xff] %v1157_v62  ;;  %1253 = vst [vmem:[%s2065_s3 + $0x138] sm:$0xff] %v1189_v63 }
 0x134   :  { %v725_v2 = vpop.f32.mrb[16].mxu0  ;;  %v853_v3 = vpop.f32.mrb[16].mxu1 }
 0x135   :  { %v1158_v4 = vadd.f32 %v1804_v17, %v725_v2  ;;  %v1190_v5 = vadd.f32 %v1804_v17, %v853_v3  ;;  %v727_v6 = vpop.f32.mrb[17].mxu0  ;;  %v855_v7 = vpop.f32.mrb[17].mxu1 }
 0x136   :  { %v728_v8 = vpop.f32.mrb[18].mxu0  ;;  %v856_v9 = vpop.f32.mrb[18].mxu1 }
 0x137   :  { %1222 = vst [vmem:[%s2065_s3 + $0x40] sm:$0xff] %v1158_v4  ;;  %1254 = vst [vmem:[%s2065_s3 + $0x140] sm:$0xff] %v1190_v5  ;;  %v1159_v10 = vadd.f32 %v1804_v17, %v728_v8  ;;  %v1191_v11 = vadd.f32 %v1804_v17, %v856_v9  ;;  %v730_v12 = vpop.f32.mrb[19].mxu0  ;;  %v858_v13 = vpop.f32.mrb[19].mxu1 }
 0x139   :  { %1223 = vst [vmem:[%s2065_s3 + $0x48] sm:$0xff] %v1159_v10  ;;  %1255 = vst [vmem:[%s2065_s3 + $0x148] sm:$0xff] %v1191_v11 }
 0x13c   :  { %v733_v14 = vpop.f32.mrb[20].mxu0  ;;  %v861_v15 = vpop.f32.mrb[20].mxu1 }
 0x13d   :  { %v1160_v16 = vadd.f32 %v1804_v17, %v733_v14  ;;  %v1192_v18 = vadd.f32 %v1804_v17, %v861_v15  ;;  %v735_v19 = vpop.f32.mrb[21].mxu0  ;;  %v863_v20 = vpop.f32.mrb[21].mxu1 }
 0x13e   :  { %v736_v21 = vpop.f32.mrb[22].mxu0  ;;  %v864_v22 = vpop.f32.mrb[22].mxu1 }
 0x13f   :  { %1224 = vst [vmem:[%s2065_s3 + $0x50] sm:$0xff] %v1160_v16  ;;  %1256 = vst [vmem:[%s2065_s3 + $0x150] sm:$0xff] %v1192_v18  ;;  %v1161_v23 = vadd.f32 %v1804_v17, %v736_v21  ;;  %v1193_v24 = vadd.f32 %v1804_v17, %v864_v22  ;;  %v738_v25 = vpop.f32.mrb[23].mxu0  ;;  %v866_v26 = vpop.f32.mrb[23].mxu1 }
 0x141   :  { %1225 = vst [vmem:[%s2065_s3 + $0x58] sm:$0xff] %v1161_v23  ;;  %1257 = vst [vmem:[%s2065_s3 + $0x158] sm:$0xff] %v1193_v24 }
 0x144   :  { %v741_v27 = vpop.f32.mrb[24].mxu0  ;;  %v869_v28 = vpop.f32.mrb[24].mxu1 }
 0x145   :  { %v1162_v29 = vadd.f32 %v1804_v17, %v741_v27  ;;  %v1194_v30 = vadd.f32 %v1804_v17, %v869_v28  ;;  %v743_v31 = vpop.f32.mrb[25].mxu0  ;;  %v871_v32 = vpop.f32.mrb[25].mxu1 }
 0x146   :  { %v744_v33 = vpop.f32.mrb[26].mxu0  ;;  %v872_v34 = vpop.f32.mrb[26].mxu1 }
 0x147   :  { %1226 = vst [vmem:[%s2065_s3 + $0x60] sm:$0xff] %v1162_v29  ;;  %1258 = vst [vmem:[%s2065_s3 + $0x160] sm:$0xff] %v1194_v30  ;;  %v1163_v35 = vadd.f32 %v1804_v17, %v744_v33  ;;  %v1195_v36 = vadd.f32 %v1804_v17, %v872_v34  ;;  %v746_v37 = vpop.f32.mrb[27].mxu0  ;;  %v874_v38 = vpop.f32.mrb[27].mxu1 }
 0x149   :  { %1227 = vst [vmem:[%s2065_s3 + $0x68] sm:$0xff] %v1163_v35  ;;  %1259 = vst [vmem:[%s2065_s3 + $0x168] sm:$0xff] %v1195_v36 }
 0x14c   :  { %v749_v39 = vpop.f32.mrb[28].mxu0  ;;  %v877_v40 = vpop.f32.mrb[28].mxu1 }
 0x14d   :  { %v1164_v41 = vadd.f32 %v1804_v17, %v749_v39  ;;  %v1196_v42 = vadd.f32 %v1804_v17, %v877_v40  ;;  %v751_v43 = vpop.f32.mrb[29].mxu0  ;;  %v879_v44 = vpop.f32.mrb[29].mxu1 }
 0x14e   :  { %v752_v45 = vpop.f32.mrb[30].mxu0  ;;  %v880_v46 = vpop.f32.mrb[30].mxu1 }
 0x14f   :  { %1228 = vst [vmem:[%s2065_s3 + $0x70] sm:$0xff] %v1164_v41  ;;  %1260 = vst [vmem:[%s2065_s3 + $0x170] sm:$0xff] %v1196_v42  ;;  %v1165_v47 = vadd.f32 %v1804_v17, %v752_v45  ;;  %v1197_v48 = vadd.f32 %v1804_v17, %v880_v46  ;;  %v754_v49 = vpop.f32.mrb[31].mxu0  ;;  %v882_v50 = vpop.f32.mrb[31].mxu1 }
 0x151   :  { %1229 = vst [vmem:[%s2065_s3 + $0x78] sm:$0xff] %v1165_v47  ;;  %1261 = vst [vmem:[%s2065_s3 + $0x178] sm:$0xff] %v1197_v48 }
 0x154   :  { %v757_v51 = vpop.f32.mrb[32].mxu0  ;;  %v885_v52 = vpop.f32.mrb[32].mxu1 }
 0x155   :  { %v1166_v53 = vadd.f32 %v1804_v17, %v757_v51  ;;  %v1198_v54 = vadd.f32 %v1804_v17, %v885_v52  ;;  %v759_v55 = vpop.f32.mrb[33].mxu0  ;;  %v887_v56 = vpop.f32.mrb[33].mxu1 }
 0x156   :  { %v760_v57 = vpop.f32.mrb[34].mxu0  ;;  %v888_v58 = vpop.f32.mrb[34].mxu1 }
 0x157   :  { %1230 = vst [vmem:[%s2065_s3 + $0x80] sm:$0xff] %v1166_v53  ;;  %1262 = vst [vmem:[%s2065_s3 + $0x180] sm:$0xff] %v1198_v54  ;;  %v1167_v59 = vadd.f32 %v1804_v17, %v760_v57  ;;  %v1199_v60 = vadd.f32 %v1804_v17, %v888_v58  ;;  %v762_v61 = vpop.f32.mrb[35].mxu0  ;;  %v890_v62 = vpop.f32.mrb[35].mxu1 }
 0x159   :  { %1231 = vst [vmem:[%s2065_s3 + $0x88] sm:$0xff] %v1167_v59  ;;  %1263 = vst [vmem:[%s2065_s3 + $0x188] sm:$0xff] %v1199_v60 }
 0x15c   :  { %v765_v63 = vpop.f32.mrb[36].mxu0  ;;  %v893_v0 = vpop.f32.mrb[36].mxu1 }
 0x15d   :  { %v1168_v1 = vadd.f32 %v1804_v17, %v765_v63  ;;  %v1200_v2 = vadd.f32 %v1804_v17, %v893_v0  ;;  %v767_v3 = vpop.f32.mrb[37].mxu0  ;;  %v895_v4 = vpop.f32.mrb[37].mxu1 }
 0x15e   :  { %v768_v5 = vpop.f32.mrb[38].mxu0  ;;  %v896_v6 = vpop.f32.mrb[38].mxu1 }
 0x15f   :  { %1232 = vst [vmem:[%s2065_s3 + $0x90] sm:$0xff] %v1168_v1  ;;  %1264 = vst [vmem:[%s2065_s3 + $0x190] sm:$0xff] %v1200_v2  ;;  %v1169_v7 = vadd.f32 %v1804_v17, %v768_v5  ;;  %v1201_v8 = vadd.f32 %v1804_v17, %v896_v6  ;;  %v770_v9 = vpop.f32.mrb[39].mxu0  ;;  %v898_v10 = vpop.f32.mrb[39].mxu1 }
 0x161   :  { %1233 = vst [vmem:[%s2065_s3 + $0x98] sm:$0xff] %v1169_v7  ;;  %1265 = vst [vmem:[%s2065_s3 + $0x198] sm:$0xff] %v1201_v8 }
 0x164   :  { %v773_v11 = vpop.f32.mrb[40].mxu0  ;;  %v901_v12 = vpop.f32.mrb[40].mxu1 }
 0x165   :  { %v1170_v13 = vadd.f32 %v1804_v17, %v773_v11  ;;  %v1202_v14 = vadd.f32 %v1804_v17, %v901_v12  ;;  %v775_v15 = vpop.f32.mrb[41].mxu0  ;;  %v903_v16 = vpop.f32.mrb[41].mxu1 }
 0x166   :  { %v776_v18 = vpop.f32.mrb[42].mxu0  ;;  %v904_v19 = vpop.f32.mrb[42].mxu1 }
 0x167   :  { %1234 = vst [vmem:[%s2065_s3 + $0xa0] sm:$0xff] %v1170_v13  ;;  %1266 = vst [vmem:[%s2065_s3 + $0x1a0] sm:$0xff] %v1202_v14  ;;  %v1171_v20 = vadd.f32 %v1804_v17, %v776_v18  ;;  %v1203_v21 = vadd.f32 %v1804_v17, %v904_v19  ;;  %v778_v22 = vpop.f32.mrb[43].mxu0  ;;  %v906_v23 = vpop.f32.mrb[43].mxu1 }
 0x169   :  { %1235 = vst [vmem:[%s2065_s3 + $0xa8] sm:$0xff] %v1171_v20  ;;  %1267 = vst [vmem:[%s2065_s3 + $0x1a8] sm:$0xff] %v1203_v21 }
 0x16c   :  { %v781_v24 = vpop.f32.mrb[44].mxu0  ;;  %v909_v25 = vpop.f32.mrb[44].mxu1 }
 0x16d   :  { %v1172_v26 = vadd.f32 %v1804_v17, %v781_v24  ;;  %v1204_v27 = vadd.f32 %v1804_v17, %v909_v25  ;;  %v783_v28 = vpop.f32.mrb[45].mxu0  ;;  %v911_v29 = vpop.f32.mrb[45].mxu1 }
 0x16e   :  { %v784_v30 = vpop.f32.mrb[46].mxu0  ;;  %v912_v31 = vpop.f32.mrb[46].mxu1 }
 0x16f   :  { %1236 = vst [vmem:[%s2065_s3 + $0xb0] sm:$0xff] %v1172_v26  ;;  %1268 = vst [vmem:[%s2065_s3 + $0x1b0] sm:$0xff] %v1204_v27  ;;  %v1173_v32 = vadd.f32 %v1804_v17, %v784_v30  ;;  %v1205_v33 = vadd.f32 %v1804_v17, %v912_v31  ;;  %v786_v34 = vpop.f32.mrb[47].mxu0  ;;  %v914_v35 = vpop.f32.mrb[47].mxu1 }
 0x171   :  { %1237 = vst [vmem:[%s2065_s3 + $0xb8] sm:$0xff] %v1173_v32  ;;  %1269 = vst [vmem:[%s2065_s3 + $0x1b8] sm:$0xff] %v1205_v33 }
 0x174   :  { %v789_v36 = vpop.f32.mrb[48].mxu0  ;;  %v917_v37 = vpop.f32.mrb[48].mxu1 }
 0x175   :  { %v1174_v38 = vadd.f32 %v1804_v17, %v789_v36  ;;  %v1206_v39 = vadd.f32 %v1804_v17, %v917_v37  ;;  %v791_v40 = vpop.f32.mrb[49].mxu0  ;;  %v919_v41 = vpop.f32.mrb[49].mxu1 }
 0x176   :  { %v792_v42 = vpop.f32.mrb[50].mxu0  ;;  %v920_v43 = vpop.f32.mrb[50].mxu1 }
 0x177   :  { %1238 = vst [vmem:[%s2065_s3 + $0xc0] sm:$0xff] %v1174_v38  ;;  %1270 = vst [vmem:[%s2065_s3 + $0x1c0] sm:$0xff] %v1206_v39  ;;  %v1175_v44 = vadd.f32 %v1804_v17, %v792_v42  ;;  %v1207_v45 = vadd.f32 %v1804_v17, %v920_v43  ;;  %v794_v46 = vpop.f32.mrb[51].mxu0  ;;  %v922_v47 = vpop.f32.mrb[51].mxu1 }
 0x179   :  { %1239 = vst [vmem:[%s2065_s3 + $0xc8] sm:$0xff] %v1175_v44  ;;  %1271 = vst [vmem:[%s2065_s3 + $0x1c8] sm:$0xff] %v1207_v45 }
 0x17c   :  { %v797_v48 = vpop.f32.mrb[52].mxu0  ;;  %v925_v49 = vpop.f32.mrb[52].mxu1 }
 0x17d   :  { %v1176_v50 = vadd.f32 %v1804_v17, %v797_v48  ;;  %v1208_v51 = vadd.f32 %v1804_v17, %v925_v49  ;;  %v799_v52 = vpop.f32.mrb[53].mxu0  ;;  %v927_v53 = vpop.f32.mrb[53].mxu1 }
 0x17e   :  { %v800_v54 = vpop.f32.mrb[54].mxu0  ;;  %v928_v55 = vpop.f32.mrb[54].mxu1 }
 0x17f   :  { %1240 = vst [vmem:[%s2065_s3 + $0xd0] sm:$0xff] %v1176_v50  ;;  %1272 = vst [vmem:[%s2065_s3 + $0x1d0] sm:$0xff] %v1208_v51  ;;  %v1177_v56 = vadd.f32 %v1804_v17, %v800_v54  ;;  %v1209_v57 = vadd.f32 %v1804_v17, %v928_v55  ;;  %v802_v58 = vpop.f32.mrb[55].mxu0  ;;  %v930_v59 = vpop.f32.mrb[55].mxu1 }
 0x181   :  { %1241 = vst [vmem:[%s2065_s3 + $0xd8] sm:$0xff] %v1177_v56  ;;  %1273 = vst [vmem:[%s2065_s3 + $0x1d8] sm:$0xff] %v1209_v57 }
 0x184   :  { %v805_v60 = vpop.f32.mrb[56].mxu0  ;;  %v933_v61 = vpop.f32.mrb[56].mxu1 }
 0x185   :  { %v1178_v62 = vadd.f32 %v1804_v17, %v805_v60  ;;  %v1210_v63 = vadd.f32 %v1804_v17, %v933_v61  ;;  %v807_v0 = vpop.f32.mrb[57].mxu0  ;;  %v935_v1 = vpop.f32.mrb[57].mxu1 }
 0x186   :  { %v808_v2 = vpop.f32.mrb[58].mxu0  ;;  %v936_v3 = vpop.f32.mrb[58].mxu1 }
 0x187   :  { %1242 = vst [vmem:[%s2065_s3 + $0xe0] sm:$0xff] %v1178_v62  ;;  %1274 = vst [vmem:[%s2065_s3 + $0x1e0] sm:$0xff] %v1210_v63  ;;  %v1179_v4 = vadd.f32 %v1804_v17, %v808_v2  ;;  %v1211_v5 = vadd.f32 %v1804_v17, %v936_v3  ;;  %v810_v6 = vpop.f32.mrb[59].mxu0  ;;  %v938_v7 = vpop.f32.mrb[59].mxu1 }
 0x189   :  { %1243 = vst [vmem:[%s2065_s3 + $0xe8] sm:$0xff] %v1179_v4  ;;  %1275 = vst [vmem:[%s2065_s3 + $0x1e8] sm:$0xff] %v1211_v5 }
 0x18c   :  { %v813_v8 = vpop.f32.mrb[60].mxu0  ;;  %v941_v9 = vpop.f32.mrb[60].mxu1 }
 0x18d   :  { %v1180_v10 = vadd.f32 %v1804_v17, %v813_v8  ;;  %v1212_v11 = vadd.f32 %v1804_v17, %v941_v9  ;;  %v815_v12 = vpop.f32.mrb[61].mxu0  ;;  %v943_v13 = vpop.f32.mrb[61].mxu1 }
 0x18e   :  { %v816_v14 = vpop.f32.mrb[62].mxu0  ;;  %v944_v15 = vpop.f32.mrb[62].mxu1 }
 0x18f   :  { %1244 = vst [vmem:[%s2065_s3 + $0xf0] sm:$0xff] %v1180_v10  ;;  %1276 = vst [vmem:[%s2065_s3 + $0x1f0] sm:$0xff] %v1212_v11  ;;  %v1181_v16 = vadd.f32 %v1804_v17, %v816_v14  ;;  %v1213_v18 = vadd.f32 %v1804_v17, %v944_v15  ;;  %v818_v19 = vpop.f32.mrb[63].mxu0  ;;  %v946_v20 = vpop.f32.mrb[63].mxu1 }
 0x191   :  { %1245 = vst [vmem:[%s2065_s3 + $0xf8] sm:$0xff] %v1181_v16  ;;  %1277 = vst [vmem:[%s2065_s3 + $0x1f8] sm:$0xff] %v1213_v18 }

// kernel: generator_forward.56
= control target key start
LH: loop header
LB: loop body
LE: loop exit
PB: predicated region body
PF: predicated region fallthrough
CT: control target
= control target key end

     0   :  { %s454_s6 = smov 0   ;;  %s456_s7 = smov 0   ;;  %s491_s0 = inlined_call_operand.vmem [shape: f32[2,64,128], index: 0, kind: input, shape index: {}]   ;;  %s492_s1 = inlined_call_operand.vmem [shape: bf16[2,64,128], index: 1, kind: output, shape index: {}]  }
   0x1   :  { %s458_s8 = smov 0  }
   0x2 LB: > { %s23_s9 = sadd.s32 1, %s438_s7  ;;  %p346_p0 = scmp.ge.s32.totalorder %s442_s8, 1  ;;  %s442_s8 = sphi %s458_s8, %s11_s8   ;;  %s438_s7 = sphi %s456_s7, %s494_s7   ;;  %s434_s6 = sphi %s454_s6, %s493_s6  }
   0x3   : > { %p25_p1 = scmp.ge.s32.totalorder %s23_s9, 2  ;;  %p106_p2 = scmp.lt.s32.totalorder %s442_s8, 3 }
   0x5   : > { %s496_s9 = smov (%p25_p1, %s23_s9), 0  ;;  %p107_p3 = pnand %p346_p0, %p106_p2 }
   0x6   : > { %p132_p4 = scmp.lt.s32.totalorder (!%p107_p3), %s434_s6, 1 }
   0x7   : > { %110 = sbr.rel (%p107_p3) target bundleno = 99 (0x63), region = 24 }
   0xe   : > { %s498_s6 = smov (!%p132_p4, %s434_s6), 1 }
   0xf   : > { %s361_s10 = sshll.u32 %s498_s6, 6  ;;  %s362_s14 = sshll.u32 %s498_s6, 5 }
  0x10   : > { %s139_s13 = scalar_lea.vmem %s491_s0, %s361_s10  ;;  %s147_s17 = scalar_lea.vmem %s492_s1, %s362_s14 }
  0x11   : > { %v148_v0 = vld [vmem:[%s139_s13] sm:$0xff]  ;;  %v149_v1 = vld [vmem:[%s139_s13 + $0x8] sm:$0xff]  ;;  %v150_v2 = vld [vmem:[%s139_s13 + $0x10] sm:$0xff] }
  0x12   : > { %v156_v3 = vadd.f32 %v149_v1, %v148_v0  ;;  %v151_v4 = vld [vmem:[%s139_s13 + $0x18] sm:$0xff]  ;;  %v152_v6 = vld [vmem:[%s139_s13 + $0x20] sm:$0xff]  ;;  %v153_v8 = vld [vmem:[%s139_s13 + $0x28] sm:$0xff] }
  0x13   : > { %v154_v10 = vld [vmem:[%s139_s13 + $0x30] sm:$0xff]  ;;  %v155_v12 = vld [vmem:[%s139_s13 + $0x38] sm:$0xff] }
  0x14   : > { %v157_v5 = vadd.f32 %v156_v3, %v150_v2 }
  0x16   : > { %v158_v7 = vadd.f32 %v157_v5, %v151_v4 }
  0x18   : > { %v159_v9 = vadd.f32 %v158_v7, %v152_v6 }
  0x1a   : > { %v160_v11 = vadd.f32 %v159_v9, %v153_v8 }
  0x1c   : > { %v161_v13 = vadd.f32 %v160_v11, %v154_v10 }
  0x1e   : > { %v162_v14 = vadd.f32 %v161_v13, %v155_v12 }
  0x20   : > { %v163_v15 = vrot.slane %v162_v14, 4 }
  0x22   : > { %v164_v16 = vadd.f32 %v163_v15, %v162_v14 }
  0x24   : > { %v165_v17 = vrot.slane %v164_v16, 2 }
  0x26   : > { %v166_v18 = vadd.f32 %v165_v17, %v164_v16 }
  0x28   : > { %v167_v19 = vrot.slane %v166_v18, 1 }
  0x2a   : > { %v168_v20 = vadd.f32 %v167_v19, %v166_v18 }
  0x2c   : > { %v170_v21 = vmul.f32 0.015625, %v168_v20 }
  0x2e   : > { %v171_v22 = vsub.f32 %v148_v0, %v170_v21  ;;  %v172_v23 = vsub.f32 %v149_v1, %v170_v21  ;;  %v173_v24 = vsub.f32 %v150_v2, %v170_v21  ;;  %v174_v25 = vsub.f32 %v151_v4, %v170_v21 }
  0x2f   : > { %v175_v26 = vsub.f32 %v152_v6, %v170_v21  ;;  %v176_v30 = vsub.f32 %v153_v8, %v170_v21  ;;  %v177_v33 = vsub.f32 %v154_v10, %v170_v21  ;;  %v178_v36 = vsub.f32 %v155_v12, %v170_v21 }
  0x30   : > { %v179_v27 = vmul.f32 %v171_v22, %v171_v22  ;;  %v180_v28 = vmul.f32 %v172_v23, %v172_v23  ;;  %v181_v29 = vmul.f32 %v173_v24, %v173_v24  ;;  %v182_v31 = vmul.f32 %v174_v25, %v174_v25 }
  0x31   : > { %v183_v34 = vmul.f32 %v175_v26, %v175_v26  ;;  %v184_v37 = vmul.f32 %v176_v30, %v176_v30  ;;  %v185_v39 = vmul.f32 %v177_v33, %v177_v33  ;;  %v186_v41 = vmul.f32 %v178_v36, %v178_v36 }
  0x32   : > { %v187_v32 = vadd.f32 %v180_v28, %v179_v27 }
  0x34   : > { %v188_v35 = vadd.f32 %v187_v32, %v181_v29 }
  0x36   : > { %v189_v38 = vadd.f32 %v188_v35, %v182_v31 }
  0x38   : > { %v190_v40 = vadd.f32 %v189_v38, %v183_v34 }
  0x3a   : > { %v191_v42 = vadd.f32 %v190_v40, %v184_v37 }
  0x3c   : > { %v192_v43 = vadd.f32 %v191_v42, %v185_v39 }
  0x3e   : > { %v193_v44 = vadd.f32 %v192_v43, %v186_v41 }
  0x40   : > { %v194_v45 = vrot.slane %v193_v44, 4 }
  0x42   : > { %v195_v46 = vadd.f32 %v194_v45, %v193_v44 }
  0x44   : > { %v196_v47 = vrot.slane %v195_v46, 2 }
  0x46   : > { %v197_v48 = vadd.f32 %v196_v47, %v195_v46 }
  0x48   : > { %v198_v49 = vrot.slane %v197_v48, 1 }
  0x4a   : > { %v199_v50 = vadd.f32 %v198_v49, %v197_v48 }
  0x4c   : > { %v200_v51 = vmul.f32 0.015625, %v199_v50 }
  0x4e   : > { %v201_v52 = vadd.f32 1e-05, %v200_v51 }
  0x50   : > { %418 = vrsqrt.f32 %v201_v52 }
  0x5a   : > { %v419_v53 = vpop.eup %418 }
  0x5b   : > { %v203_v54 = vmul.f32 %v419_v53, %v171_v22  ;;  %v204_v55 = vmul.f32 %v419_v53, %v172_v23  ;;  %v205_v56 = vmul.f32 %v419_v53, %v173_v24  ;;  %v206_v57 = vmul.f32 %v419_v53, %v174_v25 }
  0x5c   : > { %v207_v58 = vmul.f32 %v419_v53, %v175_v26  ;;  %v208_v59 = vmul.f32 %v419_v53, %v176_v30  ;;  %v209_v60 = vmul.f32 %v419_v53, %v177_v33  ;;  %v210_v61 = vmul.f32 %v419_v53, %v178_v36 }
  0x5d   : > { %v211_v62 = vmax.f32 %v203_v54, 0.0  ;;  %v212_v63 = vmax.f32 %v204_v55, 0.0  ;;  %v213_v0 = vmax.f32 %v205_v56, 0.0  ;;  %v214_v1 = vmax.f32 %v206_v57, 0.0 }
  0x5e   : > { %v215_v2 = vmax.f32 %v207_v58, 0.0  ;;  %v216_v3 = vmax.f32 %v208_v59, 0.0  ;;  %v217_v4 = vmax.f32 %v209_v60, 0.0  ;;  %v218_v5 = vmax.f32 %v210_v61, 0.0 }
  0x5f   : > { %v374_v6 = vpack.c.bf16 %v212_v63, %v211_v62  ;;  %v379_v7 = vpack.c.bf16 %v214_v1, %v213_v0 }
  0x60   : > { %v384_v8 = vpack.c.bf16 %v216_v3, %v215_v2  ;;  %v389_v9 = vpack.c.bf16 %v218_v5, %v217_v4 }
  0x61   : > { %375 = vst [vmem:[%s147_s17] sm:$0xff] %v374_v6   ;;  %391 = vst [vmem:[%s147_s17 + $0x8] sm:$0xff] %v379_v7  }
  0x62   : > { %392 = vst [vmem:[%s147_s17 + $0x10] sm:$0xff] %v384_v8   ;;  %393 = vst [vmem:[%s147_s17 + $0x18] sm:$0xff] %v389_v9  }
  0x63 PF: > { %s11_s8 = sadd.s32 1, %s442_s8   ;;  %s493_s6 = smov %s438_s7 }
  0x64   : > { %p8_p5 = scmp.ge.s32.totalorder %s11_s8, 4   ;;  %s494_s7 = smov %s496_s9 }
  0x66   :  { %10 = sbr.rel (!%p8_p5) target bundleno = 2 (0x2), region = 54 }

// kernel: generator_forward.55
= control target key start
LH: loop header
LB: loop body
LE: loop exit
PB: predicated region body
PF: predicated region fallthrough
CT: control target
= control target key end

     0   :  { %s1031_s12 = smov 0   ;;  %s1033_s13 = smov 0   ;;  %s1187_s0 = inlined_call_operand.vmem [shape: bf16[128,1152], index: 0, kind: input, shape index: {}]   ;;  %s1188_s1 = inlined_call_operand.vmem [shape: bf16[1152,128], index: 1, kind: input, shape index: {}]   ;;  %s1189_s2 = inlined_call_operand.vmem [shape: f32[1,128], index: 2, kind: input, shape index: {}]   ;;  %s1190_s3 = inlined_call_operand.vmem [shape: f32[128,128], index: 3, kind: output, shape index: {}]  }
   0x1   :  { %s1035_s14 = smov 0   ;;  %s1037_s15 = smov 0  }
   0x2   :  { %s1039_s16 = smov 0  }
   0x3 LB: > { %s25_s17 = sadd.s32 1, %s1004_s15  ;;  %p48_p1 = scmp.ne.s32.totalorder %s996_s13, %s992_s12  ;;  %s1008_s16 = sphi %s1039_s16, %s13_s16   ;;  %s1004_s15 = sphi %s1037_s15, %s1194_s15   ;;  %s1000_s14 = sphi %s1035_s14, %s1193_s14   ;;  %s996_s13 = sphi %s1033_s13, %s1192_s13   ;;  %s992_s12 = sphi %s1031_s12, %s1191_s12  }
   0x4   : > { %p26_p0 = scmp.ge.s32.totalorder %s25_s17, 9  ;;  %p49_p2 = scmp.eq.s32.totalorder %s1008_s16, 0 }
   0x5   : > { %s41_s19 = sadd.s32 1, %s996_s13  ;;  %p819_p5 = scmp.ge.s32.totalorder %s1008_s16, 9 }
   0x6   : > { %s1196_s17 = smov (%p26_p0, %s25_s17), 0  ;;  %p50_p3 = por %p49_p2, %p48_p1 }
   0x7   : > { %s37_s18 = ssub.s32 %s1004_s15, %s1196_s17  ;;  %162 = sbr.rel (%p819_p5) target bundleno = 28 (0x1c), region = 20 }
   0x8   : > { %p39_p4 = scmp.eq.s32.totalorder %s37_s18, 0 }
   0xa   : > { %s1066_s20 = scalar_select %p39_p4, %s996_s13, %s41_s19  }
   0xe   : > { %165 = sbr.rel (!%p50_p3) target bundleno = 28 (0x1c), region = 24  ;;  %s167_s21 = sand.u32 (%p50_p3), 1, %s996_s13  }
   0xf   : > { %s821_s22 = sshll.u32 (%p50_p3), %s1004_s15, 2  ;;  %s820_s23 = sshll.u32 (%p50_p3), %s167_s21, 6 }
  0x10   : > { %s1074_s26 = scalar_lea.vmem (%p50_p3), %s1187_s0, %s821_s22  ;;  %s169_s27 = scalar_lea.vmem (%p50_p3), [#allocation3], %s820_s23 }
  0x11   : > { %v190_v0 = vld [vmem:[%s1074_s26] sm:$0xf] (%p50_p3)  ;;  %v192_v1 = vld [vmem:[%s1074_s26 + $0x24] sm:$0xf] (%p50_p3)  ;;  %v194_v2 = vld [vmem:[%s1074_s26 + $0x48] sm:$0xf] (%p50_p3) }
  0x12   : > { %191 = vst [vmem:[%s169_s27] sm:$0xf] (%p50_p3), %v190_v0  ;;  %193 = vst [vmem:[%s169_s27 + $0x4] sm:$0xf] (%p50_p3), %v192_v1  ;;  %v196_v3 = vld [vmem:[%s1074_s26 + $0x6c] sm:$0xf] (%p50_p3) }
  0x13   : > { %v198_v4 = vld [vmem:[%s1074_s26 + $0x90] sm:$0xf] (%p50_p3)  ;;  %195 = vst [vmem:[%s169_s27 + $0x8] sm:$0xf] (%p50_p3), %v194_v2  ;;  %197 = vst [vmem:[%s169_s27 + $0xc] sm:$0xf] (%p50_p3), %v196_v3 }
  0x14   : > { %199 = vst [vmem:[%s169_s27 + $0x10] sm:$0xf] (%p50_p3), %v198_v4  ;;  %v200_v5 = vld [vmem:[%s1074_s26 + $0xb4] sm:$0xf] (%p50_p3)  ;;  %v202_v6 = vld [vmem:[%s1074_s26 + $0xd8] sm:$0xf] (%p50_p3) }
  0x15   : > { %v204_v7 = vld [vmem:[%s1074_s26 + $0xfc] sm:$0xf]  ;;  %201 = vst [vmem:[%s169_s27 + $0x14] sm:$0xf] %v200_v5  ;;  %203 = vst [vmem:[%s169_s27 + $0x18] sm:$0xf] %v202_v6 }
  0x16   : > { %205 = vst [vmem:[%s169_s27 + $0x1c] sm:$0xf] %v204_v7  ;;  %v206_v8 = vld [vmem:[%s1074_s26 + $0x120] sm:$0xf]  ;;  %v208_v9 = vld [vmem:[%s1074_s26 + $0x144] sm:$0xf] }
  0x17   : > { %v210_v10 = vld [vmem:[%s1074_s26 + $0x168] sm:$0xf]  ;;  %207 = vst [vmem:[%s169_s27 + $0x20] sm:$0xf] %v206_v8  ;;  %209 = vst [vmem:[%s169_s27 + $0x24] sm:$0xf] %v208_v9 }
  0x18   : > { %211 = vst [vmem:[%s169_s27 + $0x28] sm:$0xf] %v210_v10  ;;  %v212_v11 = vld [vmem:[%s1074_s26 + $0x18c] sm:$0xf]  ;;  %v214_v12 = vld [vmem:[%s1074_s26 + $0x1b0] sm:$0xf] }
  0x19   : > { %v216_v13 = vld [vmem:[%s1074_s26 + $0x1d4] sm:$0xf]  ;;  %213 = vst [vmem:[%s169_s27 + $0x2c] sm:$0xf] %v212_v11  ;;  %215 = vst [vmem:[%s169_s27 + $0x30] sm:$0xf] %v214_v12 }
  0x1a   : > { %217 = vst [vmem:[%s169_s27 + $0x34] sm:$0xf] %v216_v13  ;;  %v218_v14 = vld [vmem:[%s1074_s26 + $0x1f8] sm:$0xf]  ;;  %v220_v15 = vld [vmem:[%s1074_s26 + $0x21c] sm:$0xf] }
  0x1b   : > { %219 = vst [vmem:[%s169_s27 + $0x38] sm:$0xf] %v218_v14  ;;  %221 = vst [vmem:[%s169_s27 + $0x3c] sm:$0xf] %v220_v15 }
  0x1c PF: > { %p822_p6 = scmp.ge.s32.totalorder %s1008_s16, 1  ;;  %p287_p7 = scmp.lt.s32.totalorder %s1008_s16, 10 }
  0x1e   : > { %p288_p8 = pnand %p822_p6, %p287_p7 }
  0x1f   : > { %s294_s28 = sand.u32 (!%p288_p8), 1, %s992_s12   ;;  %s824_s29 = sshll.u32 (!%p288_p8), %s1000_s14, 4 }
  0x20   : > { %291 = sbr.rel (%p288_p8) target bundleno = 319 (0x13f), region = 69  ;;  %s823_s30 = sshll.u32 (!%p288_p8), %s294_s28, 6 }
  0x21   : > { %p333_p9 = scmp.lt.s32.totalorder (!%p288_p8), %s824_s29, 143  ;;  %s1101_s8 = scalar_lea.vmem (!%p288_p8), [#allocation3], %s823_s30 }
  0x22   : > { %p826_p10 = scmp.ne.s32.totalorder (!%p288_p8), %s1000_s14, 0 }
  0x27   : > { %s1198_s29 = smov (!%p333_p9, %s824_s29), 143  ;;  %357 = sbr.rel (%p826_p10) target bundleno = 49 (0x31), region = 77 }
  0x28   : > { %s825_s4 = sshll.u32 %s1198_s29, 2  ;;  %v1010_v16 = vmov (!%p826_p10), 0.0  }
  0x29   : > { %s1099_s7 = scalar_lea.vmem %s1188_s1, %s825_s4  ;;  %358 = vst [vmem:[#allocation2] sm:$0xff] (!%p826_p10), %v1010_v16  ;;  %359 = vst [vmem:[#allocation2 + $0x8] sm:$0xff] (!%p826_p10), %v1010_v16 }
  0x2a   : > { %360 = vst [vmem:[#allocation2 + $0x10] sm:$0xff] (!%p826_p10), %v1010_v16  ;;  %361 = vst [vmem:[#allocation2 + $0x18] sm:$0xff] (!%p826_p10), %v1010_v16 }
  0x2b   : > { %362 = vst [vmem:[#allocation2 + $0x20] sm:$0xff] (!%p826_p10), %v1010_v16  ;;  %363 = vst [vmem:[#allocation2 + $0x28] sm:$0xff] (!%p826_p10), %v1010_v16 }
  0x2c   : > { %364 = vst [vmem:[#allocation2 + $0x30] sm:$0xff] (!%p826_p10), %v1010_v16  ;;  %365 = vst [vmem:[#allocation2 + $0x38] sm:$0xff] (!%p826_p10), %v1010_v16 }
  0x2d   : > { %366 = vst [vmem:[#allocation2 + $0x40] sm:$0xff] (!%p826_p10), %v1010_v16  ;;  %367 = vst [vmem:[#allocation2 + $0x48] sm:$0xff] (!%p826_p10), %v1010_v16 }
  0x2e   : > { %368 = vst [vmem:[#allocation2 + $0x50] sm:$0xff] %v1010_v16  ;;  %369 = vst [vmem:[#allocation2 + $0x58] sm:$0xff] %v1010_v16 }
  0x2f   : > { %370 = vst [vmem:[#allocation2 + $0x60] sm:$0xff] %v1010_v16  ;;  %371 = vst [vmem:[#allocation2 + $0x68] sm:$0xff] %v1010_v16 }
  0x30   : > { %372 = vst [vmem:[#allocation2 + $0x70] sm:$0xff] %v1010_v16  ;;  %373 = vst [vmem:[#allocation2 + $0x78] sm:$0xff] %v1010_v16 }
  0x31 PF: > { %v954_v17 = vld [vmem:[%s1099_s7] sm:$0xff]   ;;  %v955_v18 = vld [vmem:[%s1099_s7 + $0x8] sm:$0xff]   ;;  %v956_v19 = vld [vmem:[%s1099_s7 + $0x10] sm:$0xff]   ;;  %p843_p11 = scmp.ne.s32.totalorder %s1000_s14, 8 }
  0x32   : > { %865 = vmatprep.subr.bf16.mxu0 %v954_v17  ;;  %897 = vmatprep.subr.bf16.mxu1 %v954_v17  ;;  %v957_v20 = vld [vmem:[%s1099_s7 + $0x18] sm:$0xff]   ;;  %v962_v21 = vld [vmem:[%s1101_s8] sm:$0xff]   ;;  %v959_v24 = vld [vmem:[%s1099_s7 + $0x28] sm:$0xff]  }
  0x33   : > { %866 = vmatpush3.bf16.msra.mxu0 %v954_v17  ;;  %905 = vmatpush3.bf16.msra.mxu1 %v954_v17  ;;  %v963_v22 = vld [vmem:[%s1101_s8 + $0x20] sm:$0xff]   ;;  %v960_v25 = vld [vmem:[%s1099_s7 + $0x30] sm:$0xff]   ;;  %v961_v26 = vld [vmem:[%s1099_s7 + $0x38] sm:$0xff]  }
  0x34   : > { %867 = vmatprep.subr.bf16.mxu0 %v955_v18  ;;  %898 = vmatprep.subr.bf16.mxu1 %v955_v18  ;;  %v958_v23 = vld [vmem:[%s1099_s7 + $0x20] sm:$0xff]   ;;  %v964_v27 = vld [vmem:[%s1101_s8 + $0x8] sm:$0xff]   ;;  %v966_v29 = vld [vmem:[%s1101_s8 + $0x10] sm:$0xff]  }
  0x35   : > { %881 = vmatprep.mubr.bf16.mxu0 %v962_v21  ;;  %889 = vmatprep.mubr.bf16.mxu1 %v963_v22  ;;  %v965_v28 = vld [vmem:[%s1101_s8 + $0x28] sm:$0xff]   ;;  %v967_v30 = vld [vmem:[%s1101_s8 + $0x30] sm:$0xff]   ;;  %v968_v31 = vld [vmem:[%s1101_s8 + $0x18] sm:$0xff]  }
  0x36   : > { %v969_v32 = vld [vmem:[%s1101_s8 + $0x38] sm:$0xff]   ;;  %v376_v33 = vld [vmem:[#allocation2 + $0x10] sm:$0xff]  ;;  %v374_v35 = vld [vmem:[#allocation2] sm:$0xff] }
  0x37   : > { %868 = vmatpush3.bf16.msra.mxu0 %v955_v18  ;;  %906 = vmatpush3.bf16.msra.mxu1 %v955_v18  ;;  %v384_v34 = vld [vmem:[#allocation2 + $0x50] sm:$0xff]  ;;  %v382_v36 = vld [vmem:[#allocation2 + $0x40] sm:$0xff]  ;;  %v377_v39 = vld [vmem:[#allocation2 + $0x18] sm:$0xff] }
  0x38   : > { %869 = vmatprep.subr.bf16.mxu0 %v956_v19  ;;  %899 = vmatprep.subr.bf16.mxu1 %v956_v19  ;;  %v385_v40 = vld [vmem:[#allocation2 + $0x58] sm:$0xff]  ;;  %v375_v45 = vld [vmem:[#allocation2 + $0x8] sm:$0xff]  ;;  %v380_v57 = vld [vmem:[#allocation2 + $0x30] sm:$0xff] }
  0x39   : > { %v383_v46 = vld [vmem:[#allocation2 + $0x48] sm:$0xff]  ;;  %v388_v58 = vld [vmem:[#allocation2 + $0x70] sm:$0xff]  ;;  %v378_v59 = vld [vmem:[#allocation2 + $0x20] sm:$0xff] }
  0x3a   : > { %v386_v60 = vld [vmem:[#allocation2 + $0x60] sm:$0xff]  ;;  %v381_v63 = vld [vmem:[#allocation2 + $0x38] sm:$0xff]  ;;  %v379_v5 = vld [vmem:[#allocation2 + $0x28] sm:$0xff] }
  0x3b   : > { %870 = vmatpush3.bf16.msra.mxu0 %v956_v19  ;;  %907 = vmatpush3.bf16.msra.mxu1 %v956_v19  ;;  %v389_v0 = vld [vmem:[#allocation2 + $0x78] sm:$0xff]  ;;  %v387_v6 = vld [vmem:[#allocation2 + $0x68] sm:$0xff]  ;;  %v844_v18 = vld [vmem:[%s1189_s2] ss:$0 sm:$0xff] (!%p843_p11) }
  0x3c   : > { %871 = vmatprep.subr.bf16.mxu0 %v957_v20  ;;  %900 = vmatprep.subr.bf16.mxu1 %v957_v20 }
  0x3f   : > { %872 = vmatpush3.bf16.msra.mxu0 %v957_v20  ;;  %908 = vmatpush3.bf16.msra.mxu1 %v957_v20 }
  0x40   : > { %873 = vmatprep.subr.bf16.mxu0 %v958_v23  ;;  %901 = vmatprep.subr.bf16.mxu1 %v958_v23 }
  0x43   : > { %874 = vmatpush3.bf16.msra.mxu0 %v958_v23  ;;  %909 = vmatpush3.bf16.msra.mxu1 %v958_v23 }
  0x44   : > { %875 = vmatprep.subr.bf16.mxu0 %v959_v24  ;;  %902 = vmatprep.subr.bf16.mxu1 %v959_v24 }
  0x47   : > { %876 = vmatpush3.bf16.msra.mxu0 %v959_v24  ;;  %910 = vmatpush3.bf16.msra.mxu1 %v959_v24 }
  0x48   : > { %877 = vmatprep.subr.bf16.mxu0 %v960_v25  ;;  %903 = vmatprep.subr.bf16.mxu1 %v960_v25 }
  0x4b   : > { %878 = vmatpush3.bf16.msra.mxu0 %v960_v25  ;;  %911 = vmatpush3.bf16.msra.mxu1 %v960_v25 }
  0x4c   : > { %879 = vmatprep.subr.bf16.mxu0 %v961_v26  ;;  %904 = vmatprep.subr.bf16.mxu1 %v961_v26 }
  0x4f   : > { %880 = vmatpush3.bf16.msra.mxu0 %v961_v26  ;;  %912 = vmatpush3.bf16.msra.mxu1 %v961_v26 }
  0x52   : > { %882 = vmatmul.mubr.bf16.vlgmr.msra.gmra.mrb[0].mxu0 %v964_v27  ;;  %890 = vmatmul.mubr.bf16.vlgmr.msra.gmra.mrb[0].mxu1 %v965_v28 }
  0x53   : > { %885 = vmatprep.mubr.bf16.mxu0 %v966_v29  ;;  %893 = vmatprep.mubr.bf16.mxu1 %v967_v30 }
  0x5a   : > { %886 = vmatmul.mubr.bf16.gmra.mrb[4].mxu0 %v968_v31  ;;  %894 = vmatmul.mubr.bf16.gmra.mrb[4].mxu1 %v969_v32 }
 0x125   : > { %v883_v37 = vpop.f32.mrb[0].mxu0  ;;  %v891_v38 = vpop.f32.mrb[0].mxu1 }
 0x126   : > { %v617_v41 = vadd.f32 %v883_v37, %v376_v33  ;;  %v625_v42 = vadd.f32 %v891_v38, %v384_v34  ;;  %v552_v43 = vpop.f32.mrb[1].mxu0  ;;  %v584_v44 = vpop.f32.mrb[1].mxu1 }
 0x127   : > { %v615_v47 = vadd.f32 %v552_v43, %v374_v35  ;;  %v623_v48 = vadd.f32 %v584_v44, %v382_v36  ;;  %v884_v49 = vpop.f32.mrb[2].mxu0  ;;  %v892_v50 = vpop.f32.mrb[2].mxu1 }
 0x128   : > { %633 = vst [vmem:[#allocation2 + $0x10] sm:$0xff] %v617_v41  ;;  %641 = vst [vmem:[#allocation2 + $0x50] sm:$0xff] %v625_v42  ;;  %v618_v51 = vadd.f32 %v884_v49, %v377_v39  ;;  %v626_v52 = vadd.f32 %v892_v50, %v385_v40  ;;  %v555_v53 = vpop.f32.mrb[3].mxu0  ;;  %v587_v54 = vpop.f32.mrb[3].mxu1 }
 0x129   : > { %631 = vst [vmem:[#allocation2] sm:$0xff] %v615_v47  ;;  %639 = vst [vmem:[#allocation2 + $0x40] sm:$0xff] %v623_v48  ;;  %v616_v55 = vadd.f32 %v555_v53, %v375_v45  ;;  %v624_v56 = vadd.f32 %v587_v54, %v383_v46 }
 0x12a   : > { %634 = vst [vmem:[#allocation2 + $0x18] sm:$0xff] %v618_v51  ;;  %642 = vst [vmem:[#allocation2 + $0x58] sm:$0xff] %v626_v52 }
 0x12b   : > { %632 = vst [vmem:[#allocation2 + $0x8] sm:$0xff] %v616_v55  ;;  %640 = vst [vmem:[#allocation2 + $0x48] sm:$0xff] %v624_v56 }
 0x12d   : > { %v887_v61 = vpop.f32.mrb[4].mxu0  ;;  %v895_v62 = vpop.f32.mrb[4].mxu1  ;;  %650 = sbr.rel (%p843_p11) target bundleno = 319 (0x13f), region = 81 }
 0x12e   : > { %v621_v1 = vadd.f32 %v887_v61, %v380_v57  ;;  %v629_v2 = vadd.f32 %v895_v62, %v388_v58  ;;  %v568_v3 = vpop.f32.mrb[5].mxu0  ;;  %v600_v4 = vpop.f32.mrb[5].mxu1 }
 0x12f   : > { %v619_v7 = vadd.f32 %v568_v3, %v378_v59  ;;  %v627_v8 = vadd.f32 %v600_v4, %v386_v60  ;;  %v888_v9 = vpop.f32.mrb[6].mxu0  ;;  %v896_v10 = vpop.f32.mrb[6].mxu1  ;;  %v653_v22 = vld [vmem:[#allocation2 + $0x10] sm:$0xff] (!%p843_p11) }
 0x130   : > { %637 = vst [vmem:[#allocation2 + $0x30] sm:$0xff] %v621_v1  ;;  %645 = vst [vmem:[#allocation2 + $0x70] sm:$0xff] %v629_v2  ;;  %v622_v11 = vadd.f32 %v888_v9, %v381_v63  ;;  %v630_v12 = vadd.f32 %v896_v10, %v389_v0  ;;  %v571_v13 = vpop.f32.mrb[7].mxu0  ;;  %v603_v14 = vpop.f32.mrb[7].mxu1  ;;  %v651_v17 = vld [vmem:[#allocation2] sm:$0xff] (!%p843_p11)  ;;  %v676_v25 = vadd.f32 (!%p843_p11), %v844_v18, %v653_v22  ;;  %v661_v36 = vld [vmem:[#allocation2 + $0x50] sm:$0xff] (!%p843_p11) }
 0x131   : > { %635 = vst [vmem:[#allocation2 + $0x20] sm:$0xff] %v619_v7  ;;  %643 = vst [vmem:[#allocation2 + $0x60] sm:$0xff] %v627_v8  ;;  %v620_v15 = vadd.f32 %v571_v13, %v379_v5  ;;  %v628_v16 = vadd.f32 %v603_v14, %v387_v6  ;;  %v674_v20 = vadd.f32 (!%p843_p11), %v844_v18, %v651_v17  ;;  %v654_v23 = vld [vmem:[#allocation2 + $0x18] sm:$0xff] (!%p843_p11)  ;;  %v659_v34 = vld [vmem:[#allocation2 + $0x40] sm:$0xff] (!%p843_p11) }
 0x132   : > { %638 = vst [vmem:[#allocation2 + $0x38] sm:$0xff] %v622_v11  ;;  %646 = vst [vmem:[#allocation2 + $0x78] sm:$0xff] %v630_v12  ;;  %v652_v19 = vld [vmem:[#allocation2 + $0x8] sm:$0xff] (!%p843_p11)  ;;  %v677_v26 = vadd.f32 (!%p843_p11), %v844_v18, %v654_v23  ;;  %v682_v37 = vadd.f32 (!%p843_p11), %v844_v18, %v659_v34  ;;  %v684_v39 = vadd.f32 (!%p843_p11), %v844_v18, %v661_v36  ;;  %v662_v40 = vld [vmem:[#allocation2 + $0x58] sm:$0xff] (!%p843_p11) }
 0x133   : > { %636 = vst [vmem:[#allocation2 + $0x28] sm:$0xff] %v620_v15  ;;  %644 = vst [vmem:[#allocation2 + $0x68] sm:$0xff] %v628_v16  ;;  %v675_v21 = vadd.f32 (!%p843_p11), %v844_v18, %v652_v19  ;;  %v660_v35 = vld [vmem:[#allocation2 + $0x48] sm:$0xff] (!%p843_p11)  ;;  %v685_v43 = vadd.f32 (!%p843_p11), %v844_v18, %v662_v40 }
 0x134   : > { %690 = vst [vmem:[%s1190_s3] sm:$0xff] %v674_v20  ;;  %692 = vst [vmem:[%s1190_s3 + $0x10] sm:$0xff] %v676_v25  ;;  %v683_v38 = vadd.f32 %v844_v18, %v660_v35 }
 0x135   : > { %691 = vst [vmem:[%s1190_s3 + $0x8] sm:$0xff] %v675_v21  ;;  %693 = vst [vmem:[%s1190_s3 + $0x18] sm:$0xff] %v677_v26 }
 0x136   : > { %698 = vst [vmem:[%s1190_s3 + $0x40] sm:$0xff] %v682_v37  ;;  %699 = vst [vmem:[%s1190_s3 + $0x48] sm:$0xff] %v683_v38 }
 0x137   : > { %v657_v29 = vld [vmem:[#allocation2 + $0x30] sm:$0xff]  ;;  %700 = vst [vmem:[%s1190_s3 + $0x50] sm:$0xff] %v684_v39  ;;  %701 = vst [vmem:[%s1190_s3 + $0x58] sm:$0xff] %v685_v43 }
 0x138   : > { %v655_v24 = vld [vmem:[#allocation2 + $0x20] sm:$0xff]  ;;  %v680_v32 = vadd.f32 %v844_v18, %v657_v29  ;;  %v665_v46 = vld [vmem:[#allocation2 + $0x70] sm:$0xff] }
 0x139   : > { %v678_v27 = vadd.f32 %v844_v18, %v655_v24  ;;  %v658_v30 = vld [vmem:[#allocation2 + $0x38] sm:$0xff]  ;;  %v663_v41 = vld [vmem:[#allocation2 + $0x60] sm:$0xff]  ;;  %v688_v48 = vadd.f32 %v844_v18, %v665_v46 }
 0x13a   : > { %v656_v28 = vld [vmem:[#allocation2 + $0x28] sm:$0xff]  ;;  %v681_v33 = vadd.f32 %v844_v18, %v658_v30  ;;  %696 = vst [vmem:[%s1190_s3 + $0x30] sm:$0xff] %v680_v32  ;;  %v686_v44 = vadd.f32 %v844_v18, %v663_v41  ;;  %v666_v47 = vld [vmem:[#allocation2 + $0x78] sm:$0xff] }
 0x13b   : > { %v679_v31 = vadd.f32 %v844_v18, %v656_v28  ;;  %694 = vst [vmem:[%s1190_s3 + $0x20] sm:$0xff] %v678_v27  ;;  %v664_v42 = vld [vmem:[#allocation2 + $0x68] sm:$0xff]  ;;  %v689_v49 = vadd.f32 %v844_v18, %v666_v47  ;;  %704 = vst [vmem:[%s1190_s3 + $0x70] sm:$0xff] %v688_v48 }
 0x13c   : > { %697 = vst [vmem:[%s1190_s3 + $0x38] sm:$0xff] %v681_v33  ;;  %v687_v45 = vadd.f32 %v844_v18, %v664_v42  ;;  %702 = vst [vmem:[%s1190_s3 + $0x60] sm:$0xff] %v686_v44 }
 0x13d   : > { %695 = vst [vmem:[%s1190_s3 + $0x28] sm:$0xff] %v679_v31  ;;  %705 = vst [vmem:[%s1190_s3 + $0x78] sm:$0xff] %v689_v49 }
 0x13e   : > { %703 = vst [vmem:[%s1190_s3 + $0x68] sm:$0xff] %v687_v45 }
 0x13f PF: > { %s13_s16 = sadd.s32 1, %s1008_s16   ;;  %s1191_s12 = smov %s996_s13 }
 0x140   : > { %p10_p12 = scmp.ge.s32.totalorder %s13_s16, 11   ;;  %s1192_s13 = smov %s1066_s20 }
 0x141   : > { %s1193_s14 = smov %s1004_s15  ;;  %s1194_s15 = smov %s1196_s17 }
 0x142   :  { %12 = sbr.rel (!%p10_p12) target bundleno = 3 (0x3), region = 122 }

// kernel: generator_forward.58
= control target key start
LH: loop header
LB: loop body
LE: loop exit
PB: predicated region body
PF: predicated region fallthrough
CT: control target
= control target key end

     0   :  { %s393_s6 = smov 0   ;;  %s395_s7 = smov 0   ;;  %s430_s0 = inlined_call_operand.vmem [shape: f32[2,16,256], index: 0, kind: input, shape index: {}]   ;;  %s431_s1 = inlined_call_operand.vmem [shape: bf16[2,16,256], index: 1, kind: output, shape index: {}]  }
   0x1   :  { %s397_s8 = smov 0  }
   0x2 LB: > { %s23_s9 = sadd.s32 1, %s377_s7  ;;  %p318_p0 = scmp.ge.s32.totalorder %s381_s8, 1  ;;  %s381_s8 = sphi %s397_s8, %s11_s8   ;;  %s377_s7 = sphi %s395_s7, %s433_s7   ;;  %s373_s6 = sphi %s393_s6, %s432_s6  }
   0x3   : > { %p25_p1 = scmp.ge.s32.totalorder %s23_s9, 2  ;;  %p108_p2 = scmp.lt.s32.totalorder %s381_s8, 3 }
   0x5   : > { %s435_s9 = smov (%p25_p1, %s23_s9), 0  ;;  %p109_p3 = pnand %p318_p0, %p108_p2 }
   0x6   : > { %p137_p4 = scmp.lt.s32.totalorder (!%p109_p3), %s373_s6, 1 }
   0x7   : > { %112 = sbr.rel (%p109_p3) target bundleno = 75 (0x4b), region = 24 }
   0xe   : > { %s437_s6 = smov (!%p137_p4, %s373_s6), 1 }
   0xf   : > { %s327_s10 = sshll.u32 %s437_s6, 5  ;;  %s328_s14 = sshll.u32 %s437_s6, 4 }
  0x10   : > { %s144_s13 = scalar_lea.vmem %s430_s0, %s327_s10  ;;  %s154_s17 = scalar_lea.vmem %s431_s1, %s328_s14 }
  0x11   : > { %v156_v0 = vld [vmem:[%s144_s13] sm:$0xff]  ;;  %v157_v1 = vld [vmem:[%s144_s13 + $0x8] sm:$0xff]  ;;  %v158_v2 = vld [vmem:[%s144_s13 + $0x10] sm:$0xff] }
  0x12   : > { %v159_v3 = vld [vmem:[%s144_s13 + $0x18] sm:$0xff]  ;;  %v160_v4 = vadd.f32 %v158_v2, %v156_v0 }
  0x13   : > { %v167_v5 = vadd.f32 %v159_v3, %v157_v1 }
  0x14   : > { %v161_v6 = vrot.slane %v160_v4, 4 }
  0x15   : > { %v168_v7 = vrot.slane %v167_v5, 4 }
  0x16   : > { %v162_v8 = vadd.f32 %v161_v6, %v160_v4 }
  0x17   : > { %v169_v9 = vadd.f32 %v168_v7, %v167_v5 }
  0x18   : > { %v163_v10 = vrot.slane %v162_v8, 2 }
  0x19   : > { %v170_v11 = vrot.slane %v169_v9, 2 }
  0x1a   : > { %v164_v12 = vadd.f32 %v163_v10, %v162_v8 }
  0x1b   : > { %v171_v13 = vadd.f32 %v170_v11, %v169_v9 }
  0x1c   : > { %v165_v14 = vrot.slane %v164_v12, 1 }
  0x1d   : > { %v172_v15 = vrot.slane %v171_v13, 1 }
  0x1e   : > { %v166_v16 = vadd.f32 %v165_v14, %v164_v12 }
  0x1f   : > { %v173_v17 = vadd.f32 %v172_v15, %v171_v13 }
  0x20   : > { %v175_v18 = vmul.f32 0.0625, %v166_v16 }
  0x21   : > { %v176_v19 = vmul.f32 0.0625, %v173_v17 }
  0x22   : > { %v177_v20 = vsub.f32 %v156_v0, %v175_v18  ;;  %v179_v21 = vsub.f32 %v158_v2, %v175_v18 }
  0x23   : > { %v178_v22 = vsub.f32 %v157_v1, %v176_v19  ;;  %v180_v23 = vsub.f32 %v159_v3, %v176_v19 }
  0x24   : > { %v181_v24 = vmul.f32 %v177_v20, %v177_v20  ;;  %v183_v25 = vmul.f32 %v179_v21, %v179_v21 }
  0x25   : > { %v182_v26 = vmul.f32 %v178_v22, %v178_v22  ;;  %v184_v27 = vmul.f32 %v180_v23, %v180_v23 }
  0x26   : > { %v185_v28 = vadd.f32 %v183_v25, %v181_v24 }
  0x27   : > { %v192_v29 = vadd.f32 %v184_v27, %v182_v26 }
  0x28   : > { %v186_v30 = vrot.slane %v185_v28, 4 }
  0x29   : > { %v193_v31 = vrot.slane %v192_v29, 4 }
  0x2a   : > { %v187_v32 = vadd.f32 %v186_v30, %v185_v28 }
  0x2b   : > { %v194_v33 = vadd.f32 %v193_v31, %v192_v29 }
  0x2c   : > { %v188_v34 = vrot.slane %v187_v32, 2 }
  0x2d   : > { %v195_v35 = vrot.slane %v194_v33, 2 }
  0x2e   : > { %v189_v36 = vadd.f32 %v188_v34, %v187_v32 }
  0x2f   : > { %v196_v37 = vadd.f32 %v195_v35, %v194_v33 }
  0x30   : > { %v190_v38 = vrot.slane %v189_v36, 1 }
  0x31   : > { %v197_v39 = vrot.slane %v196_v37, 1 }
  0x32   : > { %v191_v40 = vadd.f32 %v190_v38, %v189_v36 }
  0x33   : > { %v198_v41 = vadd.f32 %v197_v39, %v196_v37 }
  0x34   : > { %v199_v42 = vmul.f32 0.0625, %v191_v40 }
  0x35   : > { %v200_v43 = vmul.f32 0.0625, %v198_v41 }
  0x36   : > { %v201_v44 = vadd.f32 1e-05, %v199_v42 }
  0x37   : > { %v202_v45 = vadd.f32 1e-05, %v200_v43 }
  0x38   : > { %355 = vrsqrt.f32 %v201_v44 }
  0x39   : > { %357 = vrsqrt.f32 %v202_v45 }
  0x42   : > { %v356_v46 = vpop.eup %355 }
  0x43   : > { %v358_v47 = vpop.eup %357  ;;  %v205_v48 = vmul.f32 %v356_v46, %v177_v20  ;;  %v207_v49 = vmul.f32 %v356_v46, %v179_v21 }
  0x44   : > { %v206_v50 = vmul.f32 %v358_v47, %v178_v22  ;;  %v208_v51 = vmul.f32 %v358_v47, %v180_v23 }
  0x45   : > { %v209_v52 = vmax.f32 %v205_v48, 0.0  ;;  %v211_v53 = vmax.f32 %v207_v49, 0.0 }
  0x46   : > { %v210_v54 = vmax.f32 %v206_v50, 0.0  ;;  %v212_v55 = vmax.f32 %v208_v51, 0.0 }
  0x48   : > { %v329_v56 = vpack.c.bf16 %v210_v54, %v209_v52  ;;  %v330_v57 = vpack.c.bf16 %v212_v55, %v211_v53 }
  0x4a   : > { %225 = vst [vmem:[%s154_s17] sm:$0xff] %v329_v56  ;;  %226 = vst [vmem:[%s154_s17 + $0x8] sm:$0xff] %v330_v57 }
  0x4b PF: > { %s11_s8 = sadd.s32 1, %s381_s8   ;;  %s432_s6 = smov %s377_s7 }
  0x4c   : > { %p8_p5 = scmp.ge.s32.totalorder %s11_s8, 4   ;;  %s433_s7 = smov %s435_s9 }
  0x4e   :  { %10 = sbr.rel (!%p8_p5) target bundleno = 2 (0x2), region = 54 }

// kernel: generator_forward.57
= control target key start
LH: loop header
LB: loop body
LE: loop exit
PB: predicated region body
PF: predicated region fallthrough
CT: control target
= control target key end

     0   :  { %s869_s12 = smov 0   ;;  %s871_s13 = smov 0   ;;  %s988_s0 = inlined_call_operand.vmem [shape: bf16[32,1152], index: 0, kind: input, shape index: {}]   ;;  %s989_s1 = inlined_call_operand.vmem [shape: bf16[1152,256], index: 1, kind: input, shape index: {}]   ;;  %s990_s2 = inlined_call_operand.vmem [shape: f32[1,256], index: 2, kind: input, shape index: {}]   ;;  %s991_s3 = inlined_call_operand.vmem [shape: f32[32,256], index: 3, kind: output, shape index: {}]  }
   0x1   :  { %s873_s14 = smov 0   ;;  %s875_s15 = smov 0  }
   0x2   :  { %s877_s16 = smov 0  }
   0x3 LB: > { %s25_s17 = sadd.s32 1, %s841_s15  ;;  %p48_p1 = scmp.ne.s32.totalorder %s833_s13, %s829_s12  ;;  %s845_s16 = sphi %s877_s16, %s13_s16   ;;  %s841_s15 = sphi %s875_s15, %s995_s15   ;;  %s837_s14 = sphi %s873_s14, %s994_s14   ;;  %s833_s13 = sphi %s871_s13, %s993_s13   ;;  %s829_s12 = sphi %s869_s12, %s992_s12  }
   0x4   : > { %p26_p0 = scmp.ge.s32.totalorder %s25_s17, 9  ;;  %p49_p2 = scmp.eq.s32.totalorder %s845_s16, 0 }
   0x5   : > { %s41_s19 = sadd.s32 1, %s833_s13  ;;  %p690_p5 = scmp.ge.s32.totalorder %s845_s16, 9 }
   0x6   : > { %s997_s17 = smov (%p26_p0, %s25_s17), 0  ;;  %p50_p3 = por %p49_p2, %p48_p1 }
   0x7   : > { %s37_s18 = ssub.s32 %s841_s15, %s997_s17  ;;  %164 = sbr.rel (%p690_p5) target bundleno = 21 (0x15), region = 20 }
   0x8   : > { %p39_p4 = scmp.eq.s32.totalorder %s37_s18, 0 }
   0xa   : > { %s904_s20 = scalar_select %p39_p4, %s833_s13, %s41_s19  }
   0xe   : > { %167 = sbr.rel (!%p50_p3) target bundleno = 21 (0x15), region = 24  ;;  %s169_s21 = sand.u32 (%p50_p3), 1, %s833_s13  }
   0xf   : > { %s692_s22 = sshll.u32 (%p50_p3), %s841_s15, 2  ;;  %s691_s23 = sshll.u32 (%p50_p3), %s169_s21, 4 }
  0x10   : > { %s176_s26 = scalar_lea.vmem (%p50_p3), %s988_s0, %s692_s22  ;;  %s171_s27 = scalar_lea.vmem (%p50_p3), [#allocation3], %s691_s23 }
  0x11   : > { %v192_v0 = vld [vmem:[%s176_s26] sm:$0xf] (%p50_p3)  ;;  %v194_v1 = vld [vmem:[%s176_s26 + $0x24] sm:$0xf] (%p50_p3)  ;;  %v196_v2 = vld [vmem:[%s176_s26 + $0x48] sm:$0xf] (%p50_p3) }
  0x12   : > { %193 = vst [vmem:[%s171_s27] sm:$0xf] (%p50_p3), %v192_v0  ;;  %195 = vst [vmem:[%s171_s27 + $0x4] sm:$0xf] (%p50_p3), %v194_v1  ;;  %v198_v3 = vld [vmem:[%s176_s26 + $0x6c] sm:$0xf] (%p50_p3) }
  0x13   : > { %197 = vst [vmem:[%s171_s27 + $0x8] sm:$0xf] (%p50_p3), %v196_v2  ;;  %199 = vst [vmem:[%s171_s27 + $0xc] sm:$0xf] (%p50_p3), %v198_v3 }
  0x15 PF: > { %p693_p6 = scmp.ge.s32.totalorder %s845_s16, 1  ;;  %p244_p7 = scmp.lt.s32.totalorder %s845_s16, 10 }
  0x17   : > { %p245_p8 = pnand %p693_p6, %p244_p7 }
  0x18   : > { %s251_s28 = sand.u32 (!%p245_p8), 1, %s829_s12   ;;  %s695_s29 = sshll.u32 (!%p245_p8), %s837_s14, 4 }
  0x19   : > { %248 = sbr.rel (%p245_p8) target bundleno = 302 (0x12e), region = 69  ;;  %s916_s30 = sshll.u32 (!%p245_p8), %s251_s28, 4 }
  0x1a   : > { %p296_p9 = scmp.lt.s32.totalorder (!%p245_p8), %s695_s29, 143  ;;  %s253_s8 = scalar_lea.vmem (!%p245_p8), [#allocation3], %s916_s30 }
  0x1b   : > { %p698_p10 = scmp.ne.s32.totalorder (!%p245_p8), %s837_s14, 0 }
  0x20   : > { %s999_s29 = smov (!%p296_p9, %s695_s29), 143  ;;  %327 = sbr.rel (%p698_p10) target bundleno = 39 (0x27), region = 77 }
  0x21   : > { %s722_s4 = sshll.u32 %s999_s29, 3  ;;  %v847_v4 = vmov (!%p698_p10), 0.0  }
  0x22   : > { %s921_s7 = scalar_lea.vmem %s989_s1, %s722_s4  ;;  %328 = vst [vmem:[#allocation2] sm:$0xff] (!%p698_p10), %v847_v4  ;;  %329 = vst [vmem:[#allocation2 + $0x8] sm:$0xff] (!%p698_p10), %v847_v4 }
  0x23   : > { %330 = vst [vmem:[#allocation2 + $0x10] sm:$0xff] (!%p698_p10), %v847_v4  ;;  %331 = vst [vmem:[#allocation2 + $0x18] sm:$0xff] (!%p698_p10), %v847_v4 }
  0x24   : > { %332 = vst [vmem:[#allocation2 + $0x20] sm:$0xff] (!%p698_p10), %v847_v4  ;;  %333 = vst [vmem:[#allocation2 + $0x28] sm:$0xff] (!%p698_p10), %v847_v4 }
  0x25   : > { %334 = vst [vmem:[#allocation2 + $0x30] sm:$0xff] (!%p698_p10), %v847_v4  ;;  %335 = vst [vmem:[#allocation2 + $0x38] sm:$0xff] (!%p698_p10), %v847_v4 }
  0x27 PF: > { %v781_v5 = vld [vmem:[%s921_s7 + $0x4] ss:$8 sps:$4 sm:$0xff]   ;;  %v783_v6 = vld [vmem:[%s921_s7] ss:$8 sps:$4 sm:$0xff]   ;;  %v848_v7 = vmov 0   ;;  %p717_p11 = scmp.ne.s32.totalorder %s837_s14, 8 }
  0x28   : > { %488 = vmatprep.mubr.bf16.mxu0 %v848_v7  ;;  %498 = vmatprep.mubr.bf16.mxu1 %v848_v7  ;;  %v784_v8 = vld [vmem:[%s921_s7 + $0x14] ss:$8 sps:$4 sm:$0xff]   ;;  %v786_v9 = vld [vmem:[%s921_s7 + $0x10] ss:$8 sps:$4 sm:$0xff]   ;;  %v787_v10 = vld [vmem:[%s921_s7 + $0x24] ss:$8 sps:$4 sm:$0xff]   ;;  %v539_v48 = vlaneseq (!%p717_p11) }
  0x29   : > { %456 = vmatprep.subr.bf16.mxu0 %v781_v5  ;;  %723 = vmatprep.subr.bf16.mxu1 %v781_v5  ;;  %v789_v11 = vld [vmem:[%s921_s7 + $0x20] ss:$8 sps:$4 sm:$0xff]   ;;  %v790_v12 = vld [vmem:[%s921_s7 + $0x34] ss:$8 sps:$4 sm:$0xff]   ;;  %v792_v13 = vld [vmem:[%s921_s7 + $0x30] ss:$8 sps:$4 sm:$0xff]  }
  0x2a   : > { %457 = vmatpush1.bf16.msra.mxu0 %v783_v6  ;;  %731 = vmatpush1.bf16.msra.mxu1 %v783_v6  ;;  %v793_v14 = vld [vmem:[%s921_s7 + $0x44] ss:$8 sps:$4 sm:$0xff]   ;;  %v795_v15 = vld [vmem:[%s921_s7 + $0x40] ss:$8 sps:$4 sm:$0xff]   ;;  %v796_v16 = vld [vmem:[%s921_s7 + $0x54] ss:$8 sps:$4 sm:$0xff]  }
  0x2b   : > { %458 = vmatprep.subr.bf16.mxu0 %v784_v8  ;;  %724 = vmatprep.subr.bf16.mxu1 %v784_v8  ;;  %v798_v17 = vld [vmem:[%s921_s7 + $0x50] ss:$8 sps:$4 sm:$0xff]   ;;  %v799_v18 = vld [vmem:[%s921_s7 + $0x64] ss:$8 sps:$4 sm:$0xff]   ;;  %v801_v19 = vld [vmem:[%s921_s7 + $0x60] ss:$8 sps:$4 sm:$0xff]  }
  0x2c   : > { %v802_v20 = vld [vmem:[%s921_s7 + $0x74] ss:$8 sps:$4 sm:$0xff]   ;;  %v804_v21 = vld [vmem:[%s921_s7 + $0x70] ss:$8 sps:$4 sm:$0xff]   ;;  %v336_v24 = vld [vmem:[#allocation2] sm:$0xff]  ;;  %v540_v49 = vshrl.u32 (!%p717_p11), %v539_v48, 7 }
  0x2d   : > { %v805_v22 = vld [vmem:[%s253_s8] sm:$0xff]   ;;  %v806_v23 = vld [vmem:[%s253_s8 + $0x8] sm:$0xff]  }
  0x2e   : > { %459 = vmatpush1.bf16.msra.mxu0 %v786_v9  ;;  %732 = vmatpush1.bf16.msra.mxu1 %v786_v9  ;;  %v340_v25 = vld [vmem:[#allocation2 + $0x20] sm:$0xff]  ;;  %v337_v26 = vld [vmem:[#allocation2 + $0x8] sm:$0xff]  ;;  %v338_v30 = vld [vmem:[#allocation2 + $0x10] sm:$0xff]  ;;  %v541_v52 = vsub.s32 (!%p717_p11), 0, %v540_v49  ;;  %v545_v54 = vsub.s32 (!%p717_p11), 1, %v540_v49 }
  0x2f   : > { %460 = vmatprep.subr.bf16.mxu0 %v787_v10  ;;  %725 = vmatprep.subr.bf16.mxu1 %v787_v10  ;;  %v341_v27 = vld [vmem:[#allocation2 + $0x28] sm:$0xff]  ;;  %v342_v31 = vld [vmem:[#allocation2 + $0x30] sm:$0xff]  ;;  %v339_v36 = vld [vmem:[#allocation2 + $0x18] sm:$0xff] }
  0x30   : > { %v343_v37 = vld [vmem:[#allocation2 + $0x38] sm:$0xff]  ;;  %v537_v50 = vld [vmem:[%s990_s2] sm:$0x3] (!%p717_p11) }
  0x31   : > { %v542_v58 = vrot.slane (!%p717_p11), %v537_v50, %v541_v52  ;;  %v546_v59 = vrot.slane (!%p717_p11), %v537_v50, %v545_v54 }
  0x32   : > { %461 = vmatpush1.bf16.msra.mxu0 %v789_v11  ;;  %733 = vmatpush1.bf16.msra.mxu1 %v789_v11 }
  0x33   : > { %462 = vmatprep.subr.bf16.mxu0 %v790_v12  ;;  %726 = vmatprep.subr.bf16.mxu1 %v790_v12 }
  0x36   : > { %463 = vmatpush1.bf16.msra.mxu0 %v792_v13  ;;  %734 = vmatpush1.bf16.msra.mxu1 %v792_v13 }
  0x37   : > { %464 = vmatprep.subr.bf16.mxu0 %v793_v14  ;;  %727 = vmatprep.subr.bf16.mxu1 %v793_v14 }
  0x3a   : > { %465 = vmatpush1.bf16.msra.mxu0 %v795_v15  ;;  %735 = vmatpush1.bf16.msra.mxu1 %v795_v15 }
  0x3b   : > { %466 = vmatprep.subr.bf16.mxu0 %v796_v16  ;;  %728 = vmatprep.subr.bf16.mxu1 %v796_v16 }
  0x3e   : > { %467 = vmatpush1.bf16.msra.mxu0 %v798_v17  ;;  %736 = vmatpush1.bf16.msra.mxu1 %v798_v17 }
  0x3f   : > { %468 = vmatprep.subr.bf16.mxu0 %v799_v18  ;;  %729 = vmatprep.subr.bf16.mxu1 %v799_v18 }
  0x42   : > { %469 = vmatpush1.bf16.msra.mxu0 %v801_v19  ;;  %737 = vmatpush1.bf16.msra.mxu1 %v801_v19 }
  0x43   : > { %470 = vmatprep.subr.bf16.mxu0 %v802_v20  ;;  %730 = vmatprep.subr.bf16.mxu1 %v802_v20 }
  0x46   : > { %471 = vmatpush1.bf16.msra.mxu0 %v804_v21  ;;  %738 = vmatpush1.bf16.msra.mxu1 %v804_v21 }
  0x49   : > { %489 = vmatmul.mubr.bf16.vlgmr.msra.gmra.mrb[0].mxu0 %v805_v22  ;;  %499 = vmatmul.mubr.bf16.vlgmr.msra.gmra.mrb[0].mxu1 %v806_v23 }
 0x11c   : > { %v490_v28 = vpop.f32.mrb[0].mxu0  ;;  %v500_v29 = vpop.f32.mrb[0].mxu1  ;;  %528 = sbr.rel (%p717_p11) target bundleno = 302 (0x12e), region = 81 }
 0x11d   : > { %v509_v32 = vadd.f32 %v490_v28, %v336_v24  ;;  %v513_v33 = vadd.f32 %v500_v29, %v340_v25  ;;  %v492_v34 = vpop.f32.mrb[1].mxu0  ;;  %v502_v35 = vpop.f32.mrb[1].mxu1 }
 0x11e   : > { %v510_v38 = vadd.f32 %v492_v34, %v337_v26  ;;  %v514_v39 = vadd.f32 %v502_v35, %v341_v27  ;;  %v494_v40 = vpop.f32.mrb[2].mxu0  ;;  %v504_v41 = vpop.f32.mrb[2].mxu1 }
 0x11f   : > { %517 = vst [vmem:[#allocation2] sm:$0xff] %v509_v32  ;;  %521 = vst [vmem:[#allocation2 + $0x20] sm:$0xff] %v513_v33  ;;  %v511_v42 = vadd.f32 %v494_v40, %v338_v30  ;;  %v515_v43 = vadd.f32 %v504_v41, %v342_v31  ;;  %v496_v44 = vpop.f32.mrb[3].mxu0  ;;  %v506_v45 = vpop.f32.mrb[3].mxu1 }
 0x120   : > { %518 = vst [vmem:[#allocation2 + $0x8] sm:$0xff] %v510_v38  ;;  %522 = vst [vmem:[#allocation2 + $0x28] sm:$0xff] %v514_v39  ;;  %v512_v46 = vadd.f32 %v496_v44, %v339_v36  ;;  %v516_v47 = vadd.f32 %v506_v45, %v343_v37 }
 0x121   : > { %519 = vst [vmem:[#allocation2 + $0x10] sm:$0xff] %v511_v42  ;;  %523 = vst [vmem:[#allocation2 + $0x30] sm:$0xff] %v515_v43 }
 0x122   : > { %520 = vst [vmem:[#allocation2 + $0x18] sm:$0xff] %v512_v46  ;;  %524 = vst [vmem:[#allocation2 + $0x38] sm:$0xff] %v516_v47 }
 0x126   : > { %v529_v51 = vld [vmem:[#allocation2] sm:$0xff] }
 0x127   : > { %v530_v53 = vld [vmem:[#allocation2 + $0x8] sm:$0xff]  ;;  %v533_v57 = vld [vmem:[#allocation2 + $0x20] sm:$0xff]  ;;  %v549_v63 = vadd.f32 %v542_v58, %v529_v51 }
 0x128   : > { %v531_v55 = vld [vmem:[#allocation2 + $0x10] sm:$0xff]  ;;  %v534_v60 = vld [vmem:[#allocation2 + $0x28] sm:$0xff]  ;;  %v550_v0 = vadd.f32 %v546_v59, %v530_v53  ;;  %v553_v3 = vadd.f32 %v542_v58, %v533_v57 }
 0x129   : > { %v532_v56 = vld [vmem:[#allocation2 + $0x18] sm:$0xff]  ;;  %v535_v61 = vld [vmem:[#allocation2 + $0x30] sm:$0xff]  ;;  %v551_v1 = vadd.f32 %v542_v58, %v531_v55  ;;  %v554_v4 = vadd.f32 %v546_v59, %v534_v60  ;;  %557 = vst [vmem:[%s991_s3] sm:$0xff] %v549_v63 }
 0x12a   : > { %v536_v62 = vld [vmem:[#allocation2 + $0x38] sm:$0xff]  ;;  %v552_v2 = vadd.f32 %v546_v59, %v532_v56  ;;  %v555_v5 = vadd.f32 %v542_v58, %v535_v61  ;;  %558 = vst [vmem:[%s991_s3 + $0x8] sm:$0xff] %v550_v0  ;;  %561 = vst [vmem:[%s991_s3 + $0x20] sm:$0xff] %v553_v3 }
 0x12b   : > { %v556_v6 = vadd.f32 %v546_v59, %v536_v62  ;;  %559 = vst [vmem:[%s991_s3 + $0x10] sm:$0xff] %v551_v1  ;;  %562 = vst [vmem:[%s991_s3 + $0x28] sm:$0xff] %v554_v4 }
 0x12c   : > { %560 = vst [vmem:[%s991_s3 + $0x18] sm:$0xff] %v552_v2  ;;  %563 = vst [vmem:[%s991_s3 + $0x30] sm:$0xff] %v555_v5 }
 0x12d   : > { %564 = vst [vmem:[%s991_s3 + $0x38] sm:$0xff] %v556_v6 }
 0x12e PF: > { %s13_s16 = sadd.s32 1, %s845_s16   ;;  %s992_s12 = smov %s833_s13 }
 0x12f   : > { %p10_p12 = scmp.ge.s32.totalorder %s13_s16, 11   ;;  %s993_s13 = smov %s904_s20 }
 0x130   : > { %s994_s14 = smov %s841_s15  ;;  %s995_s15 = smov %s997_s17 }
 0x131   :  { %12 = sbr.rel (!%p10_p12) target bundleno = 3 (0x3), region = 122 }

// kernel: generator_forward.62
= control target key start
LH: loop header
LB: loop body
LE: loop exit
PB: predicated region body
PF: predicated region fallthrough
CT: control target
= control target key end

     0   :  { %s488_s9 = smov 0   ;;  %s490_s10 = smov 0   ;;  %s528_s0 = inlined_call_operand.vmem [shape: f32[2,16,256], index: 0, kind: input, shape index: {}]   ;;  %s529_s1 = inlined_call_operand.vmem [shape: bf16[2,16,256], index: 1, kind: input, shape index: {}]   ;;  %s530_s2 = inlined_call_operand.vmem [shape: bf16[2,16,256], index: 2, kind: output, shape index: {}]  }
   0x1   :  { %s492_s11 = smov 0  }
   0x2 LB: > { %s24_s12 = sadd.s32 1, %s467_s10  ;;  %p405_p0 = scmp.ge.s32.totalorder %s471_s11, 1  ;;  %s471_s11 = sphi %s492_s11, %s12_s11   ;;  %s467_s10 = sphi %s490_s10, %s532_s10   ;;  %s463_s9 = sphi %s488_s9, %s531_s9  }
   0x3   : > { %p26_p1 = scmp.ge.s32.totalorder %s24_s12, 2  ;;  %p150_p2 = scmp.lt.s32.totalorder %s471_s11, 3 }
   0x5   : > { %s534_s12 = smov (%p26_p1, %s24_s12), 0  ;;  %p151_p3 = pnand %p405_p0, %p150_p2 }
   0x6   : > { %p190_p4 = scmp.lt.s32.totalorder (!%p151_p3), %s463_s9, 1 }
   0x7   : > { %154 = sbr.rel (%p151_p3) target bundleno = 75 (0x4b), region = 28 }
   0xe   : > { %s536_s9 = smov (!%p190_p4, %s463_s9), 1 }
   0xf   : > { %s416_s13 = sshll.u32 %s536_s9, 5  ;;  %s417_s17 = sshll.u32 %s536_s9, 4 }
  0x10   : > { %s197_s16 = scalar_lea.vmem %s528_s0, %s416_s13  ;;  %s207_s20 = scalar_lea.vmem %s529_s1, %s417_s17 }
  0x11   : > { %v219_v0 = vld [vmem:[%s197_s16] sm:$0xff]  ;;  %v220_v1 = vld [vmem:[%s197_s16 + $0x8] sm:$0xff]  ;;  %v221_v2 = vld [vmem:[%s197_s16 + $0x10] sm:$0xff]  ;;  %s217_s23 = scalar_lea.vmem %s530_s2, %s417_s17 }
  0x12   : > { %v222_v3 = vld [vmem:[%s197_s16 + $0x18] sm:$0xff]  ;;  %v223_v4 = vadd.f32 %v221_v2, %v219_v0  ;;  %v272_v46 = vld [vmem:[%s207_s20] sm:$0xff]  ;;  %v273_v47 = vld [vmem:[%s207_s20 + $0x8] sm:$0xff] }
  0x13   : > { %v230_v5 = vadd.f32 %v222_v3, %v220_v1  ;;  %v274_v48 = vunpack.c.l.bf16 %v272_v46  ;;  %v276_v49 = vunpack.c.l.bf16 %v273_v47  ;;  %v275_v51 = vunpack.c.h.bf16 %v272_v46 }
  0x14   : > { %v224_v6 = vrot.slane %v223_v4, 4  ;;  %v277_v52 = vunpack.c.h.bf16 %v273_v47 }
  0x15   : > { %v231_v7 = vrot.slane %v230_v5, 4 }
  0x16   : > { %v225_v8 = vadd.f32 %v224_v6, %v223_v4 }
  0x17   : > { %v232_v9 = vadd.f32 %v231_v7, %v230_v5 }
  0x18   : > { %v226_v10 = vrot.slane %v225_v8, 2 }
  0x19   : > { %v233_v11 = vrot.slane %v232_v9, 2 }
  0x1a   : > { %v227_v12 = vadd.f32 %v226_v10, %v225_v8 }
  0x1b   : > { %v234_v13 = vadd.f32 %v233_v11, %v232_v9 }
  0x1c   : > { %v228_v14 = vrot.slane %v227_v12, 1 }
  0x1d   : > { %v235_v15 = vrot.slane %v234_v13, 1 }
  0x1e   : > { %v229_v16 = vadd.f32 %v228_v14, %v227_v12 }
  0x1f   : > { %v236_v17 = vadd.f32 %v235_v15, %v234_v13 }
  0x20   : > { %v238_v18 = vmul.f32 0.0625, %v229_v16 }
  0x21   : > { %v239_v19 = vmul.f32 0.0625, %v236_v17 }
  0x22   : > { %v240_v20 = vsub.f32 %v219_v0, %v238_v18  ;;  %v242_v21 = vsub.f32 %v221_v2, %v238_v18 }
  0x23   : > { %v241_v22 = vsub.f32 %v220_v1, %v239_v19  ;;  %v243_v23 = vsub.f32 %v222_v3, %v239_v19 }
  0x24   : > { %v244_v24 = vmul.f32 %v240_v20, %v240_v20  ;;  %v246_v25 = vmul.f32 %v242_v21, %v242_v21 }
  0x25   : > { %v245_v26 = vmul.f32 %v241_v22, %v241_v22  ;;  %v247_v27 = vmul.f32 %v243_v23, %v243_v23 }
  0x26   : > { %v248_v28 = vadd.f32 %v246_v25, %v244_v24 }
  0x27   : > { %v255_v29 = vadd.f32 %v247_v27, %v245_v26 }
  0x28   : > { %v249_v30 = vrot.slane %v248_v28, 4 }
  0x29   : > { %v256_v31 = vrot.slane %v255_v29, 4 }
  0x2a   : > { %v250_v32 = vadd.f32 %v249_v30, %v248_v28 }
  0x2b   : > { %v257_v33 = vadd.f32 %v256_v31, %v255_v29 }
  0x2c   : > { %v251_v34 = vrot.slane %v250_v32, 2 }
  0x2d   : > { %v258_v35 = vrot.slane %v257_v33, 2 }
  0x2e   : > { %v252_v36 = vadd.f32 %v251_v34, %v250_v32 }
  0x2f   : > { %v259_v37 = vadd.f32 %v258_v35, %v257_v33 }
  0x30   : > { %v253_v38 = vrot.slane %v252_v36, 1 }
  0x31   : > { %v260_v39 = vrot.slane %v259_v37, 1 }
  0x32   : > { %v254_v40 = vadd.f32 %v253_v38, %v252_v36 }
  0x33   : > { %v261_v41 = vadd.f32 %v260_v39, %v259_v37 }
  0x34   : > { %v262_v42 = vmul.f32 0.0625, %v254_v40 }
  0x35   : > { %v263_v43 = vmul.f32 0.0625, %v261_v41 }
  0x36   : > { %v264_v44 = vadd.f32 1e-05, %v262_v42 }
  0x37   : > { %v265_v45 = vadd.f32 1e-05, %v263_v43 }
  0x38   : > { %445 = vrsqrt.f32 %v264_v44 }
  0x39   : > { %447 = vrsqrt.f32 %v265_v45 }
  0x42   : > { %v446_v50 = vpop.eup %445 }
  0x43   : > { %v448_v53 = vpop.eup %447  ;;  %v268_v54 = vmul.f32 %v446_v50, %v240_v20  ;;  %v270_v55 = vmul.f32 %v446_v50, %v242_v21 }
  0x44   : > { %v269_v56 = vmul.f32 %v448_v53, %v241_v22  ;;  %v271_v57 = vmul.f32 %v448_v53, %v243_v23 }
  0x45   : > { %v278_v58 = vadd.f32 %v274_v48, %v268_v54  ;;  %v280_v59 = vadd.f32 %v276_v49, %v270_v55 }
  0x46   : > { %v279_v60 = vadd.f32 %v275_v51, %v269_v56  ;;  %v281_v61 = vadd.f32 %v277_v52, %v271_v57 }
  0x48   : > { %v419_v62 = vpack.c.bf16 %v279_v60, %v278_v58  ;;  %v420_v63 = vpack.c.bf16 %v281_v61, %v280_v59 }
  0x4a   : > { %294 = vst [vmem:[%s217_s23] sm:$0xff] %v419_v62  ;;  %295 = vst [vmem:[%s217_s23 + $0x8] sm:$0xff] %v420_v63 }
  0x4b PF: > { %s12_s11 = sadd.s32 1, %s471_s11   ;;  %s531_s9 = smov %s467_s10 }
  0x4c   : > { %p9_p5 = scmp.ge.s32.totalorder %s12_s11, 4   ;;  %s532_s10 = smov %s534_s12 }
  0x4e   :  { %11 = sbr.rel (!%p9_p5) target bundleno = 2 (0x2), region = 61 }

// kernel: generator_forward.59
= control target key start
LH: loop header
LB: loop body
LE: loop exit
PB: predicated region body
PF: predicated region fallthrough
CT: control target
= control target key end

     0   :  { %8 = vsyncpa [#allocation4], 0  ;;  %s1266_s0 = inlined_call_operand.hbm [shape: bf16[32,2304], index: 0, kind: input, shape index: {}]   ;;  %s1267_s1 = inlined_call_operand.vmem [shape: bf16[2304,256], index: 1, kind: input, shape index: {}]   ;;  %s1268_s2 = inlined_call_operand.vmem [shape: f32[1,256], index: 2, kind: input, shape index: {}]   ;;  %s1269_s3 = inlined_call_operand.vmem [shape: f32[32,256], index: 3, kind: output, shape index: {}]  }
   0x1   :  { %10 = vsyncpa [#allocation4 + $0x1], 0  ;;  %s1072_s12 = smov 0   ;;  %s1074_s13 = smov 0  }
   0x2   :  { %s1076_s14 = smov 0   ;;  %s1078_s15 = smov 0  }
   0x3   :  { %s1080_s16 = smov 0   ;;  %s1082_s17 = smov 0  }
   0x4 LB: > { %s764_s18 = sadd.s32 4294967295, %s1045_s17   ;;  %s28_s19 = sadd.s32 1, %s1041_s16  ;;  %s1045_s17 = sphi %s1082_s17, %s16_s17   ;;  %s1041_s16 = sphi %s1080_s16, %s1278_s16   ;;  %s1037_s15 = sphi %s1078_s15, %s1277_s15   ;;  %s1033_s14 = sphi %s1076_s14, %s1276_s14   ;;  %s1029_s13 = sphi %s1074_s13, %s1275_s13   ;;  %s1025_s12 = sphi %s1072_s12, %s1274_s12  }
   0x5   : > { %p29_p0 = scmp.ge.s32.totalorder %s28_s19, 9  ;;  %s44_s20 = sadd.s32 1, %s1033_s14 }
   0x6   : > { %p51_p1 = scmp.ne.s32.totalorder %s1033_s14, %s1029_s13  ;;  %p52_p2 = scmp.eq.s32.totalorder %s1045_s17, 0 }
   0x7   : > { %s1280_s19 = smov (%p29_p0, %s28_s19), 0  ;;  %p57_p4 = scmp.ne.s32.totalorder %s1029_s13, %s1025_s12 }
   0x8   : > { %p1108_p3 = por %p52_p2, %p51_p1  ;;  %s40_s22 = ssub.s32 %s1041_s16, %s1280_s19 }
   0x9   : > { %p58_p5 = scmp.eq.s32.totalorder %s764_s18, 0  ;;  %p42_p6 = scmp.eq.s32.totalorder %s40_s22, 0 }
   0xa   : > { %p858_p8 = scmp.lt.s32.totalorder %s1045_s17, 9  ;;  %s171_s25 = sand.u32 1, %s1033_s14  }
   0xb   : > { %p1115_p7 = por %p58_p5, %p57_p4  ;;  %s818_s26 = sshll.u32 %s1041_s16, 7 }
   0xc   : > { %s1121_s24 = scalar_select %p42_p6, %s1033_s14, %s44_s20  }
   0xd   : > { %s768_s27 = sshll.u32 %s171_s25, 5  ;;  %s1128_s30 = scalar_lea.hbm %s1266_s0, %s818_s26 }
   0xe   : > { %s175_s4 = scalar_lea.vmem [#allocation3], %s768_s27  ;;  %p1132_p9 = pnand %p858_p8, %p1108_p3 }
   0xf   : > { %s185_s5 = sshll.u32 %s175_s4, 4  ;;  %s1139_s7 = scalar_lea.sflag [#allocation4], %s171_s25  ;;  %s1136_s5 = int_to_ptr.vmem [resolvable:$true] %s185_s5 }
  0x10   : > { %s965_s8 = scalar_lea.hbm %s1128_s30, 512  ;;  %p967_p12 = pneg %p1132_p9 }
  0x11   : > { %p966_p11 = scmp.ne.s32.totalorder %s1128_s30, %s965_s8  ;;  %s970_s11 = scalar_lea.hbm %s1266_s0, 4608 }
  0x12   : > { %p971_p1 = scmp.lt.u32.totalorder %s1128_s30, %s1266_s0  ;;  %p972_p2 = scmp.lt.u32.totalorder %s970_s11, %s965_s8 }
  0x13   : > { %p968_p13 = pnand %p967_p12, %p966_p11  ;;  %p974_p4 = scmp.lt.u32.totalorder %s965_s8, %s1128_s30 }
  0x14   : > { %p973_p3 = por %p972_p2, %p971_p1 }
  0x15   : > { %p969_p0 = pneg %p968_p13 }
  0x16   : > { %p975_p5 = por %p974_p4, %p973_p3 }
  0x18   : > { %p976_p6 = pnand %p975_p5, %p969_p0 }
  0x1a   : > { %979 = shalt.err (!%p976_p6)
}
  0x1b   : > { %s980_s20 = scalar_lea.vmem %s1136_s5, 512  ;;  %s1047_s21 = smov [#allocation3]  }
  0x1c   : > { %p981_p8 = scmp.ne.s32.totalorder %s1136_s5, %s980_s20  ;;  %s985_s22 = sshll.u32 %s1047_s21, 4  ;;  %s986_s22 = int_to_ptr.vmem [resolvable:$false] %s985_s22 }
  0x1d   : > { %s987_s25 = scalar_lea.vmem %s986_s22, 1024  ;;  %p988_p10 = scmp.lt.s32.totalorder %s1136_s5, %s986_s22 }
  0x1e   : > { %p983_p11 = pnand %p981_p8, %p967_p12  ;;  %p989_p1 = scmp.lt.s32.totalorder %s987_s25, %s980_s20 }
  0x20   : > { %p984_p13 = pneg %p983_p11  ;;  %p990_p2 = por %p989_p1, %p988_p10 }
  0x22   : > { %p991_p3 = pnand %p990_p2, %p984_p13 }
  0x24   : > { %994 = shalt.err (!%p991_p3)
}
  0x25   : > { %s1048_s26 = smov 1152   ;;  %s1049_s27 = smov 128  }
  0x26   : > { %s1050_s28 = smov 8   ;;  %p208_p12 = scmp.lt.s32.totalorder %s1045_s17, 10 }
  0x27   : > { %857 = dma.hbm_to_vmem [thread:$0]  (!%p1132_p9), %s1128_s30, 512, %s1136_s5, %s1139_s7, %s1048_s26, %s1049_s27, %s1050_s28  }
  0x28   : > { %p1273_p0 = scmp.ge.s32.totalorder %s1045_s17, 1 }
  0x2a   : > { %p209_p4 = pnand %p1273_p0, %p208_p12 }
  0x2b   : > { %s214_s29 = sand.u32 (!%p209_p4), 1, %s1029_s13  }
  0x2c   : > { %212 = sbr.rel (%p209_p4) target bundleno = 355 (0x163), region = 32  ;;  %s772_s4 = sshll.u32 (!%p209_p4), %s214_s29, 5 }
  0x2d   : > { %s215_s8 = scalar_lea.sflag (!%p209_p4), [#allocation4], %s214_s29  ;;  %s1171_s9 = scalar_lea.vmem (!%p209_p4), [#allocation3], %s772_s4 }
  0x33   : > { %1020 = dma.done.wait (%p1115_p7), %s215_s8, 512  }
  0x34   : > { %1022 = vsyncadd (%p1115_p7), %s215_s8, 4294966784  ;;  %s773_s10 = sshll.u32 %s1037_s15, 5  ;;  %p776_p9 = scmp.ne.s32.totalorder %s1037_s15, 0 }
  0x35   : > { %p264_p10 = scmp.lt.s32.totalorder %s773_s10, 287  ;;  %v1051_v0 = vmov (!%p776_p9), 0.0  }
  0x36   : > { %294 = sbr.rel (%p776_p9) target bundleno = 61 (0x3d), region = 40  ;;  %295 = vst [vmem:[#allocation2] sm:$0xff] (!%p776_p9), %v1051_v0  ;;  %296 = vst [vmem:[#allocation2 + $0x8] sm:$0xff] (!%p776_p9), %v1051_v0 }
  0x37   : > { %s1282_s10 = smov (!%p264_p10, %s773_s10), 287  ;;  %297 = vst [vmem:[#allocation2 + $0x10] sm:$0xff] (!%p776_p9), %v1051_v0  ;;  %298 = vst [vmem:[#allocation2 + $0x18] sm:$0xff] (!%p776_p9), %v1051_v0 }
  0x38   : > { %s819_s30 = sshll.u32 %s1282_s10, 3  ;;  %299 = vst [vmem:[#allocation2 + $0x20] sm:$0xff] (!%p776_p9), %v1051_v0  ;;  %300 = vst [vmem:[#allocation2 + $0x28] sm:$0xff] (!%p776_p9), %v1051_v0 }
  0x39   : > { %s1181_s7 = scalar_lea.vmem %s1267_s1, %s819_s30  ;;  %301 = vst [vmem:[#allocation2 + $0x30] sm:$0xff] (!%p776_p9), %v1051_v0  ;;  %302 = vst [vmem:[#allocation2 + $0x38] sm:$0xff] (!%p776_p9), %v1051_v0 }
  0x3d PF: > { %v911_v1 = vld [vmem:[%s1181_s7 + $0x4] ss:$8 sps:$4 sm:$0xff]   ;;  %v913_v2 = vld [vmem:[%s1181_s7] ss:$8 sps:$4 sm:$0xff]   ;;  %v914_v3 = vld [vmem:[%s1181_s7 + $0x14] ss:$8 sps:$4 sm:$0xff]  }
  0x3e   : > { %527 = vmatprep.subr.bf16.mxu0 %v911_v1  ;;  %820 = vmatprep.subr.bf16.mxu1 %v911_v1  ;;  %v916_v4 = vld [vmem:[%s1181_s7 + $0x10] ss:$8 sps:$4 sm:$0xff]   ;;  %v917_v5 = vld [vmem:[%s1181_s7 + $0x24] ss:$8 sps:$4 sm:$0xff]   ;;  %v919_v6 = vld [vmem:[%s1181_s7 + $0x20] ss:$8 sps:$4 sm:$0xff]  }
  0x3f   : > { %528 = vmatpush1.bf16.msra.mxu0 %v913_v2  ;;  %836 = vmatpush1.bf16.msra.mxu1 %v913_v2  ;;  %v920_v7 = vld [vmem:[%s1181_s7 + $0x34] ss:$8 sps:$4 sm:$0xff]   ;;  %v922_v8 = vld [vmem:[%s1181_s7 + $0x30] ss:$8 sps:$4 sm:$0xff]   ;;  %v923_v9 = vld [vmem:[%s1181_s7 + $0x44] ss:$8 sps:$4 sm:$0xff]  }
  0x40   : > { %529 = vmatprep.subr.bf16.mxu0 %v914_v3  ;;  %821 = vmatprep.subr.bf16.mxu1 %v914_v3  ;;  %v925_v10 = vld [vmem:[%s1181_s7 + $0x40] ss:$8 sps:$4 sm:$0xff]   ;;  %v926_v11 = vld [vmem:[%s1181_s7 + $0x54] ss:$8 sps:$4 sm:$0xff]   ;;  %v928_v12 = vld [vmem:[%s1181_s7 + $0x50] ss:$8 sps:$4 sm:$0xff]  }
  0x41   : > { %v929_v13 = vld [vmem:[%s1181_s7 + $0x64] ss:$8 sps:$4 sm:$0xff]   ;;  %v931_v15 = vld [vmem:[%s1181_s7 + $0x60] ss:$8 sps:$4 sm:$0xff]   ;;  %v964_v16 = vld [vmem:[%s1171_s9 + $0x14] ss:$8 sps:$4 sm:$0xff]  }
  0x42   : > { %v961_v14 = vld [vmem:[%s1171_s9 + $0x4] ss:$8 sps:$4 sm:$0xff]   ;;  %v932_v17 = vld [vmem:[%s1181_s7 + $0x74] ss:$8 sps:$4 sm:$0xff]   ;;  %569 = vmatprep.mubr.bf16.mxu1 %v964_v16  ;;  %v934_v18 = vld [vmem:[%s1181_s7 + $0x70] ss:$8 sps:$4 sm:$0xff]  }
  0x43   : > { %530 = vmatpush1.bf16.msra.mxu0 %v916_v4  ;;  %837 = vmatpush1.bf16.msra.mxu1 %v916_v4  ;;  %v935_v19 = vld [vmem:[%s1181_s7 + $0x84] ss:$8 sps:$4 sm:$0xff]   ;;  %v937_v20 = vld [vmem:[%s1181_s7 + $0x80] ss:$8 sps:$4 sm:$0xff]   ;;  %v938_v21 = vld [vmem:[%s1181_s7 + $0x94] ss:$8 sps:$4 sm:$0xff]  }
  0x44   : > { %531 = vmatprep.subr.bf16.mxu0 %v917_v5  ;;  %822 = vmatprep.subr.bf16.mxu1 %v917_v5  ;;  %v940_v22 = vld [vmem:[%s1181_s7 + $0x90] ss:$8 sps:$4 sm:$0xff]   ;;  %v941_v23 = vld [vmem:[%s1181_s7 + $0xa4] ss:$8 sps:$4 sm:$0xff]   ;;  %v943_v24 = vld [vmem:[%s1181_s7 + $0xa0] ss:$8 sps:$4 sm:$0xff]  }
  0x45   : > { %559 = vmatprep.mubr.bf16.mxu0 %v961_v14  ;;  %v944_v25 = vld [vmem:[%s1181_s7 + $0xb4] ss:$8 sps:$4 sm:$0xff]   ;;  %v946_v26 = vld [vmem:[%s1181_s7 + $0xb0] ss:$8 sps:$4 sm:$0xff]   ;;  %v947_v27 = vld [vmem:[%s1181_s7 + $0xc4] ss:$8 sps:$4 sm:$0xff]  }
  0x46   : > { %v949_v28 = vld [vmem:[%s1181_s7 + $0xc0] ss:$8 sps:$4 sm:$0xff]   ;;  %v950_v29 = vld [vmem:[%s1181_s7 + $0xd4] ss:$8 sps:$4 sm:$0xff]   ;;  %v952_v30 = vld [vmem:[%s1181_s7 + $0xd0] ss:$8 sps:$4 sm:$0xff]  }
  0x47   : > { %532 = vmatpush1.bf16.msra.mxu0 %v919_v6  ;;  %838 = vmatpush1.bf16.msra.mxu1 %v919_v6  ;;  %v953_v31 = vld [vmem:[%s1181_s7 + $0xe4] ss:$8 sps:$4 sm:$0xff]   ;;  %v955_v32 = vld [vmem:[%s1181_s7 + $0xe0] ss:$8 sps:$4 sm:$0xff]   ;;  %v956_v33 = vld [vmem:[%s1181_s7 + $0xf4] ss:$8 sps:$4 sm:$0xff]  }
  0x48   : > { %533 = vmatprep.subr.bf16.mxu0 %v920_v7  ;;  %823 = vmatprep.subr.bf16.mxu1 %v920_v7  ;;  %v958_v34 = vld [vmem:[%s1181_s7 + $0xf0] ss:$8 sps:$4 sm:$0xff]   ;;  %v959_v35 = vld [vmem:[%s1171_s9] ss:$8 sps:$4 sm:$0xff]   ;;  %p813_p7 = scmp.ne.s32.totalorder %s1037_s15, 8 }
  0x49   : > { %v962_v36 = vld [vmem:[%s1171_s9 + $0x10] ss:$8 sps:$4 sm:$0xff]   ;;  %v303_v37 = vld [vmem:[#allocation2] sm:$0xff]  ;;  %v304_v39 = vld [vmem:[#allocation2 + $0x8] sm:$0xff]  ;;  %v610_v61 = vlaneseq (!%p813_p7) }
  0x4a   : > { %v307_v38 = vld [vmem:[#allocation2 + $0x20] sm:$0xff]  ;;  %v308_v40 = vld [vmem:[#allocation2 + $0x28] sm:$0xff]  ;;  %v305_v43 = vld [vmem:[#allocation2 + $0x10] sm:$0xff] }
  0x4b   : > { %534 = vmatpush1.bf16.msra.mxu0 %v922_v8  ;;  %839 = vmatpush1.bf16.msra.mxu1 %v922_v8  ;;  %v309_v44 = vld [vmem:[#allocation2 + $0x30] sm:$0xff]  ;;  %v306_v49 = vld [vmem:[#allocation2 + $0x18] sm:$0xff]  ;;  %v611_v62 = vshrl.u32 (!%p813_p7), %v610_v61, 7  ;;  %v608_v63 = vld [vmem:[%s1268_s2] sm:$0x3] (!%p813_p7) }
  0x4c   : > { %535 = vmatprep.subr.bf16.mxu0 %v923_v9  ;;  %824 = vmatprep.subr.bf16.mxu1 %v923_v9  ;;  %v310_v50 = vld [vmem:[#allocation2 + $0x38] sm:$0xff] }
  0x4d   : > { %v612_v1 = vsub.s32 (!%p813_p7), 0, %v611_v62  ;;  %v616_v3 = vsub.s32 (!%p813_p7), 1, %v611_v62 }
  0x4f   : > { %536 = vmatpush1.bf16.msra.mxu0 %v925_v10  ;;  %840 = vmatpush1.bf16.msra.mxu1 %v925_v10  ;;  %v613_v7 = vrot.slane (!%p813_p7), %v608_v63, %v612_v1  ;;  %v617_v8 = vrot.slane (!%p813_p7), %v608_v63, %v616_v3 }
  0x50   : > { %537 = vmatprep.subr.bf16.mxu0 %v926_v11  ;;  %825 = vmatprep.subr.bf16.mxu1 %v926_v11 }
  0x53   : > { %538 = vmatpush1.bf16.msra.mxu0 %v928_v12  ;;  %841 = vmatpush1.bf16.msra.mxu1 %v928_v12 }
  0x54   : > { %539 = vmatprep.subr.bf16.mxu0 %v929_v13  ;;  %826 = vmatprep.subr.bf16.mxu1 %v929_v13 }
  0x57   : > { %540 = vmatpush1.bf16.msra.mxu0 %v931_v15  ;;  %842 = vmatpush1.bf16.msra.mxu1 %v931_v15 }
  0x58   : > { %541 = vmatprep.subr.bf16.mxu0 %v932_v17  ;;  %827 = vmatprep.subr.bf16.mxu1 %v932_v17 }
  0x5b   : > { %542 = vmatpush1.bf16.msra.mxu0 %v934_v18  ;;  %843 = vmatpush1.bf16.msra.mxu1 %v934_v18 }
  0x5c   : > { %543 = vmatprep.subr.bf16.mxu0 %v935_v19  ;;  %828 = vmatprep.subr.bf16.mxu1 %v935_v19 }
  0x5f   : > { %544 = vmatpush1.bf16.msra.mxu0 %v937_v20  ;;  %844 = vmatpush1.bf16.msra.mxu1 %v937_v20 }
  0x60   : > { %545 = vmatprep.subr.bf16.mxu0 %v938_v21  ;;  %829 = vmatprep.subr.bf16.mxu1 %v938_v21 }
  0x63   : > { %546 = vmatpush1.bf16.msra.mxu0 %v940_v22  ;;  %845 = vmatpush1.bf16.msra.mxu1 %v940_v22 }
  0x64   : > { %547 = vmatprep.subr.bf16.mxu0 %v941_v23  ;;  %830 = vmatprep.subr.bf16.mxu1 %v941_v23 }
  0x67   : > { %548 = vmatpush1.bf16.msra.mxu0 %v943_v24  ;;  %846 = vmatpush1.bf16.msra.mxu1 %v943_v24 }
  0x68   : > { %549 = vmatprep.subr.bf16.mxu0 %v944_v25  ;;  %831 = vmatprep.subr.bf16.mxu1 %v944_v25 }
  0x6b   : > { %550 = vmatpush1.bf16.msra.mxu0 %v946_v26  ;;  %847 = vmatpush1.bf16.msra.mxu1 %v946_v26 }
  0x6c   : > { %551 = vmatprep.subr.bf16.mxu0 %v947_v27  ;;  %832 = vmatprep.subr.bf16.mxu1 %v947_v27 }
  0x6f   : > { %552 = vmatpush1.bf16.msra.mxu0 %v949_v28  ;;  %848 = vmatpush1.bf16.msra.mxu1 %v949_v28 }
  0x70   : > { %553 = vmatprep.subr.bf16.mxu0 %v950_v29  ;;  %833 = vmatprep.subr.bf16.mxu1 %v950_v29 }
  0x73   : > { %554 = vmatpush1.bf16.msra.mxu0 %v952_v30  ;;  %849 = vmatpush1.bf16.msra.mxu1 %v952_v30 }
  0x74   : > { %555 = vmatprep.subr.bf16.mxu0 %v953_v31  ;;  %834 = vmatprep.subr.bf16.mxu1 %v953_v31 }
  0x77   : > { %556 = vmatpush1.bf16.msra.mxu0 %v955_v32  ;;  %850 = vmatpush1.bf16.msra.mxu1 %v955_v32 }
  0x78   : > { %557 = vmatprep.subr.bf16.mxu0 %v956_v33  ;;  %835 = vmatprep.subr.bf16.mxu1 %v956_v33 }
  0x7b   : > { %558 = vmatpush1.bf16.msra.mxu0 %v958_v34  ;;  %851 = vmatpush1.bf16.msra.mxu1 %v958_v34 }
  0x7e   : > { %560 = vmatmul.mubr.bf16.vlgmr.msra.gmra.mrb[0].mxu0 %v959_v35  ;;  %570 = vmatmul.mubr.bf16.vlgmr.msra.gmra.mrb[0].mxu1 %v962_v36 }
 0x151   : > { %v561_v41 = vpop.f32.mrb[0].mxu0  ;;  %v571_v42 = vpop.f32.mrb[0].mxu1  ;;  %599 = sbr.rel (%p813_p7) target bundleno = 355 (0x163), region = 44 }
 0x152   : > { %v580_v45 = vadd.f32 %v561_v41, %v303_v37  ;;  %v584_v46 = vadd.f32 %v571_v42, %v307_v38  ;;  %v563_v47 = vpop.f32.mrb[1].mxu0  ;;  %v573_v48 = vpop.f32.mrb[1].mxu1 }
 0x153   : > { %v581_v51 = vadd.f32 %v563_v47, %v304_v39  ;;  %v585_v52 = vadd.f32 %v573_v48, %v308_v40  ;;  %v565_v53 = vpop.f32.mrb[2].mxu0  ;;  %v575_v54 = vpop.f32.mrb[2].mxu1 }
 0x154   : > { %588 = vst [vmem:[#allocation2] sm:$0xff] %v580_v45  ;;  %592 = vst [vmem:[#allocation2 + $0x20] sm:$0xff] %v584_v46  ;;  %v582_v55 = vadd.f32 %v565_v53, %v305_v43  ;;  %v586_v56 = vadd.f32 %v575_v54, %v309_v44  ;;  %v567_v57 = vpop.f32.mrb[3].mxu0  ;;  %v577_v58 = vpop.f32.mrb[3].mxu1 }
 0x155   : > { %589 = vst [vmem:[#allocation2 + $0x8] sm:$0xff] %v581_v51  ;;  %593 = vst [vmem:[#allocation2 + $0x28] sm:$0xff] %v585_v52  ;;  %v583_v59 = vadd.f32 %v567_v57, %v306_v49  ;;  %v587_v60 = vadd.f32 %v577_v58, %v310_v50 }
 0x156   : > { %590 = vst [vmem:[#allocation2 + $0x10] sm:$0xff] %v582_v55  ;;  %594 = vst [vmem:[#allocation2 + $0x30] sm:$0xff] %v586_v56 }
 0x157   : > { %591 = vst [vmem:[#allocation2 + $0x18] sm:$0xff] %v583_v59  ;;  %595 = vst [vmem:[#allocation2 + $0x38] sm:$0xff] %v587_v60 }
 0x15b   : > { %v600_v0 = vld [vmem:[#allocation2] sm:$0xff] }
 0x15c   : > { %v601_v2 = vld [vmem:[#allocation2 + $0x8] sm:$0xff]  ;;  %v604_v6 = vld [vmem:[#allocation2 + $0x20] sm:$0xff]  ;;  %v620_v12 = vadd.f32 %v613_v7, %v600_v0 }
 0x15d   : > { %v602_v4 = vld [vmem:[#allocation2 + $0x10] sm:$0xff]  ;;  %v605_v9 = vld [vmem:[#allocation2 + $0x28] sm:$0xff]  ;;  %v621_v13 = vadd.f32 %v617_v8, %v601_v2  ;;  %v624_v16 = vadd.f32 %v613_v7, %v604_v6 }
 0x15e   : > { %v603_v5 = vld [vmem:[#allocation2 + $0x18] sm:$0xff]  ;;  %v606_v10 = vld [vmem:[#allocation2 + $0x30] sm:$0xff]  ;;  %v622_v14 = vadd.f32 %v613_v7, %v602_v4  ;;  %v625_v17 = vadd.f32 %v617_v8, %v605_v9  ;;  %628 = vst [vmem:[%s1269_s3] sm:$0xff] %v620_v12 }
 0x15f   : > { %v607_v11 = vld [vmem:[#allocation2 + $0x38] sm:$0xff]  ;;  %v623_v15 = vadd.f32 %v617_v8, %v603_v5  ;;  %v626_v18 = vadd.f32 %v613_v7, %v606_v10  ;;  %629 = vst [vmem:[%s1269_s3 + $0x8] sm:$0xff] %v621_v13  ;;  %632 = vst [vmem:[%s1269_s3 + $0x20] sm:$0xff] %v624_v16 }
 0x160   : > { %v627_v19 = vadd.f32 %v617_v8, %v607_v11  ;;  %630 = vst [vmem:[%s1269_s3 + $0x10] sm:$0xff] %v622_v14  ;;  %633 = vst [vmem:[%s1269_s3 + $0x28] sm:$0xff] %v625_v17 }
 0x161   : > { %631 = vst [vmem:[%s1269_s3 + $0x18] sm:$0xff] %v623_v15  ;;  %634 = vst [vmem:[%s1269_s3 + $0x30] sm:$0xff] %v626_v18 }
 0x162   : > { %635 = vst [vmem:[%s1269_s3 + $0x38] sm:$0xff] %v627_v19 }
 0x163 PF: > { %s16_s17 = sadd.s32 1, %s1045_s17   ;;  %s1274_s12 = smov %s1029_s13 }
 0x164   : > { %p13_p5 = scmp.ge.s32.totalorder %s16_s17, 11   ;;  %s1275_s13 = smov %s1033_s14 }
 0x165   : > { %s1276_s14 = smov %s1121_s24  ;;  %s1277_s15 = smov %s1041_s16 }
 0x166   : > { %s1278_s16 = smov %s1280_s19  ;;  %15 = sbr.rel (!%p13_p5) target bundleno = 4 (0x4), region = 86 }
 0x16d   :  { %669 = vsyncpa [#allocation4], 1 }
 0x16e   :  { %671 = vsyncpa [#allocation4 + $0x1], 1 }

// kernel: generator_forward.96
= control target key start
LH: loop header
LB: loop body
LE: loop exit
PB: predicated region body
PF: predicated region fallthrough
CT: control target
= control target key end

     0   :  { %s759_s1 = inlined_call_operand.vmem [shape: bf16[512,128], index: 1, kind: input, shape index: {}]   ;;  %s760_s0 = inlined_call_operand.vmem [shape: bf16[32,512], index: 0, kind: input, shape index: {}]   ;;  %s761_s2 = inlined_call_operand.vmem [shape: f32[1,128], index: 2, kind: input, shape index: {}]   ;;  %s762_s3 = inlined_call_operand.vmem [shape: f32[32,128], index: 3, kind: output, shape index: {}]  }
   0x1   :  { %v560_v0 = vld [vmem:[%s759_s1 + $0x40] sm:$0xff]   ;;  %v564_v4 = vld [vmem:[%s759_s1 + $0x48] sm:$0xff]   ;;  %v568_v8 = vld [vmem:[%s759_s1 + $0x50] sm:$0xff]  }
   0x2   :  { %v561_v1 = vld [vmem:[%s759_s1 + $0xc0] sm:$0xff]   ;;  %504 = vmatprep.subr.bf16.mxu0 %v560_v0  ;;  %v565_v5 = vld [vmem:[%s759_s1 + $0xc8] sm:$0xff]   ;;  %v569_v9 = vld [vmem:[%s759_s1 + $0xd0] sm:$0xff]  }
   0x3   :  { %v562_v2 = vld [vmem:[%s759_s1] sm:$0xff]   ;;  %532 = vmatprep.subr.bf16.mxu1 %v561_v1  ;;  %v566_v6 = vld [vmem:[%s759_s1 + $0x8] sm:$0xff]   ;;  %v570_v10 = vld [vmem:[%s759_s1 + $0x10] sm:$0xff]  }
   0x4   :  { %v563_v3 = vld [vmem:[%s759_s1 + $0x80] sm:$0xff]   ;;  %505 = vmatpush3.bf16.msra.mxu0 %v562_v2  ;;  %v567_v7 = vld [vmem:[%s759_s1 + $0x88] sm:$0xff]   ;;  %v571_v11 = vld [vmem:[%s759_s1 + $0x90] sm:$0xff]  }
   0x5   :  { %533 = vmatpush3.bf16.msra.mxu1 %v563_v3  ;;  %506 = vmatprep.subr.bf16.mxu0 %v564_v4  ;;  %v572_v12 = vld [vmem:[%s759_s1 + $0x58] sm:$0xff]   ;;  %v576_v16 = vld [vmem:[%s759_s1 + $0x60] sm:$0xff]   ;;  %v580_v20 = vld [vmem:[%s759_s1 + $0x68] sm:$0xff]  }
   0x6   :  { %534 = vmatprep.subr.bf16.mxu1 %v565_v5  ;;  %v573_v13 = vld [vmem:[%s759_s1 + $0xd8] sm:$0xff]   ;;  %v577_v17 = vld [vmem:[%s759_s1 + $0xe0] sm:$0xff]   ;;  %v581_v21 = vld [vmem:[%s759_s1 + $0xe8] sm:$0xff]  }
   0x7   :  { %v574_v14 = vld [vmem:[%s759_s1 + $0x18] sm:$0xff]   ;;  %v578_v18 = vld [vmem:[%s759_s1 + $0x20] sm:$0xff]   ;;  %v582_v22 = vld [vmem:[%s759_s1 + $0x28] sm:$0xff]  }
   0x8   :  { %507 = vmatpush3.bf16.msra.mxu0 %v566_v6  ;;  %v575_v15 = vld [vmem:[%s759_s1 + $0x98] sm:$0xff]   ;;  %v579_v19 = vld [vmem:[%s759_s1 + $0xa0] sm:$0xff]   ;;  %v583_v23 = vld [vmem:[%s759_s1 + $0xa8] sm:$0xff]  }
   0x9   :  { %535 = vmatpush3.bf16.msra.mxu1 %v567_v7  ;;  %508 = vmatprep.subr.bf16.mxu0 %v568_v8  ;;  %v584_v24 = vld [vmem:[%s759_s1 + $0x70] sm:$0xff]   ;;  %v588_v28 = vld [vmem:[%s759_s1 + $0x78] sm:$0xff]   ;;  %v503_v49 = vld [vmem:[%s761_s2] ss:$0 sm:$0xff] }
   0xa   :  { %536 = vmatprep.subr.bf16.mxu1 %v569_v9  ;;  %v585_v25 = vld [vmem:[%s759_s1 + $0xf0] sm:$0xff]   ;;  %v589_v29 = vld [vmem:[%s759_s1 + $0xf8] sm:$0xff]  }
   0xb   :  { %v586_v26 = vld [vmem:[%s759_s1 + $0x30] sm:$0xff]   ;;  %v590_v30 = vld [vmem:[%s759_s1 + $0x38] sm:$0xff]  }
   0xc   :  { %509 = vmatpush3.bf16.msra.mxu0 %v570_v10  ;;  %v587_v27 = vld [vmem:[%s759_s1 + $0xb0] sm:$0xff]   ;;  %v591_v31 = vld [vmem:[%s759_s1 + $0xb8] sm:$0xff]  }
   0xd   :  { %537 = vmatpush3.bf16.msra.mxu1 %v571_v11  ;;  %510 = vmatprep.subr.bf16.mxu0 %v572_v12  ;;  %v592_v32 = vld [vmem:[%s760_s0] ss:$16 sps:$4 sm:$0xff]   ;;  %v594_v33 = vld [vmem:[%s760_s0 + $0x4] ss:$16 sps:$4 sm:$0xff]   ;;  %v595_v34 = vld [vmem:[%s760_s0 + $0x8] ss:$16 sps:$4 sm:$0xff]  }
   0xe   :  { %538 = vmatprep.subr.bf16.mxu1 %v573_v13  ;;  %v597_v35 = vld [vmem:[%s760_s0 + $0xc] ss:$16 sps:$4 sm:$0xff]   ;;  %363 = vmatprep.mubr.bf16.mxu0 %v594_v33  ;;  %v598_v36 = vld [vmem:[%s760_s0 + $0x24] ss:$16 sps:$4 sm:$0xff]   ;;  %v602_v38 = vld [vmem:[%s760_s0 + $0x20] ss:$16 sps:$4 sm:$0xff]  }
   0xf   :  { %412 = vmatprep.mubr.bf16.mxu1 %v597_v35  ;;  %v600_v37 = vld [vmem:[%s760_s0 + $0x2c] ss:$16 sps:$4 sm:$0xff]   ;;  %v603_v39 = vld [vmem:[%s760_s0 + $0x28] ss:$16 sps:$4 sm:$0xff]  }
  0x10   :  { %511 = vmatpush3.bf16.msra.mxu0 %v574_v14 }
  0x11   :  { %539 = vmatpush3.bf16.msra.mxu1 %v575_v15  ;;  %512 = vmatprep.subr.bf16.mxu0 %v576_v16 }
  0x12   :  { %540 = vmatprep.subr.bf16.mxu1 %v577_v17 }
  0x14   :  { %513 = vmatpush3.bf16.msra.mxu0 %v578_v18 }
  0x15   :  { %541 = vmatpush3.bf16.msra.mxu1 %v579_v19  ;;  %514 = vmatprep.subr.bf16.mxu0 %v580_v20 }
  0x16   :  { %542 = vmatprep.subr.bf16.mxu1 %v581_v21 }
  0x18   :  { %515 = vmatpush3.bf16.msra.mxu0 %v582_v22 }
  0x19   :  { %543 = vmatpush3.bf16.msra.mxu1 %v583_v23  ;;  %516 = vmatprep.subr.bf16.mxu0 %v584_v24 }
  0x1a   :  { %544 = vmatprep.subr.bf16.mxu1 %v585_v25 }
  0x1c   :  { %517 = vmatpush3.bf16.msra.mxu0 %v586_v26 }
  0x1d   :  { %545 = vmatpush3.bf16.msra.mxu1 %v587_v27  ;;  %518 = vmatprep.subr.bf16.mxu0 %v588_v28 }
  0x1e   :  { %546 = vmatprep.subr.bf16.mxu1 %v589_v29 }
  0x20   :  { %519 = vmatpush3.bf16.msra.mxu0 %v590_v30 }
  0x21   :  { %547 = vmatpush3.bf16.msra.mxu1 %v591_v31 }
  0x23   :  { %364 = vmatmul.mubr.bf16.vlgmr.msra.gmra.mrb[0].mxu0 %v592_v32 }
  0x24   :  { %413 = vmatmul.mubr.bf16.vlgmr.msra.gmra.mrb[0].mxu1 %v595_v34  ;;  %371 = vmatprep.mubr.bf16.mxu0 %v598_v36 }
  0x25   :  { %420 = vmatprep.mubr.bf16.mxu1 %v600_v37 }
  0x2b   :  { %372 = vmatmul.mubr.bf16.gmra.mrb[4].mxu0 %v602_v38 }
  0x2c   :  { %421 = vmatmul.mubr.bf16.gmra.mrb[4].mxu1 %v603_v39 }
  0xf6   :  { %v520_v40 = vpop.f32.mrb[0].mxu0 }
  0xf7   :  { %v548_v41 = vpop.f32.mrb[0].mxu1  ;;  %v521_v42 = vpop.f32.mrb[1].mxu0 }
  0xf8   :  { %v522_v43 = vadd.f32 %v521_v42, %v520_v40  ;;  %v549_v44 = vpop.f32.mrb[1].mxu1  ;;  %v523_v45 = vpop.f32.mrb[2].mxu0 }
  0xf9   :  { %v550_v46 = vadd.f32 %v549_v44, %v548_v41  ;;  %v551_v47 = vpop.f32.mrb[2].mxu1  ;;  %v524_v48 = vpop.f32.mrb[3].mxu0 }
  0xfa   :  { %v525_v50 = vadd.f32 %v524_v48, %v523_v45  ;;  %v552_v51 = vpop.f32.mrb[3].mxu1 }
  0xfb   :  { %v415_v52 = vadd.f32 %v550_v46, %v522_v43  ;;  %v553_v53 = vadd.f32 %v552_v51, %v551_v47 }
  0xfd   :  { %v451_v54 = vadd.f32 %v503_v49, %v415_v52  ;;  %v418_v55 = vadd.f32 %v553_v53, %v525_v50 }
  0xfe   :  { %v526_v56 = vpop.f32.mrb[4].mxu0 }
  0xff   :  { %455 = vst [vmem:[%s762_s3] sm:$0xff] %v451_v54  ;;  %v452_v57 = vadd.f32 %v503_v49, %v418_v55  ;;  %v554_v58 = vpop.f32.mrb[4].mxu1  ;;  %v527_v59 = vpop.f32.mrb[5].mxu0 }
 0x100   :  { %v528_v60 = vadd.f32 %v527_v59, %v526_v56  ;;  %v555_v61 = vpop.f32.mrb[5].mxu1  ;;  %v529_v62 = vpop.f32.mrb[6].mxu0 }
 0x101   :  { %456 = vst [vmem:[%s762_s3 + $0x8] sm:$0xff] %v452_v57  ;;  %v556_v63 = vadd.f32 %v555_v61, %v554_v58  ;;  %v557_v0 = vpop.f32.mrb[6].mxu1  ;;  %v530_v1 = vpop.f32.mrb[7].mxu0 }
 0x102   :  { %v531_v2 = vadd.f32 %v530_v1, %v529_v62  ;;  %v558_v3 = vpop.f32.mrb[7].mxu1 }
 0x103   :  { %v423_v4 = vadd.f32 %v556_v63, %v528_v60  ;;  %v559_v5 = vadd.f32 %v558_v3, %v557_v0 }
 0x105   :  { %v453_v6 = vadd.f32 %v503_v49, %v423_v4  ;;  %v426_v7 = vadd.f32 %v559_v5, %v531_v2 }
 0x107   :  { %457 = vst [vmem:[%s762_s3 + $0x10] sm:$0xff] %v453_v6  ;;  %v454_v8 = vadd.f32 %v503_v49, %v426_v7 }
 0x109   :  { %458 = vst [vmem:[%s762_s3 + $0x18] sm:$0xff] %v454_v8 }

// kernel: generator_forward.98
= control target key start
LH: loop header
LB: loop body
LE: loop exit
PB: predicated region body
PF: predicated region fallthrough
CT: control target
= control target key end

     0   :  { %s1105_s12 = smov 0   ;;  %s1107_s13 = smov 0   ;;  %s1231_s0 = inlined_call_operand.vmem [shape: bf16[32,1024], index: 0, kind: input, shape index: {}]   ;;  %s1232_s1 = inlined_call_operand.vmem [shape: bf16[1024,128], index: 1, kind: input, shape index: {}]   ;;  %s1233_s2 = inlined_call_operand.vmem [shape: f32[1,128], index: 2, kind: input, shape index: {}]   ;;  %s1234_s3 = inlined_call_operand.vmem [shape: f32[32,128], index: 3, kind: output, shape index: {}]  }
   0x1   :  { %s1109_s14 = smov 0   ;;  %s1111_s15 = smov 0  }
   0x2   :  { %s1113_s16 = smov 0  }
   0x3 LB: > { %s25_s17 = sadd.s32 1, %s1078_s15  ;;  %p48_p1 = scmp.ne.s32.totalorder %s1070_s13, %s1066_s12  ;;  %s1082_s16 = sphi %s1113_s16, %s13_s16   ;;  %s1078_s15 = sphi %s1111_s15, %s1238_s15   ;;  %s1074_s14 = sphi %s1109_s14, %s1237_s14   ;;  %s1070_s13 = sphi %s1107_s13, %s1236_s13   ;;  %s1066_s12 = sphi %s1105_s12, %s1235_s12  }
   0x4   : > { %p26_p0 = scmp.ge.s32.totalorder %s25_s17, 2  ;;  %p49_p2 = scmp.eq.s32.totalorder %s1082_s16, 0 }
   0x5   : > { %s41_s19 = sadd.s32 1, %s1070_s13  ;;  %p847_p5 = scmp.ge.s32.totalorder %s1082_s16, 2 }
   0x6   : > { %s1240_s17 = smov (%p26_p0, %s25_s17), 0  ;;  %p50_p3 = por %p49_p2, %p48_p1 }
   0x7   : > { %s37_s18 = ssub.s32 %s1078_s15, %s1240_s17  ;;  %162 = sbr.rel (%p847_p5) target bundleno = 22 (0x16), region = 20 }
   0x8   : > { %p39_p4 = scmp.eq.s32.totalorder %s37_s18, 0 }
   0xa   : > { %s1140_s20 = scalar_select %p39_p4, %s1070_s13, %s41_s19  }
   0xe   : > { %165 = sbr.rel (!%p50_p3) target bundleno = 22 (0x16), region = 24  ;;  %s167_s21 = sand.u32 (%p50_p3), 1, %s1070_s13  }
   0xf   : > { %s902_s22 = sshll.u32 (%p50_p3), %s1078_s15, 4  ;;  %s848_s23 = sshll.u32 (%p50_p3), %s167_s21, 6 }
  0x10   : > { %s175_s26 = scalar_lea.vmem (%p50_p3), %s1231_s0, %s902_s22  ;;  %s169_s27 = scalar_lea.vmem (%p50_p3), [#allocation3], %s848_s23 }
  0x11   : > { %v188_v0 = vld [vmem:[%s175_s26] sm:$0xff] (%p50_p3)  ;;  %v190_v1 = vld [vmem:[%s175_s26 + $0x8] sm:$0xff] (%p50_p3) }
  0x12   : > { %v192_v2 = vld [vmem:[%s175_s26 + $0x20] sm:$0xff] (%p50_p3)  ;;  %189 = vst [vmem:[%s169_s27] sm:$0xff] (%p50_p3), %v188_v0  ;;  %191 = vst [vmem:[%s169_s27 + $0x8] sm:$0xff] (%p50_p3), %v190_v1  ;;  %v194_v3 = vld [vmem:[%s175_s26 + $0x28] sm:$0xff] (%p50_p3) }
  0x13   : > { %193 = vst [vmem:[%s169_s27 + $0x10] sm:$0xff] (%p50_p3), %v192_v2  ;;  %v196_v4 = vld [vmem:[%s175_s26 + $0x40] sm:$0xff] (%p50_p3)  ;;  %v198_v5 = vld [vmem:[%s175_s26 + $0x48] sm:$0xff] (%p50_p3)  ;;  %195 = vst [vmem:[%s169_s27 + $0x18] sm:$0xff] (%p50_p3), %v194_v3 }
  0x14   : > { %197 = vst [vmem:[%s169_s27 + $0x20] sm:$0xff] (%p50_p3), %v196_v4  ;;  %199 = vst [vmem:[%s169_s27 + $0x28] sm:$0xff] (%p50_p3), %v198_v5  ;;  %v200_v6 = vld [vmem:[%s175_s26 + $0x60] sm:$0xff] (%p50_p3)  ;;  %v202_v7 = vld [vmem:[%s175_s26 + $0x68] sm:$0xff] (%p50_p3) }
  0x15   : > { %201 = vst [vmem:[%s169_s27 + $0x30] sm:$0xff] %v200_v6  ;;  %203 = vst [vmem:[%s169_s27 + $0x38] sm:$0xff] %v202_v7 }
  0x16 PF: > { %p851_p6 = scmp.ge.s32.totalorder %s1082_s16, 1  ;;  %p220_p7 = scmp.lt.s32.totalorder %s1082_s16, 3 }
  0x18   : > { %p221_p8 = pnand %p851_p6, %p220_p7 }
  0x19   : > { %s227_s28 = sand.u32 (!%p221_p8), 1, %s1066_s12   ;;  %s853_s29 = sshll.u32 (!%p221_p8), %s1074_s14, 6 }
  0x1a   : > { %224 = sbr.rel (%p221_p8) target bundleno = 315 (0x13b), region = 51  ;;  %s852_s30 = sshll.u32 (!%p221_p8), %s227_s28, 6 }
  0x1b   : > { %p267_p9 = scmp.lt.s32.totalorder (!%p221_p8), %s853_s29, 127  ;;  %s1157_s8 = scalar_lea.vmem (!%p221_p8), [#allocation3], %s852_s30 }
  0x1c   : > { %p855_p10 = scmp.ne.s32.totalorder (!%p221_p8), %s1074_s14, 0 }
  0x21   : > { %s1242_s29 = smov (!%p267_p9, %s853_s29), 127  ;;  %291 = sbr.rel (%p855_p10) target bundleno = 40 (0x28), region = 59 }
  0x22   : > { %s854_s4 = sshll.u32 %s1242_s29, 2  ;;  %v1084_v8 = vmov (!%p855_p10), 0.0  }
  0x23   : > { %s1155_s7 = scalar_lea.vmem %s1232_s1, %s854_s4  ;;  %292 = vst [vmem:[#allocation2] sm:$0xff] (!%p855_p10), %v1084_v8  ;;  %293 = vst [vmem:[#allocation2 + $0x8] sm:$0xff] (!%p855_p10), %v1084_v8 }
  0x24   : > { %294 = vst [vmem:[#allocation2 + $0x10] sm:$0xff] (!%p855_p10), %v1084_v8  ;;  %295 = vst [vmem:[#allocation2 + $0x18] sm:$0xff] (!%p855_p10), %v1084_v8 }
  0x28 PF: > { %v1000_v9 = vld [vmem:[%s1155_s7 + $0x40] sm:$0xff]   ;;  %v1004_v13 = vld [vmem:[%s1155_s7 + $0x48] sm:$0xff]   ;;  %v1008_v17 = vld [vmem:[%s1155_s7 + $0x50] sm:$0xff]   ;;  %p896_p11 = scmp.ne.s32.totalorder %s1074_s14, 1 }
  0x29   : > { %v1001_v10 = vld [vmem:[%s1155_s7 + $0xc0] sm:$0xff]   ;;  %903 = vmatprep.subr.bf16.mxu0 %v1000_v9  ;;  %v1005_v14 = vld [vmem:[%s1155_s7 + $0xc8] sm:$0xff]   ;;  %v1009_v18 = vld [vmem:[%s1155_s7 + $0xd0] sm:$0xff]  }
  0x2a   : > { %v1002_v11 = vld [vmem:[%s1155_s7] sm:$0xff]   ;;  %931 = vmatprep.subr.bf16.mxu1 %v1001_v10  ;;  %v1006_v15 = vld [vmem:[%s1155_s7 + $0x8] sm:$0xff]   ;;  %v1010_v19 = vld [vmem:[%s1155_s7 + $0x10] sm:$0xff]  }
  0x2b   : > { %v1003_v12 = vld [vmem:[%s1155_s7 + $0x80] sm:$0xff]   ;;  %904 = vmatpush3.bf16.msra.mxu0 %v1002_v11  ;;  %v1007_v16 = vld [vmem:[%s1155_s7 + $0x88] sm:$0xff]   ;;  %v1011_v20 = vld [vmem:[%s1155_s7 + $0x90] sm:$0xff]  }
  0x2c   : > { %932 = vmatpush3.bf16.msra.mxu1 %v1003_v12  ;;  %905 = vmatprep.subr.bf16.mxu0 %v1004_v13  ;;  %v1012_v21 = vld [vmem:[%s1155_s7 + $0x58] sm:$0xff]   ;;  %v1016_v25 = vld [vmem:[%s1155_s7 + $0x60] sm:$0xff]   ;;  %v1020_v29 = vld [vmem:[%s1155_s7 + $0x68] sm:$0xff]  }
  0x2d   : > { %933 = vmatprep.subr.bf16.mxu1 %v1005_v14  ;;  %v1013_v22 = vld [vmem:[%s1155_s7 + $0xd8] sm:$0xff]   ;;  %v1017_v26 = vld [vmem:[%s1155_s7 + $0xe0] sm:$0xff]   ;;  %v1021_v30 = vld [vmem:[%s1155_s7 + $0xe8] sm:$0xff]  }
  0x2e   : > { %v1014_v23 = vld [vmem:[%s1155_s7 + $0x18] sm:$0xff]   ;;  %v1018_v27 = vld [vmem:[%s1155_s7 + $0x20] sm:$0xff]   ;;  %v1022_v31 = vld [vmem:[%s1155_s7 + $0x28] sm:$0xff]  }
  0x2f   : > { %906 = vmatpush3.bf16.msra.mxu0 %v1006_v15  ;;  %v1015_v24 = vld [vmem:[%s1155_s7 + $0x98] sm:$0xff]   ;;  %v1019_v28 = vld [vmem:[%s1155_s7 + $0xa0] sm:$0xff]   ;;  %v1023_v32 = vld [vmem:[%s1155_s7 + $0xa8] sm:$0xff]  }
  0x30   : > { %934 = vmatpush3.bf16.msra.mxu1 %v1007_v16  ;;  %907 = vmatprep.subr.bf16.mxu0 %v1008_v17  ;;  %v1024_v33 = vld [vmem:[%s1155_s7 + $0x70] sm:$0xff]   ;;  %v1028_v37 = vld [vmem:[%s1155_s7 + $0x78] sm:$0xff]   ;;  %v296_v58 = vld [vmem:[#allocation2] sm:$0xff] }
  0x31   : > { %935 = vmatprep.subr.bf16.mxu1 %v1009_v18  ;;  %v1025_v34 = vld [vmem:[%s1155_s7 + $0xf0] sm:$0xff]   ;;  %v1029_v38 = vld [vmem:[%s1155_s7 + $0xf8] sm:$0xff]   ;;  %v297_v63 = vld [vmem:[#allocation2 + $0x8] sm:$0xff] }
  0x32   : > { %v1026_v35 = vld [vmem:[%s1155_s7 + $0x30] sm:$0xff]   ;;  %v1030_v39 = vld [vmem:[%s1155_s7 + $0x38] sm:$0xff]  }
  0x33   : > { %908 = vmatpush3.bf16.msra.mxu0 %v1010_v19  ;;  %v1027_v36 = vld [vmem:[%s1155_s7 + $0xb0] sm:$0xff]   ;;  %v1031_v40 = vld [vmem:[%s1155_s7 + $0xb8] sm:$0xff]  }
  0x34   : > { %936 = vmatpush3.bf16.msra.mxu1 %v1011_v20  ;;  %909 = vmatprep.subr.bf16.mxu0 %v1012_v21  ;;  %v1032_v41 = vld [vmem:[%s1157_s8] ss:$16 sps:$4 sm:$0xff]   ;;  %v1034_v42 = vld [vmem:[%s1157_s8 + $0x4] ss:$16 sps:$4 sm:$0xff]   ;;  %v1035_v43 = vld [vmem:[%s1157_s8 + $0x8] ss:$16 sps:$4 sm:$0xff]  }
  0x35   : > { %937 = vmatprep.subr.bf16.mxu1 %v1013_v22  ;;  %v1037_v44 = vld [vmem:[%s1157_s8 + $0xc] ss:$16 sps:$4 sm:$0xff]   ;;  %636 = vmatprep.mubr.bf16.mxu0 %v1034_v42  ;;  %v1038_v45 = vld [vmem:[%s1157_s8 + $0x24] ss:$16 sps:$4 sm:$0xff]   ;;  %v1042_v47 = vld [vmem:[%s1157_s8 + $0x20] ss:$16 sps:$4 sm:$0xff]  }
  0x36   : > { %685 = vmatprep.mubr.bf16.mxu1 %v1037_v44  ;;  %v1040_v46 = vld [vmem:[%s1157_s8 + $0x2c] ss:$16 sps:$4 sm:$0xff]   ;;  %v1043_v48 = vld [vmem:[%s1157_s8 + $0x28] ss:$16 sps:$4 sm:$0xff]   ;;  %v298_v12 = vld [vmem:[#allocation2 + $0x10] sm:$0xff] }
  0x37   : > { %910 = vmatpush3.bf16.msra.mxu0 %v1014_v23  ;;  %v299_v17 = vld [vmem:[#allocation2 + $0x18] sm:$0xff]  ;;  %v897_v22 = vld [vmem:[%s1233_s2] ss:$0 sm:$0xff] (!%p896_p11) }
  0x38   : > { %938 = vmatpush3.bf16.msra.mxu1 %v1015_v24  ;;  %911 = vmatprep.subr.bf16.mxu0 %v1016_v25 }
  0x39   : > { %939 = vmatprep.subr.bf16.mxu1 %v1017_v26 }
  0x3b   : > { %912 = vmatpush3.bf16.msra.mxu0 %v1018_v27 }
  0x3c   : > { %940 = vmatpush3.bf16.msra.mxu1 %v1019_v28  ;;  %913 = vmatprep.subr.bf16.mxu0 %v1020_v29 }
  0x3d   : > { %941 = vmatprep.subr.bf16.mxu1 %v1021_v30 }
  0x3f   : > { %914 = vmatpush3.bf16.msra.mxu0 %v1022_v31 }
  0x40   : > { %942 = vmatpush3.bf16.msra.mxu1 %v1023_v32  ;;  %915 = vmatprep.subr.bf16.mxu0 %v1024_v33 }
  0x41   : > { %943 = vmatprep.subr.bf16.mxu1 %v1025_v34 }
  0x43   : > { %916 = vmatpush3.bf16.msra.mxu0 %v1026_v35 }
  0x44   : > { %944 = vmatpush3.bf16.msra.mxu1 %v1027_v36  ;;  %917 = vmatprep.subr.bf16.mxu0 %v1028_v37 }
  0x45   : > { %945 = vmatprep.subr.bf16.mxu1 %v1029_v38 }
  0x47   : > { %918 = vmatpush3.bf16.msra.mxu0 %v1030_v39 }
  0x48   : > { %946 = vmatpush3.bf16.msra.mxu1 %v1031_v40 }
  0x4a   : > { %637 = vmatmul.mubr.bf16.vlgmr.msra.gmra.mrb[0].mxu0 %v1032_v41 }
  0x4b   : > { %686 = vmatmul.mubr.bf16.vlgmr.msra.gmra.mrb[0].mxu1 %v1035_v43  ;;  %644 = vmatprep.mubr.bf16.mxu0 %v1038_v45 }
  0x4c   : > { %693 = vmatprep.mubr.bf16.mxu1 %v1040_v46 }
  0x52   : > { %645 = vmatmul.mubr.bf16.gmra.mrb[4].mxu0 %v1042_v47 }
  0x53   : > { %694 = vmatmul.mubr.bf16.gmra.mrb[4].mxu1 %v1043_v48 }
 0x11d   : > { %v919_v49 = vpop.f32.mrb[0].mxu0 }
 0x11e   : > { %v947_v50 = vpop.f32.mrb[0].mxu1  ;;  %v920_v51 = vpop.f32.mrb[1].mxu0 }
 0x11f   : > { %v921_v52 = vadd.f32 %v920_v51, %v919_v49  ;;  %v948_v53 = vpop.f32.mrb[1].mxu1  ;;  %v922_v54 = vpop.f32.mrb[2].mxu0 }
 0x120   : > { %v949_v55 = vadd.f32 %v948_v53, %v947_v50  ;;  %v950_v56 = vpop.f32.mrb[2].mxu1  ;;  %v923_v57 = vpop.f32.mrb[3].mxu0 }
 0x121   : > { %v924_v59 = vadd.f32 %v923_v57, %v922_v54  ;;  %v951_v60 = vpop.f32.mrb[3].mxu1 }
 0x122   : > { %v688_v61 = vadd.f32 %v949_v55, %v921_v52  ;;  %v952_v62 = vadd.f32 %v951_v60, %v950_v56 }
 0x124   : > { %v702_v0 = vadd.f32 %v688_v61, %v296_v58  ;;  %v691_v1 = vadd.f32 %v952_v62, %v924_v59 }
 0x125   : > { %v925_v2 = vpop.f32.mrb[4].mxu0 }
 0x126   : > { %706 = vst [vmem:[#allocation2] sm:$0xff] %v702_v0  ;;  %v703_v3 = vadd.f32 %v691_v1, %v297_v63  ;;  %v953_v4 = vpop.f32.mrb[4].mxu1  ;;  %v926_v5 = vpop.f32.mrb[5].mxu0 }
 0x127   : > { %v927_v6 = vadd.f32 %v926_v5, %v925_v2  ;;  %v954_v7 = vpop.f32.mrb[5].mxu1  ;;  %v928_v8 = vpop.f32.mrb[6].mxu0 }
 0x128   : > { %707 = vst [vmem:[#allocation2 + $0x8] sm:$0xff] %v703_v3  ;;  %v955_v9 = vadd.f32 %v954_v7, %v953_v4  ;;  %v956_v10 = vpop.f32.mrb[6].mxu1  ;;  %v929_v11 = vpop.f32.mrb[7].mxu0 }
 0x129   : > { %v930_v13 = vadd.f32 %v929_v11, %v928_v8  ;;  %v957_v14 = vpop.f32.mrb[7].mxu1 }
 0x12a   : > { %v696_v15 = vadd.f32 %v955_v9, %v927_v6  ;;  %v958_v16 = vadd.f32 %v957_v14, %v956_v10  ;;  %713 = sbr.rel (%p896_p11) target bundleno = 315 (0x13b), region = 63 }
 0x12c   : > { %v704_v18 = vadd.f32 %v696_v15, %v298_v12  ;;  %v699_v19 = vadd.f32 %v958_v16, %v930_v13 }
 0x12d   : > { %v714_v21 = vld [vmem:[#allocation2] sm:$0xff] (!%p896_p11) }
 0x12e   : > { %708 = vst [vmem:[#allocation2 + $0x10] sm:$0xff] %v704_v18  ;;  %v705_v20 = vadd.f32 %v699_v19, %v299_v17  ;;  %v725_v24 = vadd.f32 (!%p896_p11), %v897_v22, %v714_v21 }
 0x12f   : > { %v715_v23 = vld [vmem:[#allocation2 + $0x8] sm:$0xff] (!%p896_p11) }
 0x130   : > { %709 = vst [vmem:[#allocation2 + $0x18] sm:$0xff] %v705_v20  ;;  %v726_v25 = vadd.f32 (!%p896_p11), %v897_v22, %v715_v23  ;;  %729 = vst [vmem:[%s1234_s3] sm:$0xff] (!%p896_p11), %v725_v24 }
 0x132   : > { %730 = vst [vmem:[%s1234_s3 + $0x8] sm:$0xff] %v726_v25 }
 0x135   : > { %v716_v26 = vld [vmem:[#allocation2 + $0x10] sm:$0xff] }
 0x136   : > { %v727_v28 = vadd.f32 %v897_v22, %v716_v26 }
 0x137   : > { %v717_v27 = vld [vmem:[#allocation2 + $0x18] sm:$0xff] }
 0x138   : > { %v728_v29 = vadd.f32 %v897_v22, %v717_v27  ;;  %731 = vst [vmem:[%s1234_s3 + $0x10] sm:$0xff] %v727_v28 }
 0x13a   : > { %732 = vst [vmem:[%s1234_s3 + $0x18] sm:$0xff] %v728_v29 }
 0x13b PF: > { %s13_s16 = sadd.s32 1, %s1082_s16   ;;  %s1235_s12 = smov %s1070_s13 }
 0x13c   : > { %p10_p12 = scmp.ge.s32.totalorder %s13_s16, 4   ;;  %s1236_s13 = smov %s1140_s20 }
 0x13d   : > { %s1237_s14 = smov %s1078_s15  ;;  %s1238_s15 = smov %s1240_s17 }
 0x13e   :  { %12 = sbr.rel (!%p10_p12) target bundleno = 3 (0x3), region = 104 }

// kernel: generator_forward.95
= control target key start
LH: loop header
LB: loop body
LE: loop exit
PB: predicated region body
PF: predicated region fallthrough
CT: control target
= control target key end

     0   :  { %s444_s1 = inlined_call_operand.vmem [shape: bf16[256,128], index: 1, kind: input, shape index: {}]   ;;  %s445_s0 = inlined_call_operand.vmem [shape: bf16[32,256], index: 0, kind: input, shape index: {}]   ;;  %s446_s2 = inlined_call_operand.vmem [shape: f32[1,128], index: 2, kind: input, shape index: {}]   ;;  %s447_s3 = inlined_call_operand.vmem [shape: f32[32,128], index: 3, kind: output, shape index: {}]  }
   0x1   :  { %v327_v0 = vld [vmem:[%s444_s1 + $0x40] sm:$0xff]   ;;  %v329_v2 = vld [vmem:[%s444_s1 + $0x48] sm:$0xff]   ;;  %v331_v4 = vld [vmem:[%s444_s1 + $0x50] sm:$0xff]  }
   0x2   :  { %v328_v1 = vld [vmem:[%s444_s1] sm:$0xff]   ;;  %283 = vmatprep.subr.bf16.mxu0 %v327_v0  ;;  %311 = vmatprep.subr.bf16.mxu1 %v327_v0  ;;  %v330_v3 = vld [vmem:[%s444_s1 + $0x8] sm:$0xff]   ;;  %v332_v5 = vld [vmem:[%s444_s1 + $0x10] sm:$0xff]  }
   0x3   :  { %284 = vmatpush3.bf16.msra.mxu0 %v328_v1  ;;  %319 = vmatpush3.bf16.msra.mxu1 %v328_v1  ;;  %v333_v6 = vld [vmem:[%s444_s1 + $0x58] sm:$0xff]   ;;  %v335_v8 = vld [vmem:[%s444_s1 + $0x60] sm:$0xff]   ;;  %v337_v10 = vld [vmem:[%s444_s1 + $0x68] sm:$0xff]  }
   0x4   :  { %285 = vmatprep.subr.bf16.mxu0 %v329_v2  ;;  %312 = vmatprep.subr.bf16.mxu1 %v329_v2  ;;  %v334_v7 = vld [vmem:[%s444_s1 + $0x18] sm:$0xff]   ;;  %v336_v9 = vld [vmem:[%s444_s1 + $0x20] sm:$0xff]   ;;  %v338_v13 = vld [vmem:[%s444_s1 + $0x28] sm:$0xff]  }
   0x5   :  { %v345_v11 = vld [vmem:[%s445_s0 + $0x4] ss:$8 sps:$4 sm:$0xff]   ;;  %v348_v12 = vld [vmem:[%s445_s0 + $0x14] ss:$8 sps:$4 sm:$0xff]   ;;  %v343_v18 = vld [vmem:[%s445_s0] ss:$8 sps:$4 sm:$0xff]  }
   0x6   :  { %v339_v14 = vld [vmem:[%s444_s1 + $0x70] sm:$0xff]   ;;  %211 = vmatprep.mubr.bf16.mxu0 %v345_v11  ;;  %219 = vmatprep.mubr.bf16.mxu1 %v348_v12  ;;  %v341_v16 = vld [vmem:[%s444_s1 + $0x78] sm:$0xff]   ;;  %v282_v23 = vld [vmem:[%s446_s2] ss:$0 sm:$0xff] }
   0x7   :  { %286 = vmatpush3.bf16.msra.mxu0 %v330_v3  ;;  %320 = vmatpush3.bf16.msra.mxu1 %v330_v3  ;;  %v340_v15 = vld [vmem:[%s444_s1 + $0x30] sm:$0xff]   ;;  %v342_v17 = vld [vmem:[%s444_s1 + $0x38] sm:$0xff]  }
   0x8   :  { %287 = vmatprep.subr.bf16.mxu0 %v331_v4  ;;  %313 = vmatprep.subr.bf16.mxu1 %v331_v4  ;;  %v346_v19 = vld [vmem:[%s445_s0 + $0x10] ss:$8 sps:$4 sm:$0xff]  }
   0xb   :  { %288 = vmatpush3.bf16.msra.mxu0 %v332_v5  ;;  %321 = vmatpush3.bf16.msra.mxu1 %v332_v5 }
   0xc   :  { %289 = vmatprep.subr.bf16.mxu0 %v333_v6  ;;  %314 = vmatprep.subr.bf16.mxu1 %v333_v6 }
   0xf   :  { %290 = vmatpush3.bf16.msra.mxu0 %v334_v7  ;;  %322 = vmatpush3.bf16.msra.mxu1 %v334_v7 }
  0x10   :  { %291 = vmatprep.subr.bf16.mxu0 %v335_v8  ;;  %315 = vmatprep.subr.bf16.mxu1 %v335_v8 }
  0x13   :  { %292 = vmatpush3.bf16.msra.mxu0 %v336_v9  ;;  %323 = vmatpush3.bf16.msra.mxu1 %v336_v9 }
  0x14   :  { %293 = vmatprep.subr.bf16.mxu0 %v337_v10  ;;  %316 = vmatprep.subr.bf16.mxu1 %v337_v10 }
  0x17   :  { %294 = vmatpush3.bf16.msra.mxu0 %v338_v13  ;;  %324 = vmatpush3.bf16.msra.mxu1 %v338_v13 }
  0x18   :  { %295 = vmatprep.subr.bf16.mxu0 %v339_v14  ;;  %317 = vmatprep.subr.bf16.mxu1 %v339_v14 }
  0x1b   :  { %296 = vmatpush3.bf16.msra.mxu0 %v340_v15  ;;  %325 = vmatpush3.bf16.msra.mxu1 %v340_v15 }
  0x1c   :  { %297 = vmatprep.subr.bf16.mxu0 %v341_v16  ;;  %318 = vmatprep.subr.bf16.mxu1 %v341_v16 }
  0x1f   :  { %298 = vmatpush3.bf16.msra.mxu0 %v342_v17  ;;  %326 = vmatpush3.bf16.msra.mxu1 %v342_v17 }
  0x22   :  { %212 = vmatmul.mubr.bf16.vlgmr.msra.gmra.mrb[0].mxu0 %v343_v18  ;;  %220 = vmatmul.mubr.bf16.vlgmr.msra.gmra.mrb[0].mxu1 %v346_v19 }
  0xf5   :  { %v299_v20 = vpop.f32.mrb[0].mxu0  ;;  %v305_v21 = vpop.f32.mrb[0].mxu1 }
  0xf6   :  { %v300_v22 = vpop.f32.mrb[1].mxu0  ;;  %v306_v24 = vpop.f32.mrb[1].mxu1 }
  0xf7   :  { %v301_v25 = vadd.f32 %v300_v22, %v299_v20  ;;  %v307_v26 = vadd.f32 %v306_v24, %v305_v21  ;;  %v302_v27 = vpop.f32.mrb[2].mxu0  ;;  %v308_v28 = vpop.f32.mrb[2].mxu1 }
  0xf8   :  { %v303_v29 = vpop.f32.mrb[3].mxu0  ;;  %v309_v30 = vpop.f32.mrb[3].mxu1 }
  0xf9   :  { %v250_v31 = vadd.f32 %v301_v25, %v282_v23  ;;  %v252_v32 = vadd.f32 %v307_v26, %v282_v23  ;;  %v304_v33 = vadd.f32 %v303_v29, %v302_v27  ;;  %v310_v34 = vadd.f32 %v309_v30, %v308_v28 }
  0xfb   :  { %254 = vst [vmem:[%s447_s3] sm:$0xff] %v250_v31  ;;  %256 = vst [vmem:[%s447_s3 + $0x10] sm:$0xff] %v252_v32  ;;  %v251_v35 = vadd.f32 %v304_v33, %v282_v23  ;;  %v253_v36 = vadd.f32 %v310_v34, %v282_v23 }
  0xfd   :  { %255 = vst [vmem:[%s447_s3 + $0x8] sm:$0xff] %v251_v35  ;;  %257 = vst [vmem:[%s447_s3 + $0x18] sm:$0xff] %v253_v36 }

// kernel: generator_forward.100
= control target key start
LH: loop header
LB: loop body
LE: loop exit
PB: predicated region body
PF: predicated region fallthrough
CT: control target
= control target key end

     0   :  { %s586_s1 = inlined_call_operand.vmem [shape: bf16[128,128], index: 1, kind: input, shape index: {}]   ;;  %s587_s0 = inlined_call_operand.vmem [shape: bf16[128,128], index: 0, kind: input, shape index: {}]   ;;  %s588_s2 = inlined_call_operand.vmem [shape: f32[1,128], index: 2, kind: input, shape index: {}]   ;;  %s589_s3 = inlined_call_operand.vmem [shape: f32[128,128], index: 3, kind: output, shape index: {}]  }
   0x1   :  { %v451_v0 = vld [vmem:[%s586_s1] sm:$0xff]   ;;  %v452_v1 = vld [vmem:[%s586_s1 + $0x8] sm:$0xff]   ;;  %v453_v2 = vld [vmem:[%s586_s1 + $0x10] sm:$0xff]  }
   0x2   :  { %403 = vmatprep.subr.bf16.mxu0 %v451_v0  ;;  %435 = vmatprep.subr.bf16.mxu1 %v451_v0  ;;  %v454_v3 = vld [vmem:[%s586_s1 + $0x18] sm:$0xff]   ;;  %v459_v4 = vld [vmem:[%s587_s0] sm:$0xff]   ;;  %v456_v7 = vld [vmem:[%s586_s1 + $0x28] sm:$0xff]  }
   0x3   :  { %404 = vmatpush3.bf16.msra.mxu0 %v451_v0  ;;  %443 = vmatpush3.bf16.msra.mxu1 %v451_v0  ;;  %v460_v5 = vld [vmem:[%s587_s0 + $0x20] sm:$0xff]   ;;  %v457_v8 = vld [vmem:[%s586_s1 + $0x30] sm:$0xff]   ;;  %v458_v9 = vld [vmem:[%s586_s1 + $0x38] sm:$0xff]  }
   0x4   :  { %405 = vmatprep.subr.bf16.mxu0 %v452_v1  ;;  %436 = vmatprep.subr.bf16.mxu1 %v452_v1  ;;  %v455_v6 = vld [vmem:[%s586_s1 + $0x20] sm:$0xff]   ;;  %v461_v10 = vld [vmem:[%s587_s0 + $0x8] sm:$0xff]   ;;  %v463_v12 = vld [vmem:[%s587_s0 + $0x10] sm:$0xff]  }
   0x5   :  { %419 = vmatprep.mubr.bf16.mxu0 %v459_v4  ;;  %427 = vmatprep.mubr.bf16.mxu1 %v460_v5  ;;  %v462_v11 = vld [vmem:[%s587_s0 + $0x28] sm:$0xff]   ;;  %v464_v13 = vld [vmem:[%s587_s0 + $0x30] sm:$0xff]   ;;  %v465_v14 = vld [vmem:[%s587_s0 + $0x18] sm:$0xff]  }
   0x6   :  { %v466_v15 = vld [vmem:[%s587_s0 + $0x38] sm:$0xff]   ;;  %v386_v16 = vld [vmem:[%s588_s2] ss:$0 sm:$0xff] }
   0x7   :  { %406 = vmatpush3.bf16.msra.mxu0 %v452_v1  ;;  %444 = vmatpush3.bf16.msra.mxu1 %v452_v1 }
   0x8   :  { %407 = vmatprep.subr.bf16.mxu0 %v453_v2  ;;  %437 = vmatprep.subr.bf16.mxu1 %v453_v2 }
   0xb   :  { %408 = vmatpush3.bf16.msra.mxu0 %v453_v2  ;;  %445 = vmatpush3.bf16.msra.mxu1 %v453_v2 }
   0xc   :  { %409 = vmatprep.subr.bf16.mxu0 %v454_v3  ;;  %438 = vmatprep.subr.bf16.mxu1 %v454_v3 }
   0xf   :  { %410 = vmatpush3.bf16.msra.mxu0 %v454_v3  ;;  %446 = vmatpush3.bf16.msra.mxu1 %v454_v3 }
  0x10   :  { %411 = vmatprep.subr.bf16.mxu0 %v455_v6  ;;  %439 = vmatprep.subr.bf16.mxu1 %v455_v6 }
  0x13   :  { %412 = vmatpush3.bf16.msra.mxu0 %v455_v6  ;;  %447 = vmatpush3.bf16.msra.mxu1 %v455_v6 }
  0x14   :  { %413 = vmatprep.subr.bf16.mxu0 %v456_v7  ;;  %440 = vmatprep.subr.bf16.mxu1 %v456_v7 }
  0x17   :  { %414 = vmatpush3.bf16.msra.mxu0 %v456_v7  ;;  %448 = vmatpush3.bf16.msra.mxu1 %v456_v7 }
  0x18   :  { %415 = vmatprep.subr.bf16.mxu0 %v457_v8  ;;  %441 = vmatprep.subr.bf16.mxu1 %v457_v8 }
  0x1b   :  { %416 = vmatpush3.bf16.msra.mxu0 %v457_v8  ;;  %449 = vmatpush3.bf16.msra.mxu1 %v457_v8 }
  0x1c   :  { %417 = vmatprep.subr.bf16.mxu0 %v458_v9  ;;  %442 = vmatprep.subr.bf16.mxu1 %v458_v9 }
  0x1f   :  { %418 = vmatpush3.bf16.msra.mxu0 %v458_v9  ;;  %450 = vmatpush3.bf16.msra.mxu1 %v458_v9 }
  0x22   :  { %420 = vmatmul.mubr.bf16.vlgmr.msra.gmra.mrb[0].mxu0 %v461_v10  ;;  %428 = vmatmul.mubr.bf16.vlgmr.msra.gmra.mrb[0].mxu1 %v462_v11 }
  0x23   :  { %423 = vmatprep.mubr.bf16.mxu0 %v463_v12  ;;  %431 = vmatprep.mubr.bf16.mxu1 %v464_v13 }
  0x2a   :  { %424 = vmatmul.mubr.bf16.gmra.mrb[4].mxu0 %v465_v14  ;;  %432 = vmatmul.mubr.bf16.gmra.mrb[4].mxu1 %v466_v15 }
  0xf5   :  { %v421_v17 = vpop.f32.mrb[0].mxu0  ;;  %v429_v18 = vpop.f32.mrb[0].mxu1 }
  0xf6   :  { %v336_v19 = vadd.f32 %v421_v17, %v386_v16  ;;  %v344_v20 = vadd.f32 %v429_v18, %v386_v16  ;;  %v213_v21 = vpop.f32.mrb[1].mxu0  ;;  %v245_v22 = vpop.f32.mrb[1].mxu1 }
  0xf7   :  { %v334_v23 = vadd.f32 %v386_v16, %v213_v21  ;;  %v342_v24 = vadd.f32 %v386_v16, %v245_v22  ;;  %v422_v25 = vpop.f32.mrb[2].mxu0  ;;  %v430_v26 = vpop.f32.mrb[2].mxu1 }
  0xf8   :  { %352 = vst [vmem:[%s589_s3 + $0x10] sm:$0xff] %v336_v19  ;;  %360 = vst [vmem:[%s589_s3 + $0x50] sm:$0xff] %v344_v20  ;;  %v337_v27 = vadd.f32 %v422_v25, %v386_v16  ;;  %v345_v28 = vadd.f32 %v430_v26, %v386_v16  ;;  %v216_v29 = vpop.f32.mrb[3].mxu0  ;;  %v248_v30 = vpop.f32.mrb[3].mxu1 }
  0xf9   :  { %350 = vst [vmem:[%s589_s3] sm:$0xff] %v334_v23  ;;  %358 = vst [vmem:[%s589_s3 + $0x40] sm:$0xff] %v342_v24  ;;  %v335_v31 = vadd.f32 %v386_v16, %v216_v29  ;;  %v343_v32 = vadd.f32 %v386_v16, %v248_v30 }
  0xfa   :  { %353 = vst [vmem:[%s589_s3 + $0x18] sm:$0xff] %v337_v27  ;;  %361 = vst [vmem:[%s589_s3 + $0x58] sm:$0xff] %v345_v28 }
  0xfb   :  { %351 = vst [vmem:[%s589_s3 + $0x8] sm:$0xff] %v335_v31  ;;  %359 = vst [vmem:[%s589_s3 + $0x48] sm:$0xff] %v343_v32 }
  0xfd   :  { %v425_v33 = vpop.f32.mrb[4].mxu0  ;;  %v433_v34 = vpop.f32.mrb[4].mxu1 }
  0xfe   :  { %v340_v35 = vadd.f32 %v425_v33, %v386_v16  ;;  %v348_v36 = vadd.f32 %v433_v34, %v386_v16  ;;  %v229_v37 = vpop.f32.mrb[5].mxu0  ;;  %v261_v38 = vpop.f32.mrb[5].mxu1 }
  0xff   :  { %v338_v39 = vadd.f32 %v386_v16, %v229_v37  ;;  %v346_v40 = vadd.f32 %v386_v16, %v261_v38  ;;  %v426_v41 = vpop.f32.mrb[6].mxu0  ;;  %v434_v42 = vpop.f32.mrb[6].mxu1 }
 0x100   :  { %356 = vst [vmem:[%s589_s3 + $0x30] sm:$0xff] %v340_v35  ;;  %364 = vst [vmem:[%s589_s3 + $0x70] sm:$0xff] %v348_v36  ;;  %v341_v43 = vadd.f32 %v426_v41, %v386_v16  ;;  %v349_v44 = vadd.f32 %v434_v42, %v386_v16  ;;  %v232_v45 = vpop.f32.mrb[7].mxu0  ;;  %v264_v46 = vpop.f32.mrb[7].mxu1 }
 0x101   :  { %354 = vst [vmem:[%s589_s3 + $0x20] sm:$0xff] %v338_v39  ;;  %362 = vst [vmem:[%s589_s3 + $0x60] sm:$0xff] %v346_v40  ;;  %v339_v47 = vadd.f32 %v386_v16, %v232_v45  ;;  %v347_v48 = vadd.f32 %v386_v16, %v264_v46 }
 0x102   :  { %357 = vst [vmem:[%s589_s3 + $0x38] sm:$0xff] %v341_v43  ;;  %365 = vst [vmem:[%s589_s3 + $0x78] sm:$0xff] %v349_v44 }
 0x103   :  { %355 = vst [vmem:[%s589_s3 + $0x28] sm:$0xff] %v339_v47  ;;  %363 = vst [vmem:[%s589_s3 + $0x68] sm:$0xff] %v347_v48 }

// kernel: generator_forward.101
= control target key start
LH: loop header
LB: loop body
LE: loop exit
PB: predicated region body
PF: predicated region fallthrough
CT: control target
= control target key end

     0   :  { %s804_s1 = inlined_call_operand.vmem [shape: bf16[256,128], index: 1, kind: input, shape index: {}]   ;;  %s805_s0 = inlined_call_operand.vmem [shape: bf16[128,256], index: 0, kind: input, shape index: {}]   ;;  %s806_s2 = inlined_call_operand.vmem [shape: f32[1,128], index: 2, kind: input, shape index: {}]   ;;  %s807_s3 = inlined_call_operand.vmem [shape: f32[128,128], index: 3, kind: output, shape index: {}]  }
   0x1   :  { %v579_v0 = vld [vmem:[%s804_s1 + $0x40] sm:$0xff]   ;;  %v581_v2 = vld [vmem:[%s804_s1 + $0x48] sm:$0xff]   ;;  %v583_v4 = vld [vmem:[%s804_s1 + $0x50] sm:$0xff]  }
   0x2   :  { %v580_v1 = vld [vmem:[%s804_s1] sm:$0xff]   ;;  %499 = vmatprep.subr.bf16.mxu0 %v579_v0  ;;  %563 = vmatprep.subr.bf16.mxu1 %v579_v0  ;;  %v582_v3 = vld [vmem:[%s804_s1 + $0x8] sm:$0xff]   ;;  %v584_v5 = vld [vmem:[%s804_s1 + $0x10] sm:$0xff]  }
   0x3   :  { %500 = vmatpush3.bf16.msra.mxu0 %v580_v1  ;;  %571 = vmatpush3.bf16.msra.mxu1 %v580_v1  ;;  %v585_v6 = vld [vmem:[%s804_s1 + $0x58] sm:$0xff]   ;;  %v587_v8 = vld [vmem:[%s804_s1 + $0x60] sm:$0xff]   ;;  %v589_v10 = vld [vmem:[%s804_s1 + $0x68] sm:$0xff]  }
   0x4   :  { %501 = vmatprep.subr.bf16.mxu0 %v581_v2  ;;  %564 = vmatprep.subr.bf16.mxu1 %v581_v2  ;;  %v586_v7 = vld [vmem:[%s804_s1 + $0x18] sm:$0xff]   ;;  %v588_v9 = vld [vmem:[%s804_s1 + $0x20] sm:$0xff]   ;;  %v590_v13 = vld [vmem:[%s804_s1 + $0x28] sm:$0xff]  }
   0x5   :  { %v597_v11 = vld [vmem:[%s805_s0 + $0x4] ss:$8 sps:$4 sm:$0xff]   ;;  %v591_v14 = vld [vmem:[%s804_s1 + $0x70] sm:$0xff]   ;;  %v593_v16 = vld [vmem:[%s804_s1 + $0x78] sm:$0xff]  }
   0x6   :  { %v600_v12 = vld [vmem:[%s805_s0 + $0x44] ss:$8 sps:$4 sm:$0xff]   ;;  %307 = vmatprep.mubr.bf16.mxu0 %v597_v11  ;;  %v592_v15 = vld [vmem:[%s804_s1 + $0x30] sm:$0xff]   ;;  %v594_v17 = vld [vmem:[%s804_s1 + $0x38] sm:$0xff]  }
   0x7   :  { %502 = vmatpush3.bf16.msra.mxu0 %v582_v3  ;;  %572 = vmatpush3.bf16.msra.mxu1 %v582_v3  ;;  %v595_v18 = vld [vmem:[%s805_s0] ss:$8 sps:$4 sm:$0xff]   ;;  %v601_v20 = vld [vmem:[%s805_s0 + $0x14] ss:$8 sps:$4 sm:$0xff]   ;;  %v605_v22 = vld [vmem:[%s805_s0 + $0x10] ss:$8 sps:$4 sm:$0xff]  }
   0x8   :  { %503 = vmatprep.subr.bf16.mxu0 %v583_v4  ;;  %565 = vmatprep.subr.bf16.mxu1 %v583_v4  ;;  %v598_v19 = vld [vmem:[%s805_s0 + $0x40] ss:$8 sps:$4 sm:$0xff]   ;;  %v603_v21 = vld [vmem:[%s805_s0 + $0x54] ss:$8 sps:$4 sm:$0xff]   ;;  %v606_v23 = vld [vmem:[%s805_s0 + $0x50] ss:$8 sps:$4 sm:$0xff]  }
   0x9   :  { %339 = vmatprep.mubr.bf16.mxu1 %v600_v12  ;;  %v607_v24 = vld [vmem:[%s805_s0 + $0x24] ss:$8 sps:$4 sm:$0xff]   ;;  %v611_v26 = vld [vmem:[%s805_s0 + $0x20] ss:$8 sps:$4 sm:$0xff]   ;;  %v613_v28 = vld [vmem:[%s805_s0 + $0x34] ss:$8 sps:$4 sm:$0xff]  }
   0xa   :  { %v609_v25 = vld [vmem:[%s805_s0 + $0x64] ss:$8 sps:$4 sm:$0xff]   ;;  %v612_v27 = vld [vmem:[%s805_s0 + $0x60] ss:$8 sps:$4 sm:$0xff]   ;;  %v615_v29 = vld [vmem:[%s805_s0 + $0x74] ss:$8 sps:$4 sm:$0xff]  }
   0xb   :  { %504 = vmatpush3.bf16.msra.mxu0 %v584_v5  ;;  %573 = vmatpush3.bf16.msra.mxu1 %v584_v5  ;;  %v617_v30 = vld [vmem:[%s805_s0 + $0x30] ss:$8 sps:$4 sm:$0xff]   ;;  %v738_v35 = vld [vmem:[%s806_s2] ss:$0 sm:$0xff] }
   0xc   :  { %505 = vmatprep.subr.bf16.mxu0 %v585_v6  ;;  %566 = vmatprep.subr.bf16.mxu1 %v585_v6  ;;  %v618_v31 = vld [vmem:[%s805_s0 + $0x70] ss:$8 sps:$4 sm:$0xff]  }
   0xf   :  { %506 = vmatpush3.bf16.msra.mxu0 %v586_v7  ;;  %574 = vmatpush3.bf16.msra.mxu1 %v586_v7 }
  0x10   :  { %507 = vmatprep.subr.bf16.mxu0 %v587_v8  ;;  %567 = vmatprep.subr.bf16.mxu1 %v587_v8 }
  0x13   :  { %508 = vmatpush3.bf16.msra.mxu0 %v588_v9  ;;  %575 = vmatpush3.bf16.msra.mxu1 %v588_v9 }
  0x14   :  { %509 = vmatprep.subr.bf16.mxu0 %v589_v10  ;;  %568 = vmatprep.subr.bf16.mxu1 %v589_v10 }
  0x17   :  { %510 = vmatpush3.bf16.msra.mxu0 %v590_v13  ;;  %576 = vmatpush3.bf16.msra.mxu1 %v590_v13 }
  0x18   :  { %511 = vmatprep.subr.bf16.mxu0 %v591_v14  ;;  %569 = vmatprep.subr.bf16.mxu1 %v591_v14 }
  0x1b   :  { %512 = vmatpush3.bf16.msra.mxu0 %v592_v15  ;;  %577 = vmatpush3.bf16.msra.mxu1 %v592_v15 }
  0x1c   :  { %513 = vmatprep.subr.bf16.mxu0 %v593_v16  ;;  %570 = vmatprep.subr.bf16.mxu1 %v593_v16 }
  0x1f   :  { %514 = vmatpush3.bf16.msra.mxu0 %v594_v17  ;;  %578 = vmatpush3.bf16.msra.mxu1 %v594_v17 }
  0x22   :  { %308 = vmatmul.mubr.bf16.vlgmr.msra.gmra.mrb[0].mxu0 %v595_v18  ;;  %340 = vmatmul.mubr.bf16.vlgmr.msra.gmra.mrb[0].mxu1 %v598_v19 }
  0x23   :  { %315 = vmatprep.mubr.bf16.mxu0 %v601_v20  ;;  %347 = vmatprep.mubr.bf16.mxu1 %v603_v21 }
  0x2a   :  { %316 = vmatmul.mubr.bf16.gmra.mrb[4].mxu0 %v605_v22  ;;  %348 = vmatmul.mubr.bf16.gmra.mrb[4].mxu1 %v606_v23 }
  0x2b   :  { %323 = vmatprep.mubr.bf16.mxu0 %v607_v24  ;;  %355 = vmatprep.mubr.bf16.mxu1 %v609_v25 }
  0x32   :  { %324 = vmatmul.mubr.bf16.gmra.mrb[8].mxu0 %v611_v26  ;;  %356 = vmatmul.mubr.bf16.gmra.mrb[8].mxu1 %v612_v27 }
  0x33   :  { %331 = vmatprep.mubr.bf16.mxu0 %v613_v28  ;;  %363 = vmatprep.mubr.bf16.mxu1 %v615_v29 }
  0x3a   :  { %332 = vmatmul.mubr.bf16.gmra.mrb[12].mxu0 %v617_v30  ;;  %364 = vmatmul.mubr.bf16.gmra.mrb[12].mxu1 %v618_v31 }
  0xf5   :  { %v515_v32 = vpop.f32.mrb[0].mxu0  ;;  %v539_v33 = vpop.f32.mrb[0].mxu1 }
  0xf6   :  { %v516_v34 = vpop.f32.mrb[1].mxu0  ;;  %v540_v36 = vpop.f32.mrb[1].mxu1 }
  0xf7   :  { %v517_v37 = vadd.f32 %v516_v34, %v515_v32  ;;  %v541_v38 = vadd.f32 %v540_v36, %v539_v33  ;;  %v518_v39 = vpop.f32.mrb[2].mxu0  ;;  %v542_v40 = vpop.f32.mrb[2].mxu1 }
  0xf8   :  { %v519_v41 = vpop.f32.mrb[3].mxu0  ;;  %v543_v42 = vpop.f32.mrb[3].mxu1 }
  0xf9   :  { %v430_v43 = vadd.f32 %v517_v37, %v738_v35  ;;  %v438_v44 = vadd.f32 %v541_v38, %v738_v35  ;;  %v520_v45 = vadd.f32 %v519_v41, %v518_v39  ;;  %v544_v46 = vadd.f32 %v543_v42, %v542_v40 }
  0xfb   :  { %446 = vst [vmem:[%s807_s3] sm:$0xff] %v430_v43  ;;  %454 = vst [vmem:[%s807_s3 + $0x40] sm:$0xff] %v438_v44  ;;  %v431_v47 = vadd.f32 %v520_v45, %v738_v35  ;;  %v439_v48 = vadd.f32 %v544_v46, %v738_v35 }
  0xfd   :  { %447 = vst [vmem:[%s807_s3 + $0x8] sm:$0xff] %v431_v47  ;;  %455 = vst [vmem:[%s807_s3 + $0x48] sm:$0xff] %v439_v48  ;;  %v521_v49 = vpop.f32.mrb[4].mxu0  ;;  %v545_v50 = vpop.f32.mrb[4].mxu1 }
  0xfe   :  { %v522_v51 = vpop.f32.mrb[5].mxu0  ;;  %v546_v52 = vpop.f32.mrb[5].mxu1 }
  0xff   :  { %v523_v53 = vadd.f32 %v522_v51, %v521_v49  ;;  %v547_v54 = vadd.f32 %v546_v52, %v545_v50  ;;  %v524_v55 = vpop.f32.mrb[6].mxu0  ;;  %v548_v56 = vpop.f32.mrb[6].mxu1 }
 0x100   :  { %v525_v57 = vpop.f32.mrb[7].mxu0  ;;  %v549_v58 = vpop.f32.mrb[7].mxu1 }
 0x101   :  { %v432_v59 = vadd.f32 %v523_v53, %v738_v35  ;;  %v440_v60 = vadd.f32 %v547_v54, %v738_v35  ;;  %v526_v61 = vadd.f32 %v525_v57, %v524_v55  ;;  %v550_v62 = vadd.f32 %v549_v58, %v548_v56 }
 0x103   :  { %448 = vst [vmem:[%s807_s3 + $0x10] sm:$0xff] %v432_v59  ;;  %456 = vst [vmem:[%s807_s3 + $0x50] sm:$0xff] %v440_v60  ;;  %v433_v63 = vadd.f32 %v526_v61, %v738_v35  ;;  %v441_v0 = vadd.f32 %v550_v62, %v738_v35 }
 0x105   :  { %449 = vst [vmem:[%s807_s3 + $0x18] sm:$0xff] %v433_v63  ;;  %457 = vst [vmem:[%s807_s3 + $0x58] sm:$0xff] %v441_v0  ;;  %v527_v1 = vpop.f32.mrb[8].mxu0  ;;  %v551_v2 = vpop.f32.mrb[8].mxu1 }
 0x106   :  { %v528_v3 = vpop.f32.mrb[9].mxu0  ;;  %v552_v4 = vpop.f32.mrb[9].mxu1 }
 0x107   :  { %v529_v5 = vadd.f32 %v528_v3, %v527_v1  ;;  %v553_v6 = vadd.f32 %v552_v4, %v551_v2  ;;  %v530_v7 = vpop.f32.mrb[10].mxu0  ;;  %v554_v8 = vpop.f32.mrb[10].mxu1 }
 0x108   :  { %v531_v9 = vpop.f32.mrb[11].mxu0  ;;  %v555_v10 = vpop.f32.mrb[11].mxu1 }
 0x109   :  { %v434_v11 = vadd.f32 %v529_v5, %v738_v35  ;;  %v442_v12 = vadd.f32 %v553_v6, %v738_v35  ;;  %v532_v13 = vadd.f32 %v531_v9, %v530_v7  ;;  %v556_v14 = vadd.f32 %v555_v10, %v554_v8 }
 0x10b   :  { %450 = vst [vmem:[%s807_s3 + $0x20] sm:$0xff] %v434_v11  ;;  %458 = vst [vmem:[%s807_s3 + $0x60] sm:$0xff] %v442_v12  ;;  %v435_v15 = vadd.f32 %v532_v13, %v738_v35  ;;  %v443_v16 = vadd.f32 %v556_v14, %v738_v35 }
 0x10d   :  { %451 = vst [vmem:[%s807_s3 + $0x28] sm:$0xff] %v435_v15  ;;  %459 = vst [vmem:[%s807_s3 + $0x68] sm:$0xff] %v443_v16  ;;  %v533_v17 = vpop.f32.mrb[12].mxu0  ;;  %v557_v18 = vpop.f32.mrb[12].mxu1 }
 0x10e   :  { %v534_v19 = vpop.f32.mrb[13].mxu0  ;;  %v558_v20 = vpop.f32.mrb[13].mxu1 }
 0x10f   :  { %v535_v21 = vadd.f32 %v534_v19, %v533_v17  ;;  %v559_v22 = vadd.f32 %v558_v20, %v557_v18  ;;  %v536_v23 = vpop.f32.mrb[14].mxu0  ;;  %v560_v24 = vpop.f32.mrb[14].mxu1 }
 0x110   :  { %v537_v25 = vpop.f32.mrb[15].mxu0  ;;  %v561_v26 = vpop.f32.mrb[15].mxu1 }
 0x111   :  { %v436_v27 = vadd.f32 %v535_v21, %v738_v35  ;;  %v444_v28 = vadd.f32 %v559_v22, %v738_v35  ;;  %v538_v29 = vadd.f32 %v537_v25, %v536_v23  ;;  %v562_v30 = vadd.f32 %v561_v26, %v560_v24 }
 0x113   :  { %452 = vst [vmem:[%s807_s3 + $0x30] sm:$0xff] %v436_v27  ;;  %460 = vst [vmem:[%s807_s3 + $0x70] sm:$0xff] %v444_v28  ;;  %v437_v31 = vadd.f32 %v538_v29, %v738_v35  ;;  %v445_v32 = vadd.f32 %v562_v30, %v738_v35 }
 0x115   :  { %453 = vst [vmem:[%s807_s3 + $0x38] sm:$0xff] %v437_v31  ;;  %461 = vst [vmem:[%s807_s3 + $0x78] sm:$0xff] %v445_v32 }

// kernel: generator_forward.103
= control target key start
LH: loop header
LB: loop body
LE: loop exit
PB: predicated region body
PF: predicated region fallthrough
CT: control target
= control target key end

     0   :  { %s1341_s1 = inlined_call_operand.vmem [shape: bf16[512,128], index: 1, kind: input, shape index: {}]   ;;  %s1342_s0 = inlined_call_operand.vmem [shape: bf16[128,512], index: 0, kind: input, shape index: {}]   ;;  %s1343_s2 = inlined_call_operand.vmem [shape: f32[1,128], index: 2, kind: input, shape index: {}]   ;;  %s1344_s3 = inlined_call_operand.vmem [shape: f32[128,128], index: 3, kind: output, shape index: {}]  }
   0x1   :  { %v980_v0 = vld [vmem:[%s1341_s1 + $0x40] sm:$0xff]   ;;  %v984_v4 = vld [vmem:[%s1341_s1 + $0x48] sm:$0xff]   ;;  %v988_v8 = vld [vmem:[%s1341_s1 + $0x50] sm:$0xff]  }
   0x2   :  { %v981_v1 = vld [vmem:[%s1341_s1 + $0xc0] sm:$0xff]   ;;  %852 = vmatprep.subr.bf16.mxu0 %v980_v0  ;;  %v985_v5 = vld [vmem:[%s1341_s1 + $0xc8] sm:$0xff]   ;;  %v989_v9 = vld [vmem:[%s1341_s1 + $0xd0] sm:$0xff]  }
   0x3   :  { %v982_v2 = vld [vmem:[%s1341_s1] sm:$0xff]   ;;  %916 = vmatprep.subr.bf16.mxu1 %v981_v1  ;;  %v986_v6 = vld [vmem:[%s1341_s1 + $0x8] sm:$0xff]   ;;  %v990_v10 = vld [vmem:[%s1341_s1 + $0x10] sm:$0xff]  }
   0x4   :  { %v983_v3 = vld [vmem:[%s1341_s1 + $0x80] sm:$0xff]   ;;  %853 = vmatpush3.bf16.msra.mxu0 %v982_v2  ;;  %v987_v7 = vld [vmem:[%s1341_s1 + $0x88] sm:$0xff]   ;;  %v991_v11 = vld [vmem:[%s1341_s1 + $0x90] sm:$0xff]  }
   0x5   :  { %917 = vmatpush3.bf16.msra.mxu1 %v983_v3  ;;  %854 = vmatprep.subr.bf16.mxu0 %v984_v4  ;;  %v992_v12 = vld [vmem:[%s1341_s1 + $0x58] sm:$0xff]   ;;  %v996_v16 = vld [vmem:[%s1341_s1 + $0x60] sm:$0xff]   ;;  %v1000_v20 = vld [vmem:[%s1341_s1 + $0x68] sm:$0xff]  }
   0x6   :  { %918 = vmatprep.subr.bf16.mxu1 %v985_v5  ;;  %v993_v13 = vld [vmem:[%s1341_s1 + $0xd8] sm:$0xff]   ;;  %v997_v17 = vld [vmem:[%s1341_s1 + $0xe0] sm:$0xff]   ;;  %v1001_v21 = vld [vmem:[%s1341_s1 + $0xe8] sm:$0xff]  }
   0x7   :  { %v994_v14 = vld [vmem:[%s1341_s1 + $0x18] sm:$0xff]   ;;  %v998_v18 = vld [vmem:[%s1341_s1 + $0x20] sm:$0xff]   ;;  %v1002_v22 = vld [vmem:[%s1341_s1 + $0x28] sm:$0xff]  }
   0x8   :  { %855 = vmatpush3.bf16.msra.mxu0 %v986_v6  ;;  %v995_v15 = vld [vmem:[%s1341_s1 + $0x98] sm:$0xff]   ;;  %v999_v19 = vld [vmem:[%s1341_s1 + $0xa0] sm:$0xff]   ;;  %v1003_v23 = vld [vmem:[%s1341_s1 + $0xa8] sm:$0xff]  }
   0x9   :  { %919 = vmatpush3.bf16.msra.mxu1 %v987_v7  ;;  %856 = vmatprep.subr.bf16.mxu0 %v988_v8  ;;  %v1004_v24 = vld [vmem:[%s1341_s1 + $0x70] sm:$0xff]   ;;  %v1008_v28 = vld [vmem:[%s1341_s1 + $0x78] sm:$0xff]  }
   0xa   :  { %920 = vmatprep.subr.bf16.mxu1 %v989_v9  ;;  %v1005_v25 = vld [vmem:[%s1341_s1 + $0xf0] sm:$0xff]   ;;  %v1009_v29 = vld [vmem:[%s1341_s1 + $0xf8] sm:$0xff]   ;;  %v1275_v9 = vld [vmem:[%s1343_s2] ss:$0 sm:$0xff] }
   0xb   :  { %v1006_v26 = vld [vmem:[%s1341_s1 + $0x30] sm:$0xff]   ;;  %v1010_v30 = vld [vmem:[%s1341_s1 + $0x38] sm:$0xff]  }
   0xc   :  { %857 = vmatpush3.bf16.msra.mxu0 %v990_v10  ;;  %v1007_v27 = vld [vmem:[%s1341_s1 + $0xb0] sm:$0xff]   ;;  %v1011_v31 = vld [vmem:[%s1341_s1 + $0xb8] sm:$0xff]  }
   0xd   :  { %921 = vmatpush3.bf16.msra.mxu1 %v991_v11  ;;  %858 = vmatprep.subr.bf16.mxu0 %v992_v12  ;;  %v1012_v32 = vld [vmem:[%s1342_s0] ss:$16 sps:$4 sm:$0xff]   ;;  %v1014_v33 = vld [vmem:[%s1342_s0 + $0x4] ss:$16 sps:$4 sm:$0xff]   ;;  %v1015_v34 = vld [vmem:[%s1342_s0 + $0x8] ss:$16 sps:$4 sm:$0xff]  }
   0xe   :  { %922 = vmatprep.subr.bf16.mxu1 %v993_v13  ;;  %v1017_v35 = vld [vmem:[%s1342_s0 + $0xc] ss:$16 sps:$4 sm:$0xff]   ;;  %531 = vmatprep.mubr.bf16.mxu0 %v1014_v33  ;;  %v1018_v36 = vld [vmem:[%s1342_s0 + $0x24] ss:$16 sps:$4 sm:$0xff]   ;;  %v1022_v38 = vld [vmem:[%s1342_s0 + $0x20] ss:$16 sps:$4 sm:$0xff]  }
   0xf   :  { %628 = vmatprep.mubr.bf16.mxu1 %v1017_v35  ;;  %v1020_v37 = vld [vmem:[%s1342_s0 + $0x2c] ss:$16 sps:$4 sm:$0xff]   ;;  %v1023_v39 = vld [vmem:[%s1342_s0 + $0x28] ss:$16 sps:$4 sm:$0xff]   ;;  %v1024_v40 = vld [vmem:[%s1342_s0 + $0x44] ss:$16 sps:$4 sm:$0xff]  }
  0x10   :  { %859 = vmatpush3.bf16.msra.mxu0 %v994_v14  ;;  %v1026_v41 = vld [vmem:[%s1342_s0 + $0x4c] ss:$16 sps:$4 sm:$0xff]   ;;  %v1028_v42 = vld [vmem:[%s1342_s0 + $0x40] ss:$16 sps:$4 sm:$0xff]   ;;  %v1029_v43 = vld [vmem:[%s1342_s0 + $0x48] ss:$16 sps:$4 sm:$0xff]  }
  0x11   :  { %923 = vmatpush3.bf16.msra.mxu1 %v995_v15  ;;  %860 = vmatprep.subr.bf16.mxu0 %v996_v16  ;;  %v1030_v44 = vld [vmem:[%s1342_s0 + $0x64] ss:$16 sps:$4 sm:$0xff]   ;;  %v1032_v45 = vld [vmem:[%s1342_s0 + $0x6c] ss:$16 sps:$4 sm:$0xff]   ;;  %v1034_v46 = vld [vmem:[%s1342_s0 + $0x60] ss:$16 sps:$4 sm:$0xff]  }
  0x12   :  { %924 = vmatprep.subr.bf16.mxu1 %v997_v17  ;;  %v1035_v47 = vld [vmem:[%s1342_s0 + $0x68] ss:$16 sps:$4 sm:$0xff]   ;;  %v1036_v48 = vld [vmem:[%s1342_s0 + $0x84] ss:$16 sps:$4 sm:$0xff]   ;;  %v1038_v49 = vld [vmem:[%s1342_s0 + $0x8c] ss:$16 sps:$4 sm:$0xff]  }
  0x13   :  { %v1040_v50 = vld [vmem:[%s1342_s0 + $0x80] ss:$16 sps:$4 sm:$0xff]   ;;  %v1041_v51 = vld [vmem:[%s1342_s0 + $0x88] ss:$16 sps:$4 sm:$0xff]   ;;  %v1042_v52 = vld [vmem:[%s1342_s0 + $0xa4] ss:$16 sps:$4 sm:$0xff]  }
  0x14   :  { %861 = vmatpush3.bf16.msra.mxu0 %v998_v18  ;;  %v1044_v53 = vld [vmem:[%s1342_s0 + $0xac] ss:$16 sps:$4 sm:$0xff]   ;;  %v1046_v54 = vld [vmem:[%s1342_s0 + $0xa0] ss:$16 sps:$4 sm:$0xff]   ;;  %v1047_v55 = vld [vmem:[%s1342_s0 + $0xa8] ss:$16 sps:$4 sm:$0xff]  }
  0x15   :  { %925 = vmatpush3.bf16.msra.mxu1 %v999_v19  ;;  %862 = vmatprep.subr.bf16.mxu0 %v1000_v20  ;;  %v1048_v56 = vld [vmem:[%s1342_s0 + $0xc4] ss:$16 sps:$4 sm:$0xff]   ;;  %v1050_v57 = vld [vmem:[%s1342_s0 + $0xcc] ss:$16 sps:$4 sm:$0xff]   ;;  %v1052_v58 = vld [vmem:[%s1342_s0 + $0xc0] ss:$16 sps:$4 sm:$0xff]  }
  0x16   :  { %926 = vmatprep.subr.bf16.mxu1 %v1001_v21  ;;  %v1053_v59 = vld [vmem:[%s1342_s0 + $0xc8] ss:$16 sps:$4 sm:$0xff]   ;;  %v1054_v60 = vld [vmem:[%s1342_s0 + $0xe4] ss:$16 sps:$4 sm:$0xff]   ;;  %v1056_v61 = vld [vmem:[%s1342_s0 + $0xec] ss:$16 sps:$4 sm:$0xff]  }
  0x17   :  { %v1058_v62 = vld [vmem:[%s1342_s0 + $0xe0] ss:$16 sps:$4 sm:$0xff]   ;;  %v1059_v63 = vld [vmem:[%s1342_s0 + $0xe8] ss:$16 sps:$4 sm:$0xff]  }
  0x18   :  { %863 = vmatpush3.bf16.msra.mxu0 %v1002_v22 }
  0x19   :  { %927 = vmatpush3.bf16.msra.mxu1 %v1003_v23  ;;  %864 = vmatprep.subr.bf16.mxu0 %v1004_v24 }
  0x1a   :  { %928 = vmatprep.subr.bf16.mxu1 %v1005_v25 }
  0x1c   :  { %865 = vmatpush3.bf16.msra.mxu0 %v1006_v26 }
  0x1d   :  { %929 = vmatpush3.bf16.msra.mxu1 %v1007_v27  ;;  %866 = vmatprep.subr.bf16.mxu0 %v1008_v28 }
  0x1e   :  { %930 = vmatprep.subr.bf16.mxu1 %v1009_v29 }
  0x20   :  { %867 = vmatpush3.bf16.msra.mxu0 %v1010_v30 }
  0x21   :  { %931 = vmatpush3.bf16.msra.mxu1 %v1011_v31 }
  0x23   :  { %532 = vmatmul.mubr.bf16.vlgmr.msra.gmra.mrb[0].mxu0 %v1012_v32 }
  0x24   :  { %629 = vmatmul.mubr.bf16.vlgmr.msra.gmra.mrb[0].mxu1 %v1015_v34  ;;  %539 = vmatprep.mubr.bf16.mxu0 %v1018_v36 }
  0x25   :  { %636 = vmatprep.mubr.bf16.mxu1 %v1020_v37 }
  0x2b   :  { %540 = vmatmul.mubr.bf16.gmra.mrb[4].mxu0 %v1022_v38 }
  0x2c   :  { %637 = vmatmul.mubr.bf16.gmra.mrb[4].mxu1 %v1023_v39  ;;  %547 = vmatprep.mubr.bf16.mxu0 %v1024_v40 }
  0x2d   :  { %644 = vmatprep.mubr.bf16.mxu1 %v1026_v41 }
  0x33   :  { %548 = vmatmul.mubr.bf16.gmra.mrb[8].mxu0 %v1028_v42 }
  0x34   :  { %645 = vmatmul.mubr.bf16.gmra.mrb[8].mxu1 %v1029_v43  ;;  %555 = vmatprep.mubr.bf16.mxu0 %v1030_v44 }
  0x35   :  { %652 = vmatprep.mubr.bf16.mxu1 %v1032_v45 }
  0x3b   :  { %556 = vmatmul.mubr.bf16.gmra.mrb[12].mxu0 %v1034_v46 }
  0x3c   :  { %653 = vmatmul.mubr.bf16.gmra.mrb[12].mxu1 %v1035_v47  ;;  %563 = vmatprep.mubr.bf16.mxu0 %v1036_v48 }
  0x3d   :  { %660 = vmatprep.mubr.bf16.mxu1 %v1038_v49 }
  0x43   :  { %564 = vmatmul.mubr.bf16.gmra.mrb[16].mxu0 %v1040_v50 }
  0x44   :  { %661 = vmatmul.mubr.bf16.gmra.mrb[16].mxu1 %v1041_v51  ;;  %571 = vmatprep.mubr.bf16.mxu0 %v1042_v52 }
  0x45   :  { %668 = vmatprep.mubr.bf16.mxu1 %v1044_v53 }
  0x4b   :  { %572 = vmatmul.mubr.bf16.gmra.mrb[20].mxu0 %v1046_v54 }
  0x4c   :  { %669 = vmatmul.mubr.bf16.gmra.mrb[20].mxu1 %v1047_v55  ;;  %579 = vmatprep.mubr.bf16.mxu0 %v1048_v56 }
  0x4d   :  { %676 = vmatprep.mubr.bf16.mxu1 %v1050_v57 }
  0x53   :  { %580 = vmatmul.mubr.bf16.gmra.mrb[24].mxu0 %v1052_v58 }
  0x54   :  { %677 = vmatmul.mubr.bf16.gmra.mrb[24].mxu1 %v1053_v59  ;;  %587 = vmatprep.mubr.bf16.mxu0 %v1054_v60 }
  0x55   :  { %684 = vmatprep.mubr.bf16.mxu1 %v1056_v61 }
  0x5b   :  { %588 = vmatmul.mubr.bf16.gmra.mrb[28].mxu0 %v1058_v62 }
  0x5c   :  { %685 = vmatmul.mubr.bf16.gmra.mrb[28].mxu1 %v1059_v63 }
  0xf6   :  { %v868_v0 = vpop.f32.mrb[0].mxu0 }
  0xf7   :  { %v932_v1 = vpop.f32.mrb[0].mxu1  ;;  %v869_v2 = vpop.f32.mrb[1].mxu0 }
  0xf8   :  { %v870_v3 = vadd.f32 %v869_v2, %v868_v0  ;;  %v933_v4 = vpop.f32.mrb[1].mxu1  ;;  %v871_v5 = vpop.f32.mrb[2].mxu0 }
  0xf9   :  { %v934_v6 = vadd.f32 %v933_v4, %v932_v1  ;;  %v935_v7 = vpop.f32.mrb[2].mxu1  ;;  %v872_v8 = vpop.f32.mrb[3].mxu0 }
  0xfa   :  { %v873_v10 = vadd.f32 %v872_v8, %v871_v5  ;;  %v936_v11 = vpop.f32.mrb[3].mxu1 }
  0xfb   :  { %v631_v12 = vadd.f32 %v934_v6, %v870_v3  ;;  %v937_v13 = vadd.f32 %v936_v11, %v935_v7 }
  0xfd   :  { %v751_v14 = vadd.f32 %v1275_v9, %v631_v12  ;;  %v634_v15 = vadd.f32 %v937_v13, %v873_v10 }
  0xfe   :  { %v874_v16 = vpop.f32.mrb[4].mxu0 }
  0xff   :  { %767 = vst [vmem:[%s1344_s3] sm:$0xff] %v751_v14  ;;  %v752_v17 = vadd.f32 %v1275_v9, %v634_v15  ;;  %v938_v18 = vpop.f32.mrb[4].mxu1  ;;  %v875_v19 = vpop.f32.mrb[5].mxu0 }
 0x100   :  { %v876_v20 = vadd.f32 %v875_v19, %v874_v16  ;;  %v939_v21 = vpop.f32.mrb[5].mxu1  ;;  %v877_v22 = vpop.f32.mrb[6].mxu0 }
 0x101   :  { %768 = vst [vmem:[%s1344_s3 + $0x8] sm:$0xff] %v752_v17  ;;  %v940_v23 = vadd.f32 %v939_v21, %v938_v18  ;;  %v941_v24 = vpop.f32.mrb[6].mxu1  ;;  %v878_v25 = vpop.f32.mrb[7].mxu0 }
 0x102   :  { %v879_v26 = vadd.f32 %v878_v25, %v877_v22  ;;  %v942_v27 = vpop.f32.mrb[7].mxu1 }
 0x103   :  { %v639_v28 = vadd.f32 %v940_v23, %v876_v20  ;;  %v943_v29 = vadd.f32 %v942_v27, %v941_v24 }
 0x105   :  { %v753_v30 = vadd.f32 %v1275_v9, %v639_v28  ;;  %v642_v31 = vadd.f32 %v943_v29, %v879_v26 }
 0x106   :  { %v880_v32 = vpop.f32.mrb[8].mxu0 }
 0x107   :  { %769 = vst [vmem:[%s1344_s3 + $0x10] sm:$0xff] %v753_v30  ;;  %v754_v33 = vadd.f32 %v1275_v9, %v642_v31  ;;  %v944_v34 = vpop.f32.mrb[8].mxu1  ;;  %v881_v35 = vpop.f32.mrb[9].mxu0 }
 0x108   :  { %v882_v36 = vadd.f32 %v881_v35, %v880_v32  ;;  %v945_v37 = vpop.f32.mrb[9].mxu1  ;;  %v883_v38 = vpop.f32.mrb[10].mxu0 }
 0x109   :  { %770 = vst [vmem:[%s1344_s3 + $0x18] sm:$0xff] %v754_v33  ;;  %v946_v39 = vadd.f32 %v945_v37, %v944_v34  ;;  %v947_v40 = vpop.f32.mrb[10].mxu1  ;;  %v884_v41 = vpop.f32.mrb[11].mxu0 }
 0x10a   :  { %v885_v42 = vadd.f32 %v884_v41, %v883_v38  ;;  %v948_v43 = vpop.f32.mrb[11].mxu1 }
 0x10b   :  { %v647_v44 = vadd.f32 %v946_v39, %v882_v36  ;;  %v949_v45 = vadd.f32 %v948_v43, %v947_v40 }
 0x10d   :  { %v755_v46 = vadd.f32 %v1275_v9, %v647_v44  ;;  %v650_v47 = vadd.f32 %v949_v45, %v885_v42 }
 0x10e   :  { %v886_v48 = vpop.f32.mrb[12].mxu0 }
 0x10f   :  { %771 = vst [vmem:[%s1344_s3 + $0x20] sm:$0xff] %v755_v46  ;;  %v756_v49 = vadd.f32 %v1275_v9, %v650_v47  ;;  %v950_v50 = vpop.f32.mrb[12].mxu1  ;;  %v887_v51 = vpop.f32.mrb[13].mxu0 }
 0x110   :  { %v888_v52 = vadd.f32 %v887_v51, %v886_v48  ;;  %v951_v53 = vpop.f32.mrb[13].mxu1  ;;  %v889_v54 = vpop.f32.mrb[14].mxu0 }
 0x111   :  { %772 = vst [vmem:[%s1344_s3 + $0x28] sm:$0xff] %v756_v49  ;;  %v952_v55 = vadd.f32 %v951_v53, %v950_v50  ;;  %v953_v56 = vpop.f32.mrb[14].mxu1  ;;  %v890_v57 = vpop.f32.mrb[15].mxu0 }
 0x112   :  { %v891_v58 = vadd.f32 %v890_v57, %v889_v54  ;;  %v954_v59 = vpop.f32.mrb[15].mxu1 }
 0x113   :  { %v655_v60 = vadd.f32 %v952_v55, %v888_v52  ;;  %v955_v61 = vadd.f32 %v954_v59, %v953_v56 }
 0x115   :  { %v757_v62 = vadd.f32 %v1275_v9, %v655_v60  ;;  %v658_v63 = vadd.f32 %v955_v61, %v891_v58 }
 0x116   :  { %v892_v0 = vpop.f32.mrb[16].mxu0 }
 0x117   :  { %773 = vst [vmem:[%s1344_s3 + $0x30] sm:$0xff] %v757_v62  ;;  %v758_v1 = vadd.f32 %v1275_v9, %v658_v63  ;;  %v956_v2 = vpop.f32.mrb[16].mxu1  ;;  %v893_v3 = vpop.f32.mrb[17].mxu0 }
 0x118   :  { %v894_v4 = vadd.f32 %v893_v3, %v892_v0  ;;  %v957_v5 = vpop.f32.mrb[17].mxu1  ;;  %v895_v6 = vpop.f32.mrb[18].mxu0 }
 0x119   :  { %774 = vst [vmem:[%s1344_s3 + $0x38] sm:$0xff] %v758_v1  ;;  %v958_v7 = vadd.f32 %v957_v5, %v956_v2  ;;  %v959_v8 = vpop.f32.mrb[18].mxu1  ;;  %v896_v10 = vpop.f32.mrb[19].mxu0 }
 0x11a   :  { %v897_v11 = vadd.f32 %v896_v10, %v895_v6  ;;  %v960_v12 = vpop.f32.mrb[19].mxu1 }
 0x11b   :  { %v663_v13 = vadd.f32 %v958_v7, %v894_v4  ;;  %v961_v14 = vadd.f32 %v960_v12, %v959_v8 }
 0x11d   :  { %v759_v15 = vadd.f32 %v1275_v9, %v663_v13  ;;  %v666_v16 = vadd.f32 %v961_v14, %v897_v11 }
 0x11e   :  { %v898_v17 = vpop.f32.mrb[20].mxu0 }
 0x11f   :  { %775 = vst [vmem:[%s1344_s3 + $0x40] sm:$0xff] %v759_v15  ;;  %v760_v18 = vadd.f32 %v1275_v9, %v666_v16  ;;  %v962_v19 = vpop.f32.mrb[20].mxu1  ;;  %v899_v20 = vpop.f32.mrb[21].mxu0 }
 0x120   :  { %v900_v21 = vadd.f32 %v899_v20, %v898_v17  ;;  %v963_v22 = vpop.f32.mrb[21].mxu1  ;;  %v901_v23 = vpop.f32.mrb[22].mxu0 }
 0x121   :  { %776 = vst [vmem:[%s1344_s3 + $0x48] sm:$0xff] %v760_v18  ;;  %v964_v24 = vadd.f32 %v963_v22, %v962_v19  ;;  %v965_v25 = vpop.f32.mrb[22].mxu1  ;;  %v902_v26 = vpop.f32.mrb[23].mxu0 }
 0x122   :  { %v903_v27 = vadd.f32 %v902_v26, %v901_v23  ;;  %v966_v28 = vpop.f32.mrb[23].mxu1 }
 0x123   :  { %v671_v29 = vadd.f32 %v964_v24, %v900_v21  ;;  %v967_v30 = vadd.f32 %v966_v28, %v965_v25 }
 0x125   :  { %v761_v31 = vadd.f32 %v1275_v9, %v671_v29  ;;  %v674_v32 = vadd.f32 %v967_v30, %v903_v27 }
 0x126   :  { %v904_v33 = vpop.f32.mrb[24].mxu0 }
 0x127   :  { %777 = vst [vmem:[%s1344_s3 + $0x50] sm:$0xff] %v761_v31  ;;  %v762_v34 = vadd.f32 %v1275_v9, %v674_v32  ;;  %v968_v35 = vpop.f32.mrb[24].mxu1  ;;  %v905_v36 = vpop.f32.mrb[25].mxu0 }
 0x128   :  { %v906_v37 = vadd.f32 %v905_v36, %v904_v33  ;;  %v969_v38 = vpop.f32.mrb[25].mxu1  ;;  %v907_v39 = vpop.f32.mrb[26].mxu0 }
 0x129   :  { %778 = vst [vmem:[%s1344_s3 + $0x58] sm:$0xff] %v762_v34  ;;  %v970_v40 = vadd.f32 %v969_v38, %v968_v35  ;;  %v971_v41 = vpop.f32.mrb[26].mxu1  ;;  %v908_v42 = vpop.f32.mrb[27].mxu0 }
 0x12a   :  { %v909_v43 = vadd.f32 %v908_v42, %v907_v39  ;;  %v972_v44 = vpop.f32.mrb[27].mxu1 }
 0x12b   :  { %v679_v45 = vadd.f32 %v970_v40, %v906_v37  ;;  %v973_v46 = vadd.f32 %v972_v44, %v971_v41 }
 0x12d   :  { %v763_v47 = vadd.f32 %v1275_v9, %v679_v45  ;;  %v682_v48 = vadd.f32 %v973_v46, %v909_v43 }
 0x12e   :  { %v910_v49 = vpop.f32.mrb[28].mxu0 }
 0x12f   :  { %779 = vst [vmem:[%s1344_s3 + $0x60] sm:$0xff] %v763_v47  ;;  %v764_v50 = vadd.f32 %v1275_v9, %v682_v48  ;;  %v974_v51 = vpop.f32.mrb[28].mxu1  ;;  %v911_v52 = vpop.f32.mrb[29].mxu0 }
 0x130   :  { %v912_v53 = vadd.f32 %v911_v52, %v910_v49  ;;  %v975_v54 = vpop.f32.mrb[29].mxu1  ;;  %v913_v55 = vpop.f32.mrb[30].mxu0 }
 0x131   :  { %780 = vst [vmem:[%s1344_s3 + $0x68] sm:$0xff] %v764_v50  ;;  %v976_v56 = vadd.f32 %v975_v54, %v974_v51  ;;  %v977_v57 = vpop.f32.mrb[30].mxu1  ;;  %v914_v58 = vpop.f32.mrb[31].mxu0 }
 0x132   :  { %v915_v59 = vadd.f32 %v914_v58, %v913_v55  ;;  %v978_v60 = vpop.f32.mrb[31].mxu1 }
 0x133   :  { %v687_v61 = vadd.f32 %v976_v56, %v912_v53  ;;  %v979_v62 = vadd.f32 %v978_v60, %v977_v57 }
 0x135   :  { %v765_v63 = vadd.f32 %v1275_v9, %v687_v61  ;;  %v690_v0 = vadd.f32 %v979_v62, %v915_v59 }
 0x137   :  { %781 = vst [vmem:[%s1344_s3 + $0x70] sm:$0xff] %v765_v63  ;;  %v766_v1 = vadd.f32 %v1275_v9, %v690_v0 }
 0x139   :  { %782 = vst [vmem:[%s1344_s3 + $0x78] sm:$0xff] %v766_v1 }

// kernel: generator_forward.105
= control target key start
LH: loop header
LB: loop body
LE: loop exit
PB: predicated region body
PF: predicated region fallthrough
CT: control target
= control target key end

     0   :  { %s2255_s12 = smov 0   ;;  %s2257_s13 = smov 0   ;;  %s2823_s0 = inlined_call_operand.vmem [shape: bf16[512,6272], index: 0, kind: input, shape index: {}]   ;;  %s2824_s1 = inlined_call_operand.vmem [shape: bf16[6272,128], index: 1, kind: input, shape index: {}]   ;;  %s2825_s2 = inlined_call_operand.vmem [shape: f32[1,128], index: 2, kind: input, shape index: {}]   ;;  %s2826_s3 = inlined_call_operand.vmem [shape: f32[512,128], index: 3, kind: output, shape index: {}]  }
   0x1   :  { %s2259_s14 = smov 0   ;;  %s2261_s15 = smov 0  }
   0x2   :  { %s2263_s16 = smov 0  }
   0x3 LB: > { %s25_s17 = sadd.s32 1, %s2228_s15  ;;  %p48_p1 = scmp.ne.s32.totalorder %s2220_s13, %s2216_s12  ;;  %s2232_s16 = sphi %s2263_s16, %s13_s16   ;;  %s2228_s15 = sphi %s2261_s15, %s2830_s15   ;;  %s2224_s14 = sphi %s2259_s14, %s2829_s14   ;;  %s2220_s13 = sphi %s2257_s13, %s2828_s13   ;;  %s2216_s12 = sphi %s2255_s12, %s2827_s12  }
   0x4   : > { %p26_p0 = scmp.ge.s32.totalorder %s25_s17, 49  ;;  %p49_p2 = scmp.eq.s32.totalorder %s2232_s16, 0 }
   0x5   : > { %s41_s19 = sadd.s32 1, %s2220_s13  ;;  %p1795_p5 = scmp.ge.s32.totalorder %s2232_s16, 49 }
   0x6   : > { %s2832_s17 = smov (%p26_p0, %s25_s17), 0  ;;  %p50_p3 = por %p49_p2, %p48_p1 }
   0x7   : > { %s37_s18 = ssub.s32 %s2228_s15, %s2832_s17  ;;  %162 = sbr.rel (%p1795_p5) target bundleno = 60 (0x3c), region = 20 }
   0x8   : > { %p39_p4 = scmp.eq.s32.totalorder %s37_s18, 0 }
   0xa   : > { %s2290_s20 = scalar_select %p39_p4, %s2220_s13, %s41_s19  }
   0xe   : > { %165 = sbr.rel (!%p50_p3) target bundleno = 60 (0x3c), region = 24  ;;  %s167_s21 = sand.u32 (%p50_p3), 1, %s2220_s13  }
   0xf   : > { %s1797_s22 = sshll.u32 (%p50_p3), %s2228_s15, 2  ;;  %s1796_s23 = sshll.u32 (%p50_p3), %s167_s21, 8 }
  0x10   : > { %s2298_s26 = scalar_lea.vmem (%p50_p3), %s2823_s0, %s1797_s22  ;;  %s2302_s27 = scalar_lea.vmem (%p50_p3), [#allocation3], %s1796_s23 }
  0x11   : > { %v190_v0 = vld [vmem:[%s2298_s26] sm:$0xf] (%p50_p3)  ;;  %v192_v1 = vld [vmem:[%s2298_s26 + $0xc4] sm:$0xf] (%p50_p3)  ;;  %v194_v2 = vld [vmem:[%s2298_s26 + $0x188] sm:$0xf] (%p50_p3) }
  0x12   : > { %191 = vst [vmem:[%s2302_s27] sm:$0xf] (%p50_p3), %v190_v0  ;;  %193 = vst [vmem:[%s2302_s27 + $0x4] sm:$0xf] (%p50_p3), %v192_v1  ;;  %v196_v3 = vld [vmem:[%s2298_s26 + $0x24c] sm:$0xf] (%p50_p3) }
  0x13   : > { %v198_v4 = vld [vmem:[%s2298_s26 + $0x310] sm:$0xf] (%p50_p3)  ;;  %195 = vst [vmem:[%s2302_s27 + $0x8] sm:$0xf] (%p50_p3), %v194_v2  ;;  %197 = vst [vmem:[%s2302_s27 + $0xc] sm:$0xf] (%p50_p3), %v196_v3 }
  0x14   : > { %199 = vst [vmem:[%s2302_s27 + $0x10] sm:$0xf] (%p50_p3), %v198_v4  ;;  %v200_v5 = vld [vmem:[%s2298_s26 + $0x3d4] sm:$0xf] (%p50_p3)  ;;  %v202_v6 = vld [vmem:[%s2298_s26 + $0x498] sm:$0xf] (%p50_p3) }
  0x15   : > { %v204_v7 = vld [vmem:[%s2298_s26 + $0x55c] sm:$0xf]  ;;  %201 = vst [vmem:[%s2302_s27 + $0x14] sm:$0xf] %v200_v5  ;;  %203 = vst [vmem:[%s2302_s27 + $0x18] sm:$0xf] %v202_v6 }
  0x16   : > { %205 = vst [vmem:[%s2302_s27 + $0x1c] sm:$0xf] %v204_v7  ;;  %v206_v8 = vld [vmem:[%s2298_s26 + $0x620] sm:$0xf]  ;;  %v208_v9 = vld [vmem:[%s2298_s26 + $0x6e4] sm:$0xf] }
  0x17   : > { %v210_v10 = vld [vmem:[%s2298_s26 + $0x7a8] sm:$0xf]  ;;  %207 = vst [vmem:[%s2302_s27 + $0x20] sm:$0xf] %v206_v8  ;;  %209 = vst [vmem:[%s2302_s27 + $0x24] sm:$0xf] %v208_v9 }
  0x18   : > { %211 = vst [vmem:[%s2302_s27 + $0x28] sm:$0xf] %v210_v10  ;;  %v212_v11 = vld [vmem:[%s2298_s26 + $0x86c] sm:$0xf]  ;;  %v214_v12 = vld [vmem:[%s2298_s26 + $0x930] sm:$0xf] }
  0x19   : > { %v216_v13 = vld [vmem:[%s2298_s26 + $0x9f4] sm:$0xf]  ;;  %213 = vst [vmem:[%s2302_s27 + $0x2c] sm:$0xf] %v212_v11  ;;  %215 = vst [vmem:[%s2302_s27 + $0x30] sm:$0xf] %v214_v12 }
  0x1a   : > { %217 = vst [vmem:[%s2302_s27 + $0x34] sm:$0xf] %v216_v13  ;;  %v218_v14 = vld [vmem:[%s2298_s26 + $0xab8] sm:$0xf]  ;;  %v220_v15 = vld [vmem:[%s2298_s26 + $0xb7c] sm:$0xf] }
  0x1b   : > { %v222_v16 = vld [vmem:[%s2298_s26 + $0xc40] sm:$0xf]  ;;  %219 = vst [vmem:[%s2302_s27 + $0x38] sm:$0xf] %v218_v14  ;;  %221 = vst [vmem:[%s2302_s27 + $0x3c] sm:$0xf] %v220_v15 }
  0x1c   : > { %223 = vst [vmem:[%s2302_s27 + $0x40] sm:$0xf] %v222_v16  ;;  %v224_v17 = vld [vmem:[%s2298_s26 + $0xd04] sm:$0xf]  ;;  %v226_v18 = vld [vmem:[%s2298_s26 + $0xdc8] sm:$0xf] }
  0x1d   : > { %v228_v19 = vld [vmem:[%s2298_s26 + $0xe8c] sm:$0xf]  ;;  %225 = vst [vmem:[%s2302_s27 + $0x44] sm:$0xf] %v224_v17  ;;  %227 = vst [vmem:[%s2302_s27 + $0x48] sm:$0xf] %v226_v18 }
  0x1e   : > { %229 = vst [vmem:[%s2302_s27 + $0x4c] sm:$0xf] %v228_v19  ;;  %v230_v20 = vld [vmem:[%s2298_s26 + $0xf50] sm:$0xf]  ;;  %v232_v21 = vld [vmem:[%s2298_s26 + $0x1014] sm:$0xf] }
  0x1f   : > { %v234_v22 = vld [vmem:[%s2298_s26 + $0x10d8] sm:$0xf]  ;;  %231 = vst [vmem:[%s2302_s27 + $0x50] sm:$0xf] %v230_v20  ;;  %233 = vst [vmem:[%s2302_s27 + $0x54] sm:$0xf] %v232_v21 }
  0x20   : > { %235 = vst [vmem:[%s2302_s27 + $0x58] sm:$0xf] %v234_v22  ;;  %v236_v23 = vld [vmem:[%s2298_s26 + $0x119c] sm:$0xf]  ;;  %v238_v24 = vld [vmem:[%s2298_s26 + $0x1260] sm:$0xf] }
  0x21   : > { %v240_v25 = vld [vmem:[%s2298_s26 + $0x1324] sm:$0xf]  ;;  %237 = vst [vmem:[%s2302_s27 + $0x5c] sm:$0xf] %v236_v23  ;;  %239 = vst [vmem:[%s2302_s27 + $0x60] sm:$0xf] %v238_v24 }
  0x22   : > { %241 = vst [vmem:[%s2302_s27 + $0x64] sm:$0xf] %v240_v25  ;;  %v242_v26 = vld [vmem:[%s2298_s26 + $0x13e8] sm:$0xf]  ;;  %v244_v27 = vld [vmem:[%s2298_s26 + $0x14ac] sm:$0xf] }
  0x23   : > { %v246_v28 = vld [vmem:[%s2298_s26 + $0x1570] sm:$0xf]  ;;  %243 = vst [vmem:[%s2302_s27 + $0x68] sm:$0xf] %v242_v26  ;;  %245 = vst [vmem:[%s2302_s27 + $0x6c] sm:$0xf] %v244_v27 }
  0x24   : > { %247 = vst [vmem:[%s2302_s27 + $0x70] sm:$0xf] %v246_v28  ;;  %v248_v29 = vld [vmem:[%s2298_s26 + $0x1634] sm:$0xf]  ;;  %v250_v30 = vld [vmem:[%s2298_s26 + $0x16f8] sm:$0xf] }
  0x25   : > { %v252_v31 = vld [vmem:[%s2298_s26 + $0x17bc] sm:$0xf]  ;;  %249 = vst [vmem:[%s2302_s27 + $0x74] sm:$0xf] %v248_v29  ;;  %251 = vst [vmem:[%s2302_s27 + $0x78] sm:$0xf] %v250_v30 }
  0x26   : > { %253 = vst [vmem:[%s2302_s27 + $0x7c] sm:$0xf] %v252_v31  ;;  %v254_v32 = vld [vmem:[%s2298_s26 + $0x1880] sm:$0xf]  ;;  %v256_v33 = vld [vmem:[%s2298_s26 + $0x1944] sm:$0xf] }
  0x27   : > { %v258_v34 = vld [vmem:[%s2298_s26 + $0x1a08] sm:$0xf]  ;;  %255 = vst [vmem:[%s2302_s27 + $0x80] sm:$0xf] %v254_v32  ;;  %257 = vst [vmem:[%s2302_s27 + $0x84] sm:$0xf] %v256_v33 }
  0x28   : > { %259 = vst [vmem:[%s2302_s27 + $0x88] sm:$0xf] %v258_v34  ;;  %v260_v35 = vld [vmem:[%s2298_s26 + $0x1acc] sm:$0xf]  ;;  %v262_v36 = vld [vmem:[%s2298_s26 + $0x1b90] sm:$0xf] }
  0x29   : > { %v264_v37 = vld [vmem:[%s2298_s26 + $0x1c54] sm:$0xf]  ;;  %261 = vst [vmem:[%s2302_s27 + $0x8c] sm:$0xf] %v260_v35  ;;  %263 = vst [vmem:[%s2302_s27 + $0x90] sm:$0xf] %v262_v36 }
  0x2a   : > { %265 = vst [vmem:[%s2302_s27 + $0x94] sm:$0xf] %v264_v37  ;;  %v266_v38 = vld [vmem:[%s2298_s26 + $0x1d18] sm:$0xf]  ;;  %v268_v39 = vld [vmem:[%s2298_s26 + $0x1ddc] sm:$0xf] }
  0x2b   : > { %v270_v40 = vld [vmem:[%s2298_s26 + $0x1ea0] sm:$0xf]  ;;  %267 = vst [vmem:[%s2302_s27 + $0x98] sm:$0xf] %v266_v38  ;;  %269 = vst [vmem:[%s2302_s27 + $0x9c] sm:$0xf] %v268_v39 }
  0x2c   : > { %271 = vst [vmem:[%s2302_s27 + $0xa0] sm:$0xf] %v270_v40  ;;  %v272_v41 = vld [vmem:[%s2298_s26 + $0x1f64] sm:$0xf]  ;;  %v274_v42 = vld [vmem:[%s2298_s26 + $0x2028] sm:$0xf] }
  0x2d   : > { %v276_v43 = vld [vmem:[%s2298_s26 + $0x20ec] sm:$0xf]  ;;  %273 = vst [vmem:[%s2302_s27 + $0xa4] sm:$0xf] %v272_v41  ;;  %275 = vst [vmem:[%s2302_s27 + $0xa8] sm:$0xf] %v274_v42 }
  0x2e   : > { %277 = vst [vmem:[%s2302_s27 + $0xac] sm:$0xf] %v276_v43  ;;  %v278_v44 = vld [vmem:[%s2298_s26 + $0x21b0] sm:$0xf]  ;;  %v280_v45 = vld [vmem:[%s2298_s26 + $0x2274] sm:$0xf] }
  0x2f   : > { %v282_v46 = vld [vmem:[%s2298_s26 + $0x2338] sm:$0xf]  ;;  %279 = vst [vmem:[%s2302_s27 + $0xb0] sm:$0xf] %v278_v44  ;;  %281 = vst [vmem:[%s2302_s27 + $0xb4] sm:$0xf] %v280_v45 }
  0x30   : > { %283 = vst [vmem:[%s2302_s27 + $0xb8] sm:$0xf] %v282_v46  ;;  %v284_v47 = vld [vmem:[%s2298_s26 + $0x23fc] sm:$0xf]  ;;  %v286_v48 = vld [vmem:[%s2298_s26 + $0x24c0] sm:$0xf] }
  0x31   : > { %v288_v49 = vld [vmem:[%s2298_s26 + $0x2584] sm:$0xf]  ;;  %285 = vst [vmem:[%s2302_s27 + $0xbc] sm:$0xf] %v284_v47  ;;  %287 = vst [vmem:[%s2302_s27 + $0xc0] sm:$0xf] %v286_v48 }
  0x32   : > { %289 = vst [vmem:[%s2302_s27 + $0xc4] sm:$0xf] %v288_v49  ;;  %v290_v50 = vld [vmem:[%s2298_s26 + $0x2648] sm:$0xf]  ;;  %v292_v51 = vld [vmem:[%s2298_s26 + $0x270c] sm:$0xf] }
  0x33   : > { %v294_v52 = vld [vmem:[%s2298_s26 + $0x27d0] sm:$0xf]  ;;  %291 = vst [vmem:[%s2302_s27 + $0xc8] sm:$0xf] %v290_v50  ;;  %293 = vst [vmem:[%s2302_s27 + $0xcc] sm:$0xf] %v292_v51 }
  0x34   : > { %295 = vst [vmem:[%s2302_s27 + $0xd0] sm:$0xf] %v294_v52  ;;  %v296_v53 = vld [vmem:[%s2298_s26 + $0x2894] sm:$0xf]  ;;  %v298_v54 = vld [vmem:[%s2298_s26 + $0x2958] sm:$0xf] }
  0x35   : > { %v300_v55 = vld [vmem:[%s2298_s26 + $0x2a1c] sm:$0xf]  ;;  %297 = vst [vmem:[%s2302_s27 + $0xd4] sm:$0xf] %v296_v53  ;;  %299 = vst [vmem:[%s2302_s27 + $0xd8] sm:$0xf] %v298_v54 }
  0x36   : > { %301 = vst [vmem:[%s2302_s27 + $0xdc] sm:$0xf] %v300_v55  ;;  %v302_v56 = vld [vmem:[%s2298_s26 + $0x2ae0] sm:$0xf]  ;;  %v304_v57 = vld [vmem:[%s2298_s26 + $0x2ba4] sm:$0xf] }
  0x37   : > { %v306_v58 = vld [vmem:[%s2298_s26 + $0x2c68] sm:$0xf]  ;;  %303 = vst [vmem:[%s2302_s27 + $0xe0] sm:$0xf] %v302_v56  ;;  %305 = vst [vmem:[%s2302_s27 + $0xe4] sm:$0xf] %v304_v57 }
  0x38   : > { %307 = vst [vmem:[%s2302_s27 + $0xe8] sm:$0xf] %v306_v58  ;;  %v308_v59 = vld [vmem:[%s2298_s26 + $0x2d2c] sm:$0xf]  ;;  %v310_v60 = vld [vmem:[%s2298_s26 + $0x2df0] sm:$0xf] }
  0x39   : > { %v312_v61 = vld [vmem:[%s2298_s26 + $0x2eb4] sm:$0xf]  ;;  %309 = vst [vmem:[%s2302_s27 + $0xec] sm:$0xf] %v308_v59  ;;  %311 = vst [vmem:[%s2302_s27 + $0xf0] sm:$0xf] %v310_v60 }
  0x3a   : > { %313 = vst [vmem:[%s2302_s27 + $0xf4] sm:$0xf] %v312_v61  ;;  %v314_v62 = vld [vmem:[%s2298_s26 + $0x2f78] sm:$0xf]  ;;  %v316_v63 = vld [vmem:[%s2298_s26 + $0x303c] sm:$0xf] }
  0x3b   : > { %315 = vst [vmem:[%s2302_s27 + $0xf8] sm:$0xf] %v314_v62  ;;  %317 = vst [vmem:[%s2302_s27 + $0xfc] sm:$0xf] %v316_v63 }
  0x3c PF: > { %p1798_p6 = scmp.ge.s32.totalorder %s2232_s16, 1  ;;  %p479_p7 = scmp.lt.s32.totalorder %s2232_s16, 50 }
  0x3e   : > { %p480_p8 = pnand %p1798_p6, %p479_p7 }
  0x3f   : > { %s486_s28 = sand.u32 (!%p480_p8), 1, %s2216_s12   ;;  %s1800_s29 = sshll.u32 (!%p480_p8), %s2224_s14, 4 }
  0x40   : > { %483 = sbr.rel (%p480_p8) target bundleno = 474 (0x1da), region = 69  ;;  %s1799_s30 = sshll.u32 (!%p480_p8), %s486_s28, 8 }
  0x41   : > { %p525_p9 = scmp.lt.s32.totalorder (!%p480_p8), %s1800_s29, 783  ;;  %s2439_s8 = scalar_lea.vmem (!%p480_p8), [#allocation3], %s1799_s30 }
  0x42   : > { %p1802_p10 = scmp.ne.s32.totalorder (!%p480_p8), %s2224_s14, 0 }
  0x47   : > { %s2834_s29 = smov (!%p525_p9, %s1800_s29), 783  ;;  %549 = sbr.rel (%p1802_p10) target bundleno = 105 (0x69), region = 77 }
  0x48   : > { %s1801_s4 = sshll.u32 %s2834_s29, 2  ;;  %v2234_v0 = vmov (!%p1802_p10), 0.0  }
  0x49   : > { %s2437_s7 = scalar_lea.vmem %s2824_s1, %s1801_s4  ;;  %550 = vst [vmem:[#allocation2] sm:$0xff] (!%p1802_p10), %v2234_v0  ;;  %551 = vst [vmem:[#allocation2 + $0x8] sm:$0xff] (!%p1802_p10), %v2234_v0 }
  0x4a   : > { %552 = vst [vmem:[#allocation2 + $0x10] sm:$0xff] (!%p1802_p10), %v2234_v0  ;;  %553 = vst [vmem:[#allocation2 + $0x18] sm:$0xff] (!%p1802_p10), %v2234_v0 }
  0x4b   : > { %554 = vst [vmem:[#allocation2 + $0x20] sm:$0xff] (!%p1802_p10), %v2234_v0  ;;  %555 = vst [vmem:[#allocation2 + $0x28] sm:$0xff] (!%p1802_p10), %v2234_v0 }
  0x4c   : > { %556 = vst [vmem:[#allocation2 + $0x30] sm:$0xff] (!%p1802_p10), %v2234_v0  ;;  %557 = vst [vmem:[#allocation2 + $0x38] sm:$0xff] (!%p1802_p10), %v2234_v0 }
  0x4d   : > { %558 = vst [vmem:[#allocation2 + $0x40] sm:$0xff] (!%p1802_p10), %v2234_v0  ;;  %559 = vst [vmem:[#allocation2 + $0x48] sm:$0xff] (!%p1802_p10), %v2234_v0 }
  0x4e   : > { %560 = vst [vmem:[#allocation2 + $0x50] sm:$0xff] %v2234_v0  ;;  %561 = vst [vmem:[#allocation2 + $0x58] sm:$0xff] %v2234_v0 }
  0x4f   : > { %562 = vst [vmem:[#allocation2 + $0x60] sm:$0xff] %v2234_v0  ;;  %563 = vst [vmem:[#allocation2 + $0x68] sm:$0xff] %v2234_v0 }
  0x50   : > { %564 = vst [vmem:[#allocation2 + $0x70] sm:$0xff] %v2234_v0  ;;  %565 = vst [vmem:[#allocation2 + $0x78] sm:$0xff] %v2234_v0 }
  0x51   : > { %566 = vst [vmem:[#allocation2 + $0x80] sm:$0xff] %v2234_v0  ;;  %567 = vst [vmem:[#allocation2 + $0x88] sm:$0xff] %v2234_v0 }
  0x52   : > { %568 = vst [vmem:[#allocation2 + $0x90] sm:$0xff] %v2234_v0  ;;  %569 = vst [vmem:[#allocation2 + $0x98] sm:$0xff] %v2234_v0 }
  0x53   : > { %570 = vst [vmem:[#allocation2 + $0xa0] sm:$0xff] %v2234_v0  ;;  %571 = vst [vmem:[#allocation2 + $0xa8] sm:$0xff] %v2234_v0 }
  0x54   : > { %572 = vst [vmem:[#allocation2 + $0xb0] sm:$0xff] %v2234_v0  ;;  %573 = vst [vmem:[#allocation2 + $0xb8] sm:$0xff] %v2234_v0 }
  0x55   : > { %574 = vst [vmem:[#allocation2 + $0xc0] sm:$0xff] %v2234_v0  ;;  %575 = vst [vmem:[#allocation2 + $0xc8] sm:$0xff] %v2234_v0 }
  0x56   : > { %576 = vst [vmem:[#allocation2 + $0xd0] sm:$0xff] %v2234_v0  ;;  %577 = vst [vmem:[#allocation2 + $0xd8] sm:$0xff] %v2234_v0 }
  0x57   : > { %578 = vst [vmem:[#allocation2 + $0xe0] sm:$0xff] %v2234_v0  ;;  %579 = vst [vmem:[#allocation2 + $0xe8] sm:$0xff] %v2234_v0 }
  0x58   : > { %580 = vst [vmem:[#allocation2 + $0xf0] sm:$0xff] %v2234_v0  ;;  %581 = vst [vmem:[#allocation2 + $0xf8] sm:$0xff] %v2234_v0 }
  0x59   : > { %582 = vst [vmem:[#allocation2 + $0x100] sm:$0xff] %v2234_v0  ;;  %583 = vst [vmem:[#allocation2 + $0x108] sm:$0xff] %v2234_v0 }
  0x5a   : > { %584 = vst [vmem:[#allocation2 + $0x110] sm:$0xff] %v2234_v0  ;;  %585 = vst [vmem:[#allocation2 + $0x118] sm:$0xff] %v2234_v0 }
  0x5b   : > { %586 = vst [vmem:[#allocation2 + $0x120] sm:$0xff] %v2234_v0  ;;  %587 = vst [vmem:[#allocation2 + $0x128] sm:$0xff] %v2234_v0 }
  0x5c   : > { %588 = vst [vmem:[#allocation2 + $0x130] sm:$0xff] %v2234_v0  ;;  %589 = vst [vmem:[#allocation2 + $0x138] sm:$0xff] %v2234_v0 }
  0x5d   : > { %590 = vst [vmem:[#allocation2 + $0x140] sm:$0xff] %v2234_v0  ;;  %591 = vst [vmem:[#allocation2 + $0x148] sm:$0xff] %v2234_v0 }
  0x5e   : > { %592 = vst [vmem:[#allocation2 + $0x150] sm:$0xff] %v2234_v0  ;;  %593 = vst [vmem:[#allocation2 + $0x158] sm:$0xff] %v2234_v0 }
  0x5f   : > { %594 = vst [vmem:[#allocation2 + $0x160] sm:$0xff] %v2234_v0  ;;  %595 = vst [vmem:[#allocation2 + $0x168] sm:$0xff] %v2234_v0 }
  0x60   : > { %596 = vst [vmem:[#allocation2 + $0x170] sm:$0xff] %v2234_v0  ;;  %597 = vst [vmem:[#allocation2 + $0x178] sm:$0xff] %v2234_v0 }
  0x61   : > { %598 = vst [vmem:[#allocation2 + $0x180] sm:$0xff] %v2234_v0  ;;  %599 = vst [vmem:[#allocation2 + $0x188] sm:$0xff] %v2234_v0 }
  0x62   : > { %600 = vst [vmem:[#allocation2 + $0x190] sm:$0xff] %v2234_v0  ;;  %601 = vst [vmem:[#allocation2 + $0x198] sm:$0xff] %v2234_v0 }
  0x63   : > { %602 = vst [vmem:[#allocation2 + $0x1a0] sm:$0xff] %v2234_v0  ;;  %603 = vst [vmem:[#allocation2 + $0x1a8] sm:$0xff] %v2234_v0 }
  0x64   : > { %604 = vst [vmem:[#allocation2 + $0x1b0] sm:$0xff] %v2234_v0  ;;  %605 = vst [vmem:[#allocation2 + $0x1b8] sm:$0xff] %v2234_v0 }
  0x65   : > { %606 = vst [vmem:[#allocation2 + $0x1c0] sm:$0xff] %v2234_v0  ;;  %607 = vst [vmem:[#allocation2 + $0x1c8] sm:$0xff] %v2234_v0 }
  0x66   : > { %608 = vst [vmem:[#allocation2 + $0x1d0] sm:$0xff] %v2234_v0  ;;  %609 = vst [vmem:[#allocation2 + $0x1d8] sm:$0xff] %v2234_v0 }
  0x67   : > { %610 = vst [vmem:[#allocation2 + $0x1e0] sm:$0xff] %v2234_v0  ;;  %611 = vst [vmem:[#allocation2 + $0x1e8] sm:$0xff] %v2234_v0 }
  0x68   : > { %612 = vst [vmem:[#allocation2 + $0x1f0] sm:$0xff] %v2234_v0  ;;  %613 = vst [vmem:[#allocation2 + $0x1f8] sm:$0xff] %v2234_v0 }
  0x69 PF: > { %v2026_v1 = vld [vmem:[%s2437_s7] sm:$0xff]   ;;  %v2027_v2 = vld [vmem:[%s2437_s7 + $0x8] sm:$0xff]   ;;  %v2028_v3 = vld [vmem:[%s2437_s7 + $0x10] sm:$0xff]   ;;  %p1843_p11 = scmp.ne.s32.totalorder %s2224_s14, 48 }
  0x6a   : > { %1889 = vmatprep.subr.bf16.mxu0 %v2026_v1  ;;  %1969 = vmatprep.subr.bf16.mxu1 %v2026_v1  ;;  %v2029_v4 = vld [vmem:[%s2437_s7 + $0x18] sm:$0xff]   ;;  %v2034_v5 = vld [vmem:[%s2439_s8] sm:$0xff]   ;;  %v2031_v8 = vld [vmem:[%s2437_s7 + $0x28] sm:$0xff]  }
  0x6b   : > { %1890 = vmatpush3.bf16.msra.mxu0 %v2026_v1  ;;  %1977 = vmatpush3.bf16.msra.mxu1 %v2026_v1  ;;  %v2035_v6 = vld [vmem:[%s2439_s8 + $0x80] sm:$0xff]   ;;  %v2032_v9 = vld [vmem:[%s2437_s7 + $0x30] sm:$0xff]   ;;  %v2033_v10 = vld [vmem:[%s2437_s7 + $0x38] sm:$0xff]  }
  0x6c   : > { %1891 = vmatprep.subr.bf16.mxu0 %v2027_v2  ;;  %1970 = vmatprep.subr.bf16.mxu1 %v2027_v2  ;;  %v2030_v7 = vld [vmem:[%s2437_s7 + $0x20] sm:$0xff]   ;;  %v2036_v11 = vld [vmem:[%s2439_s8 + $0x8] sm:$0xff]   ;;  %v2038_v13 = vld [vmem:[%s2439_s8 + $0x10] sm:$0xff]  }
  0x6d   : > { %1905 = vmatprep.mubr.bf16.mxu0 %v2034_v5  ;;  %1937 = vmatprep.mubr.bf16.mxu1 %v2035_v6  ;;  %v2037_v12 = vld [vmem:[%s2439_s8 + $0x88] sm:$0xff]   ;;  %v2039_v14 = vld [vmem:[%s2439_s8 + $0x90] sm:$0xff]   ;;  %v2040_v15 = vld [vmem:[%s2439_s8 + $0x18] sm:$0xff]  }
  0x6e   : > { %v2041_v16 = vld [vmem:[%s2439_s8 + $0x98] sm:$0xff]   ;;  %v2042_v17 = vld [vmem:[%s2439_s8 + $0x20] sm:$0xff]   ;;  %v2044_v19 = vld [vmem:[%s2439_s8 + $0x28] sm:$0xff]  }
  0x6f   : > { %1892 = vmatpush3.bf16.msra.mxu0 %v2027_v2  ;;  %1978 = vmatpush3.bf16.msra.mxu1 %v2027_v2  ;;  %v2043_v18 = vld [vmem:[%s2439_s8 + $0xa0] sm:$0xff]   ;;  %v2045_v20 = vld [vmem:[%s2439_s8 + $0xa8] sm:$0xff]   ;;  %v2046_v21 = vld [vmem:[%s2439_s8 + $0x30] sm:$0xff]  }
  0x70   : > { %1893 = vmatprep.subr.bf16.mxu0 %v2028_v3  ;;  %1971 = vmatprep.subr.bf16.mxu1 %v2028_v3  ;;  %v2047_v22 = vld [vmem:[%s2439_s8 + $0xb0] sm:$0xff]   ;;  %v2048_v23 = vld [vmem:[%s2439_s8 + $0x38] sm:$0xff]   ;;  %v2050_v25 = vld [vmem:[%s2439_s8 + $0x40] sm:$0xff]  }
  0x71   : > { %v2049_v24 = vld [vmem:[%s2439_s8 + $0xb8] sm:$0xff]   ;;  %v2051_v26 = vld [vmem:[%s2439_s8 + $0xc0] sm:$0xff]   ;;  %v2052_v27 = vld [vmem:[%s2439_s8 + $0x48] sm:$0xff]  }
  0x72   : > { %v2053_v28 = vld [vmem:[%s2439_s8 + $0xc8] sm:$0xff]   ;;  %v2054_v29 = vld [vmem:[%s2439_s8 + $0x50] sm:$0xff]   ;;  %v2056_v31 = vld [vmem:[%s2439_s8 + $0x58] sm:$0xff]  }
  0x73   : > { %1894 = vmatpush3.bf16.msra.mxu0 %v2028_v3  ;;  %1979 = vmatpush3.bf16.msra.mxu1 %v2028_v3  ;;  %v2055_v30 = vld [vmem:[%s2439_s8 + $0xd0] sm:$0xff]   ;;  %v2057_v32 = vld [vmem:[%s2439_s8 + $0xd8] sm:$0xff]   ;;  %v2058_v33 = vld [vmem:[%s2439_s8 + $0x60] sm:$0xff]  }
  0x74   : > { %1895 = vmatprep.subr.bf16.mxu0 %v2029_v4  ;;  %1972 = vmatprep.subr.bf16.mxu1 %v2029_v4  ;;  %v2059_v34 = vld [vmem:[%s2439_s8 + $0xe0] sm:$0xff]   ;;  %v2060_v35 = vld [vmem:[%s2439_s8 + $0x68] sm:$0xff]   ;;  %v2062_v37 = vld [vmem:[%s2439_s8 + $0x70] sm:$0xff]  }
  0x75   : > { %v2061_v36 = vld [vmem:[%s2439_s8 + $0xe8] sm:$0xff]   ;;  %v2063_v38 = vld [vmem:[%s2439_s8 + $0xf0] sm:$0xff]   ;;  %v2064_v39 = vld [vmem:[%s2439_s8 + $0x78] sm:$0xff]  }
  0x76   : > { %v2065_v40 = vld [vmem:[%s2439_s8 + $0xf8] sm:$0xff]   ;;  %v616_v41 = vld [vmem:[#allocation2 + $0x10] sm:$0xff]  ;;  %v614_v43 = vld [vmem:[#allocation2] sm:$0xff] }
  0x77   : > { %1896 = vmatpush3.bf16.msra.mxu0 %v2029_v4  ;;  %1980 = vmatpush3.bf16.msra.mxu1 %v2029_v4  ;;  %v648_v42 = vld [vmem:[#allocation2 + $0x110] sm:$0xff]  ;;  %v646_v44 = vld [vmem:[#allocation2 + $0x100] sm:$0xff]  ;;  %v617_v47 = vld [vmem:[#allocation2 + $0x18] sm:$0xff] }
  0x78   : > { %1897 = vmatprep.subr.bf16.mxu0 %v2030_v7  ;;  %1973 = vmatprep.subr.bf16.mxu1 %v2030_v7  ;;  %v649_v48 = vld [vmem:[#allocation2 + $0x118] sm:$0xff]  ;;  %v615_v53 = vld [vmem:[#allocation2 + $0x8] sm:$0xff]  ;;  %v620_v1 = vld [vmem:[#allocation2 + $0x30] sm:$0xff] }
  0x79   : > { %v647_v54 = vld [vmem:[#allocation2 + $0x108] sm:$0xff]  ;;  %v652_v2 = vld [vmem:[#allocation2 + $0x130] sm:$0xff]  ;;  %v618_v3 = vld [vmem:[#allocation2 + $0x20] sm:$0xff] }
  0x7a   : > { %v650_v4 = vld [vmem:[#allocation2 + $0x120] sm:$0xff] }
  0x7b   : > { %1898 = vmatpush3.bf16.msra.mxu0 %v2030_v7  ;;  %1981 = vmatpush3.bf16.msra.mxu1 %v2030_v7  ;;  %v621_v7 = vld [vmem:[#allocation2 + $0x38] sm:$0xff] }
  0x7c   : > { %1899 = vmatprep.subr.bf16.mxu0 %v2031_v8  ;;  %1974 = vmatprep.subr.bf16.mxu1 %v2031_v8 }
  0x7f   : > { %1900 = vmatpush3.bf16.msra.mxu0 %v2031_v8  ;;  %1982 = vmatpush3.bf16.msra.mxu1 %v2031_v8  ;;  %v653_v8 = vld [vmem:[#allocation2 + $0x138] sm:$0xff] }
  0x80   : > { %1901 = vmatprep.subr.bf16.mxu0 %v2032_v9  ;;  %1975 = vmatprep.subr.bf16.mxu1 %v2032_v9 }
  0x83   : > { %1902 = vmatpush3.bf16.msra.mxu0 %v2032_v9  ;;  %1983 = vmatpush3.bf16.msra.mxu1 %v2032_v9 }
  0x84   : > { %1903 = vmatprep.subr.bf16.mxu0 %v2033_v10  ;;  %1976 = vmatprep.subr.bf16.mxu1 %v2033_v10 }
  0x87   : > { %1904 = vmatpush3.bf16.msra.mxu0 %v2033_v10  ;;  %1984 = vmatpush3.bf16.msra.mxu1 %v2033_v10 }
  0x8a   : > { %1906 = vmatmul.mubr.bf16.vlgmr.msra.gmra.mrb[0].mxu0 %v2036_v11  ;;  %1938 = vmatmul.mubr.bf16.vlgmr.msra.gmra.mrb[0].mxu1 %v2037_v12 }
  0x8b   : > { %1909 = vmatprep.mubr.bf16.mxu0 %v2038_v13  ;;  %1941 = vmatprep.mubr.bf16.mxu1 %v2039_v14  ;;  %v619_v13 = vld [vmem:[#allocation2 + $0x28] sm:$0xff] }
  0x8c   : > { %v651_v14 = vld [vmem:[#allocation2 + $0x128] sm:$0xff] }
  0x92   : > { %1910 = vmatmul.mubr.bf16.gmra.mrb[4].mxu0 %v2040_v15  ;;  %1942 = vmatmul.mubr.bf16.gmra.mrb[4].mxu1 %v2041_v16 }
  0x93   : > { %1913 = vmatprep.mubr.bf16.mxu0 %v2042_v17  ;;  %1945 = vmatprep.mubr.bf16.mxu1 %v2043_v18 }
  0x9a   : > { %1914 = vmatmul.mubr.bf16.gmra.mrb[8].mxu0 %v2044_v19  ;;  %1946 = vmatmul.mubr.bf16.gmra.mrb[8].mxu1 %v2045_v20 }
  0x9b   : > { %1917 = vmatprep.mubr.bf16.mxu0 %v2046_v21  ;;  %1949 = vmatprep.mubr.bf16.mxu1 %v2047_v22 }
  0xa2   : > { %1918 = vmatmul.mubr.bf16.gmra.mrb[12].mxu0 %v2048_v23  ;;  %1950 = vmatmul.mubr.bf16.gmra.mrb[12].mxu1 %v2049_v24 }
  0xa3   : > { %1921 = vmatprep.mubr.bf16.mxu0 %v2050_v25  ;;  %1953 = vmatprep.mubr.bf16.mxu1 %v2051_v26  ;;  %v624_v25 = vld [vmem:[#allocation2 + $0x50] sm:$0xff] }
  0xa4   : > { %v656_v26 = vld [vmem:[#allocation2 + $0x150] sm:$0xff] }
  0xaa   : > { %1922 = vmatmul.mubr.bf16.gmra.mrb[16].mxu0 %v2052_v27  ;;  %1954 = vmatmul.mubr.bf16.gmra.mrb[16].mxu1 %v2053_v28  ;;  %v622_v27 = vld [vmem:[#allocation2 + $0x40] sm:$0xff] }
  0xab   : > { %1925 = vmatprep.mubr.bf16.mxu0 %v2054_v29  ;;  %1957 = vmatprep.mubr.bf16.mxu1 %v2055_v30  ;;  %v654_v28 = vld [vmem:[#allocation2 + $0x140] sm:$0xff] }
  0xb2   : > { %1926 = vmatmul.mubr.bf16.gmra.mrb[20].mxu0 %v2056_v31  ;;  %1958 = vmatmul.mubr.bf16.gmra.mrb[20].mxu1 %v2057_v32  ;;  %v625_v31 = vld [vmem:[#allocation2 + $0x58] sm:$0xff] }
  0xb3   : > { %1929 = vmatprep.mubr.bf16.mxu0 %v2058_v33  ;;  %1961 = vmatprep.mubr.bf16.mxu1 %v2059_v34  ;;  %v657_v32 = vld [vmem:[#allocation2 + $0x158] sm:$0xff] }
  0xba   : > { %1930 = vmatmul.mubr.bf16.gmra.mrb[24].mxu0 %v2060_v35  ;;  %1962 = vmatmul.mubr.bf16.gmra.mrb[24].mxu1 %v2061_v36 }
  0xbb   : > { %1933 = vmatprep.mubr.bf16.mxu0 %v2062_v37  ;;  %1965 = vmatprep.mubr.bf16.mxu1 %v2063_v38  ;;  %v623_v37 = vld [vmem:[#allocation2 + $0x48] sm:$0xff] }
  0xbc   : > { %v655_v38 = vld [vmem:[#allocation2 + $0x148] sm:$0xff] }
  0xc2   : > { %1934 = vmatmul.mubr.bf16.gmra.mrb[28].mxu0 %v2064_v39  ;;  %1966 = vmatmul.mubr.bf16.gmra.mrb[28].mxu1 %v2065_v40 }
 0x15d   : > { %v1907_v45 = vpop.f32.mrb[0].mxu0  ;;  %v1939_v46 = vpop.f32.mrb[0].mxu1 }
 0x15e   : > { %v1289_v49 = vadd.f32 %v1907_v45, %v616_v41  ;;  %v1321_v50 = vadd.f32 %v1939_v46, %v648_v42  ;;  %v1032_v51 = vpop.f32.mrb[1].mxu0  ;;  %v1160_v52 = vpop.f32.mrb[1].mxu1 }
 0x15f   : > { %v1287_v55 = vadd.f32 %v1032_v51, %v614_v43  ;;  %v1319_v56 = vadd.f32 %v1160_v52, %v646_v44  ;;  %v1908_v57 = vpop.f32.mrb[2].mxu0  ;;  %v1940_v58 = vpop.f32.mrb[2].mxu1  ;;  %v626_v51 = vld [vmem:[#allocation2 + $0x60] sm:$0xff] }
 0x160   : > { %1353 = vst [vmem:[#allocation2 + $0x10] sm:$0xff] %v1289_v49  ;;  %1385 = vst [vmem:[#allocation2 + $0x110] sm:$0xff] %v1321_v50  ;;  %v1290_v59 = vadd.f32 %v1908_v57, %v617_v47  ;;  %v1322_v60 = vadd.f32 %v1940_v58, %v649_v48  ;;  %v1035_v61 = vpop.f32.mrb[3].mxu0  ;;  %v1163_v62 = vpop.f32.mrb[3].mxu1  ;;  %v628_v49 = vld [vmem:[#allocation2 + $0x70] sm:$0xff]  ;;  %v658_v52 = vld [vmem:[#allocation2 + $0x160] sm:$0xff] }
 0x161   : > { %1351 = vst [vmem:[#allocation2] sm:$0xff] %v1287_v55  ;;  %1383 = vst [vmem:[#allocation2 + $0x100] sm:$0xff] %v1319_v56  ;;  %v1288_v63 = vadd.f32 %v1035_v61, %v615_v53  ;;  %v1320_v0 = vadd.f32 %v1163_v62, %v647_v54  ;;  %v660_v50 = vld [vmem:[#allocation2 + $0x170] sm:$0xff]  ;;  %v629_v55 = vld [vmem:[#allocation2 + $0x78] sm:$0xff] }
 0x162   : > { %1354 = vst [vmem:[#allocation2 + $0x18] sm:$0xff] %v1290_v59  ;;  %1386 = vst [vmem:[#allocation2 + $0x118] sm:$0xff] %v1322_v60  ;;  %v661_v56 = vld [vmem:[#allocation2 + $0x178] sm:$0xff]  ;;  %v627_v61 = vld [vmem:[#allocation2 + $0x68] sm:$0xff] }
 0x163   : > { %1352 = vst [vmem:[#allocation2 + $0x8] sm:$0xff] %v1288_v63  ;;  %1384 = vst [vmem:[#allocation2 + $0x108] sm:$0xff] %v1320_v0  ;;  %v659_v62 = vld [vmem:[#allocation2 + $0x168] sm:$0xff] }
 0x165   : > { %v1911_v5 = vpop.f32.mrb[4].mxu0  ;;  %v1943_v6 = vpop.f32.mrb[4].mxu1 }
 0x166   : > { %v1293_v9 = vadd.f32 %v1911_v5, %v620_v1  ;;  %v1325_v10 = vadd.f32 %v1943_v6, %v652_v2  ;;  %v1048_v11 = vpop.f32.mrb[5].mxu0  ;;  %v1176_v12 = vpop.f32.mrb[5].mxu1 }
 0x167   : > { %v1291_v15 = vadd.f32 %v1048_v11, %v618_v3  ;;  %v1323_v16 = vadd.f32 %v1176_v12, %v650_v4  ;;  %v1912_v17 = vpop.f32.mrb[6].mxu0  ;;  %v1944_v18 = vpop.f32.mrb[6].mxu1  ;;  %v630_v11 = vld [vmem:[#allocation2 + $0x80] sm:$0xff] }
 0x168   : > { %1357 = vst [vmem:[#allocation2 + $0x30] sm:$0xff] %v1293_v9  ;;  %1389 = vst [vmem:[#allocation2 + $0x130] sm:$0xff] %v1325_v10  ;;  %v1294_v19 = vadd.f32 %v1912_v17, %v621_v7  ;;  %v1326_v20 = vadd.f32 %v1944_v18, %v653_v8  ;;  %v1051_v21 = vpop.f32.mrb[7].mxu0  ;;  %v1179_v22 = vpop.f32.mrb[7].mxu1  ;;  %v632_v9 = vld [vmem:[#allocation2 + $0x90] sm:$0xff]  ;;  %v662_v12 = vld [vmem:[#allocation2 + $0x180] sm:$0xff] }
 0x169   : > { %1355 = vst [vmem:[#allocation2 + $0x20] sm:$0xff] %v1291_v15  ;;  %1387 = vst [vmem:[#allocation2 + $0x120] sm:$0xff] %v1323_v16  ;;  %v1292_v23 = vadd.f32 %v1051_v21, %v619_v13  ;;  %v1324_v24 = vadd.f32 %v1179_v22, %v651_v14  ;;  %v664_v10 = vld [vmem:[#allocation2 + $0x190] sm:$0xff]  ;;  %v633_v15 = vld [vmem:[#allocation2 + $0x98] sm:$0xff] }
 0x16a   : > { %1358 = vst [vmem:[#allocation2 + $0x38] sm:$0xff] %v1294_v19  ;;  %1390 = vst [vmem:[#allocation2 + $0x138] sm:$0xff] %v1326_v20  ;;  %v665_v16 = vld [vmem:[#allocation2 + $0x198] sm:$0xff]  ;;  %v631_v21 = vld [vmem:[#allocation2 + $0x88] sm:$0xff] }
 0x16b   : > { %1356 = vst [vmem:[#allocation2 + $0x28] sm:$0xff] %v1292_v23  ;;  %1388 = vst [vmem:[#allocation2 + $0x128] sm:$0xff] %v1324_v24  ;;  %v663_v22 = vld [vmem:[#allocation2 + $0x188] sm:$0xff] }
 0x16d   : > { %v1915_v29 = vpop.f32.mrb[8].mxu0  ;;  %v1947_v30 = vpop.f32.mrb[8].mxu1 }
 0x16e   : > { %v1297_v33 = vadd.f32 %v1915_v29, %v624_v25  ;;  %v1329_v34 = vadd.f32 %v1947_v30, %v656_v26  ;;  %v1064_v35 = vpop.f32.mrb[9].mxu0  ;;  %v1192_v36 = vpop.f32.mrb[9].mxu1 }
 0x16f   : > { %v1295_v39 = vadd.f32 %v1064_v35, %v622_v27  ;;  %v1327_v40 = vadd.f32 %v1192_v36, %v654_v28  ;;  %v1916_v41 = vpop.f32.mrb[10].mxu0  ;;  %v1948_v42 = vpop.f32.mrb[10].mxu1  ;;  %v634_v35 = vld [vmem:[#allocation2 + $0xa0] sm:$0xff] }
 0x170   : > { %1361 = vst [vmem:[#allocation2 + $0x50] sm:$0xff] %v1297_v33  ;;  %1393 = vst [vmem:[#allocation2 + $0x150] sm:$0xff] %v1329_v34  ;;  %v1298_v43 = vadd.f32 %v1916_v41, %v625_v31  ;;  %v1330_v44 = vadd.f32 %v1948_v42, %v657_v32  ;;  %v1067_v45 = vpop.f32.mrb[11].mxu0  ;;  %v1195_v46 = vpop.f32.mrb[11].mxu1  ;;  %v636_v33 = vld [vmem:[#allocation2 + $0xb0] sm:$0xff]  ;;  %v666_v36 = vld [vmem:[#allocation2 + $0x1a0] sm:$0xff] }
 0x171   : > { %1359 = vst [vmem:[#allocation2 + $0x40] sm:$0xff] %v1295_v39  ;;  %1391 = vst [vmem:[#allocation2 + $0x140] sm:$0xff] %v1327_v40  ;;  %v1296_v47 = vadd.f32 %v1067_v45, %v623_v37  ;;  %v1328_v48 = vadd.f32 %v1195_v46, %v655_v38  ;;  %v668_v34 = vld [vmem:[#allocation2 + $0x1b0] sm:$0xff]  ;;  %v637_v39 = vld [vmem:[#allocation2 + $0xb8] sm:$0xff] }
 0x172   : > { %1362 = vst [vmem:[#allocation2 + $0x58] sm:$0xff] %v1298_v43  ;;  %1394 = vst [vmem:[#allocation2 + $0x158] sm:$0xff] %v1330_v44  ;;  %v669_v40 = vld [vmem:[#allocation2 + $0x1b8] sm:$0xff]  ;;  %v635_v45 = vld [vmem:[#allocation2 + $0xa8] sm:$0xff] }
 0x173   : > { %1360 = vst [vmem:[#allocation2 + $0x48] sm:$0xff] %v1296_v47  ;;  %1392 = vst [vmem:[#allocation2 + $0x148] sm:$0xff] %v1328_v48  ;;  %v667_v46 = vld [vmem:[#allocation2 + $0x1a8] sm:$0xff] }
 0x175   : > { %v1919_v53 = vpop.f32.mrb[12].mxu0  ;;  %v1951_v54 = vpop.f32.mrb[12].mxu1 }
 0x176   : > { %v1301_v57 = vadd.f32 %v1919_v53, %v628_v49  ;;  %v1333_v58 = vadd.f32 %v1951_v54, %v660_v50  ;;  %v1080_v59 = vpop.f32.mrb[13].mxu0  ;;  %v1208_v60 = vpop.f32.mrb[13].mxu1 }
 0x177   : > { %v1299_v63 = vadd.f32 %v1080_v59, %v626_v51  ;;  %v1331_v0 = vadd.f32 %v1208_v60, %v658_v52  ;;  %v1920_v1 = vpop.f32.mrb[14].mxu0  ;;  %v1952_v2 = vpop.f32.mrb[14].mxu1  ;;  %v638_v59 = vld [vmem:[#allocation2 + $0xc0] sm:$0xff] }
 0x178   : > { %1365 = vst [vmem:[#allocation2 + $0x70] sm:$0xff] %v1301_v57  ;;  %1397 = vst [vmem:[#allocation2 + $0x170] sm:$0xff] %v1333_v58  ;;  %v1302_v3 = vadd.f32 %v1920_v1, %v629_v55  ;;  %v1334_v4 = vadd.f32 %v1952_v2, %v661_v56  ;;  %v1083_v5 = vpop.f32.mrb[15].mxu0  ;;  %v1211_v6 = vpop.f32.mrb[15].mxu1  ;;  %v640_v57 = vld [vmem:[#allocation2 + $0xd0] sm:$0xff]  ;;  %v670_v60 = vld [vmem:[#allocation2 + $0x1c0] sm:$0xff] }
 0x179   : > { %1363 = vst [vmem:[#allocation2 + $0x60] sm:$0xff] %v1299_v63  ;;  %1395 = vst [vmem:[#allocation2 + $0x160] sm:$0xff] %v1331_v0  ;;  %v1300_v7 = vadd.f32 %v1083_v5, %v627_v61  ;;  %v1332_v8 = vadd.f32 %v1211_v6, %v659_v62  ;;  %v672_v58 = vld [vmem:[#allocation2 + $0x1d0] sm:$0xff]  ;;  %v641_v63 = vld [vmem:[#allocation2 + $0xd8] sm:$0xff] }
 0x17a   : > { %1366 = vst [vmem:[#allocation2 + $0x78] sm:$0xff] %v1302_v3  ;;  %1398 = vst [vmem:[#allocation2 + $0x178] sm:$0xff] %v1334_v4  ;;  %v673_v0 = vld [vmem:[#allocation2 + $0x1d8] sm:$0xff]  ;;  %v639_v5 = vld [vmem:[#allocation2 + $0xc8] sm:$0xff] }
 0x17b   : > { %1364 = vst [vmem:[#allocation2 + $0x68] sm:$0xff] %v1300_v7  ;;  %1396 = vst [vmem:[#allocation2 + $0x168] sm:$0xff] %v1332_v8  ;;  %v671_v6 = vld [vmem:[#allocation2 + $0x1c8] sm:$0xff] }
 0x17d   : > { %v1923_v13 = vpop.f32.mrb[16].mxu0  ;;  %v1955_v14 = vpop.f32.mrb[16].mxu1 }
 0x17e   : > { %v1305_v17 = vadd.f32 %v1923_v13, %v632_v9  ;;  %v1337_v18 = vadd.f32 %v1955_v14, %v664_v10  ;;  %v1096_v19 = vpop.f32.mrb[17].mxu0  ;;  %v1224_v20 = vpop.f32.mrb[17].mxu1 }
 0x17f   : > { %v1303_v23 = vadd.f32 %v1096_v19, %v630_v11  ;;  %v1335_v24 = vadd.f32 %v1224_v20, %v662_v12  ;;  %v1924_v25 = vpop.f32.mrb[18].mxu0  ;;  %v1956_v26 = vpop.f32.mrb[18].mxu1  ;;  %v642_v19 = vld [vmem:[#allocation2 + $0xe0] sm:$0xff] }
 0x180   : > { %1369 = vst [vmem:[#allocation2 + $0x90] sm:$0xff] %v1305_v17  ;;  %1401 = vst [vmem:[#allocation2 + $0x190] sm:$0xff] %v1337_v18  ;;  %v1306_v27 = vadd.f32 %v1924_v25, %v633_v15  ;;  %v1338_v28 = vadd.f32 %v1956_v26, %v665_v16  ;;  %v1099_v29 = vpop.f32.mrb[19].mxu0  ;;  %v1227_v30 = vpop.f32.mrb[19].mxu1  ;;  %v644_v17 = vld [vmem:[#allocation2 + $0xf0] sm:$0xff]  ;;  %v674_v20 = vld [vmem:[#allocation2 + $0x1e0] sm:$0xff] }
 0x181   : > { %1367 = vst [vmem:[#allocation2 + $0x80] sm:$0xff] %v1303_v23  ;;  %1399 = vst [vmem:[#allocation2 + $0x180] sm:$0xff] %v1335_v24  ;;  %v1304_v31 = vadd.f32 %v1099_v29, %v631_v21  ;;  %v1336_v32 = vadd.f32 %v1227_v30, %v663_v22  ;;  %v676_v18 = vld [vmem:[#allocation2 + $0x1f0] sm:$0xff]  ;;  %v645_v23 = vld [vmem:[#allocation2 + $0xf8] sm:$0xff] }
 0x182   : > { %1370 = vst [vmem:[#allocation2 + $0x98] sm:$0xff] %v1306_v27  ;;  %1402 = vst [vmem:[#allocation2 + $0x198] sm:$0xff] %v1338_v28  ;;  %v677_v24 = vld [vmem:[#allocation2 + $0x1f8] sm:$0xff]  ;;  %v643_v29 = vld [vmem:[#allocation2 + $0xe8] sm:$0xff] }
 0x183   : > { %1368 = vst [vmem:[#allocation2 + $0x88] sm:$0xff] %v1304_v31  ;;  %1400 = vst [vmem:[#allocation2 + $0x188] sm:$0xff] %v1336_v32  ;;  %v675_v30 = vld [vmem:[#allocation2 + $0x1e8] sm:$0xff] }
 0x185   : > { %v1927_v37 = vpop.f32.mrb[20].mxu0  ;;  %v1959_v38 = vpop.f32.mrb[20].mxu1 }
 0x186   : > { %v1309_v41 = vadd.f32 %v1927_v37, %v636_v33  ;;  %v1341_v42 = vadd.f32 %v1959_v38, %v668_v34  ;;  %v1112_v43 = vpop.f32.mrb[21].mxu0  ;;  %v1240_v44 = vpop.f32.mrb[21].mxu1 }
 0x187   : > { %v1307_v47 = vadd.f32 %v1112_v43, %v634_v35  ;;  %v1339_v48 = vadd.f32 %v1240_v44, %v666_v36  ;;  %v1928_v49 = vpop.f32.mrb[22].mxu0  ;;  %v1960_v50 = vpop.f32.mrb[22].mxu1  ;;  %v1420_v43 = vld [vmem:[#allocation2 + $0x8] sm:$0xff] (!%p1843_p11) }
 0x188   : > { %1373 = vst [vmem:[#allocation2 + $0xb0] sm:$0xff] %v1309_v41  ;;  %1405 = vst [vmem:[#allocation2 + $0x1b0] sm:$0xff] %v1341_v42  ;;  %v1310_v51 = vadd.f32 %v1928_v49, %v637_v39  ;;  %v1342_v52 = vadd.f32 %v1960_v50, %v669_v40  ;;  %v1115_v53 = vpop.f32.mrb[23].mxu0  ;;  %v1243_v54 = vpop.f32.mrb[23].mxu1  ;;  %v1419_v41 = vld [vmem:[#allocation2] sm:$0xff] (!%p1843_p11) }
 0x189   : > { %1371 = vst [vmem:[#allocation2 + $0xa0] sm:$0xff] %v1307_v47  ;;  %1403 = vst [vmem:[#allocation2 + $0x1a0] sm:$0xff] %v1339_v48  ;;  %v1308_v55 = vadd.f32 %v1115_v53, %v635_v45  ;;  %v1340_v56 = vadd.f32 %v1243_v54, %v667_v46  ;;  %v2550_v42 = vld [vmem:[%s2825_s2] ss:$0 sm:$0xff] (!%p1843_p11)  ;;  %v1421_v46 = vld [vmem:[#allocation2 + $0x10] sm:$0xff] (!%p1843_p11) }
 0x18a   : > { %1374 = vst [vmem:[#allocation2 + $0xb8] sm:$0xff] %v1310_v51  ;;  %1406 = vst [vmem:[#allocation2 + $0x1b8] sm:$0xff] %v1342_v52  ;;  %v1490_v44 = vadd.f32 (!%p1843_p11), %v2550_v42, %v1419_v41  ;;  %v1491_v45 = vadd.f32 (!%p1843_p11), %v2550_v42, %v1420_v43  ;;  %v1422_v47 = vld [vmem:[#allocation2 + $0x18] sm:$0xff] (!%p1843_p11)  ;;  %v1423_v48 = vld [vmem:[#allocation2 + $0x20] sm:$0xff] (!%p1843_p11)  ;;  %v1492_v49 = vadd.f32 (!%p1843_p11), %v2550_v42, %v1421_v46 }
 0x18b   : > { %1372 = vst [vmem:[#allocation2 + $0xa8] sm:$0xff] %v1308_v55  ;;  %1404 = vst [vmem:[#allocation2 + $0x1a8] sm:$0xff] %v1340_v56  ;;  %v1493_v50 = vadd.f32 (!%p1843_p11), %v2550_v42, %v1422_v47  ;;  %v1424_v51 = vld [vmem:[#allocation2 + $0x28] sm:$0xff] (!%p1843_p11)  ;;  %v1425_v52 = vld [vmem:[#allocation2 + $0x30] sm:$0xff] (!%p1843_p11)  ;;  %v1494_v53 = vadd.f32 (!%p1843_p11), %v2550_v42, %v1423_v48 }
 0x18c   : > { %2066 = vtanh.f32 (!%p1843_p11), %v1490_v44  ;;  %v1426_v54 = vld [vmem:[#allocation2 + $0x38] sm:$0xff] (!%p1843_p11)  ;;  %v1495_v55 = vadd.f32 (!%p1843_p11), %v2550_v42, %v1424_v51  ;;  %v1427_v56 = vld [vmem:[#allocation2 + $0x40] sm:$0xff] (!%p1843_p11) }
 0x18d   : > { %v1931_v61 = vpop.f32.mrb[24].mxu0  ;;  %v1963_v62 = vpop.f32.mrb[24].mxu1  ;;  %2068 = vtanh.f32 (!%p1843_p11), %v1491_v45 }
 0x18e   : > { %v1313_v1 = vadd.f32 %v1931_v61, %v640_v57  ;;  %v1345_v2 = vadd.f32 %v1963_v62, %v672_v58  ;;  %v1128_v3 = vpop.f32.mrb[25].mxu0  ;;  %v1256_v4 = vpop.f32.mrb[25].mxu1  ;;  %2070 = vtanh.f32 (!%p1843_p11), %v1492_v49  ;;  %v1496_v57 = vadd.f32 (!%p1843_p11), %v2550_v42, %v1425_v52  ;;  %v1428_v58 = vld [vmem:[#allocation2 + $0x48] sm:$0xff] (!%p1843_p11)  ;;  %v1430_v62 = vld [vmem:[#allocation2 + $0x58] sm:$0xff] (!%p1843_p11) }
 0x18f   : > { %v1311_v7 = vadd.f32 %v1128_v3, %v638_v59  ;;  %v1343_v8 = vadd.f32 %v1256_v4, %v670_v60  ;;  %v1932_v9 = vpop.f32.mrb[26].mxu0  ;;  %v1964_v10 = vpop.f32.mrb[26].mxu1  ;;  %2072 = vtanh.f32 (!%p1843_p11), %v1493_v50  ;;  %v1497_v59 = vadd.f32 (!%p1843_p11), %v2550_v42, %v1426_v54  ;;  %v1429_v60 = vld [vmem:[#allocation2 + $0x50] sm:$0xff] (!%p1843_p11) }
 0x190   : > { %1377 = vst [vmem:[#allocation2 + $0xd0] sm:$0xff] %v1313_v1  ;;  %1409 = vst [vmem:[#allocation2 + $0x1d0] sm:$0xff] %v1345_v2  ;;  %v1314_v11 = vadd.f32 %v1932_v9, %v641_v63  ;;  %v1346_v12 = vadd.f32 %v1964_v10, %v673_v0  ;;  %v1131_v13 = vpop.f32.mrb[27].mxu0  ;;  %v1259_v14 = vpop.f32.mrb[27].mxu1  ;;  %2074 = vtanh.f32 (!%p1843_p11), %v1494_v53  ;;  %v1498_v61 = vadd.f32 (!%p1843_p11), %v2550_v42, %v1427_v56  ;;  %v1431_v0 = vld [vmem:[#allocation2 + $0x60] sm:$0xff] (!%p1843_p11)  ;;  %v1432_v2 = vld [vmem:[#allocation2 + $0x68] sm:$0xff] (!%p1843_p11) }
 0x191   : > { %1375 = vst [vmem:[#allocation2 + $0xc0] sm:$0xff] %v1311_v7  ;;  %1407 = vst [vmem:[#allocation2 + $0x1c0] sm:$0xff] %v1343_v8  ;;  %v1312_v15 = vadd.f32 %v1131_v13, %v639_v5  ;;  %v1344_v16 = vadd.f32 %v1259_v14, %v671_v6  ;;  %2076 = vtanh.f32 (!%p1843_p11), %v1495_v55  ;;  %v1499_v63 = vadd.f32 (!%p1843_p11), %v2550_v42, %v1428_v58  ;;  %v1433_v4 = vld [vmem:[#allocation2 + $0x70] sm:$0xff] (!%p1843_p11)  ;;  %v1434_v6 = vld [vmem:[#allocation2 + $0x78] sm:$0xff] (!%p1843_p11) }
 0x192   : > { %1378 = vst [vmem:[#allocation2 + $0xd8] sm:$0xff] %v1314_v11  ;;  %1410 = vst [vmem:[#allocation2 + $0x1d8] sm:$0xff] %v1346_v12  ;;  %2078 = vtanh.f32 (!%p1843_p11), %v1496_v57  ;;  %v1500_v1 = vadd.f32 (!%p1843_p11), %v2550_v42, %v1429_v60  ;;  %v1501_v3 = vadd.f32 (!%p1843_p11), %v2550_v42, %v1430_v62  ;;  %v1502_v5 = vadd.f32 (!%p1843_p11), %v2550_v42, %v1431_v0  ;;  %v1435_v8 = vld [vmem:[#allocation2 + $0x80] sm:$0xff] (!%p1843_p11)  ;;  %v1436_v11 = vld [vmem:[#allocation2 + $0x88] sm:$0xff] (!%p1843_p11) }
 0x193   : > { %1376 = vst [vmem:[#allocation2 + $0xc8] sm:$0xff] %v1312_v15  ;;  %1408 = vst [vmem:[#allocation2 + $0x1c8] sm:$0xff] %v1344_v16  ;;  %2080 = vtanh.f32 (!%p1843_p11), %v1497_v59  ;;  %v1503_v7 = vadd.f32 (!%p1843_p11), %v2550_v42, %v1432_v2  ;;  %v1504_v10 = vadd.f32 (!%p1843_p11), %v2550_v42, %v1433_v4  ;;  %v1505_v13 = vadd.f32 (!%p1843_p11), %v2550_v42, %v1434_v6  ;;  %v1437_v14 = vld [vmem:[#allocation2 + $0x90] sm:$0xff] (!%p1843_p11)  ;;  %v1451_v57 = vld [vmem:[#allocation2 + $0x100] sm:$0xff] (!%p1843_p11) }
 0x194   : > { %2082 = vtanh.f32 (!%p1843_p11), %v1498_v61  ;;  %v1506_v16 = vadd.f32 (!%p1843_p11), %v2550_v42, %v1435_v8  ;;  %v1452_v60 = vld [vmem:[#allocation2 + $0x108] sm:$0xff] (!%p1843_p11)  ;;  %v1454_v2 = vld [vmem:[#allocation2 + $0x118] sm:$0xff] (!%p1843_p11) }
 0x195   : > { %v1935_v21 = vpop.f32.mrb[28].mxu0  ;;  %v1967_v22 = vpop.f32.mrb[28].mxu1  ;;  %1418 = sbr.rel (%p1843_p11) target bundleno = 474 (0x1da), region = 81  ;;  %2084 = vtanh.f32 (!%p1843_p11), %v1499_v63  ;;  %v1453_v63 = vld [vmem:[#allocation2 + $0x110] sm:$0xff] (!%p1843_p11)  ;;  %v1523_v4 = vadd.f32 (!%p1843_p11), %v2550_v42, %v1452_v60  ;;  %v1456_v8 = vld [vmem:[#allocation2 + $0x128] sm:$0xff] (!%p1843_p11) }
 0x196   : > { %v1317_v25 = vadd.f32 %v1935_v21, %v644_v17  ;;  %v1349_v26 = vadd.f32 %v1967_v22, %v676_v18  ;;  %v1144_v27 = vpop.f32.mrb[29].mxu0  ;;  %v1272_v28 = vpop.f32.mrb[29].mxu1  ;;  %2086 = vtanh.f32 (!%p1843_p11), %v1500_v1  ;;  %v1438_v17 = vld [vmem:[#allocation2 + $0x98] sm:$0xff] (!%p1843_p11)  ;;  %v1508_v22 = vadd.f32 (!%p1843_p11), %v2550_v42, %v1437_v14  ;;  %v1473_v60 = vld [vmem:[#allocation2 + $0x1b0] sm:$0xff] (!%p1843_p11) }
 0x197   : > { %v1315_v31 = vadd.f32 %v1144_v27, %v642_v19  ;;  %v1347_v32 = vadd.f32 %v1272_v28, %v674_v20  ;;  %v1936_v33 = vpop.f32.mrb[30].mxu0  ;;  %v1968_v34 = vpop.f32.mrb[30].mxu1  ;;  %2088 = vtanh.f32 (!%p1843_p11), %v1501_v3  ;;  %v1507_v19 = vadd.f32 (!%p1843_p11), %v2550_v42, %v1436_v11  ;;  %v1439_v20 = vld [vmem:[#allocation2 + $0xa0] sm:$0xff] (!%p1843_p11)  ;;  %v1457_v11 = vld [vmem:[#allocation2 + $0x130] sm:$0xff] (!%p1843_p11)  ;;  %v1458_v14 = vld [vmem:[#allocation2 + $0x138] sm:$0xff] (!%p1843_p11) }
 0x198   : > { %1381 = vst [vmem:[#allocation2 + $0xf0] sm:$0xff] %v1317_v25  ;;  %1413 = vst [vmem:[#allocation2 + $0x1f0] sm:$0xff] %v1349_v26  ;;  %v1318_v35 = vadd.f32 %v1936_v33, %v645_v23  ;;  %v1350_v36 = vadd.f32 %v1968_v34, %v677_v24  ;;  %v1147_v37 = vpop.f32.mrb[31].mxu0  ;;  %v1275_v38 = vpop.f32.mrb[31].mxu1  ;;  %2090 = vtanh.f32 (!%p1843_p11), %v1502_v5  ;;  %v1440_v23 = vld [vmem:[#allocation2 + $0xa8] sm:$0xff] (!%p1843_p11)  ;;  %v1509_v25 = vadd.f32 (!%p1843_p11), %v2550_v42, %v1438_v17  ;;  %v1441_v26 = vld [vmem:[#allocation2 + $0xb0] sm:$0xff] (!%p1843_p11) }
 0x199   : > { %1379 = vst [vmem:[#allocation2 + $0xe0] sm:$0xff] %v1315_v31  ;;  %1411 = vst [vmem:[#allocation2 + $0x1e0] sm:$0xff] %v1347_v32  ;;  %v1316_v39 = vadd.f32 %v1147_v37, %v643_v29  ;;  %v1348_v40 = vadd.f32 %v1275_v38, %v675_v30  ;;  %v2067_v9 = vpop.eup (!%p1843_p11), %2066  ;;  %2092 = vtanh.f32 (!%p1843_p11), %v1503_v7  ;;  %v1510_v28 = vadd.f32 (!%p1843_p11), %v2550_v42, %v1439_v20  ;;  %v1442_v29 = vld [vmem:[#allocation2 + $0xb8] sm:$0xff] (!%p1843_p11)  ;;  %v1443_v32 = vld [vmem:[#allocation2 + $0xc0] sm:$0xff] (!%p1843_p11) }
 0x19a   : > { %1382 = vst [vmem:[#allocation2 + $0xf8] sm:$0xff] %v1318_v35  ;;  %1414 = vst [vmem:[#allocation2 + $0x1f8] sm:$0xff] %v1350_v36  ;;  %v2069_v12 = vpop.eup (!%p1843_p11), %2068  ;;  %2094 = vtanh.f32 (!%p1843_p11), %v1504_v10  ;;  %v1511_v31 = vadd.f32 (!%p1843_p11), %v2550_v42, %v1440_v23  ;;  %v1512_v34 = vadd.f32 (!%p1843_p11), %v2550_v42, %v1441_v26  ;;  %v1444_v35 = vld [vmem:[#allocation2 + $0xc8] sm:$0xff] (!%p1843_p11)  ;;  %v1513_v37 = vadd.f32 (!%p1843_p11), %v2550_v42, %v1442_v29  ;;  %v1445_v38 = vld [vmem:[#allocation2 + $0xd0] sm:$0xff] (!%p1843_p11) }
 0x19b   : > { %1380 = vst [vmem:[#allocation2 + $0xe8] sm:$0xff] %v1316_v39  ;;  %1412 = vst [vmem:[#allocation2 + $0x1e8] sm:$0xff] %v1348_v40  ;;  %v2071_v15 = vpop.eup (!%p1843_p11), %2070  ;;  %2096 = vtanh.f32 (!%p1843_p11), %v1505_v13  ;;  %v1514_v40 = vadd.f32 (!%p1843_p11), %v2550_v42, %v1443_v32  ;;  %v1446_v41 = vld [vmem:[#allocation2 + $0xd8] sm:$0xff] (!%p1843_p11)  ;;  %v1515_v44 = vadd.f32 (!%p1843_p11), %v2550_v42, %v1444_v35  ;;  %v1516_v47 = vadd.f32 (!%p1843_p11), %v2550_v42, %v1445_v38  ;;  %v1455_v5 = vld [vmem:[#allocation2 + $0x120] sm:$0xff] (!%p1843_p11) }
 0x19c   : > { %1618 = vst [vmem:[%s2826_s3] sm:$0xff] %v2067_v9  ;;  %1619 = vst [vmem:[%s2826_s3 + $0x8] sm:$0xff] %v2069_v12  ;;  %v2073_v18 = vpop.eup %2072  ;;  %2098 = vtanh.f32 %v1506_v16  ;;  %v1517_v50 = vadd.f32 %v2550_v42, %v1446_v41  ;;  %v1522_v1 = vadd.f32 %v2550_v42, %v1451_v57  ;;  %v1524_v7 = vadd.f32 %v2550_v42, %v1453_v63  ;;  %v1459_v17 = vld [vmem:[#allocation2 + $0x140] sm:$0xff]  ;;  %v1460_v20 = vld [vmem:[#allocation2 + $0x148] sm:$0xff] }
 0x19d   : > { %1620 = vst [vmem:[%s2826_s3 + $0x10] sm:$0xff] %v2071_v15  ;;  %v2075_v21 = vpop.eup %2074  ;;  %1621 = vst [vmem:[%s2826_s3 + $0x18] sm:$0xff] %v2073_v18  ;;  %2100 = vtanh.f32 %v1507_v19  ;;  %v1525_v10 = vadd.f32 %v2550_v42, %v1454_v2  ;;  %v1526_v13 = vadd.f32 %v2550_v42, %v1455_v5  ;;  %v1527_v16 = vadd.f32 %v2550_v42, %v1456_v8  ;;  %v1461_v23 = vld [vmem:[#allocation2 + $0x150] sm:$0xff]  ;;  %v1462_v26 = vld [vmem:[#allocation2 + $0x158] sm:$0xff] }
 0x19e   : > { %v2077_v24 = vpop.eup %2076  ;;  %1622 = vst [vmem:[%s2826_s3 + $0x20] sm:$0xff] %v2075_v21  ;;  %2102 = vtanh.f32 %v1508_v22  ;;  %v1528_v19 = vadd.f32 %v2550_v42, %v1457_v11  ;;  %v1529_v22 = vadd.f32 %v2550_v42, %v1458_v14  ;;  %v1463_v29 = vld [vmem:[#allocation2 + $0x160] sm:$0xff]  ;;  %v1464_v32 = vld [vmem:[#allocation2 + $0x168] sm:$0xff]  ;;  %v1465_v35 = vld [vmem:[#allocation2 + $0x170] sm:$0xff] }
 0x19f   : > { %v2079_v27 = vpop.eup %2078  ;;  %1623 = vst [vmem:[%s2826_s3 + $0x28] sm:$0xff] %v2077_v24  ;;  %2104 = vtanh.f32 %v1509_v25  ;;  %v1449_v51 = vld [vmem:[#allocation2 + $0xf0] sm:$0xff]  ;;  %v1530_v25 = vadd.f32 %v2550_v42, %v1459_v17  ;;  %v1466_v38 = vld [vmem:[#allocation2 + $0x178] sm:$0xff]  ;;  %v1467_v41 = vld [vmem:[#allocation2 + $0x180] sm:$0xff] }
 0x1a0   : > { %v2081_v30 = vpop.eup %2080  ;;  %1624 = vst [vmem:[%s2826_s3 + $0x30] sm:$0xff] %v2079_v27  ;;  %2106 = vtanh.f32 %v1510_v28  ;;  %v1447_v45 = vld [vmem:[#allocation2 + $0xe0] sm:$0xff]  ;;  %v1520_v59 = vadd.f32 %v2550_v42, %v1449_v51  ;;  %v1531_v28 = vadd.f32 %v2550_v42, %v1460_v20  ;;  %v1470_v51 = vld [vmem:[#allocation2 + $0x198] sm:$0xff]  ;;  %v1472_v57 = vld [vmem:[#allocation2 + $0x1a8] sm:$0xff] }
 0x1a1   : > { %v2083_v33 = vpop.eup %2082  ;;  %1625 = vst [vmem:[%s2826_s3 + $0x38] sm:$0xff] %v2081_v30  ;;  %2108 = vtanh.f32 %v1511_v31  ;;  %v1518_v53 = vadd.f32 %v2550_v42, %v1447_v45  ;;  %v1450_v54 = vld [vmem:[#allocation2 + $0xf8] sm:$0xff]  ;;  %v1532_v31 = vadd.f32 %v2550_v42, %v1461_v23  ;;  %v1468_v45 = vld [vmem:[#allocation2 + $0x188] sm:$0xff]  ;;  %v1475_v2 = vld [vmem:[#allocation2 + $0x1c0] sm:$0xff] }
 0x1a2   : > { %v2085_v36 = vpop.eup %2084  ;;  %1626 = vst [vmem:[%s2826_s3 + $0x40] sm:$0xff] %v2083_v33  ;;  %2110 = vtanh.f32 %v1512_v34  ;;  %v1448_v48 = vld [vmem:[#allocation2 + $0xe8] sm:$0xff]  ;;  %v1521_v62 = vadd.f32 %v2550_v42, %v1450_v54  ;;  %v1533_v34 = vadd.f32 %v2550_v42, %v1462_v26  ;;  %v1471_v54 = vld [vmem:[#allocation2 + $0x1a0] sm:$0xff]  ;;  %v1474_v63 = vld [vmem:[#allocation2 + $0x1b8] sm:$0xff] }
 0x1a3   : > { %v2087_v39 = vpop.eup %2086  ;;  %1627 = vst [vmem:[%s2826_s3 + $0x48] sm:$0xff] %v2085_v36  ;;  %2112 = vtanh.f32 %v1513_v37  ;;  %v1519_v56 = vadd.f32 %v2550_v42, %v1448_v48  ;;  %v1534_v37 = vadd.f32 %v2550_v42, %v1463_v29  ;;  %v1469_v48 = vld [vmem:[#allocation2 + $0x190] sm:$0xff]  ;;  %v1476_v5 = vld [vmem:[#allocation2 + $0x1c8] sm:$0xff]  ;;  %v1478_v11 = vld [vmem:[#allocation2 + $0x1d8] sm:$0xff] }
 0x1a4   : > { %v2089_v43 = vpop.eup %2088  ;;  %1628 = vst [vmem:[%s2826_s3 + $0x50] sm:$0xff] %v2087_v39  ;;  %2114 = vtanh.f32 %v1514_v40  ;;  %v1535_v40 = vadd.f32 %v2550_v42, %v1464_v32  ;;  %v1477_v8 = vld [vmem:[#allocation2 + $0x1d0] sm:$0xff]  ;;  %v1479_v14 = vld [vmem:[#allocation2 + $0x1e0] sm:$0xff]  ;;  %v1480_v17 = vld [vmem:[#allocation2 + $0x1e8] sm:$0xff] }
 0x1a5   : > { %v2091_v46 = vpop.eup %2090  ;;  %1629 = vst [vmem:[%s2826_s3 + $0x58] sm:$0xff] %v2089_v43  ;;  %2116 = vtanh.f32 %v1515_v44  ;;  %v1536_v44 = vadd.f32 %v2550_v42, %v1465_v35  ;;  %v1481_v20 = vld [vmem:[#allocation2 + $0x1f0] sm:$0xff]  ;;  %v1482_v23 = vld [vmem:[#allocation2 + $0x1f8] sm:$0xff] }
 0x1a6   : > { %v2093_v49 = vpop.eup %2092  ;;  %1630 = vst [vmem:[%s2826_s3 + $0x60] sm:$0xff] %v2091_v46  ;;  %2118 = vtanh.f32 %v1516_v47  ;;  %v1537_v47 = vadd.f32 %v2550_v42, %v1466_v38  ;;  %v1553_v29 = vadd.f32 %v2550_v42, %v1482_v23 }
 0x1a7   : > { %v2095_v52 = vpop.eup %2094  ;;  %1631 = vst [vmem:[%s2826_s3 + $0x68] sm:$0xff] %v2093_v49  ;;  %2120 = vtanh.f32 %v1517_v50  ;;  %v1538_v50 = vadd.f32 %v2550_v42, %v1467_v41 }
 0x1a8   : > { %v2097_v55 = vpop.eup %2096  ;;  %1632 = vst [vmem:[%s2826_s3 + $0x70] sm:$0xff] %v2095_v52  ;;  %2122 = vtanh.f32 %v1518_v53  ;;  %v1539_v53 = vadd.f32 %v2550_v42, %v1468_v45 }
 0x1a9   : > { %v2099_v58 = vpop.eup %2098  ;;  %1633 = vst [vmem:[%s2826_s3 + $0x78] sm:$0xff] %v2097_v55  ;;  %2124 = vtanh.f32 %v1519_v56  ;;  %v1540_v56 = vadd.f32 %v2550_v42, %v1469_v48 }
 0x1aa   : > { %v2101_v61 = vpop.eup %2100  ;;  %1634 = vst [vmem:[%s2826_s3 + $0x80] sm:$0xff] %v2099_v58  ;;  %2126 = vtanh.f32 %v1520_v59  ;;  %v1541_v59 = vadd.f32 %v2550_v42, %v1470_v51 }
 0x1ab   : > { %v2103_v0 = vpop.eup %2102  ;;  %1635 = vst [vmem:[%s2826_s3 + $0x88] sm:$0xff] %v2101_v61  ;;  %2128 = vtanh.f32 %v1521_v62  ;;  %v1542_v62 = vadd.f32 %v2550_v42, %v1471_v54 }
 0x1ac   : > { %v2105_v3 = vpop.eup %2104  ;;  %1636 = vst [vmem:[%s2826_s3 + $0x90] sm:$0xff] %v2103_v0  ;;  %2130 = vtanh.f32 %v1522_v1  ;;  %v1543_v1 = vadd.f32 %v2550_v42, %v1472_v57 }
 0x1ad   : > { %v2107_v6 = vpop.eup %2106  ;;  %1637 = vst [vmem:[%s2826_s3 + $0x98] sm:$0xff] %v2105_v3  ;;  %2132 = vtanh.f32 %v1523_v4  ;;  %v1544_v4 = vadd.f32 %v2550_v42, %v1473_v60 }
 0x1ae   : > { %v2109_v9 = vpop.eup %2108  ;;  %1638 = vst [vmem:[%s2826_s3 + $0xa0] sm:$0xff] %v2107_v6  ;;  %2134 = vtanh.f32 %v1524_v7  ;;  %v1545_v7 = vadd.f32 %v2550_v42, %v1474_v63 }
 0x1af   : > { %v2111_v12 = vpop.eup %2110  ;;  %1639 = vst [vmem:[%s2826_s3 + $0xa8] sm:$0xff] %v2109_v9  ;;  %2136 = vtanh.f32 %v1525_v10  ;;  %v1546_v10 = vadd.f32 %v2550_v42, %v1475_v2 }
 0x1b0   : > { %v2113_v15 = vpop.eup %2112  ;;  %1640 = vst [vmem:[%s2826_s3 + $0xb0] sm:$0xff] %v2111_v12  ;;  %2138 = vtanh.f32 %v1526_v13  ;;  %v1547_v13 = vadd.f32 %v2550_v42, %v1476_v5 }
 0x1b1   : > { %v2115_v18 = vpop.eup %2114  ;;  %1641 = vst [vmem:[%s2826_s3 + $0xb8] sm:$0xff] %v2113_v15  ;;  %2140 = vtanh.f32 %v1527_v16  ;;  %v1548_v16 = vadd.f32 %v2550_v42, %v1477_v8 }
 0x1b2   : > { %v2117_v21 = vpop.eup %2116  ;;  %1642 = vst [vmem:[%s2826_s3 + $0xc0] sm:$0xff] %v2115_v18  ;;  %2142 = vtanh.f32 %v1528_v19  ;;  %v1549_v19 = vadd.f32 %v2550_v42, %v1478_v11 }
 0x1b3   : > { %v2119_v24 = vpop.eup %2118  ;;  %1643 = vst [vmem:[%s2826_s3 + $0xc8] sm:$0xff] %v2117_v21  ;;  %2144 = vtanh.f32 %v1529_v22  ;;  %v1550_v22 = vadd.f32 %v2550_v42, %v1479_v14 }
 0x1b4   : > { %v2121_v27 = vpop.eup %2120  ;;  %1644 = vst [vmem:[%s2826_s3 + $0xd0] sm:$0xff] %v2119_v24  ;;  %2146 = vtanh.f32 %v1530_v25  ;;  %v1551_v25 = vadd.f32 %v2550_v42, %v1480_v17 }
 0x1b5   : > { %v2123_v30 = vpop.eup %2122  ;;  %1645 = vst [vmem:[%s2826_s3 + $0xd8] sm:$0xff] %v2121_v27  ;;  %2148 = vtanh.f32 %v1531_v28  ;;  %v1552_v27 = vadd.f32 %v2550_v42, %v1481_v20 }
 0x1b6   : > { %v2125_v33 = vpop.eup %2124  ;;  %1646 = vst [vmem:[%s2826_s3 + $0xe0] sm:$0xff] %v2123_v30  ;;  %2150 = vtanh.f32 %v1532_v31 }
 0x1b7   : > { %v2127_v36 = vpop.eup %2126  ;;  %1647 = vst [vmem:[%s2826_s3 + $0xe8] sm:$0xff] %v2125_v33  ;;  %2152 = vtanh.f32 %v1533_v34 }
 0x1b8   : > { %v2129_v39 = vpop.eup %2128  ;;  %1648 = vst [vmem:[%s2826_s3 + $0xf0] sm:$0xff] %v2127_v36  ;;  %2154 = vtanh.f32 %v1534_v37 }
 0x1b9   : > { %v2131_v43 = vpop.eup %2130  ;;  %1649 = vst [vmem:[%s2826_s3 + $0xf8] sm:$0xff] %v2129_v39  ;;  %2156 = vtanh.f32 %v1535_v40 }
 0x1ba   : > { %v2133_v46 = vpop.eup %2132  ;;  %1650 = vst [vmem:[%s2826_s3 + $0x100] sm:$0xff] %v2131_v43  ;;  %2158 = vtanh.f32 %v1536_v44 }
 0x1bb   : > { %v2135_v49 = vpop.eup %2134  ;;  %1651 = vst [vmem:[%s2826_s3 + $0x108] sm:$0xff] %v2133_v46  ;;  %2160 = vtanh.f32 %v1537_v47 }
 0x1bc   : > { %v2137_v52 = vpop.eup %2136  ;;  %1652 = vst [vmem:[%s2826_s3 + $0x110] sm:$0xff] %v2135_v49  ;;  %2162 = vtanh.f32 %v1538_v50 }
 0x1bd   : > { %v2139_v55 = vpop.eup %2138  ;;  %1653 = vst [vmem:[%s2826_s3 + $0x118] sm:$0xff] %v2137_v52  ;;  %2164 = vtanh.f32 %v1539_v53 }
 0x1be   : > { %v2141_v58 = vpop.eup %2140  ;;  %1654 = vst [vmem:[%s2826_s3 + $0x120] sm:$0xff] %v2139_v55  ;;  %2166 = vtanh.f32 %v1540_v56 }
 0x1bf   : > { %v2143_v61 = vpop.eup %2142  ;;  %1655 = vst [vmem:[%s2826_s3 + $0x128] sm:$0xff] %v2141_v58  ;;  %2168 = vtanh.f32 %v1541_v59 }
 0x1c0   : > { %v2145_v0 = vpop.eup %2144  ;;  %1656 = vst [vmem:[%s2826_s3 + $0x130] sm:$0xff] %v2143_v61  ;;  %2170 = vtanh.f32 %v1542_v62 }
 0x1c1   : > { %v2147_v3 = vpop.eup %2146  ;;  %1657 = vst [vmem:[%s2826_s3 + $0x138] sm:$0xff] %v2145_v0  ;;  %2172 = vtanh.f32 %v1543_v1 }
 0x1c2   : > { %v2149_v6 = vpop.eup %2148  ;;  %1658 = vst [vmem:[%s2826_s3 + $0x140] sm:$0xff] %v2147_v3  ;;  %2174 = vtanh.f32 %v1544_v4 }
 0x1c3   : > { %v2151_v9 = vpop.eup %2150  ;;  %1659 = vst [vmem:[%s2826_s3 + $0x148] sm:$0xff] %v2149_v6  ;;  %2176 = vtanh.f32 %v1545_v7 }
 0x1c4   : > { %v2153_v12 = vpop.eup %2152  ;;  %1660 = vst [vmem:[%s2826_s3 + $0x150] sm:$0xff] %v2151_v9  ;;  %2178 = vtanh.f32 %v1546_v10 }
 0x1c5   : > { %v2155_v15 = vpop.eup %2154  ;;  %1661 = vst [vmem:[%s2826_s3 + $0x158] sm:$0xff] %v2153_v12  ;;  %2180 = vtanh.f32 %v1547_v13 }
 0x1c6   : > { %v2157_v18 = vpop.eup %2156  ;;  %1662 = vst [vmem:[%s2826_s3 + $0x160] sm:$0xff] %v2155_v15  ;;  %2182 = vtanh.f32 %v1548_v16 }
 0x1c7   : > { %v2159_v21 = vpop.eup %2158  ;;  %1663 = vst [vmem:[%s2826_s3 + $0x168] sm:$0xff] %v2157_v18  ;;  %2184 = vtanh.f32 %v1549_v19 }
 0x1c8   : > { %v2161_v24 = vpop.eup %2160  ;;  %1664 = vst [vmem:[%s2826_s3 + $0x170] sm:$0xff] %v2159_v21  ;;  %2186 = vtanh.f32 %v1550_v22 }
 0x1c9   : > { %v2163_v26 = vpop.eup %2162  ;;  %1665 = vst [vmem:[%s2826_s3 + $0x178] sm:$0xff] %v2161_v24  ;;  %2188 = vtanh.f32 %v1551_v25 }
 0x1ca   : > { %v2165_v28 = vpop.eup %2164  ;;  %1666 = vst [vmem:[%s2826_s3 + $0x180] sm:$0xff] %v2163_v26  ;;  %2190 = vtanh.f32 %v1552_v27 }
 0x1cb   : > { %v2167_v30 = vpop.eup %2166  ;;  %1667 = vst [vmem:[%s2826_s3 + $0x188] sm:$0xff] %v2165_v28  ;;  %2192 = vtanh.f32 %v1553_v29 }
 0x1cc   : > { %v2169_v31 = vpop.eup %2168  ;;  %1668 = vst [vmem:[%s2826_s3 + $0x190] sm:$0xff] %v2167_v30 }
 0x1cd   : > { %v2171_v32 = vpop.eup %2170  ;;  %1669 = vst [vmem:[%s2826_s3 + $0x198] sm:$0xff] %v2169_v31 }
 0x1ce   : > { %v2173_v33 = vpop.eup %2172  ;;  %1670 = vst [vmem:[%s2826_s3 + $0x1a0] sm:$0xff] %v2171_v32 }
 0x1cf   : > { %v2175_v42 = vpop.eup %2174  ;;  %1671 = vst [vmem:[%s2826_s3 + $0x1a8] sm:$0xff] %v2173_v33 }
 0x1d0   : > { %v2177_v34 = vpop.eup %2176  ;;  %1672 = vst [vmem:[%s2826_s3 + $0x1b0] sm:$0xff] %v2175_v42 }
 0x1d1   : > { %v2179_v35 = vpop.eup %2178  ;;  %1673 = vst [vmem:[%s2826_s3 + $0x1b8] sm:$0xff] %v2177_v34 }
 0x1d2   : > { %v2181_v36 = vpop.eup %2180  ;;  %1674 = vst [vmem:[%s2826_s3 + $0x1c0] sm:$0xff] %v2179_v35 }
 0x1d3   : > { %v2183_v37 = vpop.eup %2182  ;;  %1675 = vst [vmem:[%s2826_s3 + $0x1c8] sm:$0xff] %v2181_v36 }
 0x1d4   : > { %v2185_v38 = vpop.eup %2184  ;;  %1676 = vst [vmem:[%s2826_s3 + $0x1d0] sm:$0xff] %v2183_v37 }
 0x1d5   : > { %v2187_v39 = vpop.eup %2186  ;;  %1677 = vst [vmem:[%s2826_s3 + $0x1d8] sm:$0xff] %v2185_v38 }
 0x1d6   : > { %v2189_v40 = vpop.eup %2188  ;;  %1678 = vst [vmem:[%s2826_s3 + $0x1e0] sm:$0xff] %v2187_v39 }
 0x1d7   : > { %v2191_v41 = vpop.eup %2190  ;;  %1679 = vst [vmem:[%s2826_s3 + $0x1e8] sm:$0xff] %v2189_v40 }
 0x1d8   : > { %v2193_v43 = vpop.eup %2192  ;;  %1680 = vst [vmem:[%s2826_s3 + $0x1f0] sm:$0xff] %v2191_v41 }
 0x1d9   : > { %1681 = vst [vmem:[%s2826_s3 + $0x1f8] sm:$0xff] %v2193_v43 }
 0x1da PF: > { %s13_s16 = sadd.s32 1, %s2232_s16   ;;  %s2827_s12 = smov %s2220_s13 }
 0x1db   : > { %p10_p12 = scmp.ge.s32.totalorder %s13_s16, 51   ;;  %s2828_s13 = smov %s2290_s20 }
 0x1dc   : > { %s2829_s14 = smov %s2228_s15  ;;  %s2830_s15 = smov %s2832_s17 }
 0x1dd   :  { %12 = sbr.rel (!%p10_p12) target bundleno = 3 (0x3), region = 122 }

</bundles_post_ra>
